<compile_context>
chip_gen: v6e
topology: v6e:2x2x1
jax: 0.10.0
libtpu: 0.0.40
codegen_flags: <defaults>
</compile_context>

<pallas_src>
import functools

import jax
import jax.numpy as jnp
from jax.experimental import pallas as pl
from jax.experimental.pallas import tpu as pltpu


_TAPS = tuple((di, dj) for di in range(3) for dj in range(3))


# --------------------------------------------------------------------------
# In-kernel helpers
# --------------------------------------------------------------------------
def _conv3x3_band_from_ref(src_ref, w_ref, b_ref, wp, start, m):
    """3x3 'same' conv on the interior band of a zero-padded, row-flattened
    (Hp*Wp, Cin) frame held in VMEM.  Nine shifted loads + nine small matmuls
    accumulated in f32 (im2col is formed implicitly, never materialized in HBM).
    Returns a (m, Cout) f32 band, bias already added."""
    acc = None
    for t, (di, dj) in enumerate(_TAPS):
        off = (di - 1) * wp + (dj - 1)
        v = src_ref[pl.ds(start + off, m), :]                   # (m, Cin)
        y = jnp.dot(v, w_ref[t], preferred_element_type=jnp.float32)
        acc = y if acc is None else acc + y
    return acc + b_ref[...]


# --------------------------------------------------------------------------
# Kernel A: stem conv + residual block A, fully fused (one image per grid step)
# --------------------------------------------------------------------------
def _block_a_kernel(xp_ref, ws_ref, bs_ref, wa1_ref, ba1_ref, wa2_ref, ba2_ref,
                    mask_ref, o_ref, h_frame, a_frame, *, wp, start, m):
    mask = mask_ref[...]                                        # (m, 1) interior mask

    # stem: 3x3 conv (BN scale pre-folded into weights) + bias + ReLU
    h_band = jnp.maximum(
        _conv3x3_band_from_ref(xp_ref, ws_ref, bs_ref, wp, start, m), 0.0)
    h_frame[...] = jnp.zeros_like(h_frame)
    h_frame[pl.ds(start, m), :] = h_band * mask                 # re-zero padding rows

    # a1: 3x3 conv + bias + ReLU
    a_band = jnp.maximum(
        _conv3x3_band_from_ref(h_frame, wa1_ref, ba1_ref, wp, start, m), 0.0)
    a_frame[...] = jnp.zeros_like(a_frame)
    a_frame[pl.ds(start, m), :] = a_band * mask

    # a2: 3x3 conv + bias + identity shortcut + ReLU
    h2_band = _conv3x3_band_from_ref(a_frame, wa2_ref, ba2_ref, wp, start, m)
    h2_band = jnp.maximum(h2_band + h_frame[pl.ds(start, m), :], 0.0)
    o_ref[...] = jnp.zeros_like(o_ref)                          # padded output frame
    o_ref[pl.ds(start, m), :] = h2_band * mask


def _block_a_call(xp_flat, params, mask, hp, wp):
    B, npix, cin = xp_flat.shape
    c1 = params["stem"]["cout"]
    m = mask.shape[0]
    start = wp + 1

    ws, bs = params["stem"]["w"], params["stem"]["b"]
    wa1, ba1 = params["a1"]["w"], params["a1"]["b"]
    wa2, ba2 = params["a2"]["w"], params["a2"]["b"]

    kern = functools.partial(_block_a_kernel, wp=wp, start=start, m=m)
    rep = lambda a: pl.BlockSpec(a.shape, lambda b: (0,) * a.ndim)
    per_b_in = pl.BlockSpec((None, npix, cin), lambda b: (b, 0, 0))

    flops = 2 * B * m * 9 * (cin * c1 + c1 * c1 + c1 * c1)
    bytes_accessed = 4 * (int(xp_flat.size) + int(ws.size) + int(bs.size)
                          + int(wa1.size) + int(ba1.size) + int(wa2.size)
                          + int(ba2.size) + int(mask.size) + B * npix * c1)

    return pl.pallas_call(
        kern,
        out_shape=jax.ShapeDtypeStruct((B, npix, c1), jnp.float32),
        grid=(B,),
        in_specs=[per_b_in, rep(ws), rep(bs), rep(wa1), rep(ba1),
                  rep(wa2), rep(ba2), rep(mask)],
        out_specs=pl.BlockSpec((None, npix, c1), lambda b: (b, 0, 0)),
        scratch_shapes=[pltpu.VMEM((npix, c1), jnp.float32),
                        pltpu.VMEM((npix, c1), jnp.float32)],
        compiler_params=pltpu.CompilerParams(dimension_semantics=("parallel",)),
        cost_estimate=pl.CostEstimate(flops=flops, transcendentals=0,
                                      bytes_accessed=bytes_accessed),
    )(xp_flat, ws, bs, wa1, ba1, wa2, ba2, mask)


# --------------------------------------------------------------------------
# Kernel B: stride-2 residual block B + fused global average pooling
# --------------------------------------------------------------------------
def _block_b_kernel(g00_ref, g01_ref, g10_ref, g11_ref,
                    wb1_ref, bb1_ref, wds_ref, bds_ref, wb2_ref, bb2_ref,
                    mask_ref, gap_ref, o_ref, b1_frame, *, wq, start, m):
    mask = mask_ref[...]

    # b1: 3x3 stride-2 conv expressed as 9 shifted matmuls over the four
    # parity-phase frames of the zero-padded block-A output.
    phase = {(0, 0): g00_ref, (0, 1): g01_ref, (1, 0): g10_ref, (1, 1): g11_ref}
    acc = None
    for t, (di, dj) in enumerate(_TAPS):
        ai, ri = di // 2, di % 2
        aj, rj = dj // 2, dj % 2
        rel = (ai - 1) * wq + (aj - 1)                          # in {-11,-10,-1,0}
        v = phase[(ri, rj)][pl.ds(start + rel, m), :]
        y = jnp.dot(v, wb1_ref[t], preferred_element_type=jnp.float32)
        acc = y if acc is None else acc + y
    b1_band = jnp.maximum(acc + bb1_ref[...], 0.0)
    b1_frame[...] = jnp.zeros_like(b1_frame)
    b1_frame[pl.ds(start, m), :] = b1_band * mask

    # b_ds: 1x1 stride-2 projection shortcut (no ReLU). Input pixel (2i, 2j) is
    # phase (1,1) at frame offset -(wq+1), i.e. rows [0, m) of the G11 frame.
    ds_band = jnp.dot(g11_ref[pl.ds(0, m), :], wds_ref[...],
                      preferred_element_type=jnp.float32) + bds_ref[...]

    # b2: 3x3 stride-1 conv + bias + shortcut + ReLU
    y_band = _conv3x3_band_from_ref(b1_frame, wb2_ref, bb2_ref, wq, start, m)
    y_band = jnp.maximum(y_band + ds_band, 0.0)

    # Fused global average pool: (1, m) @ (m, C2); gap_ref already carries the
    # 1/(H*W) weight on interior positions and 0 on padding positions.
    o_ref[...] = jnp.dot(gap_ref[...], y_band, preferred_element_type=jnp.float32)


def _block_b_call(phases, params, mask, gap, hq, wq):
    B, npix, c1 = phases[0].shape
    c2 = params["b2"]["cout"]
    m = mask.shape[0]
    start = wq + 1

    wb1, bb1 = params["b1"]["w"], params["b1"]["b"]
    wds, bds = params["b_ds"]["w"][0], params["b_ds"]["b"]      # (c1, c2), (1, c2)
    wb2, bb2 = params["b2"]["w"], params["b2"]["b"]

    kern = functools.partial(_block_b_kernel, wq=wq, start=start, m=m)
    rep = lambda a: pl.BlockSpec(a.shape, lambda b: (0,) * a.ndim)
    per_b_in = pl.BlockSpec((None, npix, c1), lambda b: (b, 0, 0))

    flops = 2 * B * m * (9 * c1 * c2 + c1 * c2 + 9 * c2 * c2 + c2)
    bytes_accessed = 4 * (4 * B * npix * c1 + int(wb1.size) + int(bb1.size)
                          + int(wds.size) + int(bds.size) + int(wb2.size)
                          + int(bb2.size) + int(mask.size) + int(gap.size)
                          + B * c2)

    return pl.pallas_call(
        kern,
        out_shape=jax.ShapeDtypeStruct((B, 1, c2), jnp.float32),
        grid=(B,),
        in_specs=[per_b_in, per_b_in, per_b_in, per_b_in,
                  rep(wb1), rep(bb1), rep(wds), rep(bds), rep(wb2), rep(bb2),
                  rep(mask), rep(gap)],
        out_specs=pl.BlockSpec((None, 1, c2), lambda b: (b, 0, 0)),
        scratch_shapes=[pltpu.VMEM((npix, c2), jnp.float32)],
        compiler_params=pltpu.CompilerParams(dimension_semantics=("parallel",)),
        cost_estimate=pl.CostEstimate(flops=flops, transcendentals=0,
                                      bytes_accessed=bytes_accessed),
    )(*phases, wb1, bb1, wds, bds, wb2, bb2, mask, gap)


# --------------------------------------------------------------------------
# Parameters (BN scale folded into conv weights once, at init)
# --------------------------------------------------------------------------
def _init_conv_bn(key, kh, kw, cin, cout):
    kw_key, g_key, b_key, m_key = jax.random.split(key, 4)
    fan_in = kh * kw * cin
    w = jax.random.normal(kw_key, (kh * kw, cin, cout), jnp.float32) / jnp.sqrt(
        jnp.float32(fan_in))
    gamma = 1.0 + 0.1 * jax.random.normal(g_key, (cout,), jnp.float32)
    beta = 0.1 * jax.random.normal(b_key, (cout,), jnp.float32)
    mean = 0.05 * jax.random.normal(m_key, (cout,), jnp.float32)
    var = jnp.ones((cout,), jnp.float32)
    eps = 1e-5
    scale = gamma / jnp.sqrt(var + eps)
    bias = beta - mean * scale
    # Fold BN scale into the conv weights:  (x @ w) * s + b  ==  x @ (w * s) + b
    w_folded = w * scale[None, None, :]
    return dict(w=w_folded, b=bias.reshape(1, cout),
                kh=kh, kw=kw, cin=cin, cout=cout)


def make_params(key, cin=4, c1=16, c2=32):
    keys = jax.random.split(key, 6)
    return dict(
        stem=_init_conv_bn(keys[0], 3, 3, cin, c1),
        a1=_init_conv_bn(keys[1], 3, 3, c1, c1),
        a2=_init_conv_bn(keys[2], 3, 3, c1, c1),
        b1=_init_conv_bn(keys[3], 3, 3, c1, c2),
        b2=_init_conv_bn(keys[4], 3, 3, c2, c2),
        b_ds=_init_conv_bn(keys[5], 1, 1, c1, c2),
    )


# --------------------------------------------------------------------------
# Forward pass (mirrors SimCLRModel.forward)
# --------------------------------------------------------------------------
def _interior_band_mask(hp, wp):
    """(m, 1) f32 mask over the interior band of a flattened (hp, wp) padded frame."""
    start = wp + 1
    m = hp * wp - 2 * start
    q = start + jnp.arange(m)
    i = q // wp
    j = q % wp
    inside = (i >= 1) & (i < hp - 1) & (j >= 1) & (j < wp - 1)
    return inside.astype(jnp.float32).reshape(m, 1)


def simclr_forward(params, x_nchw):
    """feats = encoder(x)[0]; reshape (a, b) -> (a, b, 1, 1)."""
    x = jnp.transpose(x_nchw, (0, 2, 3, 1)).astype(jnp.float32)   # NCHW -> NHWC
    B, H, W, cin = x.shape
    c1 = params["stem"]["cout"]
    c2 = params["b2"]["cout"]

    # Padded, row-flattened input frame for kernel A (read from HBM exactly once).
    hp1, wp1 = H + 2, W + 2
    xp = jnp.pad(x, ((0, 0), (1, 1), (1, 1), (0, 0))).reshape(B, hp1 * wp1, cin)
    mask1 = _interior_band_mask(hp1, wp1)

    h = _block_a_call(xp, params, mask1, hp1, wp1)                # (B, hp1*wp1, c1)

    # Parity-phase decomposition of the padded feature map for the stride-2 block
    # (cheap XLA strided slices between the two fused kernels; no data inflation).
    h4 = h.reshape(B, hp1, wp1, c1)
    Hs, Ws = H // 2, W // 2
    hq, wq = Hs + 2, Ws + 2
    phases = []
    for r in (0, 1):
        for s in (0, 1):
            g = h4[:, r::2, s::2, :]                              # (B, Hs+1, Ws+1, c1)
            g = jnp.pad(g, ((0, 0), (0, hq - g.shape[1]),
                            (0, wq - g.shape[2]), (0, 0)))
            phases.append(g.reshape(B, hq * wq, c1))
    mask2 = _interior_band_mask(hq, wq)
    gap = (mask2 / jnp.float32(Hs * Ws)).reshape(1, -1)           # fused-GAP weights

    feats = _block_b_call(phases, params, mask2, gap, hq, wq)     # (B, 1, c2)
    feats = feats.reshape(B, c2)                                  # encoder(x)[0]

    a_, b_ = feats.shape
    return jnp.reshape(feats, (a_, b_, 1, 1))


# --------------------------------------------------------------------------
# Pure-JAX reference (same folded weights) for a correctness check
# --------------------------------------------------------------------------
def reference_forward(params, x_nchw):
    x = jnp.transpose(x_nchw, (0, 2, 3, 1)).astype(jnp.float32)

    def conv(x, p, stride, pad, relu=True, residual=None):
        w = p["w"].reshape(p["kh"], p["kw"], p["cin"], p["cout"])
        y = jax.lax.conv_general_dilated(
            x, w, window_strides=(stride, stride),
            padding=[(pad, pad), (pad, pad)],
            dimension_numbers=("NHWC", "HWIO", "NHWC"))
        y = y + p["b"].reshape(1, 1, 1, -1)
        if residual is not None:
            y = y + residual
        return jnp.maximum(y, 0.0) if relu else y

    h = conv(x, params["stem"], 1, 1)
    a = conv(h, params["a1"], 1, 1)
    h = conv(a, params["a2"], 1, 1, residual=h)
    ds = conv(h, params["b_ds"], 2, 0, relu=False)
    b = conv(h, params["b1"], 2, 1)
    h = conv(b, params["b2"], 1, 1, residual=ds)
    feats = jnp.mean(h, axis=(1, 2))
    B, C = feats.shape
    return feats.reshape(B, C, 1, 1)


if __name__ == "__main__":
    key = jax.random.PRNGKey(0)
    pkey, xkey = jax.random.split(key)
    params = make_params(pkey, cin=4, c1=16, c2=32)

    # small NCHW input consistent with an image encoder
    x = jax.random.normal(xkey, (2, 4, 16, 16), jnp.float32)

    fwd = jax.jit(functools.partial(simclr_forward, params))
    out = jax.block_until_ready(fwd(x))

    assert out.shape == (2, 32, 1, 1), out.shape
    assert out.dtype == jnp.float32
    assert bool(jnp.all(jnp.isfinite(out)))

    ref = reference_forward(params, x)
    err = float(jnp.max(jnp.abs(out - ref)))
    assert err < 5e-2, f"kernel/reference mismatch: max abs err {err}"

    print("KERNEL_OK")
</pallas_src>

<mosaic_0001>
module attributes {stable_mosaic.version = 11 : i64} {
  func.func @_block_a_kernel(%arg0: i32, %arg1: memref<1x324x4xf32, #tpu.memory_space<vmem>>, %arg2: memref<9x4x16xf32, #tpu.memory_space<vmem>>, %arg3: memref<1x16xf32, #tpu.memory_space<vmem>>, %arg4: memref<9x16x16xf32, #tpu.memory_space<vmem>>, %arg5: memref<1x16xf32, #tpu.memory_space<vmem>>, %arg6: memref<9x16x16xf32, #tpu.memory_space<vmem>>, %arg7: memref<1x16xf32, #tpu.memory_space<vmem>>, %arg8: memref<286x1xf32, #tpu.memory_space<vmem>>, %arg9: memref<1x324x16xf32, #tpu.memory_space<vmem>>, %arg10: memref<324x16xf32, #tpu.memory_space<vmem>>, %arg11: memref<324x16xf32, #tpu.memory_space<vmem>>) attributes {dimension_semantics = [#tpu.dimension_semantics<parallel>], iteration_bounds = array<i64: 2>, scalar_prefetch = 0 : i64, scratch_operands = 2 : i64, tpu.core_type = #tpu.core_type<tc>, window_params = [{transform_indices = @transform_0, window_bounds = array<i64: 1, 324, 4>}, {pipeline_mode = #tpu.pipeline_mode<synchronous>, transform_indices = @transform_1, window_bounds = array<i64: 9, 4, 16>}, {pipeline_mode = #tpu.pipeline_mode<synchronous>, transform_indices = @transform_2, window_bounds = array<i64: 1, 16>}, {pipeline_mode = #tpu.pipeline_mode<synchronous>, transform_indices = @transform_3, window_bounds = array<i64: 9, 16, 16>}, {pipeline_mode = #tpu.pipeline_mode<synchronous>, transform_indices = @transform_4, window_bounds = array<i64: 1, 16>}, {pipeline_mode = #tpu.pipeline_mode<synchronous>, transform_indices = @transform_5, window_bounds = array<i64: 9, 16, 16>}, {pipeline_mode = #tpu.pipeline_mode<synchronous>, transform_indices = @transform_6, window_bounds = array<i64: 1, 16>}, {pipeline_mode = #tpu.pipeline_mode<synchronous>, transform_indices = @transform_7, window_bounds = array<i64: 286, 1>}, {transform_indices = @transform_8, window_bounds = array<i64: 1, 324, 16>}]} {
    %c0 = arith.constant 0 : index
    %c0_0 = arith.constant 0 : index
    %0 = vector.load %arg8[%c0, %c0_0] : memref<286x1xf32, #tpu.memory_space<vmem>>, vector<286x1xf32>
    %c0_1 = arith.constant 0 : index
    %c0_2 = arith.constant 0 : index
    %c0_3 = arith.constant 0 : index
    %1 = vector.load %arg1[%c0_1, %c0_2, %c0_3] : memref<1x324x4xf32, #tpu.memory_space<vmem>>, vector<1x286x4xf32>
    %2 = vector.shape_cast %1 : vector<1x286x4xf32> to vector<286x4xf32>
    %c0_4 = arith.constant 0 : index
    %c0_5 = arith.constant 0 : index
    %c0_6 = arith.constant 0 : index
    %3 = vector.load %arg2[%c0_4, %c0_5, %c0_6] : memref<9x4x16xf32, #tpu.memory_space<vmem>>, vector<1x4x16xf32>
    %4 = vector.shape_cast %3 : vector<1x4x16xf32> to vector<4x16xf32>
    %cst = arith.constant dense<0.000000e+00> : vector<286x16xf32>
    %5 = tpu.matmul %2, %4, %cst {dimension_numbers = #tpu.dot_dimension_numbers<[1], [0], [0], [1], [0, 0, 1, 1], [], []>} : vector<286x4xf32>, vector<4x16xf32>, vector<286x16xf32> -> vector<286x16xf32>
    %c0_7 = arith.constant 0 : index
    %c1 = arith.constant 1 : index
    %c0_8 = arith.constant 0 : index
    %6 = vector.load %arg1[%c0_7, %c1, %c0_8] : memref<1x324x4xf32, #tpu.memory_space<vmem>>, vector<1x286x4xf32>
    %7 = vector.shape_cast %6 : vector<1x286x4xf32> to vector<286x4xf32>
    %c1_9 = arith.constant 1 : index
    %c0_10 = arith.constant 0 : index
    %c0_11 = arith.constant 0 : index
    %8 = vector.load %arg2[%c1_9, %c0_10, %c0_11] : memref<9x4x16xf32, #tpu.memory_space<vmem>>, vector<1x4x16xf32>
    %9 = vector.shape_cast %8 : vector<1x4x16xf32> to vector<4x16xf32>
    %cst_12 = arith.constant dense<0.000000e+00> : vector<286x16xf32>
    %10 = tpu.matmul %7, %9, %cst_12 {dimension_numbers = #tpu.dot_dimension_numbers<[1], [0], [0], [1], [0, 0, 1, 1], [], []>} : vector<286x4xf32>, vector<4x16xf32>, vector<286x16xf32> -> vector<286x16xf32>
    %11 = arith.addf %5, %10 : vector<286x16xf32>
    %c0_13 = arith.constant 0 : index
    %c2 = arith.constant 2 : index
    %c0_14 = arith.constant 0 : index
    %12 = vector.load %arg1[%c0_13, %c2, %c0_14] : memref<1x324x4xf32, #tpu.memory_space<vmem>>, vector<1x286x4xf32>
    %13 = vector.shape_cast %12 : vector<1x286x4xf32> to vector<286x4xf32>
    %c2_15 = arith.constant 2 : index
    %c0_16 = arith.constant 0 : index
    %c0_17 = arith.constant 0 : index
    %14 = vector.load %arg2[%c2_15, %c0_16, %c0_17] : memref<9x4x16xf32, #tpu.memory_space<vmem>>, vector<1x4x16xf32>
    %15 = vector.shape_cast %14 : vector<1x4x16xf32> to vector<4x16xf32>
    %cst_18 = arith.constant dense<0.000000e+00> : vector<286x16xf32>
    %16 = tpu.matmul %13, %15, %cst_18 {dimension_numbers = #tpu.dot_dimension_numbers<[1], [0], [0], [1], [0, 0, 1, 1], [], []>} : vector<286x4xf32>, vector<4x16xf32>, vector<286x16xf32> -> vector<286x16xf32>
    %17 = arith.addf %11, %16 : vector<286x16xf32>
    %c0_19 = arith.constant 0 : index
    %c18 = arith.constant 18 : index
    %c0_20 = arith.constant 0 : index
    %18 = vector.load %arg1[%c0_19, %c18, %c0_20] : memref<1x324x4xf32, #tpu.memory_space<vmem>>, vector<1x286x4xf32>
    %19 = vector.shape_cast %18 : vector<1x286x4xf32> to vector<286x4xf32>
    %c3 = arith.constant 3 : index
    %c0_21 = arith.constant 0 : index
    %c0_22 = arith.constant 0 : index
    %20 = vector.load %arg2[%c3, %c0_21, %c0_22] : memref<9x4x16xf32, #tpu.memory_space<vmem>>, vector<1x4x16xf32>
    %21 = vector.shape_cast %20 : vector<1x4x16xf32> to vector<4x16xf32>
    %cst_23 = arith.constant dense<0.000000e+00> : vector<286x16xf32>
    %22 = tpu.matmul %19, %21, %cst_23 {dimension_numbers = #tpu.dot_dimension_numbers<[1], [0], [0], [1], [0, 0, 1, 1], [], []>} : vector<286x4xf32>, vector<4x16xf32>, vector<286x16xf32> -> vector<286x16xf32>
    %23 = arith.addf %17, %22 : vector<286x16xf32>
    %c0_24 = arith.constant 0 : index
    %c19 = arith.constant 19 : index
    %c0_25 = arith.constant 0 : index
    %24 = vector.load %arg1[%c0_24, %c19, %c0_25] : memref<1x324x4xf32, #tpu.memory_space<vmem>>, vector<1x286x4xf32>
    %25 = vector.shape_cast %24 : vector<1x286x4xf32> to vector<286x4xf32>
    %c4 = arith.constant 4 : index
    %c0_26 = arith.constant 0 : index
    %c0_27 = arith.constant 0 : index
    %26 = vector.load %arg2[%c4, %c0_26, %c0_27] : memref<9x4x16xf32, #tpu.memory_space<vmem>>, vector<1x4x16xf32>
    %27 = vector.shape_cast %26 : vector<1x4x16xf32> to vector<4x16xf32>
    %cst_28 = arith.constant dense<0.000000e+00> : vector<286x16xf32>
    %28 = tpu.matmul %25, %27, %cst_28 {dimension_numbers = #tpu.dot_dimension_numbers<[1], [0], [0], [1], [0, 0, 1, 1], [], []>} : vector<286x4xf32>, vector<4x16xf32>, vector<286x16xf32> -> vector<286x16xf32>
    %29 = arith.addf %23, %28 : vector<286x16xf32>
    %c0_29 = arith.constant 0 : index
    %c20 = arith.constant 20 : index
    %c0_30 = arith.constant 0 : index
    %30 = vector.load %arg1[%c0_29, %c20, %c0_30] : memref<1x324x4xf32, #tpu.memory_space<vmem>>, vector<1x286x4xf32>
    %31 = vector.shape_cast %30 : vector<1x286x4xf32> to vector<286x4xf32>
    %c5 = arith.constant 5 : index
    %c0_31 = arith.constant 0 : index
    %c0_32 = arith.constant 0 : index
    %32 = vector.load %arg2[%c5, %c0_31, %c0_32] : memref<9x4x16xf32, #tpu.memory_space<vmem>>, vector<1x4x16xf32>
    %33 = vector.shape_cast %32 : vector<1x4x16xf32> to vector<4x16xf32>
    %cst_33 = arith.constant dense<0.000000e+00> : vector<286x16xf32>
    %34 = tpu.matmul %31, %33, %cst_33 {dimension_numbers = #tpu.dot_dimension_numbers<[1], [0], [0], [1], [0, 0, 1, 1], [], []>} : vector<286x4xf32>, vector<4x16xf32>, vector<286x16xf32> -> vector<286x16xf32>
    %35 = arith.addf %29, %34 : vector<286x16xf32>
    %c0_34 = arith.constant 0 : index
    %c36 = arith.constant 36 : index
    %c0_35 = arith.constant 0 : index
    %36 = vector.load %arg1[%c0_34, %c36, %c0_35] : memref<1x324x4xf32, #tpu.memory_space<vmem>>, vector<1x286x4xf32>
    %37 = vector.shape_cast %36 : vector<1x286x4xf32> to vector<286x4xf32>
    %c6 = arith.constant 6 : index
    %c0_36 = arith.constant 0 : index
    %c0_37 = arith.constant 0 : index
    %38 = vector.load %arg2[%c6, %c0_36, %c0_37] : memref<9x4x16xf32, #tpu.memory_space<vmem>>, vector<1x4x16xf32>
    %39 = vector.shape_cast %38 : vector<1x4x16xf32> to vector<4x16xf32>
    %cst_38 = arith.constant dense<0.000000e+00> : vector<286x16xf32>
    %40 = tpu.matmul %37, %39, %cst_38 {dimension_numbers = #tpu.dot_dimension_numbers<[1], [0], [0], [1], [0, 0, 1, 1], [], []>} : vector<286x4xf32>, vector<4x16xf32>, vector<286x16xf32> -> vector<286x16xf32>
    %41 = arith.addf %35, %40 : vector<286x16xf32>
    %c0_39 = arith.constant 0 : index
    %c37 = arith.constant 37 : index
    %c0_40 = arith.constant 0 : index
    %42 = vector.load %arg1[%c0_39, %c37, %c0_40] : memref<1x324x4xf32, #tpu.memory_space<vmem>>, vector<1x286x4xf32>
    %43 = vector.shape_cast %42 : vector<1x286x4xf32> to vector<286x4xf32>
    %c7 = arith.constant 7 : index
    %c0_41 = arith.constant 0 : index
    %c0_42 = arith.constant 0 : index
    %44 = vector.load %arg2[%c7, %c0_41, %c0_42] : memref<9x4x16xf32, #tpu.memory_space<vmem>>, vector<1x4x16xf32>
    %45 = vector.shape_cast %44 : vector<1x4x16xf32> to vector<4x16xf32>
    %cst_43 = arith.constant dense<0.000000e+00> : vector<286x16xf32>
    %46 = tpu.matmul %43, %45, %cst_43 {dimension_numbers = #tpu.dot_dimension_numbers<[1], [0], [0], [1], [0, 0, 1, 1], [], []>} : vector<286x4xf32>, vector<4x16xf32>, vector<286x16xf32> -> vector<286x16xf32>
    %47 = arith.addf %41, %46 : vector<286x16xf32>
    %c0_44 = arith.constant 0 : index
    %c38 = arith.constant 38 : index
    %c0_45 = arith.constant 0 : index
    %48 = vector.load %arg1[%c0_44, %c38, %c0_45] : memref<1x324x4xf32, #tpu.memory_space<vmem>>, vector<1x286x4xf32>
    %49 = vector.shape_cast %48 : vector<1x286x4xf32> to vector<286x4xf32>
    %c8 = arith.constant 8 : index
    %c0_46 = arith.constant 0 : index
    %c0_47 = arith.constant 0 : index
    %50 = vector.load %arg2[%c8, %c0_46, %c0_47] : memref<9x4x16xf32, #tpu.memory_space<vmem>>, vector<1x4x16xf32>
    %51 = vector.shape_cast %50 : vector<1x4x16xf32> to vector<4x16xf32>
    %cst_48 = arith.constant dense<0.000000e+00> : vector<286x16xf32>
    %52 = tpu.matmul %49, %51, %cst_48 {dimension_numbers = #tpu.dot_dimension_numbers<[1], [0], [0], [1], [0, 0, 1, 1], [], []>} : vector<286x4xf32>, vector<4x16xf32>, vector<286x16xf32> -> vector<286x16xf32>
    %53 = arith.addf %47, %52 : vector<286x16xf32>
    %c0_49 = arith.constant 0 : index
    %c0_50 = arith.constant 0 : index
    %54 = vector.load %arg3[%c0_49, %c0_50] : memref<1x16xf32, #tpu.memory_space<vmem>>, vector<1x16xf32>
    %55 = vector.broadcast %54 : vector<1x16xf32> to vector<286x16xf32>
    %56 = arith.addf %53, %55 : vector<286x16xf32>
    %cst_51 = arith.constant 0.000000e+00 : f32
    %57 = vector.broadcast %cst_51 : f32 to vector<286x16xf32>
    %58 = arith.maximumf %56, %57 : vector<286x16xf32>
    %cst_52 = arith.constant 0.000000e+00 : f32
    %59 = vector.broadcast %cst_52 : f32 to vector<324x16xf32>
    %c0_53 = arith.constant 0 : index
    %c0_54 = arith.constant 0 : index
    %60 = vector.load %arg10[%c0_53, %c0_54] : memref<324x16xf32, #tpu.memory_space<vmem>>, vector<324x16xf32>
    tpu.vector_store %arg10[%c0_53, %c0_54], %59 {strides = array<i32>} : memref<324x16xf32, #tpu.memory_space<vmem>>, vector<324x16xf32>,
    %61 = vector.broadcast %0 : vector<286x1xf32> to vector<286x16xf32>
    %62 = arith.mulf %58, %61 : vector<286x16xf32>
    %c19_55 = arith.constant 19 : index
    %c0_56 = arith.constant 0 : index
    %63 = vector.load %arg10[%c19_55, %c0_56] : memref<324x16xf32, #tpu.memory_space<vmem>>, vector<286x16xf32>
    tpu.vector_store %arg10[%c19_55, %c0_56], %62 {strides = array<i32>} : memref<324x16xf32, #tpu.memory_space<vmem>>, vector<286x16xf32>,
    %c0_57 = arith.constant 0 : index
    %c0_58 = arith.constant 0 : index
    %64 = vector.load %arg10[%c0_57, %c0_58] : memref<324x16xf32, #tpu.memory_space<vmem>>, vector<286x16xf32>
    %c0_59 = arith.constant 0 : index
    %c0_60 = arith.constant 0 : index
    %c0_61 = arith.constant 0 : index
    %65 = vector.load %arg4[%c0_59, %c0_60, %c0_61] : memref<9x16x16xf32, #tpu.memory_space<vmem>>, vector<1x16x16xf32>
    %66 = vector.shape_cast %65 : vector<1x16x16xf32> to vector<16x16xf32>
    %cst_62 = arith.constant dense<0.000000e+00> : vector<286x16xf32>
    %67 = tpu.matmul %64, %66, %cst_62 {dimension_numbers = #tpu.dot_dimension_numbers<[1], [0], [0], [1], [0, 0, 1, 1], [], []>} : vector<286x16xf32>, vector<16x16xf32>, vector<286x16xf32> -> vector<286x16xf32>
    %c1_63 = arith.constant 1 : index
    %c0_64 = arith.constant 0 : index
    %68 = vector.load %arg10[%c1_63, %c0_64] : memref<324x16xf32, #tpu.memory_space<vmem>>, vector<286x16xf32>
    %c1_65 = arith.constant 1 : index
    %c0_66 = arith.constant 0 : index
    %c0_67 = arith.constant 0 : index
    %69 = vector.load %arg4[%c1_65, %c0_66, %c0_67] : memref<9x16x16xf32, #tpu.memory_space<vmem>>, vector<1x16x16xf32>
    %70 = vector.shape_cast %69 : vector<1x16x16xf32> to vector<16x16xf32>
    %cst_68 = arith.constant dense<0.000000e+00> : vector<286x16xf32>
    %71 = tpu.matmul %68, %70, %cst_68 {dimension_numbers = #tpu.dot_dimension_numbers<[1], [0], [0], [1], [0, 0, 1, 1], [], []>} : vector<286x16xf32>, vector<16x16xf32>, vector<286x16xf32> -> vector<286x16xf32>
    %72 = arith.addf %67, %71 : vector<286x16xf32>
    %c2_69 = arith.constant 2 : index
    %c0_70 = arith.constant 0 : index
    %73 = vector.load %arg10[%c2_69, %c0_70] : memref<324x16xf32, #tpu.memory_space<vmem>>, vector<286x16xf32>
    %c2_71 = arith.constant 2 : index
    %c0_72 = arith.constant 0 : index
    %c0_73 = arith.constant 0 : index
    %74 = vector.load %arg4[%c2_71, %c0_72, %c0_73] : memref<9x16x16xf32, #tpu.memory_space<vmem>>, vector<1x16x16xf32>
    %75 = vector.shape_cast %74 : vector<1x16x16xf32> to vector<16x16xf32>
    %cst_74 = arith.constant dense<0.000000e+00> : vector<286x16xf32>
    %76 = tpu.matmul %73, %75, %cst_74 {dimension_numbers = #tpu.dot_dimension_numbers<[1], [0], [0], [1], [0, 0, 1, 1], [], []>} : vector<286x16xf32>, vector<16x16xf32>, vector<286x16xf32> -> vector<286x16xf32>
    %77 = arith.addf %72, %76 : vector<286x16xf32>
    %c18_75 = arith.constant 18 : index
    %c0_76 = arith.constant 0 : index
    %78 = vector.load %arg10[%c18_75, %c0_76] : memref<324x16xf32, #tpu.memory_space<vmem>>, vector<286x16xf32>
    %c3_77 = arith.constant 3 : index
    %c0_78 = arith.constant 0 : index
    %c0_79 = arith.constant 0 : index
    %79 = vector.load %arg4[%c3_77, %c0_78, %c0_79] : memref<9x16x16xf32, #tpu.memory_space<vmem>>, vector<1x16x16xf32>
    %80 = vector.shape_cast %79 : vector<1x16x16xf32> to vector<16x16xf32>
    %cst_80 = arith.constant dense<0.000000e+00> : vector<286x16xf32>
    %81 = tpu.matmul %78, %80, %cst_80 {dimension_numbers = #tpu.dot_dimension_numbers<[1], [0], [0], [1], [0, 0, 1, 1], [], []>} : vector<286x16xf32>, vector<16x16xf32>, vector<286x16xf32> -> vector<286x16xf32>
    %82 = arith.addf %77, %81 : vector<286x16xf32>
    %c19_81 = arith.constant 19 : index
    %c0_82 = arith.constant 0 : index
    %83 = vector.load %arg10[%c19_81, %c0_82] : memref<324x16xf32, #tpu.memory_space<vmem>>, vector<286x16xf32>
    %c4_83 = arith.constant 4 : index
    %c0_84 = arith.constant 0 : index
    %c0_85 = arith.constant 0 : index
    %84 = vector.load %arg4[%c4_83, %c0_84, %c0_85] : memref<9x16x16xf32, #tpu.memory_space<vmem>>, vector<1x16x16xf32>
    %85 = vector.shape_cast %84 : vector<1x16x16xf32> to vector<16x16xf32>
    %cst_86 = arith.constant dense<0.000000e+00> : vector<286x16xf32>
    %86 = tpu.matmul %83, %85, %cst_86 {dimension_numbers = #tpu.dot_dimension_numbers<[1], [0], [0], [1], [0, 0, 1, 1], [], []>} : vector<286x16xf32>, vector<16x16xf32>, vector<286x16xf32> -> vector<286x16xf32>
    %87 = arith.addf %82, %86 : vector<286x16xf32>
    %c20_87 = arith.constant 20 : index
    %c0_88 = arith.constant 0 : index
    %88 = vector.load %arg10[%c20_87, %c0_88] : memref<324x16xf32, #tpu.memory_space<vmem>>, vector<286x16xf32>
    %c5_89 = arith.constant 5 : index
    %c0_90 = arith.constant 0 : index
    %c0_91 = arith.constant 0 : index
    %89 = vector.load %arg4[%c5_89, %c0_90, %c0_91] : memref<9x16x16xf32, #tpu.memory_space<vmem>>, vector<1x16x16xf32>
    %90 = vector.shape_cast %89 : vector<1x16x16xf32> to vector<16x16xf32>
    %cst_92 = arith.constant dense<0.000000e+00> : vector<286x16xf32>
    %91 = tpu.matmul %88, %90, %cst_92 {dimension_numbers = #tpu.dot_dimension_numbers<[1], [0], [0], [1], [0, 0, 1, 1], [], []>} : vector<286x16xf32>, vector<16x16xf32>, vector<286x16xf32> -> vector<286x16xf32>
    %92 = arith.addf %87, %91 : vector<286x16xf32>
    %c36_93 = arith.constant 36 : index
    %c0_94 = arith.constant 0 : index
    %93 = vector.load %arg10[%c36_93, %c0_94] : memref<324x16xf32, #tpu.memory_space<vmem>>, vector<286x16xf32>
    %c6_95 = arith.constant 6 : index
    %c0_96 = arith.constant 0 : index
    %c0_97 = arith.constant 0 : index
    %94 = vector.load %arg4[%c6_95, %c0_96, %c0_97] : memref<9x16x16xf32, #tpu.memory_space<vmem>>, vector<1x16x16xf32>
    %95 = vector.shape_cast %94 : vector<1x16x16xf32> to vector<16x16xf32>
    %cst_98 = arith.constant dense<0.000000e+00> : vector<286x16xf32>
    %96 = tpu.matmul %93, %95, %cst_98 {dimension_numbers = #tpu.dot_dimension_numbers<[1], [0], [0], [1], [0, 0, 1, 1], [], []>} : vector<286x16xf32>, vector<16x16xf32>, vector<286x16xf32> -> vector<286x16xf32>
    %97 = arith.addf %92, %96 : vector<286x16xf32>
    %c37_99 = arith.constant 37 : index
    %c0_100 = arith.constant 0 : index
    %98 = vector.load %arg10[%c37_99, %c0_100] : memref<324x16xf32, #tpu.memory_space<vmem>>, vector<286x16xf32>
    %c7_101 = arith.constant 7 : index
    %c0_102 = arith.constant 0 : index
    %c0_103 = arith.constant 0 : index
    %99 = vector.load %arg4[%c7_101, %c0_102, %c0_103] : memref<9x16x16xf32, #tpu.memory_space<vmem>>, vector<1x16x16xf32>
    %100 = vector.shape_cast %99 : vector<1x16x16xf32> to vector<16x16xf32>
    %cst_104 = arith.constant dense<0.000000e+00> : vector<286x16xf32>
    %101 = tpu.matmul %98, %100, %cst_104 {dimension_numbers = #tpu.dot_dimension_numbers<[1], [0], [0], [1], [0, 0, 1, 1], [], []>} : vector<286x16xf32>, vector<16x16xf32>, vector<286x16xf32> -> vector<286x16xf32>
    %102 = arith.addf %97, %101 : vector<286x16xf32>
    %c38_105 = arith.constant 38 : index
    %c0_106 = arith.constant 0 : index
    %103 = vector.load %arg10[%c38_105, %c0_106] : memref<324x16xf32, #tpu.memory_space<vmem>>, vector<286x16xf32>
    %c8_107 = arith.constant 8 : index
    %c0_108 = arith.constant 0 : index
    %c0_109 = arith.constant 0 : index
    %104 = vector.load %arg4[%c8_107, %c0_108, %c0_109] : memref<9x16x16xf32, #tpu.memory_space<vmem>>, vector<1x16x16xf32>
    %105 = vector.shape_cast %104 : vector<1x16x16xf32> to vector<16x16xf32>
    %cst_110 = arith.constant dense<0.000000e+00> : vector<286x16xf32>
    %106 = tpu.matmul %103, %105, %cst_110 {dimension_numbers = #tpu.dot_dimension_numbers<[1], [0], [0], [1], [0, 0, 1, 1], [], []>} : vector<286x16xf32>, vector<16x16xf32>, vector<286x16xf32> -> vector<286x16xf32>
    %107 = arith.addf %102, %106 : vector<286x16xf32>
    %c0_111 = arith.constant 0 : index
    %c0_112 = arith.constant 0 : index
    %108 = vector.load %arg5[%c0_111, %c0_112] : memref<1x16xf32, #tpu.memory_space<vmem>>, vector<1x16xf32>
    %109 = vector.broadcast %108 : vector<1x16xf32> to vector<286x16xf32>
    %110 = arith.addf %107, %109 : vector<286x16xf32>
    %cst_113 = arith.constant 0.000000e+00 : f32
    %111 = vector.broadcast %cst_113 : f32 to vector<286x16xf32>
    %112 = arith.maximumf %110, %111 : vector<286x16xf32>
    %cst_114 = arith.constant 0.000000e+00 : f32
    %113 = vector.broadcast %cst_114 : f32 to vector<324x16xf32>
    %c0_115 = arith.constant 0 : index
    %c0_116 = arith.constant 0 : index
    %114 = vector.load %arg11[%c0_115, %c0_116] : memref<324x16xf32, #tpu.memory_space<vmem>>, vector<324x16xf32>
    tpu.vector_store %arg11[%c0_115, %c0_116], %113 {strides = array<i32>} : memref<324x16xf32, #tpu.memory_space<vmem>>, vector<324x16xf32>,
    %115 = vector.broadcast %0 : vector<286x1xf32> to vector<286x16xf32>
    %116 = arith.mulf %112, %115 : vector<286x16xf32>
    %c19_117 = arith.constant 19 : index
    %c0_118 = arith.constant 0 : index
    %117 = vector.load %arg11[%c19_117, %c0_118] : memref<324x16xf32, #tpu.memory_space<vmem>>, vector<286x16xf32>
    tpu.vector_store %arg11[%c19_117, %c0_118], %116 {strides = array<i32>} : memref<324x16xf32, #tpu.memory_space<vmem>>, vector<286x16xf32>,
    %c0_119 = arith.constant 0 : index
    %c0_120 = arith.constant 0 : index
    %118 = vector.load %arg11[%c0_119, %c0_120] : memref<324x16xf32, #tpu.memory_space<vmem>>, vector<286x16xf32>
    %c0_121 = arith.constant 0 : index
    %c0_122 = arith.constant 0 : index
    %c0_123 = arith.constant 0 : index
    %119 = vector.load %arg6[%c0_121, %c0_122, %c0_123] : memref<9x16x16xf32, #tpu.memory_space<vmem>>, vector<1x16x16xf32>
    %120 = vector.shape_cast %119 : vector<1x16x16xf32> to vector<16x16xf32>
    %cst_124 = arith.constant dense<0.000000e+00> : vector<286x16xf32>
    %121 = tpu.matmul %118, %120, %cst_124 {dimension_numbers = #tpu.dot_dimension_numbers<[1], [0], [0], [1], [0, 0, 1, 1], [], []>} : vector<286x16xf32>, vector<16x16xf32>, vector<286x16xf32> -> vector<286x16xf32>
    %c1_125 = arith.constant 1 : index
    %c0_126 = arith.constant 0 : index
    %122 = vector.load %arg11[%c1_125, %c0_126] : memref<324x16xf32, #tpu.memory_space<vmem>>, vector<286x16xf32>
    %c1_127 = arith.constant 1 : index
    %c0_128 = arith.constant 0 : index
    %c0_129 = arith.constant 0 : index
    %123 = vector.load %arg6[%c1_127, %c0_128, %c0_129] : memref<9x16x16xf32, #tpu.memory_space<vmem>>, vector<1x16x16xf32>
    %124 = vector.shape_cast %123 : vector<1x16x16xf32> to vector<16x16xf32>
    %cst_130 = arith.constant dense<0.000000e+00> : vector<286x16xf32>
    %125 = tpu.matmul %122, %124, %cst_130 {dimension_numbers = #tpu.dot_dimension_numbers<[1], [0], [0], [1], [0, 0, 1, 1], [], []>} : vector<286x16xf32>, vector<16x16xf32>, vector<286x16xf32> -> vector<286x16xf32>
    %126 = arith.addf %121, %125 : vector<286x16xf32>
    %c2_131 = arith.constant 2 : index
    %c0_132 = arith.constant 0 : index
    %127 = vector.load %arg11[%c2_131, %c0_132] : memref<324x16xf32, #tpu.memory_space<vmem>>, vector<286x16xf32>
    %c2_133 = arith.constant 2 : index
    %c0_134 = arith.constant 0 : index
    %c0_135 = arith.constant 0 : index
    %128 = vector.load %arg6[%c2_133, %c0_134, %c0_135] : memref<9x16x16xf32, #tpu.memory_space<vmem>>, vector<1x16x16xf32>
    %129 = vector.shape_cast %128 : vector<1x16x16xf32> to vector<16x16xf32>
    %cst_136 = arith.constant dense<0.000000e+00> : vector<286x16xf32>
    %130 = tpu.matmul %127, %129, %cst_136 {dimension_numbers = #tpu.dot_dimension_numbers<[1], [0], [0], [1], [0, 0, 1, 1], [], []>} : vector<286x16xf32>, vector<16x16xf32>, vector<286x16xf32> -> vector<286x16xf32>
    %131 = arith.addf %126, %130 : vector<286x16xf32>
    %c18_137 = arith.constant 18 : index
    %c0_138 = arith.constant 0 : index
    %132 = vector.load %arg11[%c18_137, %c0_138] : memref<324x16xf32, #tpu.memory_space<vmem>>, vector<286x16xf32>
    %c3_139 = arith.constant 3 : index
    %c0_140 = arith.constant 0 : index
    %c0_141 = arith.constant 0 : index
    %133 = vector.load %arg6[%c3_139, %c0_140, %c0_141] : memref<9x16x16xf32, #tpu.memory_space<vmem>>, vector<1x16x16xf32>
    %134 = vector.shape_cast %133 : vector<1x16x16xf32> to vector<16x16xf32>
    %cst_142 = arith.constant dense<0.000000e+00> : vector<286x16xf32>
    %135 = tpu.matmul %132, %134, %cst_142 {dimension_numbers = #tpu.dot_dimension_numbers<[1], [0], [0], [1], [0, 0, 1, 1], [], []>} : vector<286x16xf32>, vector<16x16xf32>, vector<286x16xf32> -> vector<286x16xf32>
    %136 = arith.addf %131, %135 : vector<286x16xf32>
    %c19_143 = arith.constant 19 : index
    %c0_144 = arith.constant 0 : index
    %137 = vector.load %arg11[%c19_143, %c0_144] : memref<324x16xf32, #tpu.memory_space<vmem>>, vector<286x16xf32>
    %c4_145 = arith.constant 4 : index
    %c0_146 = arith.constant 0 : index
    %c0_147 = arith.constant 0 : index
    %138 = vector.load %arg6[%c4_145, %c0_146, %c0_147] : memref<9x16x16xf32, #tpu.memory_space<vmem>>, vector<1x16x16xf32>
    %139 = vector.shape_cast %138 : vector<1x16x16xf32> to vector<16x16xf32>
    %cst_148 = arith.constant dense<0.000000e+00> : vector<286x16xf32>
    %140 = tpu.matmul %137, %139, %cst_148 {dimension_numbers = #tpu.dot_dimension_numbers<[1], [0], [0], [1], [0, 0, 1, 1], [], []>} : vector<286x16xf32>, vector<16x16xf32>, vector<286x16xf32> -> vector<286x16xf32>
    %141 = arith.addf %136, %140 : vector<286x16xf32>
    %c20_149 = arith.constant 20 : index
    %c0_150 = arith.constant 0 : index
    %142 = vector.load %arg11[%c20_149, %c0_150] : memref<324x16xf32, #tpu.memory_space<vmem>>, vector<286x16xf32>
    %c5_151 = arith.constant 5 : index
    %c0_152 = arith.constant 0 : index
    %c0_153 = arith.constant 0 : index
    %143 = vector.load %arg6[%c5_151, %c0_152, %c0_153] : memref<9x16x16xf32, #tpu.memory_space<vmem>>, vector<1x16x16xf32>
    %144 = vector.shape_cast %143 : vector<1x16x16xf32> to vector<16x16xf32>
    %cst_154 = arith.constant dense<0.000000e+00> : vector<286x16xf32>
    %145 = tpu.matmul %142, %144, %cst_154 {dimension_numbers = #tpu.dot_dimension_numbers<[1], [0], [0], [1], [0, 0, 1, 1], [], []>} : vector<286x16xf32>, vector<16x16xf32>, vector<286x16xf32> -> vector<286x16xf32>
    %146 = arith.addf %141, %145 : vector<286x16xf32>
    %c36_155 = arith.constant 36 : index
    %c0_156 = arith.constant 0 : index
    %147 = vector.load %arg11[%c36_155, %c0_156] : memref<324x16xf32, #tpu.memory_space<vmem>>, vector<286x16xf32>
    %c6_157 = arith.constant 6 : index
    %c0_158 = arith.constant 0 : index
    %c0_159 = arith.constant 0 : index
    %148 = vector.load %arg6[%c6_157, %c0_158, %c0_159] : memref<9x16x16xf32, #tpu.memory_space<vmem>>, vector<1x16x16xf32>
    %149 = vector.shape_cast %148 : vector<1x16x16xf32> to vector<16x16xf32>
    %cst_160 = arith.constant dense<0.000000e+00> : vector<286x16xf32>
    %150 = tpu.matmul %147, %149, %cst_160 {dimension_numbers = #tpu.dot_dimension_numbers<[1], [0], [0], [1], [0, 0, 1, 1], [], []>} : vector<286x16xf32>, vector<16x16xf32>, vector<286x16xf32> -> vector<286x16xf32>
    %151 = arith.addf %146, %150 : vector<286x16xf32>
    %c37_161 = arith.constant 37 : index
    %c0_162 = arith.constant 0 : index
    %152 = vector.load %arg11[%c37_161, %c0_162] : memref<324x16xf32, #tpu.memory_space<vmem>>, vector<286x16xf32>
    %c7_163 = arith.constant 7 : index
    %c0_164 = arith.constant 0 : index
    %c0_165 = arith.constant 0 : index
    %153 = vector.load %arg6[%c7_163, %c0_164, %c0_165] : memref<9x16x16xf32, #tpu.memory_space<vmem>>, vector<1x16x16xf32>
    %154 = vector.shape_cast %153 : vector<1x16x16xf32> to vector<16x16xf32>
    %cst_166 = arith.constant dense<0.000000e+00> : vector<286x16xf32>
    %155 = tpu.matmul %152, %154, %cst_166 {dimension_numbers = #tpu.dot_dimension_numbers<[1], [0], [0], [1], [0, 0, 1, 1], [], []>} : vector<286x16xf32>, vector<16x16xf32>, vector<286x16xf32> -> vector<286x16xf32>
    %156 = arith.addf %151, %155 : vector<286x16xf32>
    %c38_167 = arith.constant 38 : index
    %c0_168 = arith.constant 0 : index
    %157 = vector.load %arg11[%c38_167, %c0_168] : memref<324x16xf32, #tpu.memory_space<vmem>>, vector<286x16xf32>
    %c8_169 = arith.constant 8 : index
    %c0_170 = arith.constant 0 : index
    %c0_171 = arith.constant 0 : index
    %158 = vector.load %arg6[%c8_169, %c0_170, %c0_171] : memref<9x16x16xf32, #tpu.memory_space<vmem>>, vector<1x16x16xf32>
    %159 = vector.shape_cast %158 : vector<1x16x16xf32> to vector<16x16xf32>
    %cst_172 = arith.constant dense<0.000000e+00> : vector<286x16xf32>
    %160 = tpu.matmul %157, %159, %cst_172 {dimension_numbers = #tpu.dot_dimension_numbers<[1], [0], [0], [1], [0, 0, 1, 1], [], []>} : vector<286x16xf32>, vector<16x16xf32>, vector<286x16xf32> -> vector<286x16xf32>
    %161 = arith.addf %156, %160 : vector<286x16xf32>
    %c0_173 = arith.constant 0 : index
    %c0_174 = arith.constant 0 : index
    %162 = vector.load %arg7[%c0_173, %c0_174] : memref<1x16xf32, #tpu.memory_space<vmem>>, vector<1x16xf32>
    %163 = vector.broadcast %162 : vector<1x16xf32> to vector<286x16xf32>
    %164 = arith.addf %161, %163 : vector<286x16xf32>
    %c19_175 = arith.constant 19 : index
    %c0_176 = arith.constant 0 : index
    %165 = vector.load %arg10[%c19_175, %c0_176] : memref<324x16xf32, #tpu.memory_space<vmem>>, vector<286x16xf32>
    %166 = arith.addf %164, %165 : vector<286x16xf32>
    %cst_177 = arith.constant 0.000000e+00 : f32
    %167 = vector.broadcast %cst_177 : f32 to vector<286x16xf32>
    %168 = arith.maximumf %166, %167 : vector<286x16xf32>
    %cst_178 = arith.constant 0.000000e+00 : f32
    %169 = vector.broadcast %cst_178 : f32 to vector<324x16xf32>
    %c0_179 = arith.constant 0 : index
    %c0_180 = arith.constant 0 : index
    %c0_181 = arith.constant 0 : index
    %170 = vector.load %arg9[%c0_179, %c0_180, %c0_181] : memref<1x324x16xf32, #tpu.memory_space<vmem>>, vector<1x324x16xf32>
    %171 = vector.shape_cast %170 : vector<1x324x16xf32> to vector<324x16xf32>
    %172 = vector.shape_cast %169 : vector<324x16xf32> to vector<1x324x16xf32>
    tpu.vector_store %arg9[%c0_179, %c0_180, %c0_181], %172 {strides = array<i32>} : memref<1x324x16xf32, #tpu.memory_space<vmem>>, vector<1x324x16xf32>,
    %173 = vector.broadcast %0 : vector<286x1xf32> to vector<286x16xf32>
    %174 = arith.mulf %168, %173 : vector<286x16xf32>
    %c0_182 = arith.constant 0 : index
    %c19_183 = arith.constant 19 : index
    %c0_184 = arith.constant 0 : index
    %175 = vector.load %arg9[%c0_182, %c19_183, %c0_184] : memref<1x324x16xf32, #tpu.memory_space<vmem>>, vector<1x286x16xf32>
    %176 = vector.shape_cast %175 : vector<1x286x16xf32> to vector<286x16xf32>
    %177 = vector.shape_cast %174 : vector<286x16xf32> to vector<1x286x16xf32>
    tpu.vector_store %arg9[%c0_182, %c19_183, %c0_184], %177 {strides = array<i32>} : memref<1x324x16xf32, #tpu.memory_space<vmem>>, vector<1x286x16xf32>,
    return
  }
  func.func @transform_0(%arg0: i32) -> (i32, i32, i32) {
    %c0_i32 = arith.constant 0 : i32
    %c0_i32_0 = arith.constant 0 : i32
    %c0_i32_1 = arith.constant 0 : i32
    return %arg0, %c0_i32, %c0_i32_0 : i32, i32, i32
  }
  func.func @transform_1(%arg0: i32) -> (i32, i32, i32) {
    %c0_i32 = arith.constant 0 : i32
    %c0_i32_0 = arith.constant 0 : i32
    %c0_i32_1 = arith.constant 0 : i32
    %c0_i32_2 = arith.constant 0 : i32
    return %c0_i32, %c0_i32_0, %c0_i32_1 : i32, i32, i32
  }
  func.func @transform_2(%arg0: i32) -> (i32, i32) {
    %c0_i32 = arith.constant 0 : i32
    %c0_i32_0 = arith.constant 0 : i32
    %c0_i32_1 = arith.constant 0 : i32
    return %c0_i32, %c0_i32_0 : i32, i32
  }
  func.func @transform_3(%arg0: i32) -> (i32, i32, i32) {
    %c0_i32 = arith.constant 0 : i32
    %c0_i32_0 = arith.constant 0 : i32
    %c0_i32_1 = arith.constant 0 : i32
    %c0_i32_2 = arith.constant 0 : i32
    return %c0_i32, %c0_i32_0, %c0_i32_1 : i32, i32, i32
  }
  func.func @transform_4(%arg0: i32) -> (i32, i32) {
    %c0_i32 = arith.constant 0 : i32
    %c0_i32_0 = arith.constant 0 : i32
    %c0_i32_1 = arith.constant 0 : i32
    return %c0_i32, %c0_i32_0 : i32, i32
  }
  func.func @transform_5(%arg0: i32) -> (i32, i32, i32) {
    %c0_i32 = arith.constant 0 : i32
    %c0_i32_0 = arith.constant 0 : i32
    %c0_i32_1 = arith.constant 0 : i32
    %c0_i32_2 = arith.constant 0 : i32
    return %c0_i32, %c0_i32_0, %c0_i32_1 : i32, i32, i32
  }
  func.func @transform_6(%arg0: i32) -> (i32, i32) {
    %c0_i32 = arith.constant 0 : i32
    %c0_i32_0 = arith.constant 0 : i32
    %c0_i32_1 = arith.constant 0 : i32
    return %c0_i32, %c0_i32_0 : i32, i32
  }
  func.func @transform_7(%arg0: i32) -> (i32, i32) {
    %c0_i32 = arith.constant 0 : i32
    %c0_i32_0 = arith.constant 0 : i32
    %c0_i32_1 = arith.constant 0 : i32
    return %c0_i32, %c0_i32_0 : i32, i32
  }
  func.func @transform_8(%arg0: i32) -> (i32, i32, i32) {
    %c0_i32 = arith.constant 0 : i32
    %c0_i32_0 = arith.constant 0 : i32
    %c0_i32_1 = arith.constant 0 : i32
    return %arg0, %c0_i32, %c0_i32_0 : i32, i32, i32
  }
}

module attributes {stable_mosaic.version = 11 : i64} {
  func.func @_block_b_kernel(%arg0: i32, %arg1: memref<1x100x16xf32, #tpu.memory_space<vmem>>, %arg2: memref<1x100x16xf32, #tpu.memory_space<vmem>>, %arg3: memref<1x100x16xf32, #tpu.memory_space<vmem>>, %arg4: memref<1x100x16xf32, #tpu.memory_space<vmem>>, %arg5: memref<9x16x32xf32, #tpu.memory_space<vmem>>, %arg6: memref<1x32xf32, #tpu.memory_space<vmem>>, %arg7: memref<16x32xf32, #tpu.memory_space<vmem>>, %arg8: memref<1x32xf32, #tpu.memory_space<vmem>>, %arg9: memref<9x32x32xf32, #tpu.memory_space<vmem>>, %arg10: memref<1x32xf32, #tpu.memory_space<vmem>>, %arg11: memref<78x1xf32, #tpu.memory_space<vmem>>, %arg12: memref<1x78xf32, #tpu.memory_space<vmem>>, %arg13: memref<1x1x32xf32, #tpu.memory_space<vmem>>, %arg14: memref<100x32xf32, #tpu.memory_space<vmem>>) attributes {dimension_semantics = [#tpu.dimension_semantics<parallel>], iteration_bounds = array<i64: 2>, scalar_prefetch = 0 : i64, scratch_operands = 1 : i64, tpu.core_type = #tpu.core_type<tc>, window_params = [{transform_indices = @transform_0, window_bounds = array<i64: 1, 100, 16>}, {transform_indices = @transform_1, window_bounds = array<i64: 1, 100, 16>}, {transform_indices = @transform_2, window_bounds = array<i64: 1, 100, 16>}, {transform_indices = @transform_3, window_bounds = array<i64: 1, 100, 16>}, {pipeline_mode = #tpu.pipeline_mode<synchronous>, transform_indices = @transform_4, window_bounds = array<i64: 9, 16, 32>}, {pipeline_mode = #tpu.pipeline_mode<synchronous>, transform_indices = @transform_5, window_bounds = array<i64: 1, 32>}, {pipeline_mode = #tpu.pipeline_mode<synchronous>, transform_indices = @transform_6, window_bounds = array<i64: 16, 32>}, {pipeline_mode = #tpu.pipeline_mode<synchronous>, transform_indices = @transform_7, window_bounds = array<i64: 1, 32>}, {pipeline_mode = #tpu.pipeline_mode<synchronous>, transform_indices = @transform_8, window_bounds = array<i64: 9, 32, 32>}, {pipeline_mode = #tpu.pipeline_mode<synchronous>, transform_indices = @transform_9, window_bounds = array<i64: 1, 32>}, {pipeline_mode = #tpu.pipeline_mode<synchronous>, transform_indices = @transform_10, window_bounds = array<i64: 78, 1>}, {pipeline_mode = #tpu.pipeline_mode<synchronous>, transform_indices = @transform_11, window_bounds = array<i64: 1, 78>}, {transform_indices = @transform_12, window_bounds = array<i64: 1, 1, 32>}]} {
    %c0 = arith.constant 0 : index
    %c0_0 = arith.constant 0 : index
    %0 = vector.load %arg11[%c0, %c0_0] : memref<78x1xf32, #tpu.memory_space<vmem>>, vector<78x1xf32>
    %c0_1 = arith.constant 0 : index
    %c0_2 = arith.constant 0 : index
    %c0_3 = arith.constant 0 : index
    %1 = vector.load %arg1[%c0_1, %c0_2, %c0_3] : memref<1x100x16xf32, #tpu.memory_space<vmem>>, vector<1x78x16xf32>
    %2 = vector.shape_cast %1 : vector<1x78x16xf32> to vector<78x16xf32>
    %c0_4 = arith.constant 0 : index
    %c0_5 = arith.constant 0 : index
    %c0_6 = arith.constant 0 : index
    %3 = vector.load %arg5[%c0_4, %c0_5, %c0_6] : memref<9x16x32xf32, #tpu.memory_space<vmem>>, vector<1x16x32xf32>
    %4 = vector.shape_cast %3 : vector<1x16x32xf32> to vector<16x32xf32>
    %cst = arith.constant dense<0.000000e+00> : vector<78x32xf32>
    %5 = tpu.matmul %2, %4, %cst {dimension_numbers = #tpu.dot_dimension_numbers<[1], [0], [0], [1], [0, 0, 1, 1], [], []>} : vector<78x16xf32>, vector<16x32xf32>, vector<78x32xf32> -> vector<78x32xf32>
    %c0_7 = arith.constant 0 : index
    %c0_8 = arith.constant 0 : index
    %c0_9 = arith.constant 0 : index
    %6 = vector.load %arg2[%c0_7, %c0_8, %c0_9] : memref<1x100x16xf32, #tpu.memory_space<vmem>>, vector<1x78x16xf32>
    %7 = vector.shape_cast %6 : vector<1x78x16xf32> to vector<78x16xf32>
    %c1 = arith.constant 1 : index
    %c0_10 = arith.constant 0 : index
    %c0_11 = arith.constant 0 : index
    %8 = vector.load %arg5[%c1, %c0_10, %c0_11] : memref<9x16x32xf32, #tpu.memory_space<vmem>>, vector<1x16x32xf32>
    %9 = vector.shape_cast %8 : vector<1x16x32xf32> to vector<16x32xf32>
    %cst_12 = arith.constant dense<0.000000e+00> : vector<78x32xf32>
    %10 = tpu.matmul %7, %9, %cst_12 {dimension_numbers = #tpu.dot_dimension_numbers<[1], [0], [0], [1], [0, 0, 1, 1], [], []>} : vector<78x16xf32>, vector<16x32xf32>, vector<78x32xf32> -> vector<78x32xf32>
    %11 = arith.addf %5, %10 : vector<78x32xf32>
    %c0_13 = arith.constant 0 : index
    %c1_14 = arith.constant 1 : index
    %c0_15 = arith.constant 0 : index
    %12 = vector.load %arg1[%c0_13, %c1_14, %c0_15] : memref<1x100x16xf32, #tpu.memory_space<vmem>>, vector<1x78x16xf32>
    %13 = vector.shape_cast %12 : vector<1x78x16xf32> to vector<78x16xf32>
    %c2 = arith.constant 2 : index
    %c0_16 = arith.constant 0 : index
    %c0_17 = arith.constant 0 : index
    %14 = vector.load %arg5[%c2, %c0_16, %c0_17] : memref<9x16x32xf32, #tpu.memory_space<vmem>>, vector<1x16x32xf32>
    %15 = vector.shape_cast %14 : vector<1x16x32xf32> to vector<16x32xf32>
    %cst_18 = arith.constant dense<0.000000e+00> : vector<78x32xf32>
    %16 = tpu.matmul %13, %15, %cst_18 {dimension_numbers = #tpu.dot_dimension_numbers<[1], [0], [0], [1], [0, 0, 1, 1], [], []>} : vector<78x16xf32>, vector<16x32xf32>, vector<78x32xf32> -> vector<78x32xf32>
    %17 = arith.addf %11, %16 : vector<78x32xf32>
    %c0_19 = arith.constant 0 : index
    %c0_20 = arith.constant 0 : index
    %c0_21 = arith.constant 0 : index
    %18 = vector.load %arg3[%c0_19, %c0_20, %c0_21] : memref<1x100x16xf32, #tpu.memory_space<vmem>>, vector<1x78x16xf32>
    %19 = vector.shape_cast %18 : vector<1x78x16xf32> to vector<78x16xf32>
    %c3 = arith.constant 3 : index
    %c0_22 = arith.constant 0 : index
    %c0_23 = arith.constant 0 : index
    %20 = vector.load %arg5[%c3, %c0_22, %c0_23] : memref<9x16x32xf32, #tpu.memory_space<vmem>>, vector<1x16x32xf32>
    %21 = vector.shape_cast %20 : vector<1x16x32xf32> to vector<16x32xf32>
    %cst_24 = arith.constant dense<0.000000e+00> : vector<78x32xf32>
    %22 = tpu.matmul %19, %21, %cst_24 {dimension_numbers = #tpu.dot_dimension_numbers<[1], [0], [0], [1], [0, 0, 1, 1], [], []>} : vector<78x16xf32>, vector<16x32xf32>, vector<78x32xf32> -> vector<78x32xf32>
    %23 = arith.addf %17, %22 : vector<78x32xf32>
    %c0_25 = arith.constant 0 : index
    %c0_26 = arith.constant 0 : index
    %c0_27 = arith.constant 0 : index
    %24 = vector.load %arg4[%c0_25, %c0_26, %c0_27] : memref<1x100x16xf32, #tpu.memory_space<vmem>>, vector<1x78x16xf32>
    %25 = vector.shape_cast %24 : vector<1x78x16xf32> to vector<78x16xf32>
    %c4 = arith.constant 4 : index
    %c0_28 = arith.constant 0 : index
    %c0_29 = arith.constant 0 : index
    %26 = vector.load %arg5[%c4, %c0_28, %c0_29] : memref<9x16x32xf32, #tpu.memory_space<vmem>>, vector<1x16x32xf32>
    %27 = vector.shape_cast %26 : vector<1x16x32xf32> to vector<16x32xf32>
    %cst_30 = arith.constant dense<0.000000e+00> : vector<78x32xf32>
    %28 = tpu.matmul %25, %27, %cst_30 {dimension_numbers = #tpu.dot_dimension_numbers<[1], [0], [0], [1], [0, 0, 1, 1], [], []>} : vector<78x16xf32>, vector<16x32xf32>, vector<78x32xf32> -> vector<78x32xf32>
    %29 = arith.addf %23, %28 : vector<78x32xf32>
    %c0_31 = arith.constant 0 : index
    %c1_32 = arith.constant 1 : index
    %c0_33 = arith.constant 0 : index
    %30 = vector.load %arg3[%c0_31, %c1_32, %c0_33] : memref<1x100x16xf32, #tpu.memory_space<vmem>>, vector<1x78x16xf32>
    %31 = vector.shape_cast %30 : vector<1x78x16xf32> to vector<78x16xf32>
    %c5 = arith.constant 5 : index
    %c0_34 = arith.constant 0 : index
    %c0_35 = arith.constant 0 : index
    %32 = vector.load %arg5[%c5, %c0_34, %c0_35] : memref<9x16x32xf32, #tpu.memory_space<vmem>>, vector<1x16x32xf32>
    %33 = vector.shape_cast %32 : vector<1x16x32xf32> to vector<16x32xf32>
    %cst_36 = arith.constant dense<0.000000e+00> : vector<78x32xf32>
    %34 = tpu.matmul %31, %33, %cst_36 {dimension_numbers = #tpu.dot_dimension_numbers<[1], [0], [0], [1], [0, 0, 1, 1], [], []>} : vector<78x16xf32>, vector<16x32xf32>, vector<78x32xf32> -> vector<78x32xf32>
    %35 = arith.addf %29, %34 : vector<78x32xf32>
    %c0_37 = arith.constant 0 : index
    %c10 = arith.constant 10 : index
    %c0_38 = arith.constant 0 : index
    %36 = vector.load %arg1[%c0_37, %c10, %c0_38] : memref<1x100x16xf32, #tpu.memory_space<vmem>>, vector<1x78x16xf32>
    %37 = vector.shape_cast %36 : vector<1x78x16xf32> to vector<78x16xf32>
    %c6 = arith.constant 6 : index
    %c0_39 = arith.constant 0 : index
    %c0_40 = arith.constant 0 : index
    %38 = vector.load %arg5[%c6, %c0_39, %c0_40] : memref<9x16x32xf32, #tpu.memory_space<vmem>>, vector<1x16x32xf32>
    %39 = vector.shape_cast %38 : vector<1x16x32xf32> to vector<16x32xf32>
    %cst_41 = arith.constant dense<0.000000e+00> : vector<78x32xf32>
    %40 = tpu.matmul %37, %39, %cst_41 {dimension_numbers = #tpu.dot_dimension_numbers<[1], [0], [0], [1], [0, 0, 1, 1], [], []>} : vector<78x16xf32>, vector<16x32xf32>, vector<78x32xf32> -> vector<78x32xf32>
    %41 = arith.addf %35, %40 : vector<78x32xf32>
    %c0_42 = arith.constant 0 : index
    %c10_43 = arith.constant 10 : index
    %c0_44 = arith.constant 0 : index
    %42 = vector.load %arg2[%c0_42, %c10_43, %c0_44] : memref<1x100x16xf32, #tpu.memory_space<vmem>>, vector<1x78x16xf32>
    %43 = vector.shape_cast %42 : vector<1x78x16xf32> to vector<78x16xf32>
    %c7 = arith.constant 7 : index
    %c0_45 = arith.constant 0 : index
    %c0_46 = arith.constant 0 : index
    %44 = vector.load %arg5[%c7, %c0_45, %c0_46] : memref<9x16x32xf32, #tpu.memory_space<vmem>>, vector<1x16x32xf32>
    %45 = vector.shape_cast %44 : vector<1x16x32xf32> to vector<16x32xf32>
    %cst_47 = arith.constant dense<0.000000e+00> : vector<78x32xf32>
    %46 = tpu.matmul %43, %45, %cst_47 {dimension_numbers = #tpu.dot_dimension_numbers<[1], [0], [0], [1], [0, 0, 1, 1], [], []>} : vector<78x16xf32>, vector<16x32xf32>, vector<78x32xf32> -> vector<78x32xf32>
    %47 = arith.addf %41, %46 : vector<78x32xf32>
    %c0_48 = arith.constant 0 : index
    %c11 = arith.constant 11 : index
    %c0_49 = arith.constant 0 : index
    %48 = vector.load %arg1[%c0_48, %c11, %c0_49] : memref<1x100x16xf32, #tpu.memory_space<vmem>>, vector<1x78x16xf32>
    %49 = vector.shape_cast %48 : vector<1x78x16xf32> to vector<78x16xf32>
    %c8 = arith.constant 8 : index
    %c0_50 = arith.constant 0 : index
    %c0_51 = arith.constant 0 : index
    %50 = vector.load %arg5[%c8, %c0_50, %c0_51] : memref<9x16x32xf32, #tpu.memory_space<vmem>>, vector<1x16x32xf32>
    %51 = vector.shape_cast %50 : vector<1x16x32xf32> to vector<16x32xf32>
    %cst_52 = arith.constant dense<0.000000e+00> : vector<78x32xf32>
    %52 = tpu.matmul %49, %51, %cst_52 {dimension_numbers = #tpu.dot_dimension_numbers<[1], [0], [0], [1], [0, 0, 1, 1], [], []>} : vector<78x16xf32>, vector<16x32xf32>, vector<78x32xf32> -> vector<78x32xf32>
    %53 = arith.addf %47, %52 : vector<78x32xf32>
    %c0_53 = arith.constant 0 : index
    %c0_54 = arith.constant 0 : index
    %54 = vector.load %arg6[%c0_53, %c0_54] : memref<1x32xf32, #tpu.memory_space<vmem>>, vector<1x32xf32>
    %55 = vector.broadcast %54 : vector<1x32xf32> to vector<78x32xf32>
    %56 = arith.addf %53, %55 : vector<78x32xf32>
    %cst_55 = arith.constant 0.000000e+00 : f32
    %57 = vector.broadcast %cst_55 : f32 to vector<78x32xf32>
    %58 = arith.maximumf %56, %57 : vector<78x32xf32>
    %cst_56 = arith.constant 0.000000e+00 : f32
    %59 = vector.broadcast %cst_56 : f32 to vector<100x32xf32>
    %c0_57 = arith.constant 0 : index
    %c0_58 = arith.constant 0 : index
    %60 = vector.load %arg14[%c0_57, %c0_58] : memref<100x32xf32, #tpu.memory_space<vmem>>, vector<100x32xf32>
    tpu.vector_store %arg14[%c0_57, %c0_58], %59 {strides = array<i32>} : memref<100x32xf32, #tpu.memory_space<vmem>>, vector<100x32xf32>,
    %61 = vector.broadcast %0 : vector<78x1xf32> to vector<78x32xf32>
    %62 = arith.mulf %58, %61 : vector<78x32xf32>
    %c11_59 = arith.constant 11 : index
    %c0_60 = arith.constant 0 : index
    %63 = vector.load %arg14[%c11_59, %c0_60] : memref<100x32xf32, #tpu.memory_space<vmem>>, vector<78x32xf32>
    tpu.vector_store %arg14[%c11_59, %c0_60], %62 {strides = array<i32>} : memref<100x32xf32, #tpu.memory_space<vmem>>, vector<78x32xf32>,
    %c0_61 = arith.constant 0 : index
    %c0_62 = arith.constant 0 : index
    %c0_63 = arith.constant 0 : index
    %64 = vector.load %arg4[%c0_61, %c0_62, %c0_63] : memref<1x100x16xf32, #tpu.memory_space<vmem>>, vector<1x78x16xf32>
    %65 = vector.shape_cast %64 : vector<1x78x16xf32> to vector<78x16xf32>
    %c0_64 = arith.constant 0 : index
    %c0_65 = arith.constant 0 : index
    %66 = vector.load %arg7[%c0_64, %c0_65] : memref<16x32xf32, #tpu.memory_space<vmem>>, vector<16x32xf32>
    %cst_66 = arith.constant dense<0.000000e+00> : vector<78x32xf32>
    %67 = tpu.matmul %65, %66, %cst_66 {dimension_numbers = #tpu.dot_dimension_numbers<[1], [0], [0], [1], [0, 0, 1, 1], [], []>} : vector<78x16xf32>, vector<16x32xf32>, vector<78x32xf32> -> vector<78x32xf32>
    %c0_67 = arith.constant 0 : index
    %c0_68 = arith.constant 0 : index
    %68 = vector.load %arg8[%c0_67, %c0_68] : memref<1x32xf32, #tpu.memory_space<vmem>>, vector<1x32xf32>
    %69 = vector.broadcast %68 : vector<1x32xf32> to vector<78x32xf32>
    %70 = arith.addf %67, %69 : vector<78x32xf32>
    %c0_69 = arith.constant 0 : index
    %c0_70 = arith.constant 0 : index
    %71 = vector.load %arg14[%c0_69, %c0_70] : memref<100x32xf32, #tpu.memory_space<vmem>>, vector<78x32xf32>
    %c0_71 = arith.constant 0 : index
    %c0_72 = arith.constant 0 : index
    %c0_73 = arith.constant 0 : index
    %72 = vector.load %arg9[%c0_71, %c0_72, %c0_73] : memref<9x32x32xf32, #tpu.memory_space<vmem>>, vector<1x32x32xf32>
    %73 = vector.shape_cast %72 : vector<1x32x32xf32> to vector<32x32xf32>
    %cst_74 = arith.constant dense<0.000000e+00> : vector<78x32xf32>
    %74 = tpu.matmul %71, %73, %cst_74 {dimension_numbers = #tpu.dot_dimension_numbers<[1], [0], [0], [1], [0, 0, 1, 1], [], []>} : vector<78x32xf32>, vector<32x32xf32>, vector<78x32xf32> -> vector<78x32xf32>
    %c1_75 = arith.constant 1 : index
    %c0_76 = arith.constant 0 : index
    %75 = vector.load %arg14[%c1_75, %c0_76] : memref<100x32xf32, #tpu.memory_space<vmem>>, vector<78x32xf32>
    %c1_77 = arith.constant 1 : index
    %c0_78 = arith.constant 0 : index
    %c0_79 = arith.constant 0 : index
    %76 = vector.load %arg9[%c1_77, %c0_78, %c0_79] : memref<9x32x32xf32, #tpu.memory_space<vmem>>, vector<1x32x32xf32>
    %77 = vector.shape_cast %76 : vector<1x32x32xf32> to vector<32x32xf32>
    %cst_80 = arith.constant dense<0.000000e+00> : vector<78x32xf32>
    %78 = tpu.matmul %75, %77, %cst_80 {dimension_numbers = #tpu.dot_dimension_numbers<[1], [0], [0], [1], [0, 0, 1, 1], [], []>} : vector<78x32xf32>, vector<32x32xf32>, vector<78x32xf32> -> vector<78x32xf32>
    %79 = arith.addf %74, %78 : vector<78x32xf32>
    %c2_81 = arith.constant 2 : index
    %c0_82 = arith.constant 0 : index
    %80 = vector.load %arg14[%c2_81, %c0_82] : memref<100x32xf32, #tpu.memory_space<vmem>>, vector<78x32xf32>
    %c2_83 = arith.constant 2 : index
    %c0_84 = arith.constant 0 : index
    %c0_85 = arith.constant 0 : index
    %81 = vector.load %arg9[%c2_83, %c0_84, %c0_85] : memref<9x32x32xf32, #tpu.memory_space<vmem>>, vector<1x32x32xf32>
    %82 = vector.shape_cast %81 : vector<1x32x32xf32> to vector<32x32xf32>
    %cst_86 = arith.constant dense<0.000000e+00> : vector<78x32xf32>
    %83 = tpu.matmul %80, %82, %cst_86 {dimension_numbers = #tpu.dot_dimension_numbers<[1], [0], [0], [1], [0, 0, 1, 1], [], []>} : vector<78x32xf32>, vector<32x32xf32>, vector<78x32xf32> -> vector<78x32xf32>
    %84 = arith.addf %79, %83 : vector<78x32xf32>
    %c10_87 = arith.constant 10 : index
    %c0_88 = arith.constant 0 : index
    %85 = vector.load %arg14[%c10_87, %c0_88] : memref<100x32xf32, #tpu.memory_space<vmem>>, vector<78x32xf32>
    %c3_89 = arith.constant 3 : index
    %c0_90 = arith.constant 0 : index
    %c0_91 = arith.constant 0 : index
    %86 = vector.load %arg9[%c3_89, %c0_90, %c0_91] : memref<9x32x32xf32, #tpu.memory_space<vmem>>, vector<1x32x32xf32>
    %87 = vector.shape_cast %86 : vector<1x32x32xf32> to vector<32x32xf32>
    %cst_92 = arith.constant dense<0.000000e+00> : vector<78x32xf32>
    %88 = tpu.matmul %85, %87, %cst_92 {dimension_numbers = #tpu.dot_dimension_numbers<[1], [0], [0], [1], [0, 0, 1, 1], [], []>} : vector<78x32xf32>, vector<32x32xf32>, vector<78x32xf32> -> vector<78x32xf32>
    %89 = arith.addf %84, %88 : vector<78x32xf32>
    %c11_93 = arith.constant 11 : index
    %c0_94 = arith.constant 0 : index
    %90 = vector.load %arg14[%c11_93, %c0_94] : memref<100x32xf32, #tpu.memory_space<vmem>>, vector<78x32xf32>
    %c4_95 = arith.constant 4 : index
    %c0_96 = arith.constant 0 : index
    %c0_97 = arith.constant 0 : index
    %91 = vector.load %arg9[%c4_95, %c0_96, %c0_97] : memref<9x32x32xf32, #tpu.memory_space<vmem>>, vector<1x32x32xf32>
    %92 = vector.shape_cast %91 : vector<1x32x32xf32> to vector<32x32xf32>
    %cst_98 = arith.constant dense<0.000000e+00> : vector<78x32xf32>
    %93 = tpu.matmul %90, %92, %cst_98 {dimension_numbers = #tpu.dot_dimension_numbers<[1], [0], [0], [1], [0, 0, 1, 1], [], []>} : vector<78x32xf32>, vector<32x32xf32>, vector<78x32xf32> -> vector<78x32xf32>
    %94 = arith.addf %89, %93 : vector<78x32xf32>
    %c12 = arith.constant 12 : index
    %c0_99 = arith.constant 0 : index
    %95 = vector.load %arg14[%c12, %c0_99] : memref<100x32xf32, #tpu.memory_space<vmem>>, vector<78x32xf32>
    %c5_100 = arith.constant 5 : index
    %c0_101 = arith.constant 0 : index
    %c0_102 = arith.constant 0 : index
    %96 = vector.load %arg9[%c5_100, %c0_101, %c0_102] : memref<9x32x32xf32, #tpu.memory_space<vmem>>, vector<1x32x32xf32>
    %97 = vector.shape_cast %96 : vector<1x32x32xf32> to vector<32x32xf32>
    %cst_103 = arith.constant dense<0.000000e+00> : vector<78x32xf32>
    %98 = tpu.matmul %95, %97, %cst_103 {dimension_numbers = #tpu.dot_dimension_numbers<[1], [0], [0], [1], [0, 0, 1, 1], [], []>} : vector<78x32xf32>, vector<32x32xf32>, vector<78x32xf32> -> vector<78x32xf32>
    %99 = arith.addf %94, %98 : vector<78x32xf32>
    %c20 = arith.constant 20 : index
    %c0_104 = arith.constant 0 : index
    %100 = vector.load %arg14[%c20, %c0_104] : memref<100x32xf32, #tpu.memory_space<vmem>>, vector<78x32xf32>
    %c6_105 = arith.constant 6 : index
    %c0_106 = arith.constant 0 : index
    %c0_107 = arith.constant 0 : index
    %101 = vector.load %arg9[%c6_105, %c0_106, %c0_107] : memref<9x32x32xf32, #tpu.memory_space<vmem>>, vector<1x32x32xf32>
    %102 = vector.shape_cast %101 : vector<1x32x32xf32> to vector<32x32xf32>
    %cst_108 = arith.constant dense<0.000000e+00> : vector<78x32xf32>
    %103 = tpu.matmul %100, %102, %cst_108 {dimension_numbers = #tpu.dot_dimension_numbers<[1], [0], [0], [1], [0, 0, 1, 1], [], []>} : vector<78x32xf32>, vector<32x32xf32>, vector<78x32xf32> -> vector<78x32xf32>
    %104 = arith.addf %99, %103 : vector<78x32xf32>
    %c21 = arith.constant 21 : index
    %c0_109 = arith.constant 0 : index
    %105 = vector.load %arg14[%c21, %c0_109] : memref<100x32xf32, #tpu.memory_space<vmem>>, vector<78x32xf32>
    %c7_110 = arith.constant 7 : index
    %c0_111 = arith.constant 0 : index
    %c0_112 = arith.constant 0 : index
    %106 = vector.load %arg9[%c7_110, %c0_111, %c0_112] : memref<9x32x32xf32, #tpu.memory_space<vmem>>, vector<1x32x32xf32>
    %107 = vector.shape_cast %106 : vector<1x32x32xf32> to vector<32x32xf32>
    %cst_113 = arith.constant dense<0.000000e+00> : vector<78x32xf32>
    %108 = tpu.matmul %105, %107, %cst_113 {dimension_numbers = #tpu.dot_dimension_numbers<[1], [0], [0], [1], [0, 0, 1, 1], [], []>} : vector<78x32xf32>, vector<32x32xf32>, vector<78x32xf32> -> vector<78x32xf32>
    %109 = arith.addf %104, %108 : vector<78x32xf32>
    %c22 = arith.constant 22 : index
    %c0_114 = arith.constant 0 : index
    %110 = vector.load %arg14[%c22, %c0_114] : memref<100x32xf32, #tpu.memory_space<vmem>>, vector<78x32xf32>
    %c8_115 = arith.constant 8 : index
    %c0_116 = arith.constant 0 : index
    %c0_117 = arith.constant 0 : index
    %111 = vector.load %arg9[%c8_115, %c0_116, %c0_117] : memref<9x32x32xf32, #tpu.memory_space<vmem>>, vector<1x32x32xf32>
    %112 = vector.shape_cast %111 : vector<1x32x32xf32> to vector<32x32xf32>
    %cst_118 = arith.constant dense<0.000000e+00> : vector<78x32xf32>
    %113 = tpu.matmul %110, %112, %cst_118 {dimension_numbers = #tpu.dot_dimension_numbers<[1], [0], [0], [1], [0, 0, 1, 1], [], []>} : vector<78x32xf32>, vector<32x32xf32>, vector<78x32xf32> -> vector<78x32xf32>
    %114 = arith.addf %109, %113 : vector<78x32xf32>
    %c0_119 = arith.constant 0 : index
    %c0_120 = arith.constant 0 : index
    %115 = vector.load %arg10[%c0_119, %c0_120] : memref<1x32xf32, #tpu.memory_space<vmem>>, vector<1x32xf32>
    %116 = vector.broadcast %115 : vector<1x32xf32> to vector<78x32xf32>
    %117 = arith.addf %114, %116 : vector<78x32xf32>
    %118 = arith.addf %117, %70 : vector<78x32xf32>
    %cst_121 = arith.constant 0.000000e+00 : f32
    %119 = vector.broadcast %cst_121 : f32 to vector<78x32xf32>
    %120 = arith.maximumf %118, %119 : vector<78x32xf32>
    %c0_122 = arith.constant 0 : index
    %c0_123 = arith.constant 0 : index
    %121 = vector.load %arg12[%c0_122, %c0_123] : memref<1x78xf32, #tpu.memory_space<vmem>>, vector<1x78xf32>
    %cst_124 = arith.constant dense<0.000000e+00> : vector<1x32xf32>
    %122 = tpu.matmul %121, %120, %cst_124 {dimension_numbers = #tpu.dot_dimension_numbers<[1], [0], [0], [1], [0, 0, 1, 1], [], []>} : vector<1x78xf32>, vector<78x32xf32>, vector<1x32xf32> -> vector<1x32xf32>
    %c0_125 = arith.constant 0 : index
    %c0_126 = arith.constant 0 : index
    %c0_127 = arith.constant 0 : index
    %123 = vector.load %arg13[%c0_125, %c0_126, %c0_127] : memref<1x1x32xf32, #tpu.memory_space<vmem>>, vector<1x1x32xf32>
    %124 = vector.shape_cast %123 : vector<1x1x32xf32> to vector<1x32xf32>
    %125 = vector.shape_cast %122 : vector<1x32xf32> to vector<1x1x32xf32>
    tpu.vector_store %arg13[%c0_125, %c0_126, %c0_127], %125 {strides = array<i32>} : memref<1x1x32xf32, #tpu.memory_space<vmem>>, vector<1x1x32xf32>,
    return
  }
  func.func @transform_0(%arg0: i32) -> (i32, i32, i32) {
    %c0_i32 = arith.constant 0 : i32
    %c0_i32_0 = arith.constant 0 : i32
    %c0_i32_1 = arith.constant 0 : i32
    return %arg0, %c0_i32, %c0_i32_0 : i32, i32, i32
  }
  func.func @transform_1(%arg0: i32) -> (i32, i32, i32) {
    %c0_i32 = arith.constant 0 : i32
    %c0_i32_0 = arith.constant 0 : i32
    %c0_i32_1 = arith.constant 0 : i32
    return %arg0, %c0_i32, %c0_i32_0 : i32, i32, i32
  }
  func.func @transform_2(%arg0: i32) -> (i32, i32, i32) {
    %c0_i32 = arith.constant 0 : i32
    %c0_i32_0 = arith.constant 0 : i32
    %c0_i32_1 = arith.constant 0 : i32
    return %arg0, %c0_i32, %c0_i32_0 : i32, i32, i32
  }
  func.func @transform_3(%arg0: i32) -> (i32, i32, i32) {
    %c0_i32 = arith.constant 0 : i32
    %c0_i32_0 = arith.constant 0 : i32
    %c0_i32_1 = arith.constant 0 : i32
    return %arg0, %c0_i32, %c0_i32_0 : i32, i32, i32
  }
  func.func @transform_4(%arg0: i32) -> (i32, i32, i32) {
    %c0_i32 = arith.constant 0 : i32
    %c0_i32_0 = arith.constant 0 : i32
    %c0_i32_1 = arith.constant 0 : i32
    %c0_i32_2 = arith.constant 0 : i32
    return %c0_i32, %c0_i32_0, %c0_i32_1 : i32, i32, i32
  }
  func.func @transform_5(%arg0: i32) -> (i32, i32) {
    %c0_i32 = arith.constant 0 : i32
    %c0_i32_0 = arith.constant 0 : i32
    %c0_i32_1 = arith.constant 0 : i32
    return %c0_i32, %c0_i32_0 : i32, i32
  }
  func.func @transform_6(%arg0: i32) -> (i32, i32) {
    %c0_i32 = arith.constant 0 : i32
    %c0_i32_0 = arith.constant 0 : i32
    %c0_i32_1 = arith.constant 0 : i32
    return %c0_i32, %c0_i32_0 : i32, i32
  }
  func.func @transform_7(%arg0: i32) -> (i32, i32) {
    %c0_i32 = arith.constant 0 : i32
    %c0_i32_0 = arith.constant 0 : i32
    %c0_i32_1 = arith.constant 0 : i32
    return %c0_i32, %c0_i32_0 : i32, i32
  }
  func.func @transform_8(%arg0: i32) -> (i32, i32, i32) {
    %c0_i32 = arith.constant 0 : i32
    %c0_i32_0 = arith.constant 0 : i32
    %c0_i32_1 = arith.constant 0 : i32
    %c0_i32_2 = arith.constant 0 : i32
    return %c0_i32, %c0_i32_0, %c0_i32_1 : i32, i32, i32
  }
  func.func @transform_9(%arg0: i32) -> (i32, i32) {
    %c0_i32 = arith.constant 0 : i32
    %c0_i32_0 = arith.constant 0 : i32
    %c0_i32_1 = arith.constant 0 : i32
    return %c0_i32, %c0_i32_0 : i32, i32
  }
  func.func @transform_10(%arg0: i32) -> (i32, i32) {
    %c0_i32 = arith.constant 0 : i32
    %c0_i32_0 = arith.constant 0 : i32
    %c0_i32_1 = arith.constant 0 : i32
    return %c0_i32, %c0_i32_0 : i32, i32
  }
  func.func @transform_11(%arg0: i32) -> (i32, i32) {
    %c0_i32 = arith.constant 0 : i32
    %c0_i32_0 = arith.constant 0 : i32
    %c0_i32_1 = arith.constant 0 : i32
    return %c0_i32, %c0_i32_0 : i32, i32
  }
  func.func @transform_12(%arg0: i32) -> (i32, i32, i32) {
    %c0_i32 = arith.constant 0 : i32
    %c0_i32_0 = arith.constant 0 : i32
    %c0_i32_1 = arith.constant 0 : i32
    return %arg0, %c0_i32, %c0_i32_0 : i32, i32, i32
  }
}

</mosaic_0001>

<bundles_post_ra>
// kernel: simclr_forward.3
= control target key start
LH: loop header
LB: loop body
LE: loop exit
PB: predicated region body
PF: predicated region fallthrough
CT: control target
= control target key end

     0   :  { %s6074_s0 = inlined_call_operand.vmem [shape: f32[2,100,16], index: 0, kind: input, shape index: {}]   ;;  %s6075_s1 = inlined_call_operand.vmem [shape: f32[2,100,16], index: 1, kind: input, shape index: {}]   ;;  %s6076_s2 = inlined_call_operand.vmem [shape: f32[2,100,16], index: 2, kind: input, shape index: {}]   ;;  %s6077_s3 = inlined_call_operand.vmem [shape: f32[2,100,16], index: 3, kind: input, shape index: {}]   ;;  %s6078_s4 = inlined_call_operand.vmem [shape: f32[9,16,32], index: 4, kind: input, shape index: {}]   ;;  %s6079_s5 = inlined_call_operand.vmem [shape: f32[1,32], index: 5, kind: input, shape index: {}]   ;;  %s6080_s6 = inlined_call_operand.vmem [shape: f32[16,32], index: 6, kind: input, shape index: {}]   ;;  %s6081_s7 = inlined_call_operand.vmem [shape: f32[1,32], index: 7, kind: input, shape index: {}]   ;;  %s6082_s8 = inlined_call_operand.vmem [shape: f32[9,32,32], index: 8, kind: input, shape index: {}]   ;;  %s6083_s9 = inlined_call_operand.vmem [shape: f32[1,32], index: 9, kind: input, shape index: {}]   ;;  %s6084_s10 = inlined_call_operand.vmem [shape: f32[78,1], index: 10, kind: input, shape index: {}]   ;;  %s6085_s11 = inlined_call_operand.vmem [shape: f32[1,78], index: 11, kind: input, shape index: {}]   ;;  %s6086_s12 = inlined_call_operand.hbm [shape: f32[2,1,32], index: 12, kind: output, shape index: {}]  }
   0x1   :  { %6092 = sst [smem:[#allocation20_spill]] %s6074_s0 }
   0x2   :  { %6093 = sst [smem:[#allocation21_spill]] %s6075_s1 }
   0x3   :  { %17 = vsyncpa [#allocation4], 0 }
   0x4   :  { %19 = vsyncpa [#allocation4 + $0x1], 0  ;;  %s5092_s21 = smov 0   ;;  %s5094_s22 = smov 0  }
   0x5   :  { %s5096_s23 = smov 0   ;;  %s5098_s24 = smov 0  }
   0x6 LB: > { %s5113_s25 = sadd.s32 4294967295, %s5021_s24   ;;  %s3981_s26 = sadd.s32 4294967294, %s5021_s24   ;;  %s5021_s24 = sphi %s5098_s24, %s6155_s24   ;;  %s5017_s23 = sphi %s5096_s23, %s6154_s23   ;;  %s5013_s22 = sphi %s5094_s22, %s6153_s22   ;;  %s5009_s21 = sphi %s5092_s21, %s6152_s21  }
   0x7   : > { %s5117_s27 = sadd.s32 1, %s5021_s24   ;;  %s304_s28 = sadd.s32 1, %s5017_s23 }
   0x8   : > { %s301_s29 = ssub.s32 %s5021_s24, %s5117_s27  ;;  %p314_p0 = scmp.ne.s32.totalorder %s5017_s23, %s5013_s22 }
   0x9   : > { %p302_p1 = scmp.eq.s32.totalorder %s301_s29, 0  ;;  %p315_p2 = scmp.eq.s32.totalorder %s5113_s25, 1 }
   0xa   : > { %p320_p3 = scmp.ne.s32.totalorder %s5013_s22, %s5009_s21  ;;  %p321_p4 = scmp.eq.s32.totalorder %s3981_s26, 1 }
   0xb   : > { %s5128_s30 = scalar_select %p302_p1, %s5017_s23, %s304_s28  }
   0xc   : > { %p5130_p5 = por %p315_p2, %p314_p0  ;;  %p5134_p6 = por %p321_p4, %p320_p3 }
   0xd   : > { %p3984_p7 = scmp.ge.s32.totalorder %s5021_s24, 1  ;;  %p395_p8 = scmp.lt.s32.totalorder %s5021_s24, 3 }
   0xf   : > { %p396_p9 = pnand %p3984_p7, %p395_p8 }
  0x11   : > { %399 = sbr.rel (%p396_p9) target bundleno = 838 (0x346), region = 68 }
  0x16   : > { %v3990_v0 = vld [vmem:[%s6078_s4 + $0x18] sm:$0xff]  ;;  %v3989_v1 = vld [vmem:[%s6078_s4 + $0x10] sm:$0xff]  ;;  %p451_p10 = scmp.lt.s32.totalorder %s5113_s25, 1  ;;  %v4012_v2 = vld [vmem:[%s6078_s4 + $0x28] sm:$0xff]  ;;  %vm506_vm0 = vcmask 130048   ;;  %s6096_s1 = sld [smem:[#allocation21_spill]] }
  0x17   : > { %4492 = vmatprep.subr.mxu0 %v3990_v0  ;;  %4912 = vmatprep.subr.mxu1 %v3990_v0  ;;  %v492_v3 = vld [vmem:[%s6078_s4 + $0x8] sm:$0xff]  ;;  %v5023_v4 = vmov 0   ;;  %v471_v5 = vld [vmem:[%s6084_s10] sm:$0xff]  ;;  %v473_v6 = vld [vmem:[%s6084_s10 + $0x10] sm:$0xff]  ;;  %s6097_s0 = sld [smem:[#allocation20_spill]]  ;;  %vm2000_vm1 = vcmask 261120  }
  0x18   : > { %4493 = vmatpush3.msra.mxu0 %v3990_v0  ;;  %4914 = vmatpush3.msra.mxu1 %v3990_v0  ;;  %s452_s19 = scalar_select %p451_p10, %s5113_s25, 1  ;;  %v491_v13 = vld [vmem:[%s6078_s4] sm:$0xff]  ;;  %v4024_v19 = vld [vmem:[%s6078_s4 + $0x38] sm:$0xff]  ;;  %v4036_v20 = vld [vmem:[%s6078_s4 + $0x48] sm:$0xff]  ;;  %vm2013_vm2 = vcmask 257024   ;;  %vm2084_vm3 = vcmask 259072  }
  0x19   : > { %4494 = vmatprep.subr.mxu0 %v3989_v1  ;;  %4913 = vmatprep.subr.mxu1 %v3989_v1  ;;  %v4011_v14 = vld [vmem:[%s6078_s4 + $0x20] sm:$0xff]  ;;  %v472_v25 = vld [vmem:[%s6084_s10 + $0x8] sm:$0xff]  ;;  %v4023_v26 = vld [vmem:[%s6078_s4 + $0x30] sm:$0xff]  ;;  %vm5025_vm4 = vmmov 0   ;;  %vm3801_vm5 = vcmask 1045504   ;;  %vm3797_vm6 = vcmask 637952  }
  0x1a   : > { %4495 = vmatpush3.msra.mxu0 %v3989_v1  ;;  %4915 = vmatpush3.msra.mxu1 %v3989_v1  ;;  %s5154_s15 = smul.u32 104, %s452_s19  ;;  %v4035_v31 = vld [vmem:[%s6078_s4 + $0x40] sm:$0xff]  ;;  %v4048_v32 = vld [vmem:[%s6078_s4 + $0x58] sm:$0xff]  ;;  %v4060_v37 = vld [vmem:[%s6078_s4 + $0x68] sm:$0xff]  ;;  %s449_s28 = sand.u32 1, %s5013_s22   ;;  %vm3875_vm7 = vcmask 253952  }
  0x1b   : > { %4530 = vmatprep.subr.mxu0 %v4012_v2  ;;  %4511 = vmatprep.subr.mxu1 %v492_v3  ;;  %v4047_v50 = vld [vmem:[%s6078_s4 + $0x50] sm:$0xff]  ;;  %v474_v51 = vld [vmem:[%s6084_s10 + $0x18] sm:$0xff]  ;;  %v475_v52 = vld [vmem:[%s6084_s10 + $0x20] sm:$0xff]  ;;  %s4232_s29 = sshll.u32 %s5113_s25, 4  ;;  %s5026_s25 = smov [#allocation3]  }
  0x1c   : > { %s5160_s18 = scalar_lea.vmem %s6096_s1, %s5154_s15  ;;  %4959 = vset.pattern.permute.xlu0 %v5023_v4  ;;  %4960 = vset.pattern.permute.xlu1 %v5023_v4  ;;  %s5253_s26 = scalar_lea.vmem %s6076_s2, %s5154_s15  ;;  %v4059_v57 = vld [vmem:[%s6078_s4 + $0x60] sm:$0xff]  ;;  %v4072_v58 = vld [vmem:[%s6078_s4 + $0x78] sm:$0xff]  ;;  %v476_v63 = vld [vmem:[%s6084_s10 + $0x28] sm:$0xff] }
  0x1d   : > { %v493_v7 = vld [vmem:[%s5160_s18] sm:$0xff]  ;;  %v499_v8 = vld [vmem:[%s5160_s18 + $0x30] sm:$0xff]  ;;  %v494_v9 = vld [vmem:[%s5160_s18 + $0x8] sm:$0xff]  ;;  %2017 = vperm.xlu0 %4959, %v471_v5   ;;  %2027 = vperm.xlu1 %4960, %v473_v6   ;;  %s5180_s17 = scalar_lea.vmem %s6097_s0, %s5154_s15  ;;  %s5267_s16 = scalar_lea.vmem %s6077_s3, %s5154_s15 }
  0x1e   : > { %4496 = vmatprep.mubr.msk.f32.mxu0 %vm506_vm0, %v493_v7  ;;  %4505 = vmatprep.mubr.msk.f32.mxu1 %vm506_vm0, %v499_v8  ;;  %v500_v10 = vld [vmem:[%s5160_s18 + $0x38] sm:$0xff]  ;;  %v495_v11 = vld [vmem:[%s5160_s18 + $0x10] sm:$0xff]  ;;  %v501_v12 = vld [vmem:[%s5160_s18 + $0x40] sm:$0xff]  ;;  %s450_s0 = scalar_lea.vmem [#allocation3], %s449_s28 }
  0x1f   : > { %4497 = vmatmul.mubr.msk.f32.vlgmr.msra.gmra.mxu0 %vm506_vm0, %v494_v9  ;;  %4506 = vmatmul.mubr.msk.f32.vlgmr.msra.gmra.mxu1 %vm506_vm0, %v500_v10  ;;  %v496_v15 = vld [vmem:[%s5160_s18 + $0x18] sm:$0xff]  ;;  %v502_v16 = vld [vmem:[%s5160_s18 + $0x48] sm:$0x3f]  ;;  %v497_v17 = vld [vmem:[%s5160_s18 + $0x20] sm:$0xff]  ;;  %s3890_s15 = sshll.u32 %s450_s0, 4  ;;  %s6035_s15 = int_to_ptr.vmem [resolvable:$true] %s3890_s15 }
  0x20   : > { %4531 = vmatpush3.msra.mxu0 %v4012_v2  ;;  %4499 = vmatprep.mubr.msk.f32.mxu0 %vm506_vm0, %v495_v11  ;;  %v481_v18 = vld [vmem:[%s5180_s17] sm:$0xff]  ;;  %v498_v21 = vld [vmem:[%s5160_s18 + $0x28] sm:$0xff]  ;;  %v483_v23 = vld [vmem:[%s5180_s17 + $0x10] sm:$0xff]  ;;  %s4961_s20 = scalar_lea.vmem %s6035_s15, 16 }
  0x21   : > { %4508 = vmatprep.mubr.msk.f32.mxu1 %vm506_vm0, %v501_v12  ;;  %4512 = vmatpush3.msra.mxu1 %v492_v3  ;;  %v482_v22 = vld [vmem:[%s5180_s17 + $0x8] sm:$0xff]  ;;  %v484_v27 = vld [vmem:[%s5180_s17 + $0x18] sm:$0xff]  ;;  %v485_v29 = vld [vmem:[%s5180_s17 + $0x20] sm:$0xff]  ;;  %p4962_p11 = scmp.ne.s32.totalorder %s6035_s15, %s4961_s20 }
  0x22   : > { %4513 = vmatprep.subr.mxu1 %v491_v13  ;;  %4532 = vmatprep.subr.mxu0 %v4011_v14  ;;  %v797_v24 = vld [vmem:[%s5180_s17 + $0x1] sm:$0xff]  ;;  %v798_v28 = vld [vmem:[%s5180_s17 + $0x9] sm:$0xff]  ;;  %v799_v30 = vld [vmem:[%s5180_s17 + $0x11] sm:$0xff] }
  0x23   : > { %4500 = vmatmul.mubr.msk.f32.gmra.mxu0 %vm506_vm0, %v496_v15  ;;  %4509 = vmatmul.mubr.msk.f32.gmra.mxu1 %vm506_vm0, %v502_v16  ;;  %v486_v33 = vld [vmem:[%s5180_s17 + $0x28] sm:$0xff]  ;;  %v800_v34 = vld [vmem:[%s5180_s17 + $0x19] sm:$0xff]  ;;  %v487_v35 = vld [vmem:[%s5180_s17 + $0x30] sm:$0xff]  ;;  %p4963_p12 = pnand %p4962_p11, %p5130_p5 }
  0x24   : > { %4502 = vmatprep.mubr.msk.f32.mxu0 %vm506_vm0, %v497_v17  ;;  %4514 = vmatpush3.msra.mxu1 %v491_v13  ;;  %v801_v36 = vld [vmem:[%s5180_s17 + $0x21] sm:$0xff]  ;;  %v488_v38 = vld [vmem:[%s5180_s17 + $0x38] sm:$0xff]  ;;  %v802_v39 = vld [vmem:[%s5180_s17 + $0x29] sm:$0xff] }
  0x25   : > { %4515 = vmatprep.mubr.msk.f32.mxu1 %vm506_vm0, %v481_v18  ;;  %4533 = vmatpush3.msra.mxu0 %v4011_v14  ;;  %v489_v40 = vld [vmem:[%s5180_s17 + $0x40] sm:$0xff]  ;;  %v803_v41 = vld [vmem:[%s5180_s17 + $0x31] sm:$0xff]  ;;  %v490_v42 = vld [vmem:[%s5180_s17 + $0x48] sm:$0x3f]  ;;  %p4964_p13 = pneg %p4963_p12 }
  0x26   : > { %4549 = vmatprep.subr.mxu1 %v4024_v19  ;;  %4568 = vmatprep.subr.mxu0 %v4036_v20  ;;  %v804_v43 = vld [vmem:[%s5180_s17 + $0x39] sm:$0xff]  ;;  %v805_v44 = vld [vmem:[%s5180_s17 + $0x41] sm:$0xff]  ;;  %v806_v46 = vld [vmem:[%s5180_s17 + $0x49] sm:$0x3f] }
  0x27   : > { %4503 = vmatmul.mubr.msk.f32.gmra.mxu0 %vm506_vm0, %v498_v21  ;;  %4516 = vmatmul.mubr.msk.f32.vlgmr.msra.gmra.mxu1 %vm506_vm0, %v482_v22  ;;  %v965_v45 = vld [vmem:[%s5253_s26] sm:$0xff]  ;;  %v966_v47 = vld [vmem:[%s5253_s26 + $0x8] sm:$0xff]  ;;  %v967_v48 = vld [vmem:[%s5253_s26 + $0x10] sm:$0xff] }
  0x28   : > { %4518 = vmatprep.mubr.msk.f32.mxu1 %vm506_vm0, %v483_v23  ;;  %4534 = vmatprep.mubr.msk.f32.mxu0 %vm506_vm0, %v797_v24  ;;  %v5277_v49 = vld [vmem:[%s5267_s16] sm:$0xff]  ;;  %v968_v53 = vld [vmem:[%s5253_s26 + $0x18] sm:$0xff]  ;;  %v5295_v54 = vld [vmem:[%s5267_s16 + $0x8] sm:$0xff] }
  0x29   : > { %4550 = vmatpush3.msra.mxu1 %v4024_v19  ;;  %2022 = vperm.xlu0 %4959, %v472_v25   ;;  %v969_v55 = vld [vmem:[%s5253_s26 + $0x20] sm:$0xff]  ;;  %v5299_v56 = vld [vmem:[%s5267_s16 + $0x10] sm:$0xff]  ;;  %v970_v59 = vld [vmem:[%s5253_s26 + $0x28] sm:$0xff] }
  0x2a   : > { %4551 = vmatprep.subr.mxu1 %v4023_v26  ;;  %2032 = vperm.xlu1 %4960, %v474_v51   ;;  %v5313_v60 = vld [vmem:[%s5267_s16 + $0x18] sm:$0xff]  ;;  %v971_v61 = vld [vmem:[%s5253_s26 + $0x30] sm:$0xff]  ;;  %v5319_v62 = vld [vmem:[%s5267_s16 + $0x20] sm:$0xff] }
  0x2b   : > { %4519 = vmatmul.mubr.msk.f32.gmra.mxu1 %vm506_vm0, %v484_v27  ;;  %4535 = vmatmul.mubr.msk.f32.vlgmr.msra.gmra.mxu0 %vm506_vm0, %v798_v28  ;;  %v4084_v0 = vld [vmem:[%s6078_s4 + $0x88] sm:$0xff]  ;;  %v477_v1 = vld [vmem:[%s6084_s10 + $0x30] sm:$0xff]  ;;  %v972_v2 = vld [vmem:[%s5253_s26 + $0x38] sm:$0xff] }
  0x2c   : > { %4569 = vmatpush3.msra.mxu0 %v4036_v20  ;;  %4521 = vmatprep.mubr.msk.f32.mxu1 %vm506_vm0, %v485_v29  ;;  %v5338_v3 = vld [vmem:[%s5267_s16 + $0x28] sm:$0xff]  ;;  %v973_v4 = vld [vmem:[%s5253_s26 + $0x40] sm:$0xff]  ;;  %v5342_v5 = vld [vmem:[%s5267_s16 + $0x30] sm:$0xff] }
  0x2d   : > { %4537 = vmatprep.mubr.msk.f32.mxu0 %vm506_vm0, %v799_v30  ;;  %4552 = vmatpush3.msra.mxu1 %v4023_v26  ;;  %v478_v6 = vld [vmem:[%s6084_s10 + $0x38] sm:$0xff]  ;;  %v479_v7 = vld [vmem:[%s6084_s10 + $0x40] sm:$0xff]  ;;  %v974_v8 = vld [vmem:[%s5253_s26 + $0x48] sm:$0x3f] }
  0x2e   : > { %4570 = vmatprep.subr.mxu0 %v4035_v31  ;;  %4587 = vmatprep.subr.mxu1 %v4048_v32  ;;  %v5358_v9 = vld [vmem:[%s5267_s16 + $0x38] sm:$0xff]  ;;  %v5361_v10 = vld [vmem:[%s5267_s16 + $0x40] sm:$0xff]  ;;  %v480_v12 = vld [vmem:[%s6084_s10 + $0x48] sm:$0x3f] }
  0x2f   : > { %4522 = vmatmul.mubr.msk.f32.gmra.mxu1 %vm506_vm0, %v486_v33  ;;  %4538 = vmatmul.mubr.msk.f32.gmra.mxu0 %vm506_vm0, %v800_v34  ;;  %v1301_v11 = vld [vmem:[%s5253_s26 + $0x1] sm:$0xff]  ;;  %v1302_v14 = vld [vmem:[%s5253_s26 + $0x9] sm:$0xff]  ;;  %v1303_v15 = vld [vmem:[%s5253_s26 + $0x11] sm:$0xff] }
  0x30   : > { %4524 = vmatprep.mubr.msk.f32.mxu1 %vm506_vm0, %v487_v35  ;;  %4540 = vmatprep.mubr.msk.f32.mxu0 %vm506_vm0, %v801_v36  ;;  %v1142_v13 = vld [vmem:[%s5267_s16 + $0x48] sm:$0x3f]  ;;  %v4071_v17 = vld [vmem:[%s6078_s4 + $0x70] sm:$0xff]  ;;  %v1304_v18 = vld [vmem:[%s5253_s26 + $0x19] sm:$0xff] }
  0x31   : > { %4571 = vmatpush3.msra.mxu0 %v4035_v31  ;;  %2037 = vperm.xlu0 %4959, %v475_v52   ;;  %v1469_v16 = vld [vmem:[%s5180_s17 + $0xa] sm:$0xff]  ;;  %v1470_v19 = vld [vmem:[%s5180_s17 + $0x12] sm:$0xff]  ;;  %v1305_v20 = vld [vmem:[%s5253_s26 + $0x21] sm:$0xff] }
  0x32   : > { %4606 = vmatprep.subr.mxu0 %v4060_v37  ;;  %2042 = vperm.xlu1 %4960, %v476_v63   ;;  %v1471_v21 = vld [vmem:[%s5180_s17 + $0x1a] sm:$0xff]  ;;  %v1306_v23 = vld [vmem:[%s5253_s26 + $0x29] sm:$0xff]  ;;  %v1307_v25 = vld [vmem:[%s5253_s26 + $0x31] sm:$0xff] }
  0x33   : > { %4525 = vmatmul.mubr.msk.f32.gmra.mxu1 %vm506_vm0, %v488_v38  ;;  %4541 = vmatmul.mubr.msk.f32.gmra.mxu0 %vm506_vm0, %v802_v39  ;;  %v4083_v22 = vld [vmem:[%s6078_s4 + $0x80] sm:$0xff]  ;;  %v1473_v26 = vld [vmem:[%s5180_s17 + $0x2a] sm:$0xff]  ;;  %v1474_v28 = vld [vmem:[%s5180_s17 + $0x32] sm:$0xff] }
  0x34   : > { %4527 = vmatprep.mubr.msk.f32.mxu1 %vm506_vm0, %v489_v40  ;;  %4543 = vmatprep.mubr.msk.f32.mxu0 %vm506_vm0, %v803_v41  ;;  %v1472_v24 = vld [vmem:[%s5180_s17 + $0x22] sm:$0xff]  ;;  %v1308_v27 = vld [vmem:[%s5253_s26 + $0x39] sm:$0xff]  ;;  %v1477_v33 = vld [vmem:[%s5180_s17 + $0x4a] sm:$0xff] }
  0x35   : > { %2047 = vperm.xlu0 %4959, %v477_v1   ;;  %v1309_v29 = vld [vmem:[%s5253_s26 + $0x41] sm:$0xff]  ;;  %v1310_v31 = vld [vmem:[%s5253_s26 + $0x49] sm:$0x3f]  ;;  %v1478_v35 = vld [vmem:[%s5180_s17 + $0x52] sm:$0x3f] }
  0x36   : > { %2052 = vperm.xlu1 %4960, %v478_v6   ;;  %v1475_v30 = vld [vmem:[%s5180_s17 + $0x3a] sm:$0xff]  ;;  %v1637_v34 = vld [vmem:[%s5160_s18 + $0xa] sm:$0xff]  ;;  %v1638_v36 = vld [vmem:[%s5160_s18 + $0x12] sm:$0xff] }
  0x37   : > { %4528 = vmatmul.mubr.msk.f32.gmra.mxu1 %vm506_vm0, %v490_v42  ;;  %4544 = vmatmul.mubr.msk.f32.gmra.mxu0 %vm506_vm0, %v804_v43  ;;  %v1805_v38 = vld [vmem:[%s5180_s17 + $0xb] sm:$0xff]  ;;  %v1640_v39 = vld [vmem:[%s5160_s18 + $0x22] sm:$0xff]  ;;  %v1806_v40 = vld [vmem:[%s5180_s17 + $0x13] sm:$0xff] }
  0x38   : > { %4546 = vmatprep.mubr.msk.f32.mxu0 %vm506_vm0, %v805_v44  ;;  %4553 = vmatprep.mubr.msk.f32.mxu1 %vm506_vm0, %v965_v45  ;;  %v1641_v41 = vld [vmem:[%s5160_s18 + $0x2a] sm:$0xff]  ;;  %v1807_v42 = vld [vmem:[%s5180_s17 + $0x1b] sm:$0xff]  ;;  %v1642_v43 = vld [vmem:[%s5160_s18 + $0x32] sm:$0xff] }
  0x39   : > { %2057 = vperm.xlu0 %4959, %v479_v7   ;;  %v1808_v44 = vld [vmem:[%s5180_s17 + $0x23] sm:$0xff]  ;;  %v1643_v45 = vld [vmem:[%s5160_s18 + $0x3a] sm:$0xff]  ;;  %v1646_v52 = vld [vmem:[%s5160_s18 + $0x52] sm:$0x3f] }
  0x3a   : > { %2062 = vperm.xlu1 %4960, %v480_v12   ;;  %v1811_v51 = vld [vmem:[%s5180_s17 + $0x3b] sm:$0xff]  ;;  %v2095_v63 = vld [vmem:[%s5267_s16 + $0x48] sm:$0x3f]  ;;  %s6033_s16 = scalar_lea.hbm %s6086_s12, %s4232_s29 }
  0x3b   : > { %4547 = vmatmul.mubr.msk.f32.gmra.mxu0 %vm506_vm0, %v806_v46  ;;  %4554 = vmatmul.mubr.msk.f32.vlgmr.msra.gmra.mxu1 %vm506_vm0, %v966_v47  ;;  %v1809_v46 = vld [vmem:[%s5180_s17 + $0x2b] sm:$0xff]  ;;  %v1644_v47 = vld [vmem:[%s5160_s18 + $0x42] sm:$0xff]  ;;  %v5544_v6 = vld [vmem:[%s6082_s8 + $0x78] sm:$0xff] }
  0x3c   : > { %4556 = vmatprep.mubr.msk.f32.mxu1 %vm506_vm0, %v967_v48  ;;  %4572 = vmatprep.mubr.msk.f32.mxu0 %vm506_vm0, %v5277_v49  ;;  %v1810_v48 = vld [vmem:[%s5180_s17 + $0x33] sm:$0xff]  ;;  %v4107_v1 = vld [vmem:[%s6082_s8 + $0x20] sm:$0xff]  ;;  %6099 = vst [vmem:[#allocation7_spill] sm:$0xff] %v5544_v6 }
  0x3d   : > { %4588 = vmatpush3.msra.mxu1 %v4048_v32  ;;  %v1476_v32 = vld [vmem:[%s5180_s17 + $0x42] sm:$0xff] }
  0x3e   : > { %4589 = vmatprep.subr.mxu1 %v4047_v50 }
  0x3f   : > { %4557 = vmatmul.mubr.msk.f32.gmra.mxu1 %vm506_vm0, %v968_v53  ;;  %4573 = vmatmul.mubr.msk.f32.vlgmr.msra.gmra.mxu0 %vm506_vm0, %v5295_v54  ;;  %v1812_v53 = vld [vmem:[%s5180_s17 + $0x43] sm:$0xff] }
  0x40   : > { %4607 = vmatpush3.msra.mxu0 %v4060_v37  ;;  %4559 = vmatprep.mubr.msk.f32.mxu1 %vm506_vm0, %v969_v55  ;;  %v1639_v37 = vld [vmem:[%s5160_s18 + $0x1a] sm:$0xff]  ;;  %v1813_v55 = vld [vmem:[%s5180_s17 + $0x4b] sm:$0xff] }
  0x41   : > { %4575 = vmatprep.mubr.msk.f32.mxu0 %vm506_vm0, %v5299_v56  ;;  %4590 = vmatpush3.msra.mxu1 %v4047_v50  ;;  %v1645_v50 = vld [vmem:[%s5160_s18 + $0x4a] sm:$0xff]  ;;  %s3878_s18 = scalar_lea.sflag [#allocation4], %s449_s28 }
  0x42   : > { %4608 = vmatprep.subr.mxu0 %v4059_v57  ;;  %4625 = vmatprep.subr.mxu1 %v4072_v58 }
  0x43   : > { %4560 = vmatmul.mubr.msk.f32.gmra.mxu1 %vm506_vm0, %v970_v59  ;;  %4576 = vmatmul.mubr.msk.f32.gmra.mxu0 %vm506_vm0, %v5313_v60  ;;  %v2096_v59 = vld [vmem:[%s6080_s6] sm:$0xff] }
  0x44   : > { %4562 = vmatprep.mubr.msk.f32.mxu1 %vm506_vm0, %v971_v61  ;;  %4578 = vmatprep.mubr.msk.f32.mxu0 %vm506_vm0, %v5319_v62  ;;  %v6087_v61 = vmov 0.0  }
  0x45   : > { %4609 = vmatpush3.msra.mxu0 %v4059_v57  ;;  %v1814_v57 = vld [vmem:[%s5180_s17 + $0x53] sm:$0x3f]  ;;  %2003 = vst.msk [vmem:[#allocation2 + $0x10] sm:$0xff] %vm2000_vm1, %v6087_v61  ;;  %2004 = vst.msk [vmem:[#allocation2 + $0x18] sm:$0xff] %vm2000_vm1, %v6087_v61  ;;  %s4965_s17 = sshll.u32 %s5026_s25, 4  ;;  %s4966_s17 = int_to_ptr.vmem [resolvable:$false] %s4965_s17 }
  0x46   : > { %4644 = vmatprep.subr.mxu0 %v4084_v0  ;;  %2001 = vst.msk [vmem:[#allocation2] sm:$0xff] %vm2000_vm1, %v6087_v61  ;;  %2002 = vst.msk [vmem:[#allocation2 + $0x8] sm:$0xff] %vm2000_vm1, %v6087_v61  ;;  %s4967_s26 = scalar_lea.vmem %s4966_s17, 32  ;;  %p4968_p0 = scmp.lt.s32.totalorder %s6035_s15, %s4966_s17 }
  0x47   : > { %4563 = vmatmul.mubr.msk.f32.gmra.mxu1 %vm506_vm0, %v972_v2  ;;  %4579 = vmatmul.mubr.msk.f32.gmra.mxu0 %vm506_vm0, %v5338_v3  ;;  %2005 = vst.msk [vmem:[#allocation2 + $0x20] sm:$0xff] %vm2000_vm1, %v6087_v61  ;;  %2006 = vst.msk [vmem:[#allocation2 + $0x28] sm:$0xff] %vm2000_vm1, %v6087_v61  ;;  %v2260_v2 = vld [vmem:[%s6082_s8] sm:$0xff]  ;;  %p4969_p1 = scmp.lt.s32.totalorder %s4967_s26, %s4961_s20 }
  0x48   : > { %4565 = vmatprep.mubr.msk.f32.mxu1 %vm506_vm0, %v973_v4  ;;  %4581 = vmatprep.mubr.msk.f32.mxu0 %vm506_vm0, %v5342_v5  ;;  %2007 = vst.msk [vmem:[#allocation2 + $0x30] sm:$0xff] %vm2000_vm1, %v6087_v61  ;;  %2008 = vst.msk [vmem:[#allocation2 + $0x38] sm:$0xff] %vm2000_vm1, %v6087_v61 }
  0x49   : > { %2009 = vst.msk [vmem:[#allocation2 + $0x40] sm:$0xff] %vm2000_vm1, %v6087_v61  ;;  %2010 = vst.msk [vmem:[#allocation2 + $0x48] sm:$0xff] %vm2000_vm1, %v6087_v61  ;;  %p4970_p2 = por %p4969_p1, %p4968_p0 }
  0x4a   : > { %2011 = vst.msk [vmem:[#allocation2 + $0x50] sm:$0xff] %vm2000_vm1, %v6087_v61  ;;  %2012 = vst.msk [vmem:[#allocation2 + $0x58] sm:$0xff] %vm2000_vm1, %v6087_v61 }
  0x4b   : > { %4566 = vmatmul.mubr.msk.f32.gmra.mxu1 %vm506_vm0, %v974_v8  ;;  %4582 = vmatmul.mubr.msk.f32.gmra.mxu0 %vm506_vm0, %v5358_v9  ;;  %2014 = vst.msk [vmem:[#allocation2 + $0x60] sm:$0xf] %vm2013_vm2, %v6087_v61  ;;  %p4971_p3 = pnand %p4970_p2, %p4964_p13 }
  0x4c   : > { %4584 = vmatprep.mubr.msk.f32.mxu0 %vm506_vm0, %v5361_v10  ;;  %4591 = vmatprep.mubr.msk.f32.mxu1 %vm506_vm0, %v1301_v11 }
  0x4d   : > { %v2250_v4 = vld [vmem:[#allocation2] sm:$0xff] }
  0x4f   : > { %4585 = vmatmul.mubr.msk.f32.gmra.mxu0 %vm506_vm0, %v1142_v13  ;;  %4592 = vmatmul.mubr.msk.f32.vlgmr.msra.gmra.mxu1 %vm506_vm0, %v1302_v14 }
  0x50   : > { %4594 = vmatprep.mubr.msk.f32.mxu1 %vm506_vm0, %v1303_v15  ;;  %4610 = vmatprep.mubr.msk.f32.mxu0 %vm506_vm0, %v1469_v16 }
  0x51   : > { %4626 = vmatpush3.msra.mxu1 %v4072_v58  ;;  %v2097_v58 = vld [vmem:[%s6080_s6 + $0x8] sm:$0xff] }
  0x52   : > { %4627 = vmatprep.subr.mxu1 %v4071_v17 }
  0x53   : > { %4595 = vmatmul.mubr.msk.f32.gmra.mxu1 %vm506_vm0, %v1304_v18  ;;  %4611 = vmatmul.mubr.msk.f32.vlgmr.msra.gmra.mxu0 %vm506_vm0, %v1470_v19 }
  0x54   : > { %4645 = vmatpush3.msra.mxu0 %v4084_v0  ;;  %4597 = vmatprep.mubr.msk.f32.mxu1 %vm506_vm0, %v1305_v20  ;;  %v2261_v0 = vld [vmem:[%s6082_s8 + $0x8] sm:$0xff] }
  0x55   : > { %4613 = vmatprep.mubr.msk.f32.mxu0 %vm506_vm0, %v1471_v21  ;;  %4628 = vmatpush3.msra.mxu1 %v4071_v17 }
  0x56   : > { %4646 = vmatprep.subr.mxu0 %v4083_v22  ;;  %4663 = vmatprep.subr.mxu1 %v2097_v58 }
  0x57   : > { %4598 = vmatmul.mubr.msk.f32.gmra.mxu1 %vm506_vm0, %v1306_v23  ;;  %4614 = vmatmul.mubr.msk.f32.gmra.mxu0 %vm506_vm0, %v1472_v24 }
  0x58   : > { %4600 = vmatprep.mubr.msk.f32.mxu1 %vm506_vm0, %v1307_v25  ;;  %4616 = vmatprep.mubr.msk.f32.mxu0 %vm506_vm0, %v1473_v26 }
  0x59   : > { %4647 = vmatpush3.msra.mxu0 %v4083_v22 }
  0x5b   : > { %4601 = vmatmul.mubr.msk.f32.gmra.mxu1 %vm506_vm0, %v1308_v27  ;;  %4617 = vmatmul.mubr.msk.f32.gmra.mxu0 %vm506_vm0, %v1474_v28 }
  0x5c   : > { %4603 = vmatprep.mubr.msk.f32.mxu1 %vm506_vm0, %v1309_v29  ;;  %4619 = vmatprep.mubr.msk.f32.mxu0 %vm506_vm0, %v1475_v30 }
  0x5f   : > { %4604 = vmatmul.mubr.msk.f32.gmra.mxu1 %vm506_vm0, %v1310_v31  ;;  %4620 = vmatmul.mubr.msk.f32.gmra.mxu0 %vm506_vm0, %v1476_v32 }
  0x60   : > { %4622 = vmatprep.mubr.msk.f32.mxu0 %vm506_vm0, %v1477_v33  ;;  %4629 = vmatprep.mubr.msk.f32.mxu1 %vm506_vm0, %v1637_v34 }
  0x63   : > { %4623 = vmatmul.mubr.msk.f32.gmra.mxu0 %vm506_vm0, %v1478_v35  ;;  %4630 = vmatmul.mubr.msk.f32.vlgmr.msra.gmra.mxu1 %vm506_vm0, %v1638_v36 }
  0x64   : > { %4632 = vmatprep.mubr.msk.f32.mxu1 %vm506_vm0, %v1639_v37  ;;  %4648 = vmatprep.mubr.msk.f32.mxu0 %vm506_vm0, %v1805_v38 }
  0x65   : > { %4664 = vmatpush3.msra.mxu1 %v2097_v58 }
  0x66   : > { %4665 = vmatprep.subr.mxu1 %v2096_v59 }
  0x67   : > { %4633 = vmatmul.mubr.msk.f32.gmra.mxu1 %vm506_vm0, %v1640_v39  ;;  %4649 = vmatmul.mubr.msk.f32.vlgmr.msra.gmra.mxu0 %vm506_vm0, %v1806_v40 }
  0x68   : > { %4635 = vmatprep.mubr.msk.f32.mxu1 %vm506_vm0, %v1641_v41  ;;  %4651 = vmatprep.mubr.msk.f32.mxu0 %vm506_vm0, %v1807_v42 }
  0x69   : > { %4666 = vmatpush3.msra.mxu1 %v2096_v59 }
  0x6b   : > { %4636 = vmatmul.mubr.msk.f32.gmra.mxu1 %vm506_vm0, %v1642_v43  ;;  %4652 = vmatmul.mubr.msk.f32.gmra.mxu0 %vm506_vm0, %v1808_v44 }
  0x6c   : > { %4638 = vmatprep.mubr.msk.f32.mxu1 %vm506_vm0, %v1643_v45  ;;  %4654 = vmatprep.mubr.msk.f32.mxu0 %vm506_vm0, %v1809_v46 }
  0x6f   : > { %4639 = vmatmul.mubr.msk.f32.gmra.mxu1 %vm506_vm0, %v1644_v47  ;;  %4655 = vmatmul.mubr.msk.f32.gmra.mxu0 %vm506_vm0, %v1810_v48 }
  0x70   : > { %4641 = vmatprep.mubr.msk.f32.mxu1 %vm506_vm0, %v1645_v50  ;;  %4657 = vmatprep.mubr.msk.f32.mxu0 %vm506_vm0, %v1811_v51 }
  0x73   : > { %4642 = vmatmul.mubr.msk.f32.gmra.mxu1 %vm506_vm0, %v1646_v52  ;;  %4658 = vmatmul.mubr.msk.f32.gmra.mxu0 %vm506_vm0, %v1812_v53 }
  0x74   : > { %4660 = vmatprep.mubr.msk.f32.mxu0 %vm506_vm0, %v1813_v55  ;;  %4667 = vmatprep.mubr.msk.f32.mxu1 %vm506_vm0, %v5277_v49  ;;  %v4110_v49 = vld [vmem:[%s6082_s8 + $0x38] sm:$0xff] }
  0x75   : > { %4682 = vmatprep.subr.mxu0 %v4110_v49 }
  0x76   : > { %4683 = vmatpush3.msra.mxu0 %v4110_v49 }
  0x77   : > { %4661 = vmatmul.mubr.msk.f32.gmra.mxu0 %vm506_vm0, %v1814_v57  ;;  %4668 = vmatmul.mubr.msk.f32.vlgmr.msra.gmra.mxu1 %vm506_vm0, %v5295_v54  ;;  %v2263_v54 = vld [vmem:[%s6082_s8 + $0x18] sm:$0xff] }
  0x78   : > { %4670 = vmatprep.mubr.msk.f32.mxu1 %vm506_vm0, %v5299_v56  ;;  %v4109_v56 = vld [vmem:[%s6082_s8 + $0x30] sm:$0xff]  ;;  %4705 = vmatprep.subr.mxu1 %v2263_v54 }
  0x79   : > { %4684 = vmatprep.subr.mxu0 %v4109_v56  ;;  %4706 = vmatpush3.msra.mxu1 %v2263_v54 }
  0x7a   : > { %4685 = vmatpush3.msra.mxu0 %v4109_v56 }
  0x7b   : > { %4671 = vmatmul.mubr.msk.f32.gmra.mxu1 %vm506_vm0, %v5313_v60  ;;  %v2262_v60 = vld [vmem:[%s6082_s8 + $0x10] sm:$0xff] }
  0x7c   : > { %4673 = vmatprep.mubr.msk.f32.mxu1 %vm506_vm0, %v5319_v62  ;;  %4707 = vmatprep.subr.mxu1 %v2262_v60  ;;  %v4108_v62 = vld [vmem:[%s6082_s8 + $0x28] sm:$0xff] }
  0x7d   : > { %4708 = vmatpush3.msra.mxu1 %v2262_v60  ;;  %4686 = vmatprep.subr.mxu0 %v4108_v62 }
  0x7e   : > { %4687 = vmatpush3.msra.mxu0 %v4108_v62  ;;  %4709 = vmatprep.subr.mxu1 %v2261_v0 }
  0x7f   : > { %4674 = vmatmul.mubr.msk.f32.gmra.mxu1 %vm506_vm0, %v5338_v3  ;;  %4688 = vmatprep.subr.mxu0 %v4107_v1  ;;  %v2264_v3 = vld [vmem:[#allocation2 + $0x1] sm:$0xff] }
  0x80   : > { %4676 = vmatprep.mubr.msk.f32.mxu1 %vm506_vm0, %v5342_v5  ;;  %4710 = vmatpush3.msra.mxu1 %v2261_v0  ;;  %v5538_v5 = vld [vmem:[%s6082_s8 + $0x58] sm:$0xff] }
  0x81   : > { %4689 = vmatpush3.msra.mxu0 %v4107_v1  ;;  %4711 = vmatprep.subr.mxu1 %v2260_v2  ;;  %6098 = vst [vmem:[#allocation6_spill] sm:$0xff] %v5538_v5 }
  0x82   : > { %4690 = vmatprep.mubr.msk.f32.mxu0 %vm2000_vm1, %v2264_v3  ;;  %4712 = vmatpush3.msra.mxu1 %v2260_v2 }
  0x83   : > { %4677 = vmatmul.mubr.msk.f32.gmra.mxu1 %vm506_vm0, %v5358_v9  ;;  %4728 = vmatprep.subr.mxu0 %v5538_v5 }
  0x84   : > { %4679 = vmatprep.mubr.msk.f32.mxu1 %vm506_vm0, %v5361_v10  ;;  %4751 = vmatprep.subr.mxu1 %v5544_v6 }
  0x87   : > { %4680 = vmatmul.mubr.msk.f32.gmra.mxu1 %vm506_vm0, %v2095_v63 }
  0x88   : > { %4713 = vmatprep.mubr.msk.f32.mxu1 %vm2000_vm1, %v2250_v4 }
  0xdf   : > { %v4498_v7 = vpop.f32.mrf.mxu0  ;;  %v5547_v8 = vpop.f32.mrf.mxu1 }
  0xe1   : > { %v5549_v9 = vpop.f32.mrf.mxu0  ;;  %v5551_v10 = vpop.f32.mrf.mxu1 }
  0xe3   : > { %v5553_v11 = vpop.f32.mrf.mxu0  ;;  %v5555_v12 = vpop.f32.mrf.mxu1 }
  0xe5   : > { %v5557_v13 = vpop.f32.mrf.mxu0  ;;  %v5559_v14 = vpop.f32.mrf.mxu1 }
  0xe7   : > { %v5561_v15 = vpop.f32.mrf.mxu0  ;;  %v4517_v16 = vpop.f32.mrf.mxu1 }
  0xe8   : > { %v754_v4 = vadd.f32 %v4517_v16, %v4498_v7 }
  0xe9   : > { %v5563_v17 = vpop.f32.mrf.mxu0  ;;  %v748_v18 = vpop.f32.mrf.mxu1 }
  0xea   : > { %v749_v5 = vadd.f32 %v748_v18, %v5549_v9 }
  0xeb   : > { %v4520_v19 = vpop.f32.mrf.mxu1  ;;  %v4536_v20 = vpop.f32.mrf.mxu0 }
  0xed   : > { %v758_v21 = vpop.f32.mrf.mxu1  ;;  %v906_v22 = vpop.f32.mrf.mxu0 }
  0xee   : > { %v759_v7 = vadd.f32 %v758_v21, %v5557_v13 }
  0xef   : > { %v4523_v23 = vpop.f32.mrf.mxu1  ;;  %v4539_v24 = vpop.f32.mrf.mxu0 }
  0xf0   : > { %v774_v9 = vadd.f32 %v4523_v23, %v5561_v15 }
  0xf1   : > { %v768_v25 = vpop.f32.mrf.mxu1  ;;  %v5565_v26 = vpop.f32.mrf.mxu0 }
  0xf2   : > { %v769_v18 = vadd.f32 %v768_v25, %v5563_v17 }
  0xf3   : > { %v5567_v27 = vpop.f32.mrf.mxu1  ;;  %v5569_v28 = vpop.f32.mrf.mxu0 }
  0xf4   : > { %v960_v13 = vadd.f32 %v5569_v28, %v774_v9 }
  0xf5   : > { %v5571_v29 = vpop.f32.mrf.mxu1  ;;  %v5573_v30 = vpop.f32.mrf.mxu0 }
  0xf6   : > { %v779_v21 = vadd.f32 %v5571_v29, %v5551_v10  ;;  %v959_v15 = vadd.f32 %v5573_v30, %v769_v18 }
  0xf7   : > { %v5575_v31 = vpop.f32.mrf.mxu1  ;;  %v5577_v32 = vpop.f32.mrf.mxu0 }
  0xf9   : > { %v5579_v33 = vpop.f32.mrf.mxu1  ;;  %v5581_v34 = vpop.f32.mrf.mxu0 }
  0xfa   : > { %v961_v10 = vadd.f32 %v5581_v34, %v779_v21 }
  0xfb   : > { %v5583_v35 = vpop.f32.mrf.mxu0  ;;  %v4555_v36 = vpop.f32.mrf.mxu1 }
  0xfd   : > { %v5585_v37 = vpop.f32.mrf.mxu0  ;;  %v1074_v38 = vpop.f32.mrf.mxu1 }
  0xff   : > { %v4558_v39 = vpop.f32.mrf.mxu1  ;;  %v4574_v40 = vpop.f32.mrf.mxu0 }
 0x101   : > { %v5587_v41 = vpop.f32.mrf.mxu1  ;;  %v1242_v42 = vpop.f32.mrf.mxu0 }
 0x103   : > { %v5589_v43 = vpop.f32.mrf.mxu1  ;;  %v4577_v44 = vpop.f32.mrf.mxu0 }
 0x105   : > { %v5591_v45 = vpop.f32.mrf.mxu1  ;;  %v5593_v46 = vpop.f32.mrf.mxu0 }
 0x107   : > { %v5596_v47 = vpop.f32.mrf.mxu1  ;;  %v5598_v48 = vpop.f32.mrf.mxu0 }
 0x109   : > { %v5600_v50 = vpop.f32.mrf.mxu1  ;;  %v5602_v51 = vpop.f32.mrf.mxu0 }
 0x10b   : > { %v5604_v52 = vpop.f32.mrf.mxu1  ;;  %v5606_v53 = vpop.f32.mrf.mxu0 }
 0x10c   : > { %6100 = vst [vmem:[#allocation8_spill] sm:$0xff] %v5604_v52  ;;  %6101 = vst [vmem:[#allocation9_spill] sm:$0xff] %v5606_v53  ;;  %v955_v53 = vadd.f32 %v906_v22, %v749_v5  ;;  %v957_v5 = vadd.f32 %v5565_v26, %v759_v7 }
 0x10d   : > { %v5608_v55 = vpop.f32.mrf.mxu1  ;;  %v5610_v57 = vpop.f32.mrf.mxu0 }
 0x10e   : > { %6102 = vst [vmem:[#allocation10_spill] sm:$0xff] %v5608_v55  ;;  %6103 = vst [vmem:[#allocation11_spill] sm:$0xff] %v5610_v57  ;;  %v764_v55 = vadd.f32 %v4520_v19, %v5553_v11  ;;  %v1125_v28 = vadd.f32 %v5587_v41, %v957_v5  ;;  %v5673_v41 = vld [vmem:[%s6079_s5] ss:$0 sm:$0xff] }
 0x10f   : > { %v5612_v58 = vpop.f32.mrf.mxu0  ;;  %v4593_v59 = vpop.f32.mrf.mxu1 }
 0x110   : > { %6104 = vst [vmem:[#allocation12_spill] sm:$0xff] %v5612_v58  ;;  %v958_v16 = vadd.f32 %v4539_v24, %v764_v55  ;;  %v794_v24 = vadd.f32 %v5575_v31, %v5555_v12 }
 0x111   : > { %v5614_v49 = vpop.f32.mrf.mxu0  ;;  %v1410_v54 = vpop.f32.mrf.mxu1 }
 0x112   : > { %6105 = vst [vmem:[#allocation13_spill] sm:$0xff] %v5614_v49  ;;  %v956_v49 = vadd.f32 %v4536_v20, %v754_v4  ;;  %v1126_v11 = vadd.f32 %v4558_v39, %v958_v16  ;;  %v2018_v39 = vpop.permute.xlu0 %2017 }
 0x113   : > { %v4596_v56 = vpop.f32.mrf.mxu1  ;;  %v4612_v60 = vpop.f32.mrf.mxu0  ;;  %v6112_v9 = vld [vmem:[#allocation9_spill] sm:$0xff] }
 0x114   : > { %v1124_v52 = vadd.f32 %v4555_v36, %v956_v49  ;;  %v784_v36 = vadd.f32 %v5567_v27, %v5547_v8  ;;  %v1294_v25 = vadd.f32 %v4577_v44, %v1126_v11  ;;  %v789_v27 = vadd.f32 %v5579_v33, %v5559_v14 }
 0x115   : > { %v5616_v62 = vpop.f32.mrf.mxu1  ;;  %v1578_v63 = vpop.f32.mrf.mxu0  ;;  %v1127_v44 = vadd.f32 %v5591_v45, %v959_v15  ;;  %v1293_v14 = vadd.f32 %v5593_v46, %v1125_v28  ;;  %v6115_v15 = vld [vmem:[#allocation10_spill] sm:$0xff] }
 0x116   : > { %v962_v8 = vadd.f32 %v5577_v32, %v784_v36  ;;  %v1462_v12 = vadd.f32 %v4596_v56, %v1294_v25  ;;  %v963_v32 = vadd.f32 %v5585_v37, %v789_v27  ;;  %v1129_v37 = vadd.f32 %v5600_v50, %v961_v10 }
 0x117   : > { %v5618_v0 = vpop.f32.mrf.mxu1  ;;  %v4615_v1 = vpop.f32.mrf.mxu0  ;;  %v1295_v45 = vadd.f32 %v5602_v51, %v1127_v44  ;;  %v1461_v46 = vadd.f32 %v5616_v62, %v1293_v14 }
 0x118   : > { %6106 = vst [vmem:[#allocation14_spill] sm:$0xff] %v5618_v0 }
 0x119   : > { %v5620_v2 = vpop.f32.mrf.mxu1  ;;  %v5622_v3 = vpop.f32.mrf.mxu0 }
 0x11a   : > { %6107 = vst [vmem:[#allocation15_spill] sm:$0xff] %v5620_v2  ;;  %v1629_v50 = vadd.f32 %v5622_v3, %v1461_v46 }
 0x11b   : > { %v5624_v61 = vpop.f32.mrf.mxu1  ;;  %v5626_v6 = vpop.f32.mrf.mxu0 }
 0x11c   : > { %6108 = vst [vmem:[#allocation16_spill] sm:$0xff] %v5624_v61  ;;  %6109 = vst [vmem:[#allocation17_spill] sm:$0xff] %v5626_v6  ;;  %v1123_v61 = vadd.f32 %v1074_v38, %v955_v53  ;;  %v1292_v6 = vadd.f32 %v4574_v40, %v1124_v52  ;;  %v1128_v38 = vadd.f32 %v5589_v43, %v960_v13 }
 0x11d   : > { %v5629_v58 = vpop.f32.mrf.mxu1  ;;  %v5631_v57 = vpop.f32.mrf.mxu0  ;;  %v1630_v52 = vadd.f32 %v4615_v1, %v1462_v12  ;;  %v6111_v1 = vld [vmem:[#allocation8_spill] sm:$0xff] }
 0x11e   : > { %v1291_v19 = vadd.f32 %v1242_v42, %v1123_v61  ;;  %v1460_v22 = vadd.f32 %v4593_v59, %v1292_v6  ;;  %v5656_v6 = vpop.permute.xlu1 %2027  ;;  %v964_v42 = vadd.f32 %v5583_v35, %v794_v24  ;;  %v1296_v43 = vadd.f32 %v5598_v48, %v1128_v38  ;;  %v6117_v38 = vld [vmem:[#allocation11_spill] sm:$0xff] }
 0x11f   : > { %v5634_v0 = vpop.f32.mrf.mxu1  ;;  %v5636_v2 = vpop.f32.mrf.mxu0  ;;  %v1130_v35 = vadd.f32 %v5596_v47, %v962_v8  ;;  %v1297_v12 = vadd.f32 %v6117_v38, %v1129_v37 }
 0x120   : > { %v1459_v26 = vadd.f32 %v1410_v54, %v1291_v19  ;;  %v1628_v61 = vadd.f32 %v4612_v60, %v1460_v22  ;;  %v6110_v54 = vld [vmem:[#allocation14_spill] sm:$0xff]  ;;  %v1132_v16 = vadd.f32 %v6111_v1, %v964_v42  ;;  %v2023_v22 = vpop.permute.xlu0 %2022 }
 0x121   : > { %v5641_v20 = vpop.f32.mrf.mxu1  ;;  %v5643_v4 = vpop.f32.mrf.mxu0  ;;  %v1464_v56 = vadd.f32 %v6110_v54, %v1296_v43  ;;  %v1298_v18 = vadd.f32 %v6112_v9, %v1130_v35  ;;  %v6113_v47 = vld [vmem:[#allocation15_spill] sm:$0xff]  ;;  %v1465_v35 = vadd.f32 %v5629_v58, %v1297_v12 }
 0x122   : > { %v1627_v31 = vadd.f32 %v1578_v63, %v1459_v26  ;;  %v2033_v60 = vpop.permute.xlu1 %2032  ;;  %v1463_v5 = vadd.f32 %v6113_v47, %v1295_v45 }
 0x123   : > { %v5652_v17 = vpop.f32.mrf.mxu0  ;;  %v4631_v23 = vpop.f32.mrf.mxu1  ;;  %v6114_v62 = vld [vmem:[#allocation17_spill] sm:$0xff]  ;;  %v6116_v24 = vld [vmem:[#allocation16_spill] sm:$0xff] }
 0x124   : > { %v1796_v40 = vadd.f32 %v4631_v23, %v1628_v61  ;;  %v1632_v19 = vadd.f32 %v6114_v62, %v1464_v56  ;;  %v1131_v23 = vadd.f32 %v6115_v15, %v963_v32  ;;  %v1466_v25 = vadd.f32 %v6116_v24, %v1298_v18 }
 0x125   : > { %v5663_v29 = vpop.f32.mrf.mxu0  ;;  %v1746_v30 = vpop.f32.mrf.mxu1  ;;  %v1631_v26 = vadd.f32 %v5631_v57, %v1463_v5 }
 0x126   : > { %v1795_v53 = vadd.f32 %v1746_v30, %v1627_v31  ;;  %v6118_v31 = vld [vmem:[#allocation12_spill] sm:$0xff]  ;;  %v1634_v42 = vadd.f32 %v5636_v2, %v1466_v25 }
 0x127   : > { %v4634_v33 = vpop.f32.mrf.mxu1  ;;  %v4650_v34 = vpop.f32.mrf.mxu0 }
 0x128   : > { %v1964_v55 = vadd.f32 %v4650_v34, %v1796_v40  ;;  %v1798_v63 = vadd.f32 %v4634_v33, %v1630_v52  ;;  %v1300_v40 = vadd.f32 %v6118_v31, %v1132_v16  ;;  %v2043_v33 = vpop.permute.xlu1 %2042  ;;  %v6120_v31 = vld [vmem:[#allocation6_spill] sm:$0xff] }
 0x129   : > { %v1756_v59 = vpop.f32.mrf.mxu1  ;;  %v1914_v49 = vpop.f32.mrf.mxu0 }
 0x12a   : > { %v1981_v7 = vadd.f32 %v5673_v41, %v1964_v55  ;;  %v1963_v48 = vadd.f32 %v1914_v49, %v1795_v53  ;;  %v1797_v61 = vadd.f32 %v1756_v59, %v1629_v50  ;;  %v6119_v53 = vld [vmem:[#allocation13_spill] sm:$0xff]  ;;  %v1468_v37 = vadd.f32 %v5634_v0, %v1300_v40  ;;  %v2038_v59 = vpop.permute.xlu0 %2037  ;;  %v6121_v40 = vld [vmem:[#allocation7_spill] sm:$0xff] }
 0x12b   : > { %v4637_v51 = vpop.f32.mrf.mxu1  ;;  %v4653_v11 = vpop.f32.mrf.mxu0  ;;  %v1299_v55 = vadd.f32 %v6119_v53, %v1131_v23 }
 0x12c   : > { %v1991_v36 = vmax.f32 %v1981_v7, 0.0  ;;  %v1980_v13 = vadd.f32 %v5673_v41, %v1963_v48  ;;  %v1966_v21 = vadd.f32 %v4653_v11, %v1798_v63  ;;  %v1800_v28 = vadd.f32 %v4637_v51, %v1632_v19 }
 0x12d   : > { %v1766_v8 = vpop.f32.mrf.mxu1  ;;  %v1924_v27 = vpop.f32.mrf.mxu0  ;;  %v1467_v63 = vadd.f32 %v5641_v20, %v1299_v55  ;;  %v1633_v7 = vadd.f32 %v5643_v4, %v1465_v35  ;;  %v1636_v0 = vadd.f32 %v5652_v17, %v1468_v37 }
 0x12e   : > { %v2066_v10 = vmul.f32 %v2023_v22, %v1991_v36  ;;  %v1990_v3 = vmax.f32 %v1980_v13, 0.0  ;;  %v1983_v30 = vadd.f32 %v5673_v41, %v1966_v21  ;;  %v1965_v44 = vadd.f32 %v1924_v27, %v1797_v61  ;;  %v2053_v17 = vpop.permute.xlu1 %2052 }
 0x12f   : > { %v4640_v32 = vpop.f32.mrf.mxu1  ;;  %v4656_v14 = vpop.f32.mrf.mxu0  ;;  %v1799_v43 = vadd.f32 %v1766_v8, %v1631_v26 }
 0x130   : > { %2076 = vst.msk [vmem:[#allocation2 + $0x13] sm:$0xff] %vm2000_vm1, %v2066_v10  ;;  %v2065_v57 = vmul.f32 %v2018_v39, %v1990_v3  ;;  %v1993_v34 = vmax.f32 %v1983_v30, 0.0  ;;  %v1968_v52 = vadd.f32 %v4656_v14, %v1800_v28  ;;  %v1982_v45 = vadd.f32 %v5673_v41, %v1965_v44  ;;  %v4133_v3 = vld [vmem:[%s6082_s8 + $0x50] sm:$0xff]  ;;  %v4146_v14 = vld [vmem:[%s6082_s8 + $0x68] sm:$0xff] }
 0x131   : > { %v1776_v46 = vpop.f32.mrf.mxu1  ;;  %v1934_v2 = vpop.f32.mrf.mxu0  ;;  %v1802_v54 = vadd.f32 %v4640_v32, %v1634_v42  ;;  %v4147_v28 = vld [vmem:[%s6082_s8 + $0x70] sm:$0xff]  ;;  %v4132_v32 = vld [vmem:[%s6082_s8 + $0x48] sm:$0xff] }
 0x132   : > { %2075 = vst.msk [vmem:[#allocation2 + $0xb] sm:$0xff] %vm2000_vm1, %v2065_v57  ;;  %v2068_v49 = vmul.f32 %v2033_v60, %v1993_v34  ;;  %v1985_v39 = vadd.f32 %v5673_v41, %v1968_v52  ;;  %v1967_v56 = vadd.f32 %v1934_v2, %v1799_v43  ;;  %v1992_v48 = vmax.f32 %v1982_v45, 0.0  ;;  %v2063_v42 = vpop.permute.xlu1 %2062  ;;  %v4131_v2 = vld [vmem:[%s6082_s8 + $0x40] sm:$0xff] }
 0x133   : > { %v4643_v58 = vpop.f32.mrf.mxu1  ;;  %v4659_v1 = vpop.f32.mrf.mxu0  ;;  %v1635_v60 = vadd.f32 %v5663_v29, %v1467_v63  ;;  %v1801_v5 = vadd.f32 %v1776_v46, %v1633_v7 }
 0x134   : > { %2078 = vst.msk [vmem:[#allocation2 + $0x23] sm:$0xff] %vm2000_vm1, %v2068_v49  ;;  %v1995_v16 = vmax.f32 %v1985_v39, 0.0  ;;  %v1984_v9 = vadd.f32 %v5673_v41, %v1967_v56  ;;  %v1970_v18 = vadd.f32 %v4659_v1, %v1802_v54  ;;  %v2067_v47 = vmul.f32 %v5656_v6, %v1992_v48  ;;  %v2048_v6 = vpop.permute.xlu0 %2047  ;;  %v4162_v49 = vld [vmem:[%s6082_s8 + $0x98] sm:$0xff]  ;;  %v2569_v1 = vld [vmem:[#allocation2 + $0x2] sm:$0xff] }
 0x135   : > { %v1786_v50 = vpop.f32.mrf.mxu1  ;;  %v1944_v20 = vpop.f32.mrf.mxu0  ;;  %v1804_v11 = vadd.f32 %v4643_v58, %v1636_v0  ;;  %v4176_v54 = vld [vmem:[%s6082_s8 + $0xb8] sm:$0xff] }
 0x136   : > { %v2070_v51 = vmul.f32 %v2043_v33, %v1995_v16  ;;  %v1994_v4 = vmax.f32 %v1984_v9, 0.0  ;;  %v1987_v62 = vadd.f32 %v5673_v41, %v1970_v18  ;;  %2077 = vst.msk [vmem:[#allocation2 + $0x1b] sm:$0xff] %vm2000_vm1, %v2067_v47  ;;  %v1969_v19 = vadd.f32 %v1944_v20, %v1801_v5  ;;  %v4161_v18 = vld [vmem:[%s6082_s8 + $0x90] sm:$0xff]  ;;  %v4174_v20 = vld [vmem:[%s6082_s8 + $0xa8] sm:$0xff] }
 0x137   : > { %v4662_v22 = vpop.f32.mrf.mxu0  ;;  %v1803_v29 = vadd.f32 %v1786_v50, %v1635_v60  ;;  %v4175_v60 = vld [vmem:[%s6082_s8 + $0xb0] sm:$0xff]  ;;  %v4160_v50 = vld [vmem:[%s6082_s8 + $0x88] sm:$0xff] }
 0x138   : > { %2080 = vst.msk [vmem:[#allocation2 + $0x33] sm:$0xff] %vm2000_vm1, %v2070_v51  ;;  %v2069_v36 = vmul.f32 %v2038_v59, %v1994_v4  ;;  %v1997_v13 = vmax.f32 %v1987_v62, 0.0  ;;  %v1972_v21 = vadd.f32 %v4662_v22, %v1804_v11  ;;  %v1986_v15 = vadd.f32 %v5673_v41, %v1969_v19  ;;  %v2058_v52 = vpop.permute.xlu0 %2057  ;;  %v4145_v59 = vld [vmem:[%s6082_s8 + $0x60] sm:$0xff]  ;;  %v4190_v22 = vld [vmem:[%s6082_s8 + $0xd8] sm:$0xff] }
 0x139   : > { %v1954_v23 = vpop.f32.mrf.mxu0  ;;  %v2265_v24 = vld [vmem:[#allocation2 + $0x9] sm:$0xff]  ;;  %v2266_v26 = vld [vmem:[#allocation2 + $0x11] sm:$0xff]  ;;  %v4159_v11 = vld [vmem:[%s6082_s8 + $0x80] sm:$0xff] }
 0x13a   : > { %v2251_v25 = vld [vmem:[#allocation2 + $0x8] sm:$0xff]  ;;  %2079 = vst.msk [vmem:[#allocation2 + $0x2b] sm:$0xff] %vm2000_vm1, %v2069_v36  ;;  %v2072_v61 = vmul.f32 %v2053_v17, %v1997_v13  ;;  %v1989_v8 = vadd.f32 %v5673_v41, %v1972_v21  ;;  %v1971_v27 = vadd.f32 %v1954_v23, %v1803_v29  ;;  %4691 = vmatmul.mubr.msk.f32.vlgmr.msra.gmra.mxu0 %vm2000_vm1, %v2265_v24  ;;  %v2252_v10 = vld [vmem:[#allocation2 + $0x10] sm:$0xff]  ;;  %v1996_v30 = vmax.f32 %v1986_v15, 0.0  ;;  %v4173_v62 = vld [vmem:[%s6082_s8 + $0xa0] sm:$0xff] }
 0x13b   : > { %4714 = vmatmul.mubr.msk.f32.vlgmr.msra.gmra.mxu1 %vm2000_vm1, %v2251_v25  ;;  %4693 = vmatprep.mubr.msk.f32.mxu0 %vm2000_vm1, %v2266_v26  ;;  %v2739_v0 = vld [vmem:[#allocation2 + $0xa] sm:$0xff]  ;;  %v2740_v16 = vld [vmem:[#allocation2 + $0x12] sm:$0xff] }
 0x13c   : > { %4716 = vmatprep.mubr.msk.f32.mxu1 %vm2000_vm1, %v2252_v10  ;;  %2082 = vst.msk [vmem:[#allocation2 + $0x43] sm:$0xff] %vm2000_vm1, %v2072_v61  ;;  %v1999_v38 = vmax.f32 %v1989_v8, 0.0  ;;  %v1988_v12 = vadd.f32 %v5673_v41, %v1971_v27  ;;  %4729 = vmatpush3.msra.mxu0 %v6120_v31  ;;  %v2071_v44 = vmul.f32 %v2048_v6, %v1996_v30  ;;  %v4204_v36 = vld [vmem:[%s6082_s8 + $0xf8] sm:$0xff]  ;;  %v2909_v21 = vld [vmem:[#allocation2 + $0xb] sm:$0xff]  ;;  %v2912_v8 = vld [vmem:[#allocation2 + $0x23] sm:$0xff] }
 0x13d   : > { %4752 = vmatpush3.msra.mxu1 %v6121_v40  ;;  %4730 = vmatprep.subr.mxu0 %v4133_v3  ;;  %v2267_v41 = vld [vmem:[#allocation2 + $0x19] sm:$0xff]  ;;  %v2268_v43 = vld [vmem:[#allocation2 + $0x21] sm:$0xff]  ;;  %v3079_v6 = vld [vmem:[#allocation2 + $0xc] sm:$0xff] }
 0x13e   : > { %4753 = vmatprep.subr.mxu1 %v4147_v28  ;;  %v2074_v57 = vmul.f32 %v2063_v42, %v1999_v38  ;;  %v1998_v33 = vmax.f32 %v1988_v12, 0.0  ;;  %v2253_v34 = vld [vmem:[#allocation2 + $0x18] sm:$0xff]  ;;  %4731 = vmatpush3.msra.mxu0 %v4133_v3  ;;  %2081 = vst.msk [vmem:[#allocation2 + $0x3b] sm:$0xff] %vm2000_vm1, %v2071_v44  ;;  %v2254_v53 = vld [vmem:[#allocation2 + $0x20] sm:$0xff]  ;;  %v4189_v24 = vld [vmem:[%s6082_s8 + $0xd0] sm:$0xff] }
 0x13f   : > { %4754 = vmatpush3.msra.mxu1 %v4147_v28  ;;  %4694 = vmatmul.mubr.msk.f32.gmra.mxu0 %vm2000_vm1, %v2267_v41  ;;  %v2741_v9 = vld [vmem:[#allocation2 + $0x1a] sm:$0xff]  ;;  %v2742_v47 = vld [vmem:[#allocation2 + $0x22] sm:$0xff]  ;;  %v4203_v61 = vld [vmem:[%s6082_s8 + $0xf0] sm:$0xff] }
 0x140   : > { %4717 = vmatmul.mubr.msk.f32.gmra.mxu1 %vm2000_vm1, %v2253_v34  ;;  %2085 = vst.msk [vmem:[#allocation2 + $0x53] sm:$0x3f] %vm2084_vm3, %v2074_v57  ;;  %v2073_v55 = vmul.f32 %v2058_v52, %v1998_v33  ;;  %4696 = vmatprep.mubr.msk.f32.mxu0 %vm2000_vm1, %v2268_v43  ;;  %v2910_v15 = vld [vmem:[#allocation2 + $0x13] sm:$0xff]  ;;  %v2911_v25 = vld [vmem:[#allocation2 + $0x1b] sm:$0xff]  ;;  %v4188_v10 = vld [vmem:[%s6082_s8 + $0xc8] sm:$0xff]  ;;  %v6122_v52 = vmov 0.0  }
 0x141   : > { %4719 = vmatprep.mubr.msk.f32.mxu1 %vm2000_vm1, %v2254_v53  ;;  %v2269_v35 = vld [vmem:[#allocation2 + $0x29] sm:$0xff]  ;;  %v2270_v45 = vld [vmem:[#allocation2 + $0x31] sm:$0xff]  ;;  %4732 = vmatprep.subr.mxu0 %v4132_v32  ;;  %v3081_v26 = vld [vmem:[#allocation2 + $0x1c] sm:$0xff] }
 0x142   : > { %v2255_v37 = vld [vmem:[#allocation2 + $0x28] sm:$0xff]  ;;  %4755 = vmatprep.subr.mxu1 %v4146_v14  ;;  %2083 = vst.msk [vmem:[#allocation2 + $0x4b] sm:$0xff] %vm2000_vm1, %v2073_v55  ;;  %v2256_v46 = vld [vmem:[#allocation2 + $0x30] sm:$0xff]  ;;  %4733 = vmatpush3.msra.mxu0 %v4132_v32  ;;  %v4187_v31 = vld [vmem:[%s6082_s8 + $0xc0] sm:$0xff] }
 0x143   : > { %4756 = vmatpush3.msra.mxu1 %v4146_v14  ;;  %4697 = vmatmul.mubr.msk.f32.gmra.mxu0 %vm2000_vm1, %v2269_v35  ;;  %v2743_v5 = vld [vmem:[#allocation2 + $0x2a] sm:$0xff]  ;;  %v2744_v51 = vld [vmem:[#allocation2 + $0x32] sm:$0xff]  ;;  %v4201_v44 = vld [vmem:[%s6082_s8 + $0xe0] sm:$0xff] }
 0x144   : > { %4720 = vmatmul.mubr.msk.f32.gmra.mxu1 %vm2000_vm1, %v2255_v37  ;;  %4699 = vmatprep.mubr.msk.f32.mxu0 %vm2000_vm1, %v2270_v45  ;;  %v3080_v23 = vld [vmem:[#allocation2 + $0x14] sm:$0xff]  ;;  %v3082_v27 = vld [vmem:[#allocation2 + $0x24] sm:$0xff]  ;;  %v3083_v28 = vld [vmem:[#allocation2 + $0x2c] sm:$0xff] }
 0x145   : > { %4722 = vmatprep.mubr.msk.f32.mxu1 %vm2000_vm1, %v2256_v46  ;;  %4734 = vmatprep.subr.mxu0 %v4131_v2  ;;  %v2271_v39 = vld [vmem:[#allocation2 + $0x39] sm:$0xff]  ;;  %v2272_v63 = vld [vmem:[#allocation2 + $0x41] sm:$0xff]  ;;  %v2913_v3 = vld [vmem:[#allocation2 + $0x2b] sm:$0xff] }
 0x146   : > { %4757 = vmatprep.subr.mxu1 %v4145_v59  ;;  %v2257_v56 = vld [vmem:[#allocation2 + $0x38] sm:$0xff]  ;;  %4735 = vmatpush3.msra.mxu0 %v4131_v2  ;;  %v2258_v7 = vld [vmem:[#allocation2 + $0x40] sm:$0xff]  ;;  %v4202_v30 = vld [vmem:[%s6082_s8 + $0xe8] sm:$0xff] }
 0x147   : > { %4758 = vmatpush3.msra.mxu1 %v4145_v59  ;;  %4700 = vmatmul.mubr.msk.f32.gmra.mxu0 %vm2000_vm1, %v2271_v39  ;;  %v2745_v4 = vld [vmem:[#allocation2 + $0x3a] sm:$0xff]  ;;  %v2746_v17 = vld [vmem:[#allocation2 + $0x42] sm:$0xff]  ;;  %v2918_v34 = vld [vmem:[#allocation2 + $0x53] sm:$0x3f] }
 0x148   : > { %4723 = vmatmul.mubr.msk.f32.gmra.mxu1 %vm2000_vm1, %v2257_v56  ;;  %4702 = vmatprep.mubr.msk.f32.mxu0 %vm2000_vm1, %v2272_v63  ;;  %v2914_v38 = vld [vmem:[#allocation2 + $0x33] sm:$0xff]  ;;  %v2915_v40 = vld [vmem:[#allocation2 + $0x3b] sm:$0xff]  ;;  %v2916_v32 = vld [vmem:[#allocation2 + $0x43] sm:$0xff] }
 0x149   : > { %4725 = vmatprep.mubr.msk.f32.mxu1 %vm2000_vm1, %v2258_v7  ;;  %v2273_v48 = vld [vmem:[#allocation2 + $0x49] sm:$0x3f]  ;;  %4774 = vmatprep.subr.mxu0 %v4162_v49  ;;  %v2748_v29 = vld [vmem:[#allocation2 + $0x52] sm:$0x3f]  ;;  %v3085_v42 = vld [vmem:[#allocation2 + $0x3c] sm:$0xff] }
 0x14a   : > { %v2259_v58 = vld [vmem:[#allocation2 + $0x48] sm:$0x3f]  ;;  %4797 = vmatprep.subr.mxu1 %v4176_v54  ;;  %v3084_v12 = vld [vmem:[#allocation2 + $0x34] sm:$0xff]  ;;  %v3420_v55 = vld [vmem:[#allocation2 + $0x1d] sm:$0xff] }
 0x14b   : > { %4703 = vmatmul.mubr.msk.f32.gmra.mxu0 %vm2000_vm1, %v2273_v48  ;;  %v2747_v19 = vld [vmem:[#allocation2 + $0x4a] sm:$0xff]  ;;  %v4218_v41 = vld [vmem:[%s6082_s8 + $0x118] sm:$0xff] }
 0x14c   : > { %4726 = vmatmul.mubr.msk.f32.gmra.mxu1 %vm2000_vm1, %v2259_v58  ;;  %4736 = vmatprep.mubr.msk.f32.mxu0 %vm2000_vm1, %v2569_v1  ;;  %v2578_v13 = vld [vmem:[#allocation2 + $0x4a] sm:$0x3f]  ;;  %v3088_v43 = vld [vmem:[#allocation2 + $0x54] sm:$0x3f]  ;;  %v3424_v59 = vld [vmem:[#allocation2 + $0x3d] sm:$0xff] }
 0x14d   : > { %4759 = vmatprep.mubr.msk.f32.mxu1 %vm2000_vm1, %v2739_v0  ;;  %v3086_v14 = vld [vmem:[#allocation2 + $0x44] sm:$0xff]  ;;  %v3087_v33 = vld [vmem:[#allocation2 + $0x4c] sm:$0xff]  ;;  %v3419_v53 = vld [vmem:[#allocation2 + $0x15] sm:$0xff] }
 0x14e   : > { %v2917_v57 = vld [vmem:[#allocation2 + $0x4b] sm:$0xff]  ;;  %v3423_v46 = vld [vmem:[#allocation2 + $0x35] sm:$0xff]  ;;  %v3428_v48 = vld [vmem:[#allocation2 + $0x5d] sm:$0x3f] }
 0x14f   : > { %4737 = vmatmul.mubr.msk.f32.vlgmr.msra.gmra.mxu0 %vm2000_vm1, %v2739_v0  ;;  %v3421_v35 = vld [vmem:[#allocation2 + $0x25] sm:$0xff]  ;;  %v4217_v37 = vld [vmem:[%s6082_s8 + $0x110] sm:$0xff]  ;;  %v3258_v7 = vld [vmem:[#allocation2 + $0x5c] sm:$0x3f] }
 0x150   : > { %4760 = vmatmul.mubr.msk.f32.vlgmr.msra.gmra.mxu1 %vm2000_vm1, %v2740_v16  ;;  %4739 = vmatprep.mubr.msk.f32.mxu0 %vm2000_vm1, %v2740_v16  ;;  %v3422_v45 = vld [vmem:[#allocation2 + $0x2d] sm:$0xff]  ;;  %v3427_v63 = vld [vmem:[#allocation2 + $0x55] sm:$0xff]  ;;  %v3590_v1 = vld [vmem:[#allocation2 + $0x1e] sm:$0xff] }
 0x151   : > { %4762 = vmatprep.mubr.msk.f32.mxu1 %vm2000_vm1, %v2741_v9  ;;  %4775 = vmatpush3.msra.mxu0 %v4162_v49  ;;  %v4216_v2 = vld [vmem:[%s6082_s8 + $0x108] sm:$0xff]  ;;  %v3257_v56 = vld [vmem:[#allocation2 + $0x54] sm:$0xff] }
 0x152   : > { %4798 = vmatpush3.msra.mxu1 %v4176_v54  ;;  %4776 = vmatprep.subr.mxu0 %v4161_v18  ;;  %v3425_v49 = vld [vmem:[#allocation2 + $0x45] sm:$0xff]  ;;  %v3426_v39 = vld [vmem:[#allocation2 + $0x4d] sm:$0xff]  ;;  %v3589_v58 = vld [vmem:[#allocation2 + $0x16] sm:$0xff] }
 0x153   : > { %4799 = vmatprep.subr.mxu1 %v4175_v60  ;;  %4740 = vmatmul.mubr.msk.f32.gmra.mxu0 %vm2000_vm1, %v2741_v9  ;;  %v4215_v54 = vld [vmem:[%s6082_s8 + $0x100] sm:$0xff]  ;;  %v3592_v16 = vld [vmem:[#allocation2 + $0x2e] sm:$0xff]  ;;  %v3593_v9 = vld [vmem:[#allocation2 + $0x36] sm:$0xff] }
 0x154   : > { %4763 = vmatmul.mubr.msk.f32.gmra.mxu1 %vm2000_vm1, %v2742_v47  ;;  %4742 = vmatprep.mubr.msk.f32.mxu0 %vm2000_vm1, %v2742_v47  ;;  %v3591_v0 = vld [vmem:[#allocation2 + $0x26] sm:$0xff]  ;;  %v3596_v47 = vld [vmem:[#allocation2 + $0x4e] sm:$0xff] }
 0x155   : > { %4765 = vmatprep.mubr.msk.f32.mxu1 %vm2000_vm1, %v2743_v5  ;;  %4777 = vmatpush3.msra.mxu0 %v4161_v18  ;;  %v3594_v18 = vld [vmem:[#allocation2 + $0x3e] sm:$0xff] }
 0x156   : > { %4800 = vmatpush3.msra.mxu1 %v4175_v60  ;;  %4778 = vmatprep.subr.mxu0 %v4160_v50  ;;  %v3595_v60 = vld [vmem:[#allocation2 + $0x46] sm:$0xff] }
 0x157   : > { %4801 = vmatprep.subr.mxu1 %v4174_v20  ;;  %4743 = vmatmul.mubr.msk.f32.gmra.mxu0 %vm2000_vm1, %v2743_v5  ;;  %v3597_v5 = vld [vmem:[#allocation2 + $0x56] sm:$0xff] }
 0x158   : > { %4766 = vmatmul.mubr.msk.f32.gmra.mxu1 %vm2000_vm1, %v2744_v51  ;;  %4745 = vmatprep.mubr.msk.f32.mxu0 %vm2000_vm1, %v2744_v51 }
 0x159   : > { %4768 = vmatprep.mubr.msk.f32.mxu1 %vm2000_vm1, %v2745_v4  ;;  %4779 = vmatpush3.msra.mxu0 %v4160_v50  ;;  %v3598_v50 = vld [vmem:[#allocation2 + $0x5e] sm:$0x3f] }
 0x15a   : > { %4802 = vmatpush3.msra.mxu1 %v4174_v20  ;;  %4780 = vmatprep.subr.mxu0 %v4159_v11  ;;  %v5889_v20 = vpop.f32.mrf.mxu1 }
 0x15b   : > { %4803 = vmatprep.subr.mxu1 %v4173_v62  ;;  %4746 = vmatmul.mubr.msk.f32.gmra.mxu0 %vm2000_vm1, %v2745_v4 }
 0x15c   : > { %4769 = vmatmul.mubr.msk.f32.gmra.mxu1 %vm2000_vm1, %v2746_v17  ;;  %4748 = vmatprep.mubr.msk.f32.mxu0 %vm2000_vm1, %v2746_v17  ;;  %v5891_v51 = vpop.f32.mrf.mxu1 }
 0x15d   : > { %4771 = vmatprep.mubr.msk.f32.mxu1 %vm2000_vm1, %v2747_v19  ;;  %4781 = vmatpush3.msra.mxu0 %v4159_v11 }
 0x15e   : > { %4804 = vmatpush3.msra.mxu1 %v4173_v62  ;;  %4820 = vmatprep.subr.mxu0 %v4190_v22  ;;  %v5893_v4 = vpop.f32.mrf.mxu1 }
 0x15f   : > { %4843 = vmatprep.subr.mxu1 %v4204_v36  ;;  %4749 = vmatmul.mubr.msk.f32.gmra.mxu0 %vm2000_vm1, %v2578_v13  ;;  %6123 = vst [vmem:[#allocation14_spill] sm:$0xff] %v5893_v4 }
 0x160   : > { %4772 = vmatmul.mubr.msk.f32.gmra.mxu1 %vm2000_vm1, %v2748_v29  ;;  %4782 = vmatprep.mubr.msk.f32.mxu0 %vm2000_vm1, %v2909_v21  ;;  %v5895_v11 = vpop.f32.mrf.mxu1 }
 0x161   : > { %4805 = vmatprep.mubr.msk.f32.mxu1 %vm2000_vm1, %v3079_v6  ;;  %6124 = vst [vmem:[#allocation8_spill] sm:$0xff] %v5895_v11 }
 0x162   : > { %v5897_v62 = vpop.f32.mrf.mxu1 }
 0x163   : > { %4783 = vmatmul.mubr.msk.f32.vlgmr.msra.gmra.mxu0 %vm2000_vm1, %v2910_v15  ;;  %6125 = vst [vmem:[#allocation9_spill] sm:$0xff] %v5897_v62 }
 0x164   : > { %4806 = vmatmul.mubr.msk.f32.vlgmr.msra.gmra.mxu1 %vm2000_vm1, %v3080_v23  ;;  %4785 = vmatprep.mubr.msk.f32.mxu0 %vm2000_vm1, %v2911_v25  ;;  %v5899_v17 = vpop.f32.mrf.mxu1 }
 0x165   : > { %4808 = vmatprep.mubr.msk.f32.mxu1 %vm2000_vm1, %v3081_v26  ;;  %4821 = vmatpush3.msra.mxu0 %v4190_v22  ;;  %6126 = vst [vmem:[#allocation15_spill] sm:$0xff] %v5899_v17 }
 0x166   : > { %4844 = vmatpush3.msra.mxu1 %v4204_v36  ;;  %4822 = vmatprep.subr.mxu0 %v4189_v24  ;;  %v5901_v19 = vpop.f32.mrf.mxu1 }
 0x167   : > { %4845 = vmatprep.subr.mxu1 %v4203_v61  ;;  %4786 = vmatmul.mubr.msk.f32.gmra.mxu0 %vm2000_vm1, %v2912_v8  ;;  %6127 = vst [vmem:[#allocation17_spill] sm:$0xff] %v5901_v19 }
 0x168   : > { %4809 = vmatmul.mubr.msk.f32.gmra.mxu1 %vm2000_vm1, %v3082_v27  ;;  %4788 = vmatprep.mubr.msk.f32.mxu0 %vm2000_vm1, %v2913_v3  ;;  %v5903_v22 = vpop.f32.mrf.mxu1 }
 0x169   : > { %4811 = vmatprep.mubr.msk.f32.mxu1 %vm2000_vm1, %v3083_v28  ;;  %4823 = vmatpush3.msra.mxu0 %v4189_v24  ;;  %6128 = vst [vmem:[#allocation10_spill] sm:$0xff] %v5903_v22 }
 0x16a   : > { %4846 = vmatpush3.msra.mxu1 %v4203_v61  ;;  %4824 = vmatprep.subr.mxu0 %v4188_v10  ;;  %v5905_v36 = vpop.f32.mrf.mxu1 }
 0x16b   : > { %4847 = vmatprep.subr.mxu1 %v4202_v30  ;;  %4789 = vmatmul.mubr.msk.f32.gmra.mxu0 %vm2000_vm1, %v2914_v38  ;;  %6129 = vst [vmem:[#allocation16_spill] sm:$0xff] %v5905_v36 }
 0x16c   : > { %4812 = vmatmul.mubr.msk.f32.gmra.mxu1 %vm2000_vm1, %v3084_v12  ;;  %4791 = vmatprep.mubr.msk.f32.mxu0 %vm2000_vm1, %v2915_v40  ;;  %v5907_v13 = vpop.f32.mrf.mxu1 }
 0x16d   : > { %4814 = vmatprep.mubr.msk.f32.mxu1 %vm2000_vm1, %v3085_v42  ;;  %4825 = vmatpush3.msra.mxu0 %v4188_v10  ;;  %6130 = vst [vmem:[#allocation11_spill] sm:$0xff] %v5907_v13 }
 0x16e   : > { %4848 = vmatpush3.msra.mxu1 %v4202_v30  ;;  %4826 = vmatprep.subr.mxu0 %v4187_v31 }
 0x16f   : > { %4849 = vmatprep.subr.mxu1 %v4201_v44  ;;  %4792 = vmatmul.mubr.msk.f32.gmra.mxu0 %vm2000_vm1, %v2916_v32 }
 0x170   : > { %4815 = vmatmul.mubr.msk.f32.gmra.mxu1 %vm2000_vm1, %v3086_v14  ;;  %4794 = vmatprep.mubr.msk.f32.mxu0 %vm2000_vm1, %v2917_v57 }
 0x171   : > { %4817 = vmatprep.mubr.msk.f32.mxu1 %vm2000_vm1, %v3087_v33  ;;  %4827 = vmatpush3.msra.mxu0 %v4187_v31 }
 0x172   : > { %4850 = vmatpush3.msra.mxu1 %v4201_v44  ;;  %4866 = vmatprep.subr.mxu0 %v4218_v41 }
 0x173   : > { %4889 = vmatprep.subr.mxu1 %v6122_v52  ;;  %4795 = vmatmul.mubr.msk.f32.gmra.mxu0 %vm2000_vm1, %v2918_v34 }
 0x174   : > { %4818 = vmatmul.mubr.msk.f32.gmra.mxu1 %vm2000_vm1, %v3088_v43  ;;  %4828 = vmatprep.mubr.msk.f32.mxu0 %vm2000_vm1, %v3080_v23 }
 0x175   : > { %4851 = vmatprep.mubr.msk.f32.mxu1 %vm2000_vm1, %v3419_v53 }
 0x177   : > { %4829 = vmatmul.mubr.msk.f32.vlgmr.msra.gmra.mxu0 %vm2000_vm1, %v3081_v26 }
 0x178   : > { %4852 = vmatmul.mubr.msk.f32.vlgmr.msra.gmra.mxu1 %vm2000_vm1, %v3420_v55  ;;  %4831 = vmatprep.mubr.msk.f32.mxu0 %vm2000_vm1, %v3082_v27 }
 0x179   : > { %4854 = vmatprep.mubr.msk.f32.mxu1 %vm2000_vm1, %v3421_v35  ;;  %4867 = vmatpush3.msra.mxu0 %v4218_v41 }
 0x17a   : > { %4868 = vmatprep.subr.mxu0 %v4217_v37 }
 0x17b   : > { %4832 = vmatmul.mubr.msk.f32.gmra.mxu0 %vm2000_vm1, %v3083_v28 }
 0x17c   : > { %4855 = vmatmul.mubr.msk.f32.gmra.mxu1 %vm2000_vm1, %v3422_v45  ;;  %4834 = vmatprep.mubr.msk.f32.mxu0 %vm2000_vm1, %v3084_v12 }
 0x17d   : > { %4857 = vmatprep.mubr.msk.f32.mxu1 %vm2000_vm1, %v3423_v46  ;;  %4869 = vmatpush3.msra.mxu0 %v4217_v37 }
 0x17e   : > { %4870 = vmatprep.subr.mxu0 %v4216_v2 }
 0x17f   : > { %4835 = vmatmul.mubr.msk.f32.gmra.mxu0 %vm2000_vm1, %v3085_v42 }
 0x180   : > { %4858 = vmatmul.mubr.msk.f32.gmra.mxu1 %vm2000_vm1, %v3424_v59  ;;  %4837 = vmatprep.mubr.msk.f32.mxu0 %vm2000_vm1, %v3086_v14 }
 0x181   : > { %4860 = vmatprep.mubr.msk.f32.mxu1 %vm2000_vm1, %v3425_v49  ;;  %4871 = vmatpush3.msra.mxu0 %v4216_v2 }
 0x182   : > { %4872 = vmatprep.subr.mxu0 %v4215_v54 }
 0x183   : > { %4838 = vmatmul.mubr.msk.f32.gmra.mxu0 %vm2000_vm1, %v3087_v33 }
 0x184   : > { %4861 = vmatmul.mubr.msk.f32.gmra.mxu1 %vm2000_vm1, %v3426_v39  ;;  %4840 = vmatprep.mubr.msk.f32.mxu0 %vm2000_vm1, %v3257_v56 }
 0x185   : > { %4863 = vmatprep.mubr.msk.f32.mxu1 %vm2000_vm1, %v3427_v63  ;;  %4873 = vmatpush3.msra.mxu0 %v4215_v54 }
 0x187   : > { %4841 = vmatmul.mubr.msk.f32.gmra.mxu0 %vm2000_vm1, %v3258_v7 }
 0x188   : > { %4864 = vmatmul.mubr.msk.f32.gmra.mxu1 %vm2000_vm1, %v3428_v48  ;;  %4874 = vmatprep.mubr.msk.f32.mxu0 %vm2000_vm1, %v3589_v58 }
 0x189   : > { %4909 = vmatprep.mubr.msk.f32.mxu1 %vm5025_vm4, %v6122_v52 }
 0x18b   : > { %4875 = vmatmul.mubr.msk.f32.vlgmr.msra.gmra.mxu0 %vm2000_vm1, %v3590_v1 }
 0x18c   : > { %4877 = vmatprep.mubr.msk.f32.mxu0 %vm2000_vm1, %v3591_v0 }
 0x18f   : > { %4878 = vmatmul.mubr.msk.f32.gmra.mxu0 %vm2000_vm1, %v3592_v16 }
 0x190   : > { %4880 = vmatprep.mubr.msk.f32.mxu0 %vm2000_vm1, %v3593_v9 }
 0x193   : > { %4881 = vmatmul.mubr.msk.f32.gmra.mxu0 %vm2000_vm1, %v3594_v18 }
 0x194   : > { %4883 = vmatprep.mubr.msk.f32.mxu0 %vm2000_vm1, %v3595_v60 }
 0x197   : > { %4884 = vmatmul.mubr.msk.f32.gmra.mxu0 %vm2000_vm1, %v3596_v47 }
 0x198   : > { %4886 = vmatprep.mubr.msk.f32.mxu0 %vm2000_vm1, %v3597_v5 }
 0x19b   : > { %4887 = vmatmul.mubr.msk.f32.gmra.mxu0 %vm2000_vm1, %v3598_v50 }
 0x1fa   : > { %v4692_v29 = vpop.f32.mrf.mxu0 }
 0x1fb   : > { %v4715_v21 = vpop.f32.mrf.mxu1 }
 0x1fc   : > { %v2526_v6 = vadd.f32 %v4715_v21, %v4692_v29  ;;  %v2375_v15 = vpop.f32.mrf.mxu0 }
 0x1fd   : > { %v2520_v23 = vpop.f32.mrf.mxu1 }
 0x1fe   : > { %v2521_v24 = vadd.f32 %v2520_v23, %v2375_v15 }
 0x1ff   : > { %v4695_v25 = vpop.f32.mrf.mxu0 }
 0x200   : > { %v4718_v26 = vpop.f32.mrf.mxu1 }
 0x201   : > { %v2536_v61 = vadd.f32 %v4718_v26, %v4695_v25  ;;  %v2385_v8 = vpop.f32.mrf.mxu0 }
 0x202   : > { %v2530_v27 = vpop.f32.mrf.mxu1 }
 0x203   : > { %v2531_v10 = vadd.f32 %v2530_v27, %v2385_v8  ;;  %v4698_v3 = vpop.f32.mrf.mxu0 }
 0x204   : > { %v4721_v28 = vpop.f32.mrf.mxu1 }
 0x205   : > { %v2546_v30 = vadd.f32 %v4721_v28, %v4698_v3  ;;  %v2395_v38 = vpop.f32.mrf.mxu0 }
 0x206   : > { %v2540_v12 = vpop.f32.mrf.mxu1 }
 0x207   : > { %v2541_v31 = vadd.f32 %v2540_v12, %v2395_v38  ;;  %v5910_v40 = vpop.f32.mrf.mxu0 }
 0x208   : > { %v5912_v42 = vpop.f32.mrf.mxu1 }
 0x209   : > { %v5914_v44 = vpop.f32.mrf.mxu0  ;;  %v2556_v13 = vadd.f32 %v5912_v42, %v5910_v40 }
 0x20a   : > { %v5916_v32 = vpop.f32.mrf.mxu1 }
 0x20b   : > { %v5918_v14 = vpop.f32.mrf.mxu0 }
 0x20c   : > { %v5920_v57 = vpop.f32.mrf.mxu1 }
 0x20d   : > { %v5922_v33 = vpop.f32.mrf.mxu0 }
 0x20e   : > { %v5924_v41 = vpop.f32.mrf.mxu1 }
 0x20f   : > { %v4738_v34 = vpop.f32.mrf.mxu0 }
 0x210   : > { %v4761_v43 = vpop.f32.mrf.mxu1  ;;  %v2730_v53 = vadd.f32 %v4738_v34, %v2526_v6 }
 0x211   : > { %v2680_v55 = vpop.f32.mrf.mxu0 }
 0x212   : > { %v2850_v35 = vpop.f32.mrf.mxu1  ;;  %v2900_v37 = vadd.f32 %v4761_v43, %v2730_v53  ;;  %v2729_v45 = vadd.f32 %v2680_v55, %v2521_v24 }
 0x213   : > { %v4741_v46 = vpop.f32.mrf.mxu0 }
 0x214   : > { %v4764_v2 = vpop.f32.mrf.mxu1  ;;  %v2899_v59 = vadd.f32 %v2850_v35, %v2729_v45  ;;  %v2732_v49 = vadd.f32 %v4741_v46, %v2536_v61 }
 0x215   : > { %v2690_v54 = vpop.f32.mrf.mxu0 }
 0x216   : > { %v2860_v39 = vpop.f32.mrf.mxu1  ;;  %v2731_v56 = vadd.f32 %v2690_v54, %v2531_v10  ;;  %v2902_v52 = vadd.f32 %v4764_v2, %v2732_v49  ;;  %v2566_v2 = vadd.f32 %v5920_v57, %v5918_v14 }
 0x217   : > { %v4744_v63 = vpop.f32.mrf.mxu0 }
 0x218   : > { %v4767_v7 = vpop.f32.mrf.mxu1  ;;  %v2734_v48 = vadd.f32 %v4744_v63, %v2546_v30  ;;  %v2901_v36 = vadd.f32 %v2860_v39, %v2731_v56 }
 0x219   : > { %v2700_v58 = vpop.f32.mrf.mxu0 }
 0x21a   : > { %v2870_v1 = vpop.f32.mrf.mxu1  ;;  %v2733_v0 = vadd.f32 %v2700_v58, %v2541_v31 }
 0x21b   : > { %v4747_v16 = vpop.f32.mrf.mxu0 }
 0x21c   : > { %v4770_v9 = vpop.f32.mrf.mxu1  ;;  %v2903_v49 = vadd.f32 %v2870_v1, %v2733_v0 }
 0x21d   : > { %v2710_v18 = vpop.f32.mrf.mxu0 }
 0x21e   : > { %v5926_v60 = vpop.f32.mrf.mxu1 }
 0x21f   : > { %v4750_v47 = vpop.f32.mrf.mxu0 }
 0x220   : > { %v5928_v5 = vpop.f32.mrf.mxu1 }
 0x221   : > { %v5930_v50 = vpop.f32.mrf.mxu0 }
 0x222   : > { %v5932_v29 = vpop.f32.mrf.mxu1 }
 0x223   : > { %v4784_v21 = vpop.f32.mrf.mxu0 }
 0x224   : > { %v4807_v6 = vpop.f32.mrf.mxu1  ;;  %v3070_v15 = vadd.f32 %v4784_v21, %v2900_v37 }
 0x225   : > { %v3020_v23 = vpop.f32.mrf.mxu0 }
 0x226   : > { %v3190_v24 = vpop.f32.mrf.mxu1  ;;  %v3069_v25 = vadd.f32 %v3020_v23, %v2899_v59  ;;  %v3240_v17 = vadd.f32 %v4807_v6, %v3070_v15 }
 0x227   : > { %v4787_v26 = vpop.f32.mrf.mxu0 }
 0x228   : > { %v4810_v61 = vpop.f32.mrf.mxu1  ;;  %v3072_v62 = vadd.f32 %v4787_v26, %v2902_v52  ;;  %v3239_v4 = vadd.f32 %v3190_v24, %v3069_v25  ;;  %v2561_v52 = vadd.f32 %v5924_v41, %v5922_v33 }
 0x229   : > { %v3030_v8 = vpop.f32.mrf.mxu0 }
 0x22a   : > { %v3200_v27 = vpop.f32.mrf.mxu1  ;;  %v3071_v11 = vadd.f32 %v3030_v8, %v2901_v36  ;;  %v3242_v39 = vadd.f32 %v4810_v61, %v3072_v62  ;;  %v5959_v36 = vld [vmem:[%s6081_s7] ss:$0 sm:$0xff]  ;;  %v2737_v33 = vadd.f32 %v5930_v50, %v2561_v52 }
 0x22b   : > { %v4790_v10 = vpop.f32.mrf.mxu0 }
 0x22c   : > { %v4813_v3 = vpop.f32.mrf.mxu1 }
 0x22d   : > { %v3040_v28 = vpop.f32.mrf.mxu0 }
 0x22e   : > { %v3210_v30 = vpop.f32.mrf.mxu1  ;;  %v3073_v14 = vadd.f32 %v3040_v28, %v2903_v49 }
 0x22f   : > { %v4793_v38 = vpop.f32.mrf.mxu0 }
 0x230   : > { %v5934_v12 = vpop.f32.mrf.mxu1  ;;  %v3243_v6 = vadd.f32 %v3210_v30, %v3073_v14 }
 0x231   : > { %6131 = vst [vmem:[#allocation12_spill] sm:$0xff] %v5934_v12  ;;  %v3050_v31 = vpop.f32.mrf.mxu0 }
 0x232   : > { %v5936_v34 = vpop.f32.mrf.mxu1 }
 0x233   : > { %6132 = vst [vmem:[#allocation13_spill] sm:$0xff] %v5936_v34  ;;  %v5938_v43 = vpop.f32.mrf.mxu0  ;;  %v2904_v34 = vadd.f32 %v4767_v7, %v2734_v48 }
 0x234   : > { %6133 = vst [vmem:[#allocation6_spill] sm:$0xff] %v5938_v43  ;;  %v5940_v53 = vpop.f32.mrf.mxu1 }
 0x235   : > { %6134 = vst [vmem:[#allocation7_spill] sm:$0xff] %v5940_v53  ;;  %v5942_v55 = vpop.f32.mrf.mxu0  ;;  %v2736_v53 = vadd.f32 %v4747_v16, %v2556_v13  ;;  %v3074_v56 = vadd.f32 %v4790_v10, %v2904_v34  ;;  %v2738_v13 = vadd.f32 %v4750_v47, %v2566_v2  ;;  %v5968_v16 = vld [vmem:[%s6083_s9] ss:$0 sm:$0xff] }
 0x236   : > { %6135 = vst [vmem:[#allocation18_spill] sm:$0xff] %v5942_v55  ;;  %v5944_v35 = vpop.f32.mrf.mxu1 }
 0x237   : > { %6136 = vst [vmem:[#allocation19_spill] sm:$0xff] %v5944_v35  ;;  %v4830_v37 = vpop.f32.mrf.mxu0  ;;  %v2551_v35 = vadd.f32 %v5916_v32, %v5914_v44  ;;  %v3241_v32 = vadd.f32 %v3200_v27, %v3071_v11  ;;  %v2207_v11 = vadd.f32 %v5889_v20, %v5959_v36  ;;  %v2908_v50 = vadd.f32 %v5928_v5, %v2738_v13 }
 0x238   : > { %v4853_v45 = vpop.f32.mrf.mxu1  ;;  %v3410_v43 = vadd.f32 %v4830_v37, %v3240_v17  ;;  %v2906_v17 = vadd.f32 %v4770_v9, %v2736_v53  ;;  %v3244_v9 = vadd.f32 %v4813_v3, %v3074_v56  ;;  %v2907_v27 = vadd.f32 %v5932_v29, %v2737_v33  ;;  %v6137_v10 = vld [vmem:[#allocation12_spill] sm:$0xff] }
 0x239   : > { %v3360_v46 = vpop.f32.mrf.mxu0  ;;  %v2735_v12 = vadd.f32 %v2710_v18, %v2551_v35 }
 0x23a   : > { %v3530_v59 = vpop.f32.mrf.mxu1  ;;  %v3409_v44 = vadd.f32 %v3360_v46, %v3239_v4  ;;  %v3580_v7 = vadd.f32 %v4853_v45, %v3410_v43  ;;  %v3076_v62 = vadd.f32 %v4793_v38, %v2906_v17  ;;  %v6140_v35 = vld [vmem:[#allocation13_spill] sm:$0xff] }
 0x23b   : > { %v4833_v54 = vpop.f32.mrf.mxu0  ;;  %v2905_v1 = vadd.f32 %v5926_v60, %v2735_v12  ;;  %v2202_v60 = vadd.f32 %v5959_v36, %v5891_v51  ;;  %v6138_v3 = vld [vmem:[#allocation6_spill] sm:$0xff] }
 0x23c   : > { %v4856_v58 = vpop.f32.mrf.mxu1  ;;  %v3412_v48 = vadd.f32 %v4833_v54, %v3242_v39  ;;  %v3579_v18 = vadd.f32 %v3530_v59, %v3409_v44  ;;  %v3246_v20 = vadd.f32 %v6137_v10, %v3076_v62  ;;  %v3078_v28 = vadd.f32 %v6138_v3, %v2908_v50  ;;  %v6143_v2 = vld [vmem:[#allocation7_spill] sm:$0xff]  ;;  %v6148_v10 = vld [vmem:[#allocation10_spill] sm:$0xff] }
 0x23d   : > { %v3370_v63 = vpop.f32.mrf.mxu0  ;;  %v3075_v15 = vadd.f32 %v3050_v31, %v2905_v1  ;;  %v6139_v31 = vld [vmem:[#allocation14_spill] sm:$0xff] }
 0x23e   : > { %v3540_v22 = vpop.f32.mrf.mxu1  ;;  %v3411_v41 = vadd.f32 %v3370_v63, %v3241_v32  ;;  %v3582_v25 = vadd.f32 %v4856_v58, %v3412_v48  ;;  %v2217_v53 = vadd.f32 %v6139_v31, %v5959_v36  ;;  %v6141_v45 = vld [vmem:[#allocation18_spill] sm:$0xff]  ;;  %v3248_v49 = vadd.f32 %v6143_v2, %v3078_v28  ;;  %v6145_v14 = vld [vmem:[#allocation19_spill] sm:$0xff] }
 0x23f   : > { %v4836_v21 = vpop.f32.mrf.mxu0  ;;  %v3245_v37 = vadd.f32 %v6140_v35, %v3075_v15  ;;  %v3077_v29 = vadd.f32 %v6141_v45, %v2907_v27  ;;  %v6147_v15 = vld [vmem:[#allocation17_spill] sm:$0xff]  ;;  %v6150_v35 = vld [vmem:[#allocation11_spill] sm:$0xff] }
 0x240   : > { %v4859_v40 = vpop.f32.mrf.mxu1  ;;  %v3414_v26 = vadd.f32 %v4836_v21, %v3244_v9  ;;  %v3581_v38 = vadd.f32 %v3540_v22, %v3411_v41  ;;  %v6142_v21 = vld [vmem:[#allocation8_spill] sm:$0xff] }
 0x241   : > { %v3380_v23 = vpop.f32.mrf.mxu0 }
 0x242   : > { %v3550_v4 = vpop.f32.mrf.mxu1  ;;  %v3413_v51 = vadd.f32 %v3380_v23, %v3243_v6  ;;  %v3584_v54 = vadd.f32 %v4859_v40, %v3414_v26  ;;  %v2212_v23 = vadd.f32 %v5959_v36, %v6142_v21  ;;  %v6144_v40 = vld [vmem:[#allocation9_spill] sm:$0xff] }
 0x243   : > { %v4839_v19 = vpop.f32.mrf.mxu0  ;;  %v2227_v32 = vadd.f32 %v6144_v40, %v5959_v36 }
 0x244   : > { %v4862_v12 = vpop.f32.mrf.mxu1  ;;  %v3416_v46 = vadd.f32 %v4839_v19, %v3246_v20  ;;  %v3583_v44 = vadd.f32 %v3550_v4, %v3413_v51  ;;  %v2232_v20 = vadd.f32 %v5959_v36, %v6148_v10  ;;  %v6149_v51 = vld [vmem:[#allocation16_spill] sm:$0xff] }
 0x245   : > { %v3390_v55 = vpop.f32.mrf.mxu0 }
 0x246   : > { %v3415_v52 = vadd.f32 %v3390_v55, %v3245_v37  ;;  %v3560_v39 = vpop.f32.mrf.mxu1  ;;  %v3586_v48 = vadd.f32 %v4862_v12, %v3416_v46  ;;  %v2242_v37 = vadd.f32 %v5959_v36, %v6150_v35 }
 0x247   : > { %v5952_v42 = vpop.f32.mrf.mxu0 }
 0x248   : > { %v4865_v1 = vpop.f32.mrf.mxu1  ;;  %v3418_v62 = vadd.f32 %v5952_v42, %v3248_v49  ;;  %v3585_v9 = vadd.f32 %v3560_v39, %v3415_v52  ;;  %v3796_v39 = vld [vmem:[%s6085_s11] sm:$0x1] }
 0x249   : > { %v5961_v57 = vpop.f32.mrf.mxu0 }
 0x24a   : > { %v3588_v26 = vadd.f32 %v4865_v1, %v3418_v62 }
 0x24b   : > { %v4876_v0 = vpop.f32.mrf.mxu0 }
 0x24c   : > { %v3750_v47 = vadd.f32 %v4876_v0, %v3580_v7  ;;  %v3247_v7 = vadd.f32 %v6145_v14, %v3077_v29 }
 0x24d   : > { %v3700_v24 = vpop.f32.mrf.mxu0 }
 0x24e   : > { %v3767_v61 = vadd.f32 %v5968_v16, %v3750_v47  ;;  %v3749_v8 = vadd.f32 %v3700_v24, %v3579_v18  ;;  %v3417_v47 = vadd.f32 %v5961_v57, %v3247_v7  ;;  %v2237_v24 = vadd.f32 %v6147_v15, %v5959_v36 }
 0x24f   : > { %v4879_v34 = vpop.f32.mrf.mxu0 }
 0x250   : > { %v5979_v43 = vadd.f32 %v3767_v61, %v2207_v11  ;;  %v3766_v5 = vadd.f32 %v5968_v16, %v3749_v8  ;;  %v3752_v30 = vadd.f32 %v4879_v34, %v3582_v25  ;;  %v6146_v11 = vld [vmem:[#allocation15_spill] sm:$0xff]  ;;  %v3570_v25 = vpop.f32.mrf.mxu1 }
 0x251   : > { %v3710_v59 = vpop.f32.mrf.mxu0  ;;  %v2222_v4 = vadd.f32 %v5959_v36, %v6146_v11  ;;  %v3587_v28 = vadd.f32 %v3570_v25, %v3417_v47 }
 0x252   : > { %v5986_v63 = vadd.f32 %v3766_v5, %v2202_v60  ;;  %v3769_v22 = vadd.f32 %v5968_v16, %v3752_v30  ;;  %v3751_v58 = vadd.f32 %v3710_v59, %v3581_v38  ;;  %v2247_v5 = vadd.f32 %v6149_v51, %v5959_v36 }
 0x253   : > { %v4882_v56 = vpop.f32.mrf.mxu0  ;;  %v3787_v49 = vmax.f32 %v5979_v43, 0.0 }
 0x254   : > { %v3779_v17 = vadd.f32 %v3769_v22, %v2217_v53  ;;  %v3768_v13 = vadd.f32 %v5968_v16, %v3751_v58  ;;  %v3754_v19 = vadd.f32 %v4882_v56, %v3584_v54  ;;  %v6151_v22 = vmov 0.0  }
 0x255   : > { %v3720_v33 = vpop.f32.mrf.mxu0  ;;  %v3786_v52 = vmax.f32 %v5986_v63, 0.0 }
 0x256   : > { %v3778_v41 = vadd.f32 %v3768_v13, %v2212_v23  ;;  %v3771_v55 = vadd.f32 %v5968_v16, %v3754_v19  ;;  %v3753_v0 = vadd.f32 %v3720_v33, %v3583_v44 }
 0x257   : > { %v4885_v18 = vpop.f32.mrf.mxu0 }
 0x258   : > { %v3781_v60 = vadd.f32 %v3771_v55, %v2227_v32  ;;  %v3770_v50 = vadd.f32 %v5968_v16, %v3753_v0  ;;  %v3756_v6 = vadd.f32 %v4885_v18, %v3586_v48  ;;  %v3788_v2 = vmax.f32 %v3778_v41, 0.0 }
 0x259   : > { %v3730_v42 = vpop.f32.mrf.mxu0 }
 0x25a   : > { %v3780_v61 = vadd.f32 %v3770_v50, %v2222_v4  ;;  %v3773_v8 = vadd.f32 %v5968_v16, %v3756_v6  ;;  %v3755_v27 = vadd.f32 %v3730_v42, %v3585_v9  ;;  %v3791_v23 = vmax.f32 %v3781_v60, 0.0 }
 0x25b   : > { %v4888_v3 = vpop.f32.mrf.mxu0 }
 0x25c   : > { %v3783_v57 = vadd.f32 %v3773_v8, %v2237_v24  ;;  %v3772_v38 = vadd.f32 %v5968_v16, %v3755_v27  ;;  %v3758_v12 = vadd.f32 %v4888_v3, %v3588_v26  ;;  %v3790_v36 = vmax.f32 %v3780_v61, 0.0 }
 0x25d   : > { %v3740_v34 = vpop.f32.mrf.mxu0 }
 0x25e   : > { %v3782_v30 = vadd.f32 %v3772_v38, %v2232_v20  ;;  %v3775_v31 = vadd.f32 %v5968_v16, %v3758_v12  ;;  %v3757_v53 = vadd.f32 %v3740_v34, %v3587_v28  ;;  %v3793_v58 = vmax.f32 %v3783_v57, 0.0 }
 0x260   : > { %v3785_v45 = vadd.f32 %v3775_v31, %v2247_v5  ;;  %v3774_v29 = vadd.f32 %v5968_v16, %v3757_v53  ;;  %v3792_v21 = vmax.f32 %v3782_v30, 0.0  ;;  %v3789_v16 = vmax.f32 %v3779_v17, 0.0 }
 0x262   : > { %v3795_v46 = vmax.f32 %v3785_v45, 0.0  ;;  %v3784_v59 = vadd.f32 %v3774_v29, %v2242_v37 }
 0x264   : > { %v3794_v54 = vmax.f32 %v3784_v59, 0.0  ;;  %4890 = vmatpush3.msk.msra.mxu1 %vm3801_vm5, %v3795_v46 }
 0x265   : > { %4891 = vmatprep.subr.mxu1 %v6151_v22 }
 0x266   : > { %4892 = vmatpush3.msra.mxu1 %v3794_v54 }
 0x267   : > { %4893 = vmatprep.subr.mxu1 %v6151_v22 }
 0x268   : > { %4894 = vmatpush3.msra.mxu1 %v3793_v58 }
 0x269   : > { %4895 = vmatprep.subr.mxu1 %v6151_v22 }
 0x26a   : > { %4896 = vmatpush3.msra.mxu1 %v3792_v21 }
 0x26b   : > { %4897 = vmatprep.subr.mxu1 %v6151_v22 }
 0x26c   : > { %4898 = vmatpush3.msra.mxu1 %v3791_v23 }
 0x26d   : > { %4899 = vmatprep.subr.mxu1 %v6151_v22 }
 0x26e   : > { %4900 = vmatpush3.msra.mxu1 %v3790_v36 }
 0x26f   : > { %4901 = vmatprep.subr.mxu1 %v6151_v22 }
 0x270   : > { %4902 = vmatpush3.msra.mxu1 %v3789_v16 }
 0x271   : > { %4903 = vmatprep.subr.mxu1 %v6151_v22 }
 0x272   : > { %4904 = vmatpush3.msra.mxu1 %v3788_v2 }
 0x273   : > { %4905 = vmatprep.subr.mxu1 %v6151_v22 }
 0x274   : > { %4906 = vmatpush3.msra.mxu1 %v3787_v49 }
 0x275   : > { %4907 = vmatprep.subr.mxu1 %v6151_v22 }
 0x276   : > { %4908 = vmatpush3.msra.mxu1 %v3786_v52 }
 0x277   : > { %4910 = vmatmul.mubr.msk.f32.vlgmr.msra.gmra.mxu1 %vm3797_vm6, %v3796_v39 }
 0x337   : > { %v3871_v43 = vpop.f32.mrf.mxu1 }
 0x338   : > { %3876 = vst.msk [vmem:[%s450_s0] sm:$0x1] %vm3875_vm7, %v3871_v43 }
 0x339   : > { %v4911_v63 = vpop.f32.mrf.mxu1 }
 0x33a   : > { %4974 = shalt.err (!%p4971_p3)
}
 0x33b   : > { %s4975_s29 = scalar_lea.hbm %s6033_s16, 16  ;;  %s4979_s19 = scalar_lea.hbm %s6086_s12, 32 }
 0x33c   : > { %p4976_p4 = scmp.ne.s32.totalorder %s6033_s16, %s4975_s29  ;;  %p4980_p9 = scmp.lt.s32.totalorder %s6033_s16, %s6086_s12 }
 0x33d   : > { %p4981_p10 = scmp.lt.s32.totalorder %s4979_s19, %s4975_s29 }
 0x33e   : > { %p4977_p7 = pnand %p4976_p4, %p5130_p5 }
 0x33f   : > { %p4982_p11 = por %p4981_p10, %p4980_p9 }
 0x340   : > { %p4978_p8 = pneg %p4977_p7 }
 0x342   : > { %p4983_p12 = pnand %p4982_p11, %p4978_p8 }
 0x344   : > { %4986 = shalt.err (!%p4983_p12)
}
 0x345   : > { %4917 = dma.vmem_to_hbm [thread:$0]  (%p5130_p5), %s6035_s15, 16, %s6033_s16, %s3878_s18  }
 0x346 PF: > { %p4923_p13 = scmp.ge.s32.totalorder %s5021_s24, 2  ;;  %s3902_s20 = sand.u32 1, %s5009_s21  }
 0x347   : > { %s3903_s1 = scalar_lea.sflag [#allocation4], %s3902_s20 }
 0x348   : > { %p4920_p0 = pnand %p4923_p13, %p5134_p6 }
 0x34a   : > { %p4921_p1 = pneg %p4920_p0 }
 0x34c   : > { %5004 = dma.done.wait (%p4921_p1), %s3903_s1, 16  }
 0x34d   : > { %5006 = vsyncadd (%p4921_p1), %s3903_s1, 4294967280  ;;  %p22_p2 = scmp.ge.s32.totalorder %s5117_s27, 4   ;;  %s6152_s21 = smov %s5013_s22 }
 0x34e   : > { %s6153_s22 = smov %s5017_s23  ;;  %s6154_s23 = smov %s5128_s30 }
 0x34f   : > { %s6155_s24 = smov %s5117_s27  ;;  %24 = sbr.rel (!%p22_p2) target bundleno = 6 (0x6), region = 128 }
 0x354   :  { %3907 = vsyncpa [#allocation4], 1 }
 0x355   :  { %3909 = vsyncpa [#allocation4 + $0x1], 1 }

// kernel: simclr_forward.2
= control target key start
LH: loop header
LB: loop body
LE: loop exit
PB: predicated region body
PF: predicated region fallthrough
CT: control target
= control target key end

     0   :  { %s16255_s27 = smov 0   ;;  %s20678_s0 = inlined_call_operand.vmem [shape: f32[2,324,4], index: 0, kind: input, shape index: {}]   ;;  %s20679_s1 = inlined_call_operand.vmem [shape: f32[9,4,16], index: 1, kind: input, shape index: {}]   ;;  %s20680_s2 = inlined_call_operand.vmem [shape: f32[1,16], index: 2, kind: input, shape index: {}]   ;;  %s20681_s3 = inlined_call_operand.vmem [shape: f32[9,16,16], index: 3, kind: input, shape index: {}]   ;;  %s20682_s4 = inlined_call_operand.vmem [shape: f32[1,16], index: 4, kind: input, shape index: {}]   ;;  %s20683_s5 = inlined_call_operand.vmem [shape: f32[9,16,16], index: 5, kind: input, shape index: {}]   ;;  %s20684_s6 = inlined_call_operand.vmem [shape: f32[1,16], index: 6, kind: input, shape index: {}]   ;;  %s20685_s7 = inlined_call_operand.vmem [shape: f32[286,1], index: 7, kind: input, shape index: {}]   ;;  %s20686_s8 = inlined_call_operand.vmem [shape: f32[2,324,16], index: 8, kind: output, shape index: {}]  }
   0x1 LB: > { %s12585_s28 = sadd.s32 4294967295, %s16206_s27   ;;  %p12589_p0 = scmp.ge.s32.totalorder %s16206_s27, 1  ;;  %s16206_s27 = sphi %s16255_s27, %s18_s27  }
   0x2   : > { %p262_p1 = scmp.lt.s32.totalorder %s16206_s27, 3 }
   0x4   : > { %p263_p2 = pnand %p12589_p0, %p262_p1 }
   0x6   : > { %266 = sbr.rel (%p263_p2) target bundleno = 1565 (0x61d), region = 52 }
   0xb   : > { %v12592_v0 = vld [vmem:[%s20679_s1 + $0x4] sm:$0xf]  ;;  %vm526_vm0 = vcmask 1043456   ;;  %p296_p3 = scmp.lt.s32.totalorder %s12585_s28, 1  ;;  %v378_v1 = vld [vmem:[%s20679_s1] sm:$0xf] }
   0xc   : > { %16183 = vmatprep.subr.msk.mxu1 %vm526_vm0, %v12592_v0  ;;  %14635 = vmatprep.subr.msk.mxu0 %vm526_vm0, %v12592_v0  ;;  %v12667_v2 = vld [vmem:[%s20679_s1 + $0x8] sm:$0xf]  ;;  %vm417_vm1 = vcmask 31744   ;;  %v16301_v9 = vld [vmem:[%s20679_s1 + $0xc] sm:$0xf]  ;;  %vm4220_vm2 = vcmask 130048  }
   0xd   : > { %16184 = vmatpush3.msk.msra.mxu1 %vm526_vm0, %v12592_v0  ;;  %14636 = vmatpush3.msk.msra.mxu0 %vm526_vm0, %v12592_v0  ;;  %s21150_s28 = smov (!%p296_p3, %s12585_s28), 1  ;;  %v16306_v10 = vld [vmem:[%s20679_s1 + $0x10] sm:$0xf]  ;;  %v16391_v47 = vld [vmem:[%s20679_s1 + $0x14] sm:$0xf]  ;;  %vm4514_vm3 = vcmask 128000  }
   0xe   : > { %14691 = vmatprep.subr.msk.mxu1 %vm526_vm0, %v378_v1  ;;  %14747 = vmatprep.subr.msk.mxu0 %vm526_vm0, %v12667_v2  ;;  %s16185_s13 = smul.u32 328, %s21150_s28  ;;  %v16396_v48 = vld [vmem:[%s20679_s1 + $0x18] sm:$0xf]  ;;  %vm4261_vm4 = vcmask 125952  }
  0x10   : > { %s16286_s16 = scalar_lea.vmem %s20678_s0, %s16185_s13  ;;  %s18313_s11 = scalar_lea.vmem %s20686_s8, %s16185_s13 }
  0x11   : > { %v379_v3 = vld [vmem:[%s16286_s16 + $0x1] sm:$0xff]  ;;  %v397_v4 = vld [vmem:[%s16286_s16 + $0x91] sm:$0xff]  ;;  %v380_v5 = vld [vmem:[%s16286_s16 + $0x9] sm:$0xff] }
  0x12   : > { %14637 = vmatprep.mubr.msk.f32.mxu0 %vm417_vm1, %v379_v3  ;;  %14664 = vmatprep.mubr.msk.f32.mxu1 %vm417_vm1, %v397_v4  ;;  %v398_v6 = vld [vmem:[%s16286_s16 + $0x99] sm:$0xff]  ;;  %v381_v7 = vld [vmem:[%s16286_s16 + $0x11] sm:$0xff]  ;;  %v399_v8 = vld [vmem:[%s16286_s16 + $0xa1] sm:$0xff] }
  0x13   : > { %14638 = vmatmul.mubr.msk.f32.vlgmr.msra.gmra.mxu0 %vm417_vm1, %v380_v5  ;;  %14665 = vmatmul.mubr.msk.f32.vlgmr.msra.gmra.mxu1 %vm417_vm1, %v398_v6  ;;  %v382_v11 = vld [vmem:[%s16286_s16 + $0x19] sm:$0xff]  ;;  %v400_v12 = vld [vmem:[%s16286_s16 + $0xa9] sm:$0xff]  ;;  %v383_v13 = vld [vmem:[%s16286_s16 + $0x21] sm:$0xff] }
  0x14   : > { %14692 = vmatpush3.msk.msra.mxu1 %vm526_vm0, %v378_v1  ;;  %14748 = vmatpush3.msk.msra.mxu0 %vm526_vm0, %v12667_v2  ;;  %v401_v14 = vld [vmem:[%s16286_s16 + $0xb1] sm:$0xff]  ;;  %v384_v15 = vld [vmem:[%s16286_s16 + $0x29] sm:$0xff]  ;;  %v402_v16 = vld [vmem:[%s16286_s16 + $0xb9] sm:$0xff] }
  0x15   : > { %14640 = vmatprep.mubr.msk.f32.mxu0 %vm417_vm1, %v381_v7  ;;  %14667 = vmatprep.mubr.msk.f32.mxu1 %vm417_vm1, %v399_v8  ;;  %v385_v17 = vld [vmem:[%s16286_s16 + $0x31] sm:$0xff]  ;;  %v403_v18 = vld [vmem:[%s16286_s16 + $0xc1] sm:$0xff]  ;;  %v386_v19 = vld [vmem:[%s16286_s16 + $0x39] sm:$0xff] }
  0x16   : > { %14803 = vmatprep.subr.msk.mxu1 %vm526_vm0, %v16301_v9  ;;  %14859 = vmatprep.subr.msk.mxu0 %vm526_vm0, %v16306_v10  ;;  %v404_v20 = vld [vmem:[%s16286_s16 + $0xc9] sm:$0xff]  ;;  %v387_v21 = vld [vmem:[%s16286_s16 + $0x41] sm:$0xff]  ;;  %v405_v22 = vld [vmem:[%s16286_s16 + $0xd1] sm:$0xff] }
  0x17   : > { %14641 = vmatmul.mubr.msk.f32.gmra.mxu0 %vm417_vm1, %v382_v11  ;;  %14668 = vmatmul.mubr.msk.f32.gmra.mxu1 %vm417_vm1, %v400_v12  ;;  %v388_v23 = vld [vmem:[%s16286_s16 + $0x49] sm:$0xff]  ;;  %v406_v24 = vld [vmem:[%s16286_s16 + $0xd9] sm:$0xff]  ;;  %v389_v25 = vld [vmem:[%s16286_s16 + $0x51] sm:$0xff] }
  0x18   : > { %14643 = vmatprep.mubr.msk.f32.mxu0 %vm417_vm1, %v383_v13  ;;  %14670 = vmatprep.mubr.msk.f32.mxu1 %vm417_vm1, %v401_v14  ;;  %v407_v26 = vld [vmem:[%s16286_s16 + $0xe1] sm:$0xff]  ;;  %v390_v27 = vld [vmem:[%s16286_s16 + $0x59] sm:$0xff]  ;;  %v408_v28 = vld [vmem:[%s16286_s16 + $0xe9] sm:$0xff] }
  0x19   : > { %v391_v29 = vld [vmem:[%s16286_s16 + $0x61] sm:$0xff]  ;;  %v409_v30 = vld [vmem:[%s16286_s16 + $0xf1] sm:$0xff]  ;;  %v392_v31 = vld [vmem:[%s16286_s16 + $0x69] sm:$0xff] }
  0x1a   : > { %v410_v32 = vld [vmem:[%s16286_s16 + $0xf9] sm:$0xff]  ;;  %v393_v33 = vld [vmem:[%s16286_s16 + $0x71] sm:$0xff]  ;;  %v411_v34 = vld [vmem:[%s16286_s16 + $0x101] sm:$0xff] }
  0x1b   : > { %14644 = vmatmul.mubr.msk.f32.gmra.mxu0 %vm417_vm1, %v384_v15  ;;  %14671 = vmatmul.mubr.msk.f32.gmra.mxu1 %vm417_vm1, %v402_v16  ;;  %v394_v35 = vld [vmem:[%s16286_s16 + $0x79] sm:$0xff]  ;;  %v412_v36 = vld [vmem:[%s16286_s16 + $0x109] sm:$0xff]  ;;  %v395_v37 = vld [vmem:[%s16286_s16 + $0x81] sm:$0xff] }
  0x1c   : > { %14646 = vmatprep.mubr.msk.f32.mxu0 %vm417_vm1, %v385_v17  ;;  %14673 = vmatprep.mubr.msk.f32.mxu1 %vm417_vm1, %v403_v18  ;;  %v413_v38 = vld [vmem:[%s16286_s16 + $0x111] sm:$0xff]  ;;  %v396_v39 = vld [vmem:[%s16286_s16 + $0x89] sm:$0xff]  ;;  %v414_v40 = vld [vmem:[%s16286_s16 + $0x119] sm:$0x3f] }
  0x1d   : > { %v342_v41 = vld [vmem:[%s16286_s16] sm:$0xff]  ;;  %v343_v43 = vld [vmem:[%s16286_s16 + $0x8] sm:$0xff]  ;;  %v344_v45 = vld [vmem:[%s16286_s16 + $0x10] sm:$0xff] }
  0x1e   : > { %v1131_v42 = vld [vmem:[%s16286_s16 + $0x2] sm:$0xff]  ;;  %v1132_v44 = vld [vmem:[%s16286_s16 + $0xa] sm:$0xff]  ;;  %v16384_v46 = vld [vmem:[%s16286_s16 + $0x12] sm:$0xff] }
  0x1f   : > { %14647 = vmatmul.mubr.msk.f32.gmra.mxu0 %vm417_vm1, %v386_v19  ;;  %14674 = vmatmul.mubr.msk.f32.gmra.mxu1 %vm417_vm1, %v404_v20  ;;  %v345_v49 = vld [vmem:[%s16286_s16 + $0x18] sm:$0xff]  ;;  %v346_v51 = vld [vmem:[%s16286_s16 + $0x20] sm:$0xff]  ;;  %v347_v53 = vld [vmem:[%s16286_s16 + $0x28] sm:$0xff] }
  0x20   : > { %14649 = vmatprep.mubr.msk.f32.mxu0 %vm417_vm1, %v387_v21  ;;  %14676 = vmatprep.mubr.msk.f32.mxu1 %vm417_vm1, %v405_v22  ;;  %v16404_v50 = vld [vmem:[%s16286_s16 + $0x1a] sm:$0xff]  ;;  %v16411_v52 = vld [vmem:[%s16286_s16 + $0x22] sm:$0xff]  ;;  %v16425_v54 = vld [vmem:[%s16286_s16 + $0x2a] sm:$0xff] }
  0x21   : > { %v348_v55 = vld [vmem:[%s16286_s16 + $0x30] sm:$0xff]  ;;  %v349_v57 = vld [vmem:[%s16286_s16 + $0x38] sm:$0xff]  ;;  %v350_v59 = vld [vmem:[%s16286_s16 + $0x40] sm:$0xff] }
  0x22   : > { %v16429_v56 = vld [vmem:[%s16286_s16 + $0x32] sm:$0xff]  ;;  %v16439_v58 = vld [vmem:[%s16286_s16 + $0x3a] sm:$0xff]  ;;  %v16443_v60 = vld [vmem:[%s16286_s16 + $0x42] sm:$0xff] }
  0x23   : > { %14650 = vmatmul.mubr.msk.f32.gmra.mxu0 %vm417_vm1, %v388_v23  ;;  %14677 = vmatmul.mubr.msk.f32.gmra.mxu1 %vm417_vm1, %v406_v24  ;;  %v351_v61 = vld [vmem:[%s16286_s16 + $0x48] sm:$0xff]  ;;  %v352_v63 = vld [vmem:[%s16286_s16 + $0x50] sm:$0xff]  ;;  %v353_v1 = vld [vmem:[%s16286_s16 + $0x58] sm:$0xff] }
  0x24   : > { %14652 = vmatprep.mubr.msk.f32.mxu0 %vm417_vm1, %v389_v25  ;;  %14679 = vmatprep.mubr.msk.f32.mxu1 %vm417_vm1, %v407_v26  ;;  %v16453_v62 = vld [vmem:[%s16286_s16 + $0x4a] sm:$0xff]  ;;  %v16457_v0 = vld [vmem:[%s16286_s16 + $0x52] sm:$0xff]  ;;  %v16467_v2 = vld [vmem:[%s16286_s16 + $0x5a] sm:$0xff] }
  0x25   : > { %v354_v3 = vld [vmem:[%s16286_s16 + $0x60] sm:$0xff]  ;;  %v355_v5 = vld [vmem:[%s16286_s16 + $0x68] sm:$0xff]  ;;  %v356_v7 = vld [vmem:[%s16286_s16 + $0x70] sm:$0xff] }
  0x26   : > { %v16471_v4 = vld [vmem:[%s16286_s16 + $0x62] sm:$0xff]  ;;  %v16481_v6 = vld [vmem:[%s16286_s16 + $0x6a] sm:$0xff]  ;;  %v16485_v8 = vld [vmem:[%s16286_s16 + $0x72] sm:$0xff] }
  0x27   : > { %14653 = vmatmul.mubr.msk.f32.gmra.mxu0 %vm417_vm1, %v390_v27  ;;  %14680 = vmatmul.mubr.msk.f32.gmra.mxu1 %vm417_vm1, %v408_v28  ;;  %v358_v11 = vld [vmem:[%s16286_s16 + $0x80] sm:$0xff]  ;;  %v359_v13 = vld [vmem:[%s16286_s16 + $0x88] sm:$0xff]  ;;  %v360_v15 = vld [vmem:[%s16286_s16 + $0x90] sm:$0xff] }
  0x28   : > { %14655 = vmatprep.mubr.msk.f32.mxu0 %vm417_vm1, %v391_v29  ;;  %14682 = vmatprep.mubr.msk.f32.mxu1 %vm417_vm1, %v409_v30  ;;  %v16499_v12 = vld [vmem:[%s16286_s16 + $0x82] sm:$0xff]  ;;  %v16509_v14 = vld [vmem:[%s16286_s16 + $0x8a] sm:$0xff]  ;;  %v16513_v16 = vld [vmem:[%s16286_s16 + $0x92] sm:$0xff] }
  0x29   : > { %v361_v17 = vld [vmem:[%s16286_s16 + $0x98] sm:$0xff]  ;;  %v362_v19 = vld [vmem:[%s16286_s16 + $0xa0] sm:$0xff]  ;;  %v363_v21 = vld [vmem:[%s16286_s16 + $0xa8] sm:$0xff] }
  0x2a   : > { %v16523_v18 = vld [vmem:[%s16286_s16 + $0x9a] sm:$0xff]  ;;  %v16527_v20 = vld [vmem:[%s16286_s16 + $0xa2] sm:$0xff]  ;;  %v16537_v22 = vld [vmem:[%s16286_s16 + $0xaa] sm:$0xff] }
  0x2b   : > { %14656 = vmatmul.mubr.msk.f32.gmra.mxu0 %vm417_vm1, %v392_v31  ;;  %14683 = vmatmul.mubr.msk.f32.gmra.mxu1 %vm417_vm1, %v410_v32  ;;  %v364_v23 = vld [vmem:[%s16286_s16 + $0xb0] sm:$0xff]  ;;  %v365_v25 = vld [vmem:[%s16286_s16 + $0xb8] sm:$0xff]  ;;  %v366_v27 = vld [vmem:[%s16286_s16 + $0xc0] sm:$0xff] }
  0x2c   : > { %14658 = vmatprep.mubr.msk.f32.mxu0 %vm417_vm1, %v393_v33  ;;  %14685 = vmatprep.mubr.msk.f32.mxu1 %vm417_vm1, %v411_v34  ;;  %v16541_v24 = vld [vmem:[%s16286_s16 + $0xb2] sm:$0xff]  ;;  %v16551_v26 = vld [vmem:[%s16286_s16 + $0xba] sm:$0xff]  ;;  %v16555_v28 = vld [vmem:[%s16286_s16 + $0xc2] sm:$0xff] }
  0x2d   : > { %v367_v29 = vld [vmem:[%s16286_s16 + $0xc8] sm:$0xff]  ;;  %v368_v31 = vld [vmem:[%s16286_s16 + $0xd0] sm:$0xff]  ;;  %v369_v33 = vld [vmem:[%s16286_s16 + $0xd8] sm:$0xff] }
  0x2e   : > { %v16565_v30 = vld [vmem:[%s16286_s16 + $0xca] sm:$0xff]  ;;  %v16569_v32 = vld [vmem:[%s16286_s16 + $0xd2] sm:$0xff]  ;;  %v16579_v34 = vld [vmem:[%s16286_s16 + $0xda] sm:$0xff] }
  0x2f   : > { %14659 = vmatmul.mubr.msk.f32.gmra.mxu0 %vm417_vm1, %v394_v35  ;;  %14686 = vmatmul.mubr.msk.f32.gmra.mxu1 %vm417_vm1, %v412_v36  ;;  %v370_v35 = vld [vmem:[%s16286_s16 + $0xe0] sm:$0xff] }
  0x30   : > { %14661 = vmatprep.mubr.msk.f32.mxu0 %vm417_vm1, %v395_v37  ;;  %14688 = vmatprep.mubr.msk.f32.mxu1 %vm417_vm1, %v413_v38  ;;  %v16583_v36 = vld [vmem:[%s16286_s16 + $0xe2] sm:$0xff]  ;;  %v16593_v38 = vld [vmem:[%s16286_s16 + $0xea] sm:$0xff] }
  0x31   : > { %v371_v37 = vld [vmem:[%s16286_s16 + $0xe8] sm:$0xff] }
  0x33   : > { %14662 = vmatmul.mubr.msk.f32.gmra.mxu0 %vm417_vm1, %v396_v39  ;;  %14689 = vmatmul.mubr.msk.f32.gmra.mxu1 %vm417_vm1, %v414_v40  ;;  %v372_v39 = vld [vmem:[%s16286_s16 + $0xf0] sm:$0xff] }
  0x34   : > { %14693 = vmatprep.mubr.msk.f32.mxu1 %vm417_vm1, %v342_v41  ;;  %14749 = vmatprep.mubr.msk.f32.mxu0 %vm417_vm1, %v1131_v42  ;;  %v16597_v40 = vld [vmem:[%s16286_s16 + $0xf2] sm:$0xff]  ;;  %v16607_v42 = vld [vmem:[%s16286_s16 + $0xfa] sm:$0xff] }
  0x35   : > { %v373_v41 = vld [vmem:[%s16286_s16 + $0xf8] sm:$0xff] }
  0x37   : > { %14694 = vmatmul.mubr.msk.f32.vlgmr.msra.gmra.mxu1 %vm417_vm1, %v343_v43  ;;  %14750 = vmatmul.mubr.msk.f32.vlgmr.msra.gmra.mxu0 %vm417_vm1, %v1132_v44  ;;  %v374_v43 = vld [vmem:[%s16286_s16 + $0x100] sm:$0xff] }
  0x38   : > { %14804 = vmatpush3.msk.msra.mxu1 %vm526_vm0, %v16301_v9  ;;  %14860 = vmatpush3.msk.msra.mxu0 %vm526_vm0, %v16306_v10  ;;  %v357_v9 = vld [vmem:[%s16286_s16 + $0x78] sm:$0xff]  ;;  %v16611_v44 = vld [vmem:[%s16286_s16 + $0x102] sm:$0xff] }
  0x39   : > { %14696 = vmatprep.mubr.msk.f32.mxu1 %vm417_vm1, %v344_v45  ;;  %14752 = vmatprep.mubr.msk.f32.mxu0 %vm417_vm1, %v16384_v46  ;;  %v16495_v10 = vld [vmem:[%s16286_s16 + $0x7a] sm:$0xff]  ;;  %v375_v45 = vld [vmem:[%s16286_s16 + $0x108] sm:$0xff] }
  0x3a   : > { %14915 = vmatprep.subr.msk.mxu1 %vm526_vm0, %v16391_v47  ;;  %14971 = vmatprep.subr.msk.mxu0 %vm526_vm0, %v16396_v48 }
  0x3b   : > { %14697 = vmatmul.mubr.msk.f32.gmra.mxu1 %vm417_vm1, %v345_v49  ;;  %14753 = vmatmul.mubr.msk.f32.gmra.mxu0 %vm417_vm1, %v16404_v50  ;;  %v16621_v49 = vld [vmem:[%s16286_s16 + $0x10a] sm:$0xff] }
  0x3c   : > { %14699 = vmatprep.mubr.msk.f32.mxu1 %vm417_vm1, %v346_v51  ;;  %14755 = vmatprep.mubr.msk.f32.mxu0 %vm417_vm1, %v16411_v52  ;;  %v376_v51 = vld [vmem:[%s16286_s16 + $0x110] sm:$0xff] }
  0x3f   : > { %14700 = vmatmul.mubr.msk.f32.gmra.mxu1 %vm417_vm1, %v347_v53  ;;  %14756 = vmatmul.mubr.msk.f32.gmra.mxu0 %vm417_vm1, %v16425_v54  ;;  %v16625_v53 = vld [vmem:[%s16286_s16 + $0x112] sm:$0xff] }
  0x40   : > { %14702 = vmatprep.mubr.msk.f32.mxu1 %vm417_vm1, %v348_v55  ;;  %14758 = vmatprep.mubr.msk.f32.mxu0 %vm417_vm1, %v16429_v56  ;;  %v377_v55 = vld [vmem:[%s16286_s16 + $0x118] sm:$0x3f] }
  0x43   : > { %14703 = vmatmul.mubr.msk.f32.gmra.mxu1 %vm417_vm1, %v349_v57  ;;  %14759 = vmatmul.mubr.msk.f32.gmra.mxu0 %vm417_vm1, %v16439_v58  ;;  %v1166_v57 = vld [vmem:[%s16286_s16 + $0x11a] sm:$0x3f] }
  0x44   : > { %14705 = vmatprep.mubr.msk.f32.mxu1 %vm417_vm1, %v350_v59  ;;  %14761 = vmatprep.mubr.msk.f32.mxu0 %vm417_vm1, %v16443_v60  ;;  %v1991_v59 = vld [vmem:[%s16286_s16 + $0x13] sm:$0xff] }
  0x47   : > { %14706 = vmatmul.mubr.msk.f32.gmra.mxu1 %vm417_vm1, %v351_v61  ;;  %14762 = vmatmul.mubr.msk.f32.gmra.mxu0 %vm417_vm1, %v16453_v62  ;;  %v1992_v61 = vld [vmem:[%s16286_s16 + $0x1b] sm:$0xff] }
  0x48   : > { %14708 = vmatprep.mubr.msk.f32.mxu1 %vm417_vm1, %v352_v63  ;;  %14764 = vmatprep.mubr.msk.f32.mxu0 %vm417_vm1, %v16457_v0  ;;  %v1993_v63 = vld [vmem:[%s16286_s16 + $0x23] sm:$0xff] }
  0x4b   : > { %14709 = vmatmul.mubr.msk.f32.gmra.mxu1 %vm417_vm1, %v353_v1  ;;  %14765 = vmatmul.mubr.msk.f32.gmra.mxu0 %vm417_vm1, %v16467_v2  ;;  %v16649_v1 = vld [vmem:[%s20679_s1 + $0x1c] sm:$0xf] }
  0x4c   : > { %14711 = vmatprep.mubr.msk.f32.mxu1 %vm417_vm1, %v354_v3  ;;  %14767 = vmatprep.mubr.msk.f32.mxu0 %vm417_vm1, %v16471_v4  ;;  %v1995_v3 = vld [vmem:[%s16286_s16 + $0x33] sm:$0xff] }
  0x4f   : > { %14712 = vmatmul.mubr.msk.f32.gmra.mxu1 %vm417_vm1, %v355_v5  ;;  %14768 = vmatmul.mubr.msk.f32.gmra.mxu0 %vm417_vm1, %v16481_v6  ;;  %v16208_v5 = vmov 0  }
  0x50   : > { %14714 = vmatprep.mubr.msk.f32.mxu1 %vm417_vm1, %v356_v7  ;;  %14770 = vmatprep.mubr.msk.f32.mxu0 %vm417_vm1, %v16485_v8  ;;  %v2007_v7 = vld [vmem:[%s16286_s16 + $0x93] sm:$0xff] }
  0x51   : > { %16196 = vset.pattern.permute.xlu0 %v16208_v5  ;;  %16197 = vset.pattern.permute.xlu1 %v16208_v5  ;;  %v2859_v5 = vld [vmem:[%s16286_s16 + $0x64] sm:$0xff] }
  0x53   : > { %14715 = vmatmul.mubr.msk.f32.gmra.mxu1 %vm417_vm1, %v357_v9  ;;  %14771 = vmatmul.mubr.msk.f32.gmra.mxu0 %vm417_vm1, %v16495_v10  ;;  %v307_v9 = vld [vmem:[%s20685_s7 + $0x8] sm:$0xff] }
  0x54   : > { %14717 = vmatprep.mubr.msk.f32.mxu1 %vm417_vm1, %v358_v11  ;;  %14773 = vmatprep.mubr.msk.f32.mxu0 %vm417_vm1, %v16499_v12  ;;  %v2009_v11 = vld [vmem:[%s16286_s16 + $0xa3] sm:$0xff] }
  0x57   : > { %14718 = vmatmul.mubr.msk.f32.gmra.mxu1 %vm417_vm1, %v359_v13  ;;  %14774 = vmatmul.mubr.msk.f32.gmra.mxu0 %vm417_vm1, %v16509_v14  ;;  %v310_v13 = vld [vmem:[%s20685_s7 + $0x20] sm:$0xff] }
  0x58   : > { %14720 = vmatprep.mubr.msk.f32.mxu1 %vm417_vm1, %v360_v15  ;;  %14776 = vmatprep.mubr.msk.f32.mxu0 %vm417_vm1, %v16513_v16  ;;  %v2011_v15 = vld [vmem:[%s16286_s16 + $0xb3] sm:$0xff] }
  0x5b   : > { %14721 = vmatmul.mubr.msk.f32.gmra.mxu1 %vm417_vm1, %v361_v17  ;;  %14777 = vmatmul.mubr.msk.f32.gmra.mxu0 %vm417_vm1, %v16523_v18  ;;  %v312_v17 = vld [vmem:[%s20685_s7 + $0x30] sm:$0xff] }
  0x5c   : > { %14723 = vmatprep.mubr.msk.f32.mxu1 %vm417_vm1, %v362_v19  ;;  %14779 = vmatprep.mubr.msk.f32.mxu0 %vm417_vm1, %v16527_v20  ;;  %v2013_v19 = vld [vmem:[%s16286_s16 + $0xc3] sm:$0xff] }
  0x5f   : > { %14724 = vmatmul.mubr.msk.f32.gmra.mxu1 %vm417_vm1, %v363_v21  ;;  %14780 = vmatmul.mubr.msk.f32.gmra.mxu0 %vm417_vm1, %v16537_v22  ;;  %v314_v21 = vld [vmem:[%s20685_s7 + $0x40] sm:$0xff] }
  0x60   : > { %14726 = vmatprep.mubr.msk.f32.mxu1 %vm417_vm1, %v364_v23  ;;  %14782 = vmatprep.mubr.msk.f32.mxu0 %vm417_vm1, %v16541_v24  ;;  %v2015_v23 = vld [vmem:[%s16286_s16 + $0xd3] sm:$0xff] }
  0x63   : > { %14727 = vmatmul.mubr.msk.f32.gmra.mxu1 %vm417_vm1, %v365_v25  ;;  %14783 = vmatmul.mubr.msk.f32.gmra.mxu0 %vm417_vm1, %v16551_v26  ;;  %v316_v25 = vld [vmem:[%s20685_s7 + $0x50] sm:$0xff] }
  0x64   : > { %14729 = vmatprep.mubr.msk.f32.mxu1 %vm417_vm1, %v366_v27  ;;  %14785 = vmatprep.mubr.msk.f32.mxu0 %vm417_vm1, %v16555_v28  ;;  %v2017_v27 = vld [vmem:[%s16286_s16 + $0xe3] sm:$0xff] }
  0x67   : > { %14730 = vmatmul.mubr.msk.f32.gmra.mxu1 %vm417_vm1, %v367_v29  ;;  %14786 = vmatmul.mubr.msk.f32.gmra.mxu0 %vm417_vm1, %v16565_v30  ;;  %v318_v29 = vld [vmem:[%s20685_s7 + $0x60] sm:$0xff] }
  0x68   : > { %14732 = vmatprep.mubr.msk.f32.mxu1 %vm417_vm1, %v368_v31  ;;  %14788 = vmatprep.mubr.msk.f32.mxu0 %vm417_vm1, %v16569_v32  ;;  %v2019_v31 = vld [vmem:[%s16286_s16 + $0xf3] sm:$0xff] }
  0x6b   : > { %14733 = vmatmul.mubr.msk.f32.gmra.mxu1 %vm417_vm1, %v369_v33  ;;  %14789 = vmatmul.mubr.msk.f32.gmra.mxu0 %vm417_vm1, %v16579_v34  ;;  %v320_v33 = vld [vmem:[%s20685_s7 + $0x70] sm:$0xff] }
  0x6c   : > { %14735 = vmatprep.mubr.msk.f32.mxu1 %vm417_vm1, %v370_v35  ;;  %14791 = vmatprep.mubr.msk.f32.mxu0 %vm417_vm1, %v16583_v36  ;;  %v2021_v35 = vld [vmem:[%s16286_s16 + $0x103] sm:$0xff] }
  0x6f   : > { %14736 = vmatmul.mubr.msk.f32.gmra.mxu1 %vm417_vm1, %v371_v37  ;;  %14792 = vmatmul.mubr.msk.f32.gmra.mxu0 %vm417_vm1, %v16593_v38  ;;  %v322_v37 = vld [vmem:[%s20685_s7 + $0x80] sm:$0xff] }
  0x70   : > { %14738 = vmatprep.mubr.msk.f32.mxu1 %vm417_vm1, %v372_v39  ;;  %14794 = vmatprep.mubr.msk.f32.mxu0 %vm417_vm1, %v16597_v40  ;;  %v2023_v39 = vld [vmem:[%s16286_s16 + $0x113] sm:$0xff] }
  0x73   : > { %14739 = vmatmul.mubr.msk.f32.gmra.mxu1 %vm417_vm1, %v373_v41  ;;  %14795 = vmatmul.mubr.msk.f32.gmra.mxu0 %vm417_vm1, %v16607_v42  ;;  %v324_v41 = vld [vmem:[%s20685_s7 + $0x90] sm:$0xff] }
  0x74   : > { %14741 = vmatprep.mubr.msk.f32.mxu1 %vm417_vm1, %v374_v43  ;;  %14797 = vmatprep.mubr.msk.f32.mxu0 %vm417_vm1, %v16611_v44  ;;  %v2024_v43 = vld [vmem:[%s16286_s16 + $0x11b] sm:$0xff] }
  0x77   : > { %14742 = vmatmul.mubr.msk.f32.gmra.mxu1 %vm417_vm1, %v375_v45  ;;  %14798 = vmatmul.mubr.msk.f32.gmra.mxu0 %vm417_vm1, %v16621_v49  ;;  %v2025_v45 = vld [vmem:[%s16286_s16 + $0x123] sm:$0xff] }
  0x78   : > { %14744 = vmatprep.mubr.msk.f32.mxu1 %vm417_vm1, %v376_v51  ;;  %14800 = vmatprep.mubr.msk.f32.mxu0 %vm417_vm1, %v16625_v53  ;;  %v326_v51 = vld [vmem:[%s20685_s7 + $0xa0] sm:$0xff] }
  0x7b   : > { %14745 = vmatmul.mubr.msk.f32.gmra.mxu1 %vm417_vm1, %v377_v55  ;;  %14801 = vmatmul.mubr.msk.f32.gmra.mxu0 %vm417_vm1, %v1166_v57  ;;  %v2026_v55 = vld [vmem:[%s16286_s16 + $0x12b] sm:$0x3f]  ;;  %v2421_v57 = vld [vmem:[%s16286_s16 + $0x14] sm:$0xff] }
  0x7c   : > { %14805 = vmatprep.mubr.msk.f32.mxu1 %vm417_vm1, %v16384_v46  ;;  %14861 = vmatprep.mubr.msk.f32.mxu0 %vm417_vm1, %v1991_v59  ;;  %v16654_v46 = vld [vmem:[%s20679_s1 + $0x20] sm:$0xf]  ;;  %v2851_v59 = vld [vmem:[%s16286_s16 + $0x24] sm:$0xff] }
  0x7f   : > { %14806 = vmatmul.mubr.msk.f32.vlgmr.msra.gmra.mxu1 %vm417_vm1, %v16404_v50  ;;  %14862 = vmatmul.mubr.msk.f32.vlgmr.msra.gmra.mxu0 %vm417_vm1, %v1992_v61  ;;  %v1994_v50 = vld [vmem:[%s16286_s16 + $0x2b] sm:$0xff] }
  0x80   : > { %14916 = vmatpush3.msk.msra.mxu1 %vm526_vm0, %v16391_v47  ;;  %14972 = vmatpush3.msk.msra.mxu0 %vm526_vm0, %v16396_v48  ;;  %v1996_v47 = vld [vmem:[%s16286_s16 + $0x3b] sm:$0xff]  ;;  %v1997_v48 = vld [vmem:[%s16286_s16 + $0x43] sm:$0xff] }
  0x81   : > { %14808 = vmatprep.mubr.msk.f32.mxu1 %vm417_vm1, %v16411_v52  ;;  %14864 = vmatprep.mubr.msk.f32.mxu0 %vm417_vm1, %v1993_v63  ;;  %v1998_v52 = vld [vmem:[%s16286_s16 + $0x4b] sm:$0xff] }
  0x82   : > { %15027 = vmatprep.subr.msk.mxu1 %vm526_vm0, %v16649_v1  ;;  %15083 = vmatprep.subr.msk.mxu0 %vm526_vm0, %v16654_v46  ;;  %v327_v61 = vld [vmem:[%s20685_s7 + $0xa8] sm:$0xff]  ;;  %v328_v63 = vld [vmem:[%s20685_s7 + $0xb0] sm:$0xff] }
  0x83   : > { %14809 = vmatmul.mubr.msk.f32.gmra.mxu1 %vm417_vm1, %v16425_v54  ;;  %14865 = vmatmul.mubr.msk.f32.gmra.mxu0 %vm417_vm1, %v1994_v50  ;;  %v1999_v54 = vld [vmem:[%s16286_s16 + $0x53] sm:$0xff]  ;;  %v2422_v50 = vld [vmem:[%s16286_s16 + $0x1c] sm:$0xff] }
  0x84   : > { %14811 = vmatprep.mubr.msk.f32.mxu1 %vm417_vm1, %v16429_v56  ;;  %14867 = vmatprep.mubr.msk.f32.mxu0 %vm417_vm1, %v1995_v3  ;;  %v2000_v56 = vld [vmem:[%s16286_s16 + $0x5b] sm:$0xff]  ;;  %v2852_v3 = vld [vmem:[%s16286_s16 + $0x2c] sm:$0xff] }
  0x87   : > { %14812 = vmatmul.mubr.msk.f32.gmra.mxu1 %vm417_vm1, %v16439_v58  ;;  %14868 = vmatmul.mubr.msk.f32.gmra.mxu0 %vm417_vm1, %v1996_v47  ;;  %v2001_v58 = vld [vmem:[%s16286_s16 + $0x63] sm:$0xff]  ;;  %v2853_v47 = vld [vmem:[%s16286_s16 + $0x34] sm:$0xff] }
  0x88   : > { %14814 = vmatprep.mubr.msk.f32.mxu1 %vm417_vm1, %v16443_v60  ;;  %14870 = vmatprep.mubr.msk.f32.mxu0 %vm417_vm1, %v1997_v48  ;;  %v2002_v60 = vld [vmem:[%s16286_s16 + $0x6b] sm:$0xff]  ;;  %v329_v48 = vld [vmem:[%s20685_s7 + $0xb8] sm:$0xff] }
  0x8b   : > { %14815 = vmatmul.mubr.msk.f32.gmra.mxu1 %vm417_vm1, %v16453_v62  ;;  %14871 = vmatmul.mubr.msk.f32.gmra.mxu0 %vm417_vm1, %v1998_v52  ;;  %v2003_v62 = vld [vmem:[%s16286_s16 + $0x73] sm:$0xff]  ;;  %v330_v52 = vld [vmem:[%s20685_s7 + $0xc0] sm:$0xff] }
  0x8c   : > { %14817 = vmatprep.mubr.msk.f32.mxu1 %vm417_vm1, %v16457_v0  ;;  %14873 = vmatprep.mubr.msk.f32.mxu0 %vm417_vm1, %v1999_v54  ;;  %v2004_v0 = vld [vmem:[%s16286_s16 + $0x7b] sm:$0xff] }
  0x8d   : > { %v2854_v54 = vld [vmem:[%s16286_s16 + $0x3c] sm:$0xff] }
  0x8f   : > { %14818 = vmatmul.mubr.msk.f32.gmra.mxu1 %vm417_vm1, %v16467_v2  ;;  %14874 = vmatmul.mubr.msk.f32.gmra.mxu0 %vm417_vm1, %v2000_v56  ;;  %v2005_v2 = vld [vmem:[%s16286_s16 + $0x83] sm:$0xff] }
  0x90   : > { %14820 = vmatprep.mubr.msk.f32.mxu1 %vm417_vm1, %v16471_v4  ;;  %14876 = vmatprep.mubr.msk.f32.mxu0 %vm417_vm1, %v2001_v58  ;;  %v306_v4 = vld [vmem:[%s20685_s7] sm:$0xff]  ;;  %v2856_v58 = vld [vmem:[%s16286_s16 + $0x4c] sm:$0xff] }
  0x91   : > { %4265 = vperm.xlu0 %16196, %v306_v4   ;;  %v2855_v56 = vld [vmem:[%s16286_s16 + $0x44] sm:$0xff] }
  0x93   : > { %14821 = vmatmul.mubr.msk.f32.gmra.mxu1 %vm417_vm1, %v16481_v6  ;;  %14877 = vmatmul.mubr.msk.f32.gmra.mxu0 %vm417_vm1, %v2002_v60  ;;  %v2006_v6 = vld [vmem:[%s16286_s16 + $0x8b] sm:$0xff]  ;;  %v2857_v60 = vld [vmem:[%s16286_s16 + $0x54] sm:$0xff] }
  0x94   : > { %14823 = vmatprep.mubr.msk.f32.mxu1 %vm417_vm1, %v16485_v8  ;;  %14879 = vmatprep.mubr.msk.f32.mxu0 %vm417_vm1, %v2003_v62  ;;  %v308_v8 = vld [vmem:[%s20685_s7 + $0x10] sm:$0xff]  ;;  %v333_v62 = vld [vmem:[%s20685_s7 + $0xd8] sm:$0xff] }
  0x95   : > { %4275 = vperm.xlu1 %16197, %v308_v8   ;;  %4270 = vperm.xlu0 %16196, %v307_v9   ;;  %v336_v8 = vld [vmem:[%s20685_s7 + $0xf0] sm:$0xff] }
  0x96   : > { %v2860_v9 = vld [vmem:[%s16286_s16 + $0x6c] sm:$0xff] }
  0x97   : > { %14824 = vmatmul.mubr.msk.f32.gmra.mxu1 %vm417_vm1, %v16495_v10  ;;  %14880 = vmatmul.mubr.msk.f32.gmra.mxu0 %vm417_vm1, %v2004_v0  ;;  %v2008_v10 = vld [vmem:[%s16286_s16 + $0x9b] sm:$0xff] }
  0x98   : > { %14826 = vmatprep.mubr.msk.f32.mxu1 %vm417_vm1, %v16499_v12  ;;  %14882 = vmatprep.mubr.msk.f32.mxu0 %vm417_vm1, %v2005_v2  ;;  %v309_v12 = vld [vmem:[%s20685_s7 + $0x18] sm:$0xff]  ;;  %v334_v0 = vld [vmem:[%s20685_s7 + $0xe0] sm:$0xff] }
  0x99   : > { %4280 = vperm.xlu1 %16197, %v309_v12   ;;  %4285 = vperm.xlu0 %16196, %v310_v13   ;;  %v2858_v2 = vld [vmem:[%s16286_s16 + $0x5c] sm:$0xff]  ;;  %v2861_v12 = vld [vmem:[%s16286_s16 + $0x74] sm:$0xff] }
  0x9b   : > { %14827 = vmatmul.mubr.msk.f32.gmra.mxu1 %vm417_vm1, %v16509_v14  ;;  %14883 = vmatmul.mubr.msk.f32.gmra.mxu0 %vm417_vm1, %v2006_v6  ;;  %v2010_v14 = vld [vmem:[%s16286_s16 + $0xab] sm:$0xff] }
  0x9c   : > { %14829 = vmatprep.mubr.msk.f32.mxu1 %vm417_vm1, %v16513_v16  ;;  %14885 = vmatprep.mubr.msk.f32.mxu0 %vm417_vm1, %v2007_v7  ;;  %v311_v16 = vld [vmem:[%s20685_s7 + $0x28] sm:$0xff] }
  0x9d   : > { %4290 = vperm.xlu1 %16197, %v311_v16   ;;  %4295 = vperm.xlu0 %16196, %v312_v17   ;;  %v335_v7 = vld [vmem:[%s20685_s7 + $0xe8] sm:$0xff]  ;;  %v338_v16 = vld [vmem:[%s20685_s7 + $0x100] sm:$0xff] }
  0x9e   : > { %v2862_v17 = vld [vmem:[%s16286_s16 + $0x7c] sm:$0xff] }
  0x9f   : > { %14830 = vmatmul.mubr.msk.f32.gmra.mxu1 %vm417_vm1, %v16523_v18  ;;  %14886 = vmatmul.mubr.msk.f32.gmra.mxu0 %vm417_vm1, %v2008_v10  ;;  %v2012_v18 = vld [vmem:[%s16286_s16 + $0xbb] sm:$0xff] }
  0xa0   : > { %14832 = vmatprep.mubr.msk.f32.mxu1 %vm417_vm1, %v16527_v20  ;;  %14888 = vmatprep.mubr.msk.f32.mxu0 %vm417_vm1, %v2009_v11  ;;  %v313_v20 = vld [vmem:[%s20685_s7 + $0x38] sm:$0xff] }
  0xa1   : > { %4300 = vperm.xlu1 %16197, %v313_v20   ;;  %4305 = vperm.xlu0 %16196, %v314_v21   ;;  %v2863_v20 = vld [vmem:[%s16286_s16 + $0x84] sm:$0xff] }
  0xa3   : > { %14833 = vmatmul.mubr.msk.f32.gmra.mxu1 %vm417_vm1, %v16537_v22  ;;  %14889 = vmatmul.mubr.msk.f32.gmra.mxu0 %vm417_vm1, %v2010_v14  ;;  %v2014_v22 = vld [vmem:[%s16286_s16 + $0xcb] sm:$0xff] }
  0xa4   : > { %14835 = vmatprep.mubr.msk.f32.mxu1 %vm417_vm1, %v16541_v24  ;;  %14891 = vmatprep.mubr.msk.f32.mxu0 %vm417_vm1, %v2011_v15  ;;  %v315_v24 = vld [vmem:[%s20685_s7 + $0x48] sm:$0xff]  ;;  %v337_v15 = vld [vmem:[%s20685_s7 + $0xf8] sm:$0xff] }
  0xa5   : > { %4310 = vperm.xlu1 %16197, %v315_v24   ;;  %4315 = vperm.xlu0 %16196, %v316_v25   ;;  %v340_v24 = vld [vmem:[%s20685_s7 + $0x110] sm:$0xff] }
  0xa6   : > { %v2864_v25 = vld [vmem:[%s16286_s16 + $0x8c] sm:$0xff] }
  0xa7   : > { %14836 = vmatmul.mubr.msk.f32.gmra.mxu1 %vm417_vm1, %v16551_v26  ;;  %14892 = vmatmul.mubr.msk.f32.gmra.mxu0 %vm417_vm1, %v2012_v18  ;;  %v2016_v26 = vld [vmem:[%s16286_s16 + $0xdb] sm:$0xff] }
  0xa8   : > { %14838 = vmatprep.mubr.msk.f32.mxu1 %vm417_vm1, %v16555_v28  ;;  %14894 = vmatprep.mubr.msk.f32.mxu0 %vm417_vm1, %v2013_v19  ;;  %v317_v28 = vld [vmem:[%s20685_s7 + $0x58] sm:$0xff] }
  0xa9   : > { %4320 = vperm.xlu1 %16197, %v317_v28   ;;  %4325 = vperm.xlu0 %16196, %v318_v29   ;;  %v2865_v28 = vld [vmem:[%s16286_s16 + $0x94] sm:$0xff] }
  0xab   : > { %14839 = vmatmul.mubr.msk.f32.gmra.mxu1 %vm417_vm1, %v16565_v30  ;;  %14895 = vmatmul.mubr.msk.f32.gmra.mxu0 %vm417_vm1, %v2014_v22  ;;  %v2018_v30 = vld [vmem:[%s16286_s16 + $0xeb] sm:$0xff] }
  0xac   : > { %14841 = vmatprep.mubr.msk.f32.mxu1 %vm417_vm1, %v16569_v32  ;;  %14897 = vmatprep.mubr.msk.f32.mxu0 %vm417_vm1, %v2015_v23  ;;  %v319_v32 = vld [vmem:[%s20685_s7 + $0x68] sm:$0xff] }
  0xad   : > { %4330 = vperm.xlu1 %16197, %v319_v32   ;;  %4335 = vperm.xlu0 %16196, %v320_v33   ;;  %v339_v23 = vld [vmem:[%s20685_s7 + $0x108] sm:$0xff]  ;;  %v2866_v32 = vld [vmem:[%s16286_s16 + $0x9c] sm:$0xff] }
  0xaf   : > { %14842 = vmatmul.mubr.msk.f32.gmra.mxu1 %vm417_vm1, %v16579_v34  ;;  %14898 = vmatmul.mubr.msk.f32.gmra.mxu0 %vm417_vm1, %v2016_v26  ;;  %v2020_v34 = vld [vmem:[%s16286_s16 + $0xfb] sm:$0xff] }
  0xb0   : > { %14844 = vmatprep.mubr.msk.f32.mxu1 %vm417_vm1, %v16583_v36  ;;  %14900 = vmatprep.mubr.msk.f32.mxu0 %vm417_vm1, %v2017_v27  ;;  %v321_v36 = vld [vmem:[%s20685_s7 + $0x78] sm:$0xff] }
  0xb1   : > { %4340 = vperm.xlu1 %16197, %v321_v36   ;;  %4345 = vperm.xlu0 %16196, %v322_v37  }
  0xb3   : > { %14845 = vmatmul.mubr.msk.f32.gmra.mxu1 %vm417_vm1, %v16593_v38  ;;  %14901 = vmatmul.mubr.msk.f32.gmra.mxu0 %vm417_vm1, %v2018_v30  ;;  %v2022_v38 = vld [vmem:[%s16286_s16 + $0x10b] sm:$0xff] }
  0xb4   : > { %14847 = vmatprep.mubr.msk.f32.mxu1 %vm417_vm1, %v16597_v40  ;;  %14903 = vmatprep.mubr.msk.f32.mxu0 %vm417_vm1, %v2019_v31  ;;  %v323_v40 = vld [vmem:[%s20685_s7 + $0x88] sm:$0xff]  ;;  %v341_v31 = vld [vmem:[%s20685_s7 + $0x118] sm:$0x3f] }
  0xb5   : > { %4350 = vperm.xlu1 %16197, %v323_v40   ;;  %4355 = vperm.xlu0 %16196, %v324_v41   ;;  %v2869_v41 = vld [vmem:[%s16286_s16 + $0xb4] sm:$0xff] }
  0xb7   : > { %14848 = vmatmul.mubr.msk.f32.gmra.mxu1 %vm417_vm1, %v16607_v42  ;;  %14904 = vmatmul.mubr.msk.f32.gmra.mxu0 %vm417_vm1, %v2020_v34  ;;  %v1594_v42 = vld [vmem:[%s16286_s16 + $0x11a] sm:$0xff] }
  0xb8   : > { %14850 = vmatprep.mubr.msk.f32.mxu1 %vm417_vm1, %v16611_v44  ;;  %14906 = vmatprep.mubr.msk.f32.mxu0 %vm417_vm1, %v2021_v35  ;;  %v1595_v44 = vld [vmem:[%s16286_s16 + $0x122] sm:$0xff] }
  0xb9   : > { %4365 = vperm.xlu0 %16196, %v326_v51   ;;  %v2867_v35 = vld [vmem:[%s16286_s16 + $0xa4] sm:$0xff] }
  0xba   : > { %v2871_v51 = vld [vmem:[%s16286_s16 + $0xc4] sm:$0xff] }
  0xbb   : > { %14851 = vmatmul.mubr.msk.f32.gmra.mxu1 %vm417_vm1, %v16621_v49  ;;  %14907 = vmatmul.mubr.msk.f32.gmra.mxu0 %vm417_vm1, %v2022_v38  ;;  %v325_v49 = vld [vmem:[%s20685_s7 + $0x98] sm:$0xff]  ;;  %v2868_v38 = vld [vmem:[%s16286_s16 + $0xac] sm:$0xff] }
  0xbc   : > { %14853 = vmatprep.mubr.msk.f32.mxu1 %vm417_vm1, %v16625_v53  ;;  %14909 = vmatprep.mubr.msk.f32.mxu0 %vm417_vm1, %v2023_v39  ;;  %v1596_v53 = vld [vmem:[%s16286_s16 + $0x12a] sm:$0x3f] }
  0xbd   : > { %4360 = vperm.xlu1 %16197, %v325_v49   ;;  %4375 = vperm.xlu0 %16196, %v328_v63   ;;  %v2873_v63 = vld [vmem:[%s16286_s16 + $0xd4] sm:$0xff] }
  0xbf   : > { %14854 = vmatmul.mubr.msk.f32.gmra.mxu1 %vm417_vm1, %v1594_v42  ;;  %14910 = vmatmul.mubr.msk.f32.gmra.mxu0 %vm417_vm1, %v2024_v43 }
  0xc0   : > { %14856 = vmatprep.mubr.msk.f32.mxu1 %vm417_vm1, %v1595_v44  ;;  %14912 = vmatprep.mubr.msk.f32.mxu0 %vm417_vm1, %v2025_v45  ;;  %v2870_v44 = vld [vmem:[%s16286_s16 + $0xbc] sm:$0xff] }
  0xc1   : > { %4370 = vperm.xlu1 %16197, %v327_v61   ;;  %4385 = vperm.xlu0 %16196, %v330_v52  }
  0xc3   : > { %14857 = vmatmul.mubr.msk.f32.gmra.mxu1 %vm417_vm1, %v1596_v53  ;;  %14913 = vmatmul.mubr.msk.f32.gmra.mxu0 %vm417_vm1, %v2026_v55 }
  0xc4   : > { %14917 = vmatprep.mubr.msk.f32.mxu1 %vm417_vm1, %v2421_v57  ;;  %14973 = vmatprep.mubr.msk.f32.mxu0 %vm417_vm1, %v2851_v59  ;;  %v2872_v57 = vld [vmem:[%s16286_s16 + $0xcc] sm:$0xff] }
  0xc5   : > { %4380 = vperm.xlu1 %16197, %v329_v48  }
  0xc7   : > { %14918 = vmatmul.mubr.msk.f32.vlgmr.msra.gmra.mxu1 %vm417_vm1, %v2422_v50  ;;  %14974 = vmatmul.mubr.msk.f32.vlgmr.msra.gmra.mxu0 %vm417_vm1, %v2852_v3 }
  0xc8   : > { %15028 = vmatpush3.msk.msra.mxu1 %vm526_vm0, %v16649_v1  ;;  %15084 = vmatpush3.msk.msra.mxu0 %vm526_vm0, %v16654_v46  ;;  %v331_v1 = vld [vmem:[%s20685_s7 + $0xc8] sm:$0xff]  ;;  %v332_v46 = vld [vmem:[%s20685_s7 + $0xd0] sm:$0xff] }
  0xc9   : > { %14920 = vmatprep.mubr.msk.f32.mxu1 %vm417_vm1, %v2851_v59  ;;  %14976 = vmatprep.mubr.msk.f32.mxu0 %vm417_vm1, %v2853_v47 }
  0xca   : > { %4390 = vperm.xlu1 %16197, %v331_v1   ;;  %4395 = vperm.xlu0 %16196, %v332_v46   ;;  %v2876_v46 = vld [vmem:[%s16286_s16 + $0xec] sm:$0xff] }
  0xcb   : > { %14921 = vmatmul.mubr.msk.f32.gmra.mxu1 %vm417_vm1, %v2852_v3  ;;  %14977 = vmatmul.mubr.msk.f32.gmra.mxu0 %vm417_vm1, %v2854_v54 }
  0xcc   : > { %14923 = vmatprep.mubr.msk.f32.mxu1 %vm417_vm1, %v2853_v47  ;;  %14979 = vmatprep.mubr.msk.f32.mxu0 %vm417_vm1, %v2855_v56  ;;  %v2874_v47 = vld [vmem:[%s16286_s16 + $0xdc] sm:$0xff] }
  0xce   : > { %4400 = vperm.xlu1 %16197, %v333_v62   ;;  %4405 = vperm.xlu0 %16196, %v334_v0   ;;  %v2877_v62 = vld [vmem:[%s16286_s16 + $0xf4] sm:$0xff] }
  0xcf   : > { %14924 = vmatmul.mubr.msk.f32.gmra.mxu1 %vm417_vm1, %v2854_v54  ;;  %14980 = vmatmul.mubr.msk.f32.gmra.mxu0 %vm417_vm1, %v2856_v58  ;;  %v2875_v54 = vld [vmem:[%s16286_s16 + $0xe4] sm:$0xff] }
  0xd0   : > { %14926 = vmatprep.mubr.msk.f32.mxu1 %vm417_vm1, %v2855_v56  ;;  %14982 = vmatprep.mubr.msk.f32.mxu0 %vm417_vm1, %v2857_v60 }
  0xd2   : > { %4410 = vperm.xlu1 %16197, %v335_v7   ;;  %4415 = vperm.xlu0 %16196, %v336_v8   ;;  %v2878_v7 = vld [vmem:[%s16286_s16 + $0xfc] sm:$0xff] }
  0xd3   : > { %v16915_v4 = vpop.f32.mrf.mxu0  ;;  %v16917_v6 = vpop.f32.mrf.mxu1  ;;  %14927 = vmatmul.mubr.msk.f32.gmra.mxu1 %vm417_vm1, %v2856_v58  ;;  %14983 = vmatmul.mubr.msk.f32.gmra.mxu0 %vm417_vm1, %v2858_v2 }
  0xd4   : > { %14929 = vmatprep.mubr.msk.f32.mxu1 %vm417_vm1, %v2857_v60  ;;  %14985 = vmatprep.mubr.msk.f32.mxu0 %vm417_vm1, %v2859_v5 }
  0xd5   : > { %v16930_v10 = vpop.f32.mrf.mxu0  ;;  %v16932_v11 = vpop.f32.mrf.mxu1 }
  0xd6   : > { %4420 = vperm.xlu1 %16197, %v337_v15   ;;  %4425 = vperm.xlu0 %16196, %v338_v16  }
  0xd7   : > { %v16935_v13 = vpop.f32.mrf.mxu0  ;;  %v16937_v14 = vpop.f32.mrf.mxu1  ;;  %14930 = vmatmul.mubr.msk.f32.gmra.mxu1 %vm417_vm1, %v2858_v2  ;;  %14986 = vmatmul.mubr.msk.f32.gmra.mxu0 %vm417_vm1, %v2860_v9 }
  0xd8   : > { %14932 = vmatprep.mubr.msk.f32.mxu1 %vm417_vm1, %v2859_v5  ;;  %14988 = vmatprep.mubr.msk.f32.mxu0 %vm417_vm1, %v2861_v12 }
  0xd9   : > { %v16950_v18 = vpop.f32.mrf.mxu0  ;;  %v16952_v19 = vpop.f32.mrf.mxu1 }
  0xda   : > { %4430 = vperm.xlu1 %16197, %v339_v23   ;;  %4435 = vperm.xlu0 %16196, %v340_v24   ;;  %v2880_v24 = vld [vmem:[%s16286_s16 + $0x10c] sm:$0xff] }
  0xdb   : > { %v16955_v21 = vpop.f32.mrf.mxu0  ;;  %v16957_v22 = vpop.f32.mrf.mxu1  ;;  %14933 = vmatmul.mubr.msk.f32.gmra.mxu1 %vm417_vm1, %v2860_v9  ;;  %14989 = vmatmul.mubr.msk.f32.gmra.mxu0 %vm417_vm1, %v2862_v17 }
  0xdc   : > { %14935 = vmatprep.mubr.msk.f32.mxu1 %vm417_vm1, %v2861_v12  ;;  %14991 = vmatprep.mubr.msk.f32.mxu0 %vm417_vm1, %v2863_v20  ;;  %v2879_v12 = vld [vmem:[%s16286_s16 + $0x104] sm:$0xff] }
  0xdd   : > { %v16970_v26 = vpop.f32.mrf.mxu0  ;;  %v16972_v27 = vpop.f32.mrf.mxu1 }
  0xde   : > { %4440 = vperm.xlu1 %16197, %v341_v31  }
  0xdf   : > { %v16975_v29 = vpop.f32.mrf.mxu0  ;;  %v16977_v30 = vpop.f32.mrf.mxu1  ;;  %14936 = vmatmul.mubr.msk.f32.gmra.mxu1 %vm417_vm1, %v2862_v17  ;;  %14992 = vmatmul.mubr.msk.f32.gmra.mxu0 %vm417_vm1, %v2864_v25 }
  0xe0   : > { %14938 = vmatprep.mubr.msk.f32.mxu1 %vm417_vm1, %v2863_v20  ;;  %14994 = vmatprep.mubr.msk.f32.mxu0 %vm417_vm1, %v2865_v28 }
  0xe1   : > { %v16987_v33 = vpop.f32.mrf.mxu0  ;;  %v16989_v34 = vpop.f32.mrf.mxu1 }
  0xe3   : > { %v16992_v36 = vpop.f32.mrf.mxu0  ;;  %v16994_v37 = vpop.f32.mrf.mxu1  ;;  %14939 = vmatmul.mubr.msk.f32.gmra.mxu1 %vm417_vm1, %v2864_v25  ;;  %14995 = vmatmul.mubr.msk.f32.gmra.mxu0 %vm417_vm1, %v2866_v32 }
  0xe4   : > { %14941 = vmatprep.mubr.msk.f32.mxu1 %vm417_vm1, %v2865_v28  ;;  %14997 = vmatprep.mubr.msk.f32.mxu0 %vm417_vm1, %v2867_v35 }
  0xe5   : > { %v17001_v39 = vpop.f32.mrf.mxu0  ;;  %v17003_v40 = vpop.f32.mrf.mxu1 }
  0xe7   : > { %v17006_v42 = vpop.f32.mrf.mxu0  ;;  %v17008_v43 = vpop.f32.mrf.mxu1  ;;  %14942 = vmatmul.mubr.msk.f32.gmra.mxu1 %vm417_vm1, %v2866_v32  ;;  %14998 = vmatmul.mubr.msk.f32.gmra.mxu0 %vm417_vm1, %v2868_v38 }
  0xe8   : > { %14944 = vmatprep.mubr.msk.f32.mxu1 %vm417_vm1, %v2867_v35  ;;  %15000 = vmatprep.mubr.msk.f32.mxu0 %vm417_vm1, %v2869_v41 }
  0xe9   : > { %v17015_v45 = vpop.f32.mrf.mxu0  ;;  %v17017_v49 = vpop.f32.mrf.mxu1 }
  0xeb   : > { %v17020_v53 = vpop.f32.mrf.mxu0  ;;  %v17022_v55 = vpop.f32.mrf.mxu1  ;;  %14945 = vmatmul.mubr.msk.f32.gmra.mxu1 %vm417_vm1, %v2868_v38  ;;  %15001 = vmatmul.mubr.msk.f32.gmra.mxu0 %vm417_vm1, %v2870_v44 }
  0xec   : > { %14947 = vmatprep.mubr.msk.f32.mxu1 %vm417_vm1, %v2869_v41  ;;  %15003 = vmatprep.mubr.msk.f32.mxu0 %vm417_vm1, %v2871_v51 }
  0xed   : > { %v17029_v59 = vpop.f32.mrf.mxu0  ;;  %v17031_v61 = vpop.f32.mrf.mxu1 }
  0xef   : > { %v17034_v50 = vpop.f32.mrf.mxu0  ;;  %v17036_v3 = vpop.f32.mrf.mxu1  ;;  %14948 = vmatmul.mubr.msk.f32.gmra.mxu1 %vm417_vm1, %v2870_v44  ;;  %15004 = vmatmul.mubr.msk.f32.gmra.mxu0 %vm417_vm1, %v2872_v57  ;;  %v2882_v44 = vld [vmem:[%s16286_s16 + $0x11c] sm:$0xff] }
  0xf0   : > { %14950 = vmatprep.mubr.msk.f32.mxu1 %vm417_vm1, %v2871_v51  ;;  %15006 = vmatprep.mubr.msk.f32.mxu0 %vm417_vm1, %v2873_v63 }
  0xf1   : > { %v17043_v48 = vpop.f32.mrf.mxu0  ;;  %v17045_v52 = vpop.f32.mrf.mxu1 }
  0xf3   : > { %v17048_v56 = vpop.f32.mrf.mxu0  ;;  %v17050_v1 = vpop.f32.mrf.mxu1  ;;  %14951 = vmatmul.mubr.msk.f32.gmra.mxu1 %vm417_vm1, %v2872_v57  ;;  %15007 = vmatmul.mubr.msk.f32.gmra.mxu0 %vm417_vm1, %v2874_v47 }
  0xf4   : > { %14953 = vmatprep.mubr.msk.f32.mxu1 %vm417_vm1, %v2873_v63  ;;  %15009 = vmatprep.mubr.msk.f32.mxu0 %vm417_vm1, %v2875_v54 }
  0xf5   : > { %v17057_v58 = vpop.f32.mrf.mxu0  ;;  %v17059_v60 = vpop.f32.mrf.mxu1 }
  0xf6   : > { %20757 = vst [vmem:[#allocation4_spill] sm:$0xff] %v17059_v60 }
  0xf7   : > { %v14695_v0 = vpop.f32.mrf.mxu1  ;;  %v14751_v2 = vpop.f32.mrf.mxu0  ;;  %14954 = vmatmul.mubr.msk.f32.gmra.mxu1 %vm417_vm1, %v2874_v47  ;;  %15010 = vmatmul.mubr.msk.f32.gmra.mxu0 %vm417_vm1, %v2876_v46 }
  0xf8   : > { %v958_v5 = vadd.f32 %v14695_v0, %v16915_v4  ;;  %14956 = vmatprep.mubr.msk.f32.mxu1 %vm417_vm1, %v2875_v54  ;;  %15012 = vmatprep.mubr.msk.f32.mxu0 %vm417_vm1, %v2877_v62  ;;  %v2884_v0 = vld [vmem:[%s16286_s16 + $0x12c] sm:$0xff] }
  0xf9   : > { %v952_v8 = vpop.f32.mrf.mxu1  ;;  %v1346_v9 = vpop.f32.mrf.mxu0 }
  0xfa   : > { %v17069_v15 = vadd.f32 %v14751_v2, %v958_v5  ;;  %v953_v16 = vadd.f32 %v952_v8, %v16930_v10  ;;  %v2881_v10 = vld [vmem:[%s16286_s16 + $0x114] sm:$0xff] }
  0xfb   : > { %v14698_v17 = vpop.f32.mrf.mxu1  ;;  %v14754_v20 = vpop.f32.mrf.mxu0  ;;  %14957 = vmatmul.mubr.msk.f32.gmra.mxu1 %vm417_vm1, %v2876_v46  ;;  %15013 = vmatmul.mubr.msk.f32.gmra.mxu0 %vm417_vm1, %v2878_v7 }
  0xfc   : > { %v17074_v4 = vadd.f32 %v1346_v9, %v953_v16  ;;  %v968_v23 = vadd.f32 %v14698_v17, %v16935_v13  ;;  %14959 = vmatprep.mubr.msk.f32.mxu1 %vm417_vm1, %v2877_v62  ;;  %15015 = vmatprep.mubr.msk.f32.mxu0 %vm417_vm1, %v2879_v12  ;;  %v2456_v17 = vld [vmem:[%s16286_s16 + $0x12c] sm:$0x3f] }
  0xfd   : > { %v962_v25 = vpop.f32.mrf.mxu1  ;;  %v1356_v28 = vpop.f32.mrf.mxu0 }
  0xfe   : > { %v17081_v31 = vadd.f32 %v14754_v20, %v968_v23  ;;  %v963_v32 = vadd.f32 %v962_v25, %v16950_v18  ;;  %v2883_v18 = vld [vmem:[%s16286_s16 + $0x124] sm:$0xff]  ;;  %v2886_v20 = vld [vmem:[%s16286_s16 + $0x13c] sm:$0x3f] }
  0xff   : > { %v14701_v35 = vpop.f32.mrf.mxu1  ;;  %v14757_v38 = vpop.f32.mrf.mxu0  ;;  %14960 = vmatmul.mubr.msk.f32.gmra.mxu1 %vm417_vm1, %v2878_v7  ;;  %15016 = vmatmul.mubr.msk.f32.gmra.mxu0 %vm417_vm1, %v2880_v24  ;;  %v3711_v25 = vld [vmem:[%s16286_s16 + $0x26] sm:$0xff] }
 0x100   : > { %v17086_v13 = vadd.f32 %v1356_v28, %v963_v32  ;;  %v978_v41 = vadd.f32 %v14701_v35, %v16955_v21  ;;  %14962 = vmatprep.mubr.msk.f32.mxu1 %vm417_vm1, %v2879_v12  ;;  %15018 = vmatprep.mubr.msk.f32.mxu0 %vm417_vm1, %v2881_v10 }
 0x101   : > { %v972_v51 = vpop.f32.mrf.mxu1  ;;  %v1366_v57 = vpop.f32.mrf.mxu0 }
 0x102   : > { %v17093_v63 = vadd.f32 %v14757_v38, %v978_v41  ;;  %v973_v47 = vadd.f32 %v972_v51, %v16970_v26  ;;  %v2885_v26 = vld [vmem:[%s16286_s16 + $0x134] sm:$0xff] }
 0x103   : > { %v14704_v54 = vpop.f32.mrf.mxu1  ;;  %v14760_v46 = vpop.f32.mrf.mxu0  ;;  %14963 = vmatmul.mubr.msk.f32.gmra.mxu1 %vm417_vm1, %v2880_v24  ;;  %15019 = vmatmul.mubr.msk.f32.gmra.mxu0 %vm417_vm1, %v2882_v44  ;;  %v3281_v24 = vld [vmem:[%s16286_s16 + $0x25] sm:$0xff]  ;;  %v3282_v41 = vld [vmem:[%s16286_s16 + $0x2d] sm:$0xff] }
 0x104   : > { %v17098_v21 = vadd.f32 %v1366_v57, %v973_v47  ;;  %v988_v62 = vadd.f32 %v14704_v54, %v16975_v29  ;;  %14965 = vmatprep.mubr.msk.f32.mxu1 %vm417_vm1, %v2881_v10  ;;  %15021 = vmatprep.mubr.msk.f32.mxu0 %vm417_vm1, %v2883_v18  ;;  %v3283_v57 = vld [vmem:[%s16286_s16 + $0x35] sm:$0xff] }
 0x105   : > { %v982_v2 = vpop.f32.mrf.mxu1  ;;  %v1376_v5 = vpop.f32.mrf.mxu0 }
 0x106   : > { %v17105_v7 = vadd.f32 %v14760_v46, %v988_v62  ;;  %v983_v8 = vadd.f32 %v982_v2, %v16987_v33  ;;  %v3284_v2 = vld [vmem:[%s16286_s16 + $0x3d] sm:$0xff] }
 0x107   : > { %v14707_v9 = vpop.f32.mrf.mxu1  ;;  %v14763_v12 = vpop.f32.mrf.mxu0  ;;  %14966 = vmatmul.mubr.msk.f32.gmra.mxu1 %vm417_vm1, %v2882_v44  ;;  %15022 = vmatmul.mubr.msk.f32.gmra.mxu0 %vm417_vm1, %v2884_v0  ;;  %v3712_v44 = vld [vmem:[%s16286_s16 + $0x2e] sm:$0xff] }
 0x108   : > { %v17110_v29 = vadd.f32 %v1376_v5, %v983_v8  ;;  %v998_v16 = vadd.f32 %v14707_v9, %v16992_v36  ;;  %14968 = vmatprep.mubr.msk.f32.mxu1 %vm417_vm1, %v2883_v18  ;;  %15024 = vmatprep.mubr.msk.f32.mxu0 %vm417_vm1, %v2885_v26  ;;  %v3713_v18 = vld [vmem:[%s16286_s16 + $0x36] sm:$0xff]  ;;  %v3714_v5 = vld [vmem:[%s16286_s16 + $0x3e] sm:$0xff]  ;;  %v3715_v9 = vld [vmem:[%s16286_s16 + $0x46] sm:$0xff] }
 0x109   : > { %v992_v23 = vpop.f32.mrf.mxu1  ;;  %v1386_v33 = vpop.f32.mrf.mxu0  ;;  %v3285_v8 = vld [vmem:[%s16286_s16 + $0x45] sm:$0xff] }
 0x10a   : > { %v17119_v28 = vadd.f32 %v14763_v12, %v998_v16  ;;  %v993_v10 = vadd.f32 %v992_v23, %v17001_v39 }
 0x10b   : > { %v14710_v32 = vpop.f32.mrf.mxu1  ;;  %v14766_v36 = vpop.f32.mrf.mxu0  ;;  %14969 = vmatmul.mubr.msk.f32.gmra.mxu1 %vm417_vm1, %v2456_v17  ;;  %15025 = vmatmul.mubr.msk.f32.gmra.mxu0 %vm417_vm1, %v2886_v20 }
 0x10c   : > { %v17124_v35 = vadd.f32 %v1386_v33, %v993_v10  ;;  %v1008_v38 = vadd.f32 %v14710_v32, %v17006_v42  ;;  %15029 = vmatprep.mubr.msk.f32.mxu1 %vm417_vm1, %v3281_v24  ;;  %15085 = vmatprep.mubr.msk.f32.mxu0 %vm417_vm1, %v3711_v25  ;;  %v3286_v33 = vld [vmem:[%s16286_s16 + $0x4d] sm:$0xff]  ;;  %v3287_v10 = vld [vmem:[%s16286_s16 + $0x55] sm:$0xff] }
 0x10d   : > { %v1002_v51 = vpop.f32.mrf.mxu1  ;;  %v1396_v39 = vpop.f32.mrf.mxu0  ;;  %v3716_v24 = vld [vmem:[%s16286_s16 + $0x4e] sm:$0xff]  ;;  %v3717_v32 = vld [vmem:[%s16286_s16 + $0x56] sm:$0xff] }
 0x10e   : > { %v17133_v47 = vadd.f32 %v14766_v36, %v1008_v38  ;;  %v1003_v54 = vadd.f32 %v1002_v51, %v17015_v45 }
 0x10f   : > { %v14713_v46 = vpop.f32.mrf.mxu1  ;;  %v14769_v42 = vpop.f32.mrf.mxu0  ;;  %15030 = vmatmul.mubr.msk.f32.vlgmr.msra.gmra.mxu1 %vm417_vm1, %v3282_v41  ;;  %15086 = vmatmul.mubr.msk.f32.vlgmr.msra.gmra.mxu0 %vm417_vm1, %v3712_v44 }
 0x110   : > { %v17138_v62 = vadd.f32 %v1396_v39, %v1003_v54  ;;  %v1018_v0 = vadd.f32 %v14713_v46, %v17020_v53  ;;  %15032 = vmatprep.mubr.msk.f32.mxu1 %vm417_vm1, %v3283_v57  ;;  %15088 = vmatprep.mubr.msk.f32.mxu0 %vm417_vm1, %v3713_v18  ;;  %v3288_v39 = vld [vmem:[%s16286_s16 + $0x5d] sm:$0xff]  ;;  %v3289_v54 = vld [vmem:[%s16286_s16 + $0x65] sm:$0xff] }
 0x111   : > { %v1012_v26 = vpop.f32.mrf.mxu1  ;;  %v1406_v45 = vpop.f32.mrf.mxu0  ;;  %v3718_v57 = vld [vmem:[%s16286_s16 + $0x5e] sm:$0xff]  ;;  %v3719_v46 = vld [vmem:[%s16286_s16 + $0x66] sm:$0xff] }
 0x112   : > { %v17147_v12 = vadd.f32 %v14769_v42, %v1018_v0  ;;  %v1013_v16 = vadd.f32 %v1012_v26, %v17029_v59 }
 0x113   : > { %v14716_v17 = vpop.f32.mrf.mxu1  ;;  %v14772_v53 = vpop.f32.mrf.mxu0  ;;  %15033 = vmatmul.mubr.msk.f32.gmra.mxu1 %vm417_vm1, %v3284_v2  ;;  %15089 = vmatmul.mubr.msk.f32.gmra.mxu0 %vm417_vm1, %v3714_v5 }
 0x114   : > { %v17152_v20 = vadd.f32 %v1406_v45, %v1013_v16  ;;  %v1028_v23 = vadd.f32 %v14716_v17, %v17034_v50  ;;  %15035 = vmatprep.mubr.msk.f32.mxu1 %vm417_vm1, %v3285_v8  ;;  %15091 = vmatprep.mubr.msk.f32.mxu0 %vm417_vm1, %v3715_v9  ;;  %v3290_v8 = vld [vmem:[%s16286_s16 + $0x6d] sm:$0xff]  ;;  %v3291_v17 = vld [vmem:[%s16286_s16 + $0x75] sm:$0xff] }
 0x115   : > { %v1022_v25 = vpop.f32.mrf.mxu1  ;;  %v1416_v59 = vpop.f32.mrf.mxu0 }
 0x116   : > { %v17161_v36 = vadd.f32 %v14772_v53, %v1028_v23  ;;  %v1023_v38 = vadd.f32 %v1022_v25, %v17043_v48  ;;  %v3721_v53 = vld [vmem:[%s16286_s16 + $0x76] sm:$0xff] }
 0x117   : > { %v14719_v41 = vpop.f32.mrf.mxu1  ;;  %v14775_v50 = vpop.f32.mrf.mxu0  ;;  %15036 = vmatmul.mubr.msk.f32.gmra.mxu1 %vm417_vm1, %v3286_v33  ;;  %15092 = vmatmul.mubr.msk.f32.gmra.mxu0 %vm417_vm1, %v3716_v24 }
 0x118   : > { %v17166_v44 = vadd.f32 %v1416_v59, %v1023_v38  ;;  %v1038_v51 = vadd.f32 %v14719_v41, %v17048_v56  ;;  %15038 = vmatprep.mubr.msk.f32.mxu1 %vm417_vm1, %v3287_v10  ;;  %15094 = vmatprep.mubr.msk.f32.mxu0 %vm417_vm1, %v3717_v32  ;;  %v12935_v56 = vld [vmem:[%s20681_s3 + $0x18] sm:$0xff]  ;;  %v3293_v41 = vld [vmem:[%s16286_s16 + $0x85] sm:$0xff] }
 0x119   : > { %v1032_v18 = vpop.f32.mrf.mxu1  ;;  %v1426_v48 = vpop.f32.mrf.mxu0  ;;  %15139 = vmatprep.subr.mxu1 %v12935_v56  ;;  %v3292_v10 = vld [vmem:[%s16286_s16 + $0x7d] sm:$0xff] }
 0x11a   : > { %v17175_v42 = vadd.f32 %v14775_v50, %v1038_v51  ;;  %v1033_v0 = vadd.f32 %v1032_v18, %v17057_v58  ;;  %v3720_v58 = vld [vmem:[%s16286_s16 + $0x6e] sm:$0xff]  ;;  %15140 = vmatpush3.msra.mxu1 %v12935_v56  ;;  %v3722_v32 = vld [vmem:[%s16286_s16 + $0x7e] sm:$0xff]  ;;  %v3723_v50 = vld [vmem:[%s16286_s16 + $0x86] sm:$0xff] }
 0x11b   : > { %v14722_v2 = vpop.f32.mrf.mxu1  ;;  %v14778_v5 = vpop.f32.mrf.mxu0  ;;  %15039 = vmatmul.mubr.msk.f32.gmra.mxu1 %vm417_vm1, %v3288_v39  ;;  %15095 = vmatmul.mubr.msk.f32.gmra.mxu0 %vm417_vm1, %v3718_v57  ;;  %v3295_v56 = vld [vmem:[%s16286_s16 + $0x95] sm:$0xff] }
 0x11c   : > { %v17183_v26 = vadd.f32 %v1426_v48, %v1033_v0  ;;  %v1048_v45 = vadd.f32 %v14722_v2, %v16917_v6  ;;  %15041 = vmatprep.mubr.msk.f32.mxu1 %vm417_vm1, %v3289_v54  ;;  %15097 = vmatprep.mubr.msk.f32.mxu0 %vm417_vm1, %v3719_v46  ;;  %v3294_v54 = vld [vmem:[%s16286_s16 + $0x8d] sm:$0xff]  ;;  %v3725_v2 = vld [vmem:[%s16286_s16 + $0x96] sm:$0xff] }
 0x11d   : > { %v1042_v9 = vpop.f32.mrf.mxu1  ;;  %v1436_v16 = vpop.f32.mrf.mxu0  ;;  %v3724_v46 = vld [vmem:[%s16286_s16 + $0x8e] sm:$0xff] }
 0x11e   : > { %20758 = vst [vmem:[#allocation5_spill] sm:$0xff] %v17183_v26  ;;  %v17192_v23 = vadd.f32 %v14778_v5, %v1048_v45  ;;  %v1043_v33 = vadd.f32 %v1042_v9, %v16932_v11 }
 0x11f   : > { %v14725_v6 = vpop.f32.mrf.mxu1  ;;  %v14781_v24 = vpop.f32.mrf.mxu0  ;;  %15042 = vmatmul.mubr.msk.f32.gmra.mxu1 %vm417_vm1, %v3290_v8  ;;  %15098 = vmatmul.mubr.msk.f32.gmra.mxu0 %vm417_vm1, %v3720_v58 }
 0x120   : > { %v17197_v25 = vadd.f32 %v1436_v16, %v1043_v33  ;;  %v1058_v59 = vadd.f32 %v14725_v6, %v16937_v14  ;;  %15044 = vmatprep.mubr.msk.f32.mxu1 %vm417_vm1, %v3291_v17  ;;  %15100 = vmatprep.mubr.msk.f32.mxu0 %vm417_vm1, %v3721_v53  ;;  %v3296_v16 = vld [vmem:[%s16286_s16 + $0x9d] sm:$0xff]  ;;  %v3297_v33 = vld [vmem:[%s16286_s16 + $0xa5] sm:$0xff] }
 0x121   : > { %v1052_v11 = vpop.f32.mrf.mxu1  ;;  %v1446_v38 = vpop.f32.mrf.mxu0  ;;  %v3726_v17 = vld [vmem:[%s16286_s16 + $0x9e] sm:$0xff]  ;;  %v3727_v6 = vld [vmem:[%s16286_s16 + $0xa6] sm:$0xff] }
 0x122   : > { %20759 = vst [vmem:[#allocation6_spill] sm:$0xff] %v17197_v25  ;;  %v17206_v51 = vadd.f32 %v14781_v24, %v1058_v59  ;;  %v1053_v39 = vadd.f32 %v1052_v11, %v16952_v19 }
 0x123   : > { %v14728_v57 = vpop.f32.mrf.mxu1  ;;  %v14784_v14 = vpop.f32.mrf.mxu0  ;;  %15045 = vmatmul.mubr.msk.f32.gmra.mxu1 %vm417_vm1, %v3292_v10  ;;  %15101 = vmatmul.mubr.msk.f32.gmra.mxu0 %vm417_vm1, %v3722_v32 }
 0x124   : > { %v17211_v18 = vadd.f32 %v1446_v38, %v1053_v39  ;;  %v1068_v48 = vadd.f32 %v14728_v57, %v16957_v22  ;;  %15047 = vmatprep.mubr.msk.f32.mxu1 %vm417_vm1, %v3293_v41  ;;  %15103 = vmatprep.mubr.msk.f32.mxu0 %vm417_vm1, %v3723_v50  ;;  %v3298_v38 = vld [vmem:[%s16286_s16 + $0xad] sm:$0xff]  ;;  %v3299_v39 = vld [vmem:[%s16286_s16 + $0xb5] sm:$0xff] }
 0x125   : > { %v1062_v0 = vpop.f32.mrf.mxu1  ;;  %v1456_v19 = vpop.f32.mrf.mxu0  ;;  %v3728_v41 = vld [vmem:[%s16286_s16 + $0xae] sm:$0xff]  ;;  %v3729_v57 = vld [vmem:[%s16286_s16 + $0xb6] sm:$0xff] }
 0x126   : > { %20760 = vst [vmem:[#allocation7_spill] sm:$0xff] %v17211_v18  ;;  %v17220_v5 = vadd.f32 %v14784_v14, %v1068_v48  ;;  %v1063_v45 = vadd.f32 %v1062_v0, %v16972_v27 }
 0x127   : > { %v14731_v8 = vpop.f32.mrf.mxu1  ;;  %v14787_v22 = vpop.f32.mrf.mxu0  ;;  %15048 = vmatmul.mubr.msk.f32.gmra.mxu1 %vm417_vm1, %v3294_v54  ;;  %15104 = vmatmul.mubr.msk.f32.gmra.mxu0 %vm417_vm1, %v3724_v46 }
 0x128   : > { %v17225_v58 = vadd.f32 %v1456_v19, %v1063_v45  ;;  %v1078_v9 = vadd.f32 %v14731_v8, %v16977_v30  ;;  %15050 = vmatprep.mubr.msk.f32.mxu1 %vm417_vm1, %v3295_v56  ;;  %15106 = vmatprep.mubr.msk.f32.mxu0 %vm417_vm1, %v3725_v2  ;;  %v3300_v19 = vld [vmem:[%s16286_s16 + $0xbd] sm:$0xff]  ;;  %v3301_v45 = vld [vmem:[%s16286_s16 + $0xc5] sm:$0xff] }
 0x129   : > { %v1072_v53 = vpop.f32.mrf.mxu1  ;;  %v1466_v27 = vpop.f32.mrf.mxu0  ;;  %v3730_v56 = vld [vmem:[%s16286_s16 + $0xbe] sm:$0xff]  ;;  %v3731_v8 = vld [vmem:[%s16286_s16 + $0xc6] sm:$0xff] }
 0x12a   : > { %20761 = vst [vmem:[#allocation8_spill] sm:$0xff] %v17225_v58  ;;  %v17234_v24 = vadd.f32 %v14787_v22, %v1078_v9  ;;  %v1073_v59 = vadd.f32 %v1072_v53, %v16989_v34 }
 0x12b   : > { %v14734_v10 = vpop.f32.mrf.mxu1  ;;  %v14790_v30 = vpop.f32.mrf.mxu0  ;;  %15051 = vmatmul.mubr.msk.f32.gmra.mxu1 %vm417_vm1, %v3296_v16  ;;  %15107 = vmatmul.mubr.msk.f32.gmra.mxu0 %vm417_vm1, %v3726_v17 }
 0x12c   : > { %v17239_v32 = vadd.f32 %v1466_v27, %v1073_v59  ;;  %v1088_v11 = vadd.f32 %v14734_v10, %v16994_v37  ;;  %15053 = vmatprep.mubr.msk.f32.mxu1 %vm417_vm1, %v3297_v33  ;;  %15109 = vmatprep.mubr.msk.f32.mxu0 %vm417_vm1, %v3727_v6  ;;  %v3302_v27 = vld [vmem:[%s16286_s16 + $0xcd] sm:$0xff]  ;;  %v3303_v59 = vld [vmem:[%s16286_s16 + $0xd5] sm:$0xff] }
 0x12d   : > { %v1082_v50 = vpop.f32.mrf.mxu1  ;;  %v1476_v34 = vpop.f32.mrf.mxu0  ;;  %v3732_v33 = vld [vmem:[%s16286_s16 + $0xce] sm:$0xff]  ;;  %v3733_v10 = vld [vmem:[%s16286_s16 + $0xd6] sm:$0xff] }
 0x12e   : > { %20762 = vst [vmem:[#allocation9_spill] sm:$0xff] %v17239_v32  ;;  %v17248_v14 = vadd.f32 %v14790_v30, %v1088_v11  ;;  %v1083_v48 = vadd.f32 %v1082_v50, %v17003_v40 }
 0x12f   : > { %v14737_v54 = vpop.f32.mrf.mxu1  ;;  %v14793_v37 = vpop.f32.mrf.mxu0  ;;  %15054 = vmatmul.mubr.msk.f32.gmra.mxu1 %vm417_vm1, %v3298_v38  ;;  %15110 = vmatmul.mubr.msk.f32.gmra.mxu0 %vm417_vm1, %v3728_v41 }
 0x130   : > { %v17253_v46 = vadd.f32 %v1476_v34, %v1083_v48  ;;  %v1098_v0 = vadd.f32 %v14737_v54, %v17008_v43  ;;  %15056 = vmatprep.mubr.msk.f32.mxu1 %vm417_vm1, %v3299_v39  ;;  %15112 = vmatprep.mubr.msk.f32.mxu0 %vm417_vm1, %v3729_v57  ;;  %v3304_v34 = vld [vmem:[%s16286_s16 + $0xdd] sm:$0xff]  ;;  %v3305_v48 = vld [vmem:[%s16286_s16 + $0xe5] sm:$0xff] }
 0x131   : > { %v1092_v2 = vpop.f32.mrf.mxu1  ;;  %v1486_v40 = vpop.f32.mrf.mxu0  ;;  %v3734_v39 = vld [vmem:[%s16286_s16 + $0xde] sm:$0xff]  ;;  %v3735_v54 = vld [vmem:[%s16286_s16 + $0xe6] sm:$0xff] }
 0x132   : > { %20763 = vst [vmem:[#allocation10_spill] sm:$0xff] %v17253_v46  ;;  %v17262_v22 = vadd.f32 %v14793_v37, %v1098_v0  ;;  %v1093_v9 = vadd.f32 %v1092_v2, %v17017_v49 }
 0x133   : > { %v14740_v16 = vpop.f32.mrf.mxu1  ;;  %v14796_v43 = vpop.f32.mrf.mxu0  ;;  %15057 = vmatmul.mubr.msk.f32.gmra.mxu1 %vm417_vm1, %v3300_v19  ;;  %15113 = vmatmul.mubr.msk.f32.gmra.mxu0 %vm417_vm1, %v3730_v56 }
 0x134   : > { %v17267_v17 = vadd.f32 %v1486_v40, %v1093_v9  ;;  %v1108_v53 = vadd.f32 %v14740_v16, %v17022_v55  ;;  %15059 = vmatprep.mubr.msk.f32.mxu1 %vm417_vm1, %v3301_v45  ;;  %15115 = vmatprep.mubr.msk.f32.mxu0 %vm417_vm1, %v3731_v8  ;;  %v3306_v40 = vld [vmem:[%s16286_s16 + $0xed] sm:$0xff]  ;;  %v3307_v9 = vld [vmem:[%s16286_s16 + $0xf5] sm:$0xff] }
 0x135   : > { %v1102_v6 = vpop.f32.mrf.mxu1  ;;  %v1496_v49 = vpop.f32.mrf.mxu0  ;;  %v3736_v45 = vld [vmem:[%s16286_s16 + $0xee] sm:$0xff]  ;;  %v3737_v16 = vld [vmem:[%s16286_s16 + $0xf6] sm:$0xff] }
 0x136   : > { %20764 = vst [vmem:[#allocation11_spill] sm:$0xff] %v17267_v17  ;;  %v17276_v30 = vadd.f32 %v14796_v43, %v1108_v53  ;;  %v1103_v11 = vadd.f32 %v1102_v6, %v17031_v61  ;;  %v3308_v6 = vld [vmem:[%s16286_s16 + $0xfd] sm:$0xff] }
 0x137   : > { %v14743_v38 = vpop.f32.mrf.mxu1  ;;  %v14799_v55 = vpop.f32.mrf.mxu0  ;;  %15060 = vmatmul.mubr.msk.f32.gmra.mxu1 %vm417_vm1, %v3302_v27  ;;  %15116 = vmatmul.mubr.msk.f32.gmra.mxu0 %vm417_vm1, %v3732_v33 }
 0x138   : > { %v17281_v41 = vadd.f32 %v1496_v49, %v1103_v11  ;;  %v1118_v50 = vadd.f32 %v14743_v38, %v17036_v3  ;;  %15062 = vmatprep.mubr.msk.f32.mxu1 %vm417_vm1, %v3303_v59  ;;  %15118 = vmatprep.mubr.msk.f32.mxu0 %vm417_vm1, %v3733_v10  ;;  %v3738_v49 = vld [vmem:[%s16286_s16 + $0xfe] sm:$0xff]  ;;  %v3739_v38 = vld [vmem:[%s16286_s16 + $0x106] sm:$0xff] }
 0x139   : > { %v1112_v57 = vpop.f32.mrf.mxu1  ;;  %v1506_v61 = vpop.f32.mrf.mxu0  ;;  %v3309_v11 = vld [vmem:[%s16286_s16 + $0x105] sm:$0xff] }
 0x13a   : > { %20765 = vst [vmem:[#allocation12_spill] sm:$0xff] %v17281_v41  ;;  %v17290_v37 = vadd.f32 %v14799_v55, %v1118_v50  ;;  %v1113_v0 = vadd.f32 %v1112_v57, %v17045_v52  ;;  %v3740_v57 = vld [vmem:[%s16286_s16 + $0x10e] sm:$0xff] }
 0x13b   : > { %v14746_v19 = vpop.f32.mrf.mxu1  ;;  %v14802_v3 = vpop.f32.mrf.mxu0  ;;  %15063 = vmatmul.mubr.msk.f32.gmra.mxu1 %vm417_vm1, %v3304_v34  ;;  %15119 = vmatmul.mubr.msk.f32.gmra.mxu0 %vm417_vm1, %v3734_v39  ;;  %v3310_v39 = vld [vmem:[%s16286_s16 + $0x10d] sm:$0xff] }
 0x13c   : > { %v17295_v56 = vadd.f32 %v1506_v61, %v1113_v0  ;;  %v1128_v2 = vadd.f32 %v14746_v19, %v17050_v1  ;;  %15065 = vmatprep.mubr.msk.f32.mxu1 %vm417_vm1, %v3305_v48  ;;  %15121 = vmatprep.mubr.msk.f32.mxu0 %vm417_vm1, %v3735_v54  ;;  %v12934_v1 = vld [vmem:[%s20681_s3 + $0x10] sm:$0xff] }
 0x13d   : > { %v17302_v8 = vpop.f32.mrf.mxu1  ;;  %v17304_v52 = vpop.f32.mrf.mxu0  ;;  %15141 = vmatprep.subr.mxu1 %v12934_v1  ;;  %v3311_v54 = vld [vmem:[%s16286_s16 + $0x115] sm:$0xff] }
 0x13e   : > { %20766 = vst [vmem:[#allocation13_spill] sm:$0xff] %v17295_v56  ;;  %20767 = vst [vmem:[#allocation14_spill] sm:$0xff] %v17302_v8  ;;  %v17308_v43 = vadd.f32 %v14802_v3, %v1128_v2  ;;  %15142 = vmatpush3.msra.mxu1 %v12934_v1  ;;  %v3741_v0 = vld [vmem:[%s16286_s16 + $0x116] sm:$0xff]  ;;  %v3313_v1 = vld [vmem:[%s16286_s16 + $0x125] sm:$0xff] }
 0x13f   : > { %20768 = vst [vmem:[#allocation15_spill] sm:$0xff] %v17304_v52  ;;  %v14807_v53 = vpop.f32.mrf.mxu1  ;;  %v14863_v27 = vpop.f32.mrf.mxu0  ;;  %15066 = vmatmul.mubr.msk.f32.gmra.mxu1 %vm417_vm1, %v3306_v40  ;;  %15122 = vmatmul.mubr.msk.f32.gmra.mxu0 %vm417_vm1, %v3736_v45  ;;  %v3312_v40 = vld [vmem:[%s16286_s16 + $0x11d] sm:$0xff] }
 0x140   : > { %v1956_v33 = vadd.f32 %v14807_v53, %v17069_v15  ;;  %15068 = vmatprep.mubr.msk.f32.mxu1 %vm417_vm1, %v3307_v9  ;;  %15124 = vmatprep.mubr.msk.f32.mxu0 %vm417_vm1, %v3737_v16  ;;  %v3742_v45 = vld [vmem:[%s16286_s16 + $0x11e] sm:$0xff]  ;;  %v3743_v53 = vld [vmem:[%s16286_s16 + $0x126] sm:$0xff] }
 0x141   : > { %v17320_v59 = vpop.f32.mrf.mxu1  ;;  %v17322_v10 = vpop.f32.mrf.mxu0 }
 0x142   : > { %v17326_v55 = vadd.f32 %v14863_v27, %v1956_v33 }
 0x143   : > { %v14810_v15 = vpop.f32.mrf.mxu1  ;;  %v14866_v50 = vpop.f32.mrf.mxu0  ;;  %15069 = vmatmul.mubr.msk.f32.gmra.mxu1 %vm417_vm1, %v3308_v6  ;;  %15125 = vmatmul.mubr.msk.f32.gmra.mxu0 %vm417_vm1, %v3738_v49  ;;  %v3314_v49 = vld [vmem:[%s16286_s16 + $0x12d] sm:$0xff] }
 0x144   : > { %v1958_v34 = vadd.f32 %v14810_v15, %v17081_v31  ;;  %15071 = vmatprep.mubr.msk.f32.mxu1 %vm417_vm1, %v3309_v11  ;;  %15127 = vmatprep.mubr.msk.f32.mxu0 %vm417_vm1, %v3739_v38  ;;  %v3744_v11 = vld [vmem:[%s16286_s16 + $0x12e] sm:$0xff] }
 0x145   : > { %v17335_v61 = vpop.f32.mrf.mxu1  ;;  %v17337_v48 = vpop.f32.mrf.mxu0 }
 0x146   : > { %v17341_v19 = vadd.f32 %v14866_v50, %v1958_v34  ;;  %v3315_v50 = vld [vmem:[%s16286_s16 + $0x135] sm:$0xff] }
 0x147   : > { %v14813_v3 = vpop.f32.mrf.mxu1  ;;  %v14869_v31 = vpop.f32.mrf.mxu0  ;;  %15072 = vmatmul.mubr.msk.f32.gmra.mxu1 %vm417_vm1, %v3310_v39  ;;  %15128 = vmatmul.mubr.msk.f32.gmra.mxu0 %vm417_vm1, %v3740_v57  ;;  %v3745_v34 = vld [vmem:[%s16286_s16 + $0x136] sm:$0xff] }
 0x148   : > { %v1960_v2 = vadd.f32 %v14813_v3, %v17093_v63  ;;  %15074 = vmatprep.mubr.msk.f32.mxu1 %vm417_vm1, %v3311_v54  ;;  %15130 = vmatprep.mubr.msk.f32.mxu0 %vm417_vm1, %v3741_v0  ;;  %v3316_v0 = vld [vmem:[%s16286_s16 + $0x13d] sm:$0x3f] }
 0x149   : > { %v17350_v9 = vpop.f32.mrf.mxu1  ;;  %v17352_v16 = vpop.f32.mrf.mxu0  ;;  %v3746_v3 = vld [vmem:[%s16286_s16 + $0x13e] sm:$0x3f] }
 0x14a   : > { %v17356_v27 = vadd.f32 %v14869_v31, %v1960_v2 }
 0x14b   : > { %v14816_v33 = vpop.f32.mrf.mxu1  ;;  %v14872_v63 = vpop.f32.mrf.mxu0  ;;  %15075 = vmatmul.mubr.msk.f32.gmra.mxu1 %vm417_vm1, %v3312_v40  ;;  %15131 = vmatmul.mubr.msk.f32.gmra.mxu0 %vm417_vm1, %v3742_v45 }
 0x14c   : > { %v1962_v6 = vadd.f32 %v14816_v33, %v17105_v7  ;;  %15077 = vmatprep.mubr.msk.f32.mxu1 %vm417_vm1, %v3313_v1  ;;  %15133 = vmatprep.mubr.msk.f32.mxu0 %vm417_vm1, %v3743_v53 }
 0x14d   : > { %v17365_v38 = vpop.f32.mrf.mxu1  ;;  %v17367_v15 = vpop.f32.mrf.mxu0 }
 0x14e   : > { %v17371_v39 = vadd.f32 %v14872_v63, %v1962_v6  ;;  %v20687_v6 = vmov 0.0  }
 0x14f   : > { %v14819_v57 = vpop.f32.mrf.mxu1  ;;  %v14875_v54 = vpop.f32.mrf.mxu0  ;;  %15078 = vmatmul.mubr.msk.f32.gmra.mxu1 %vm417_vm1, %v3314_v49  ;;  %15134 = vmatmul.mubr.msk.f32.gmra.mxu0 %vm417_vm1, %v3744_v11  ;;  %4224 = vst.msk [vmem:[#allocation2 + $0x18] sm:$0xff] %vm4220_vm2, %v20687_v6  ;;  %4225 = vst.msk [vmem:[#allocation2 + $0x20] sm:$0xff] %vm4220_vm2, %v20687_v6 }
 0x150   : > { %v1964_v7 = vadd.f32 %v14819_v57, %v17119_v28  ;;  %15080 = vmatprep.mubr.msk.f32.mxu1 %vm417_vm1, %v3315_v50  ;;  %15136 = vmatprep.mubr.msk.f32.mxu0 %vm417_vm1, %v3745_v34  ;;  %4221 = vst.msk [vmem:[#allocation2] sm:$0xff] %vm4220_vm2, %v20687_v6  ;;  %4222 = vst.msk [vmem:[#allocation2 + $0x8] sm:$0xff] %vm4220_vm2, %v20687_v6 }
 0x151   : > { %v17380_v31 = vpop.f32.mrf.mxu1  ;;  %v17382_v2 = vpop.f32.mrf.mxu0  ;;  %4223 = vst.msk [vmem:[#allocation2 + $0x10] sm:$0xff] %vm4220_vm2, %v20687_v6  ;;  %4226 = vst.msk [vmem:[#allocation2 + $0x28] sm:$0xff] %vm4220_vm2, %v20687_v6 }
 0x152   : > { %v17384_v40 = vadd.f32 %v14875_v54, %v1964_v7  ;;  %4227 = vst.msk [vmem:[#allocation2 + $0x30] sm:$0xff] %vm4220_vm2, %v20687_v6  ;;  %4228 = vst.msk [vmem:[#allocation2 + $0x38] sm:$0xff] %vm4220_vm2, %v20687_v6 }
 0x153   : > { %v14822_v45 = vpop.f32.mrf.mxu1  ;;  %v14878_v1 = vpop.f32.mrf.mxu0  ;;  %15081 = vmatmul.mubr.msk.f32.gmra.mxu1 %vm417_vm1, %v3316_v0  ;;  %15137 = vmatmul.mubr.msk.f32.gmra.mxu0 %vm417_vm1, %v3746_v3  ;;  %4229 = vst.msk [vmem:[#allocation2 + $0x40] sm:$0xff] %vm4220_vm2, %v20687_v6  ;;  %4230 = vst.msk [vmem:[#allocation2 + $0x48] sm:$0xff] %vm4220_vm2, %v20687_v6  ;;  %v4553_v0 = vld [vmem:[%s20681_s3 + $0x8] sm:$0xff] }
 0x154   : > { %v1966_v28 = vadd.f32 %v14822_v45, %v17133_v47  ;;  %4231 = vst.msk [vmem:[#allocation2 + $0x50] sm:$0xff] %vm4220_vm2, %v20687_v6  ;;  %4232 = vst.msk [vmem:[#allocation2 + $0x58] sm:$0xff] %vm4220_vm2, %v20687_v6  ;;  %15197 = vmatprep.subr.mxu0 %v4553_v0 }
 0x155   : > { %v17389_v53 = vpop.f32.mrf.mxu1  ;;  %v17391_v33 = vpop.f32.mrf.mxu0  ;;  %4233 = vst.msk [vmem:[#allocation2 + $0x60] sm:$0xff] %vm4220_vm2, %v20687_v6  ;;  %4234 = vst.msk [vmem:[#allocation2 + $0x68] sm:$0xff] %vm4220_vm2, %v20687_v6  ;;  %15198 = vmatpush3.msra.mxu0 %v4553_v0 }
 0x156   : > { %v17393_v63 = vadd.f32 %v14878_v1, %v1966_v28  ;;  %4235 = vst.msk [vmem:[#allocation2 + $0x70] sm:$0xff] %vm4220_vm2, %v20687_v6  ;;  %4236 = vst.msk [vmem:[#allocation2 + $0x78] sm:$0xff] %vm4220_vm2, %v20687_v6 }
 0x157   : > { %4237 = vst.msk [vmem:[#allocation2 + $0x80] sm:$0xff] %vm4220_vm2, %v20687_v6  ;;  %4238 = vst.msk [vmem:[#allocation2 + $0x88] sm:$0xff] %vm4220_vm2, %v20687_v6  ;;  %v14825_v47 = vpop.f32.mrf.mxu1  ;;  %v14881_v49 = vpop.f32.mrf.mxu0 }
 0x158   : > { %4239 = vst.msk [vmem:[#allocation2 + $0x90] sm:$0xff] %vm4220_vm2, %v20687_v6  ;;  %4240 = vst.msk [vmem:[#allocation2 + $0x98] sm:$0xff] %vm4220_vm2, %v20687_v6  ;;  %v1968_v11 = vadd.f32 %v14825_v47, %v17147_v12  ;;  %v4552_v12 = vld [vmem:[%s20681_s3] sm:$0xff] }
 0x159   : > { %4241 = vst.msk [vmem:[#allocation2 + $0xa0] sm:$0xff] %vm4220_vm2, %v20687_v6  ;;  %4242 = vst.msk [vmem:[#allocation2 + $0xa8] sm:$0xff] %vm4220_vm2, %v20687_v6  ;;  %v17556_v50 = vpop.f32.mrf.mxu1  ;;  %v17558_v34 = vpop.f32.mrf.mxu0  ;;  %15199 = vmatprep.subr.mxu0 %v4552_v12  ;;  %v4554_v47 = vld [vmem:[#allocation2 + $0x1] sm:$0xff] }
 0x15a   : > { %4243 = vst.msk [vmem:[#allocation2 + $0xb0] sm:$0xff] %vm4220_vm2, %v20687_v6  ;;  %4244 = vst.msk [vmem:[#allocation2 + $0xb8] sm:$0xff] %vm4220_vm2, %v20687_v6  ;;  %v17560_v57 = vadd.f32 %v14881_v49, %v1968_v11  ;;  %v4516_v49 = vld [vmem:[#allocation2] sm:$0xff]  ;;  %15143 = vmatprep.mubr.msk.f32.mxu1 %vm4220_vm2, %v4554_v47  ;;  %15200 = vmatpush3.msra.mxu0 %v4552_v12 }
 0x15b   : > { %4245 = vst.msk [vmem:[#allocation2 + $0xc0] sm:$0xff] %vm4220_vm2, %v20687_v6  ;;  %4246 = vst.msk [vmem:[#allocation2 + $0xc8] sm:$0xff] %vm4220_vm2, %v20687_v6  ;;  %v14828_v54 = vpop.f32.mrf.mxu1  ;;  %v14884_v7 = vpop.f32.mrf.mxu0  ;;  %15201 = vmatprep.mubr.msk.f32.mxu0 %vm4220_vm2, %v4516_v49 }
 0x15c   : > { %4247 = vst.msk [vmem:[#allocation2 + $0xd0] sm:$0xff] %vm4220_vm2, %v20687_v6  ;;  %4248 = vst.msk [vmem:[#allocation2 + $0xd8] sm:$0xff] %vm4220_vm2, %v20687_v6  ;;  %v1970_v3 = vadd.f32 %v14828_v54, %v17161_v36  ;;  %v4555_v36 = vld [vmem:[#allocation2 + $0x9] sm:$0xff] }
 0x15d   : > { %4249 = vst.msk [vmem:[#allocation2 + $0xe0] sm:$0xff] %vm4220_vm2, %v20687_v6  ;;  %4250 = vst.msk [vmem:[#allocation2 + $0xe8] sm:$0xff] %vm4220_vm2, %v20687_v6  ;;  %v17566_v45 = vpop.f32.mrf.mxu1  ;;  %v17568_v1 = vpop.f32.mrf.mxu0  ;;  %v4517_v54 = vld [vmem:[#allocation2 + $0x8] sm:$0xff]  ;;  %15144 = vmatmul.mubr.msk.f32.vlgmr.msra.gmra.mxu1 %vm4220_vm2, %v4555_v36 }
 0x15e   : > { %4251 = vst.msk [vmem:[#allocation2 + $0xf0] sm:$0xff] %vm4220_vm2, %v20687_v6  ;;  %4252 = vst.msk [vmem:[#allocation2 + $0xf8] sm:$0xff] %vm4220_vm2, %v20687_v6  ;;  %v17573_v28 = vadd.f32 %v14884_v7, %v1970_v3  ;;  %15202 = vmatmul.mubr.msk.f32.vlgmr.msra.gmra.mxu0 %vm4220_vm2, %v4517_v54 }
 0x15f   : > { %4253 = vst.msk [vmem:[#allocation2 + $0x100] sm:$0xff] %vm4220_vm2, %v20687_v6  ;;  %4254 = vst.msk [vmem:[#allocation2 + $0x108] sm:$0xff] %vm4220_vm2, %v20687_v6  ;;  %v14831_v11 = vpop.f32.mrf.mxu1 }
 0x160   : > { %4255 = vst.msk [vmem:[#allocation2 + $0x110] sm:$0xff] %vm4220_vm2, %v20687_v6  ;;  %4256 = vst.msk [vmem:[#allocation2 + $0x118] sm:$0xff] %vm4220_vm2, %v20687_v6  ;;  %v1972_v52 = vadd.f32 %v14831_v11, %v17175_v42 }
 0x161   : > { %4257 = vst.msk [vmem:[#allocation2 + $0x120] sm:$0xff] %vm4220_vm2, %v20687_v6  ;;  %4258 = vst.msk [vmem:[#allocation2 + $0x128] sm:$0xff] %vm4220_vm2, %v20687_v6  ;;  %v17579_v0 = vpop.f32.mrf.mxu1 }
 0x162   : > { %4259 = vst.msk [vmem:[#allocation2 + $0x130] sm:$0xff] %vm4220_vm2, %v20687_v6  ;;  %4260 = vst.msk [vmem:[#allocation2 + $0x138] sm:$0xff] %vm4220_vm2, %v20687_v6 }
 0x163   : > { %8374 = vst.msk [vmem:[#allocation3] sm:$0xff] %vm4220_vm2, %v20687_v6  ;;  %8375 = vst.msk [vmem:[#allocation3 + $0x8] sm:$0xff] %vm4220_vm2, %v20687_v6  ;;  %v14834_v56 = vpop.f32.mrf.mxu1 }
 0x164   : > { %8376 = vst.msk [vmem:[#allocation3 + $0x10] sm:$0xff] %vm4220_vm2, %v20687_v6  ;;  %8377 = vst.msk [vmem:[#allocation3 + $0x18] sm:$0xff] %vm4220_vm2, %v20687_v6  ;;  %v1974_v12 = vadd.f32 %v14834_v56, %v17192_v23  ;;  %v13009_v23 = vld [vmem:[%s20681_s3 + $0x28] sm:$0xff] }
 0x165   : > { %8378 = vst.msk [vmem:[#allocation3 + $0x20] sm:$0xff] %vm4220_vm2, %v20687_v6  ;;  %8379 = vst.msk [vmem:[#allocation3 + $0x28] sm:$0xff] %vm4220_vm2, %v20687_v6  ;;  %v17587_v47 = vpop.f32.mrf.mxu1  ;;  %15255 = vmatprep.subr.mxu1 %v13009_v23 }
 0x166   : > { %8380 = vst.msk [vmem:[#allocation3 + $0x30] sm:$0xff] %vm4220_vm2, %v20687_v6  ;;  %8381 = vst.msk [vmem:[#allocation3 + $0x38] sm:$0xff] %vm4220_vm2, %v20687_v6  ;;  %15256 = vmatpush3.msra.mxu1 %v13009_v23 }
 0x167   : > { %8382 = vst.msk [vmem:[#allocation3 + $0x40] sm:$0xff] %vm4220_vm2, %v20687_v6  ;;  %8383 = vst.msk [vmem:[#allocation3 + $0x48] sm:$0xff] %vm4220_vm2, %v20687_v6  ;;  %v14837_v49 = vpop.f32.mrf.mxu1 }
 0x168   : > { %8384 = vst.msk [vmem:[#allocation3 + $0x50] sm:$0xff] %vm4220_vm2, %v20687_v6  ;;  %8385 = vst.msk [vmem:[#allocation3 + $0x58] sm:$0xff] %vm4220_vm2, %v20687_v6  ;;  %v1976_v36 = vadd.f32 %v14837_v49, %v17206_v51 }
 0x169   : > { %8386 = vst.msk [vmem:[#allocation3 + $0x60] sm:$0xff] %vm4220_vm2, %v20687_v6  ;;  %8387 = vst.msk [vmem:[#allocation3 + $0x68] sm:$0xff] %vm4220_vm2, %v20687_v6  ;;  %v17594_v60 = vpop.f32.mrf.mxu1 }
 0x16a   : > { %8388 = vst.msk [vmem:[#allocation3 + $0x70] sm:$0xff] %vm4220_vm2, %v20687_v6  ;;  %8389 = vst.msk [vmem:[#allocation3 + $0x78] sm:$0xff] %vm4220_vm2, %v20687_v6 }
 0x16b   : > { %8390 = vst.msk [vmem:[#allocation3 + $0x80] sm:$0xff] %vm4220_vm2, %v20687_v6  ;;  %8391 = vst.msk [vmem:[#allocation3 + $0x88] sm:$0xff] %vm4220_vm2, %v20687_v6  ;;  %v14840_v56 = vpop.f32.mrf.mxu1 }
 0x16c   : > { %8392 = vst.msk [vmem:[#allocation3 + $0x90] sm:$0xff] %vm4220_vm2, %v20687_v6  ;;  %8393 = vst.msk [vmem:[#allocation3 + $0x98] sm:$0xff] %vm4220_vm2, %v20687_v6 }
 0x16d   : > { %8394 = vst.msk [vmem:[#allocation3 + $0xa0] sm:$0xff] %vm4220_vm2, %v20687_v6  ;;  %8395 = vst.msk [vmem:[#allocation3 + $0xa8] sm:$0xff] %vm4220_vm2, %v20687_v6  ;;  %v17604_v54 = vpop.f32.mrf.mxu1 }
 0x16e   : > { %8396 = vst.msk [vmem:[#allocation3 + $0xb0] sm:$0xff] %vm4220_vm2, %v20687_v6  ;;  %8397 = vst.msk [vmem:[#allocation3 + $0xb8] sm:$0xff] %vm4220_vm2, %v20687_v6 }
 0x16f   : > { %8398 = vst.msk [vmem:[#allocation3 + $0xc0] sm:$0xff] %vm4220_vm2, %v20687_v6  ;;  %8399 = vst.msk [vmem:[#allocation3 + $0xc8] sm:$0xff] %vm4220_vm2, %v20687_v6  ;;  %v14843_v49 = vpop.f32.mrf.mxu1 }
 0x170   : > { %8400 = vst.msk [vmem:[#allocation3 + $0xd0] sm:$0xff] %vm4220_vm2, %v20687_v6  ;;  %8401 = vst.msk [vmem:[#allocation3 + $0xd8] sm:$0xff] %vm4220_vm2, %v20687_v6 }
 0x171   : > { %8402 = vst.msk [vmem:[#allocation3 + $0xe0] sm:$0xff] %vm4220_vm2, %v20687_v6  ;;  %8403 = vst.msk [vmem:[#allocation3 + $0xe8] sm:$0xff] %vm4220_vm2, %v20687_v6 }
 0x172   : > { %8404 = vst.msk [vmem:[#allocation3 + $0xf0] sm:$0xff] %vm4220_vm2, %v20687_v6  ;;  %8405 = vst.msk [vmem:[#allocation3 + $0xf8] sm:$0xff] %vm4220_vm2, %v20687_v6 }
 0x173   : > { %8406 = vst.msk [vmem:[#allocation3 + $0x100] sm:$0xff] %vm4220_vm2, %v20687_v6  ;;  %8407 = vst.msk [vmem:[#allocation3 + $0x108] sm:$0xff] %vm4220_vm2, %v20687_v6 }
 0x174   : > { %8408 = vst.msk [vmem:[#allocation3 + $0x110] sm:$0xff] %vm4220_vm2, %v20687_v6  ;;  %8409 = vst.msk [vmem:[#allocation3 + $0x118] sm:$0xff] %vm4220_vm2, %v20687_v6 }
 0x175   : > { %8410 = vst.msk [vmem:[#allocation3 + $0x120] sm:$0xff] %vm4220_vm2, %v20687_v6  ;;  %8411 = vst.msk [vmem:[#allocation3 + $0x128] sm:$0xff] %vm4220_vm2, %v20687_v6 }
 0x176   : > { %8412 = vst.msk [vmem:[#allocation3 + $0x130] sm:$0xff] %vm4220_vm2, %v20687_v6  ;;  %8413 = vst.msk [vmem:[#allocation3 + $0x138] sm:$0xff] %vm4220_vm2, %v20687_v6  ;;  %v14887_v6 = vpop.f32.mrf.mxu0 }
 0x177   : > { %20769 = vst [vmem:[#allocation16_spill] sm:$0xff] %v17566_v45  ;;  %20770 = vst [vmem:[#allocation17_spill] sm:$0xff] %v17568_v1  ;;  %v17584_v3 = vadd.f32 %v14887_v6, %v1972_v52 }
 0x178   : > { %20771 = vst [vmem:[#allocation18_spill] sm:$0xff] %v17579_v0  ;;  %v17581_v7 = vpop.f32.mrf.mxu0  ;;  %20773 = vst [vmem:[#allocation20_spill] sm:$0xff] %v17587_v47 }
 0x179   : > { %20772 = vst [vmem:[#allocation19_spill] sm:$0xff] %v17581_v7  ;;  %20775 = vst [vmem:[#allocation22_spill] sm:$0xff] %v17594_v60 }
 0x17a   : > { %v14890_v41 = vpop.f32.mrf.mxu0  ;;  %20777 = vst [vmem:[#allocation24_spill] sm:$0xff] %v17604_v54 }
 0x17b   : > { %v17591_v42 = vadd.f32 %v14890_v41, %v1974_v12  ;;  %v1978_v41 = vadd.f32 %v14840_v56, %v17220_v5 }
 0x17c   : > { %v17589_v8 = vpop.f32.mrf.mxu0 }
 0x17d   : > { %20774 = vst [vmem:[#allocation21_spill] sm:$0xff] %v17589_v8 }
 0x17e   : > { %v14893_v11 = vpop.f32.mrf.mxu0 }
 0x17f   : > { %v17598_v52 = vadd.f32 %v14893_v11, %v1976_v36  ;;  %v1980_v11 = vadd.f32 %v14843_v49, %v17234_v24  ;;  %v17611_v36 = vpop.f32.mrf.mxu1 }
 0x180   : > { %v17596_v17 = vpop.f32.mrf.mxu0  ;;  %20779 = vst [vmem:[#allocation26_spill] sm:$0xff] %v17611_v36 }
 0x181   : > { %20776 = vst [vmem:[#allocation23_spill] sm:$0xff] %v17596_v17  ;;  %v14846_v58 = vpop.f32.mrf.mxu1 }
 0x182   : > { %v14896_v6 = vpop.f32.mrf.mxu0  ;;  %v1982_v5 = vadd.f32 %v14846_v58, %v17248_v14 }
 0x183   : > { %v17608_v51 = vadd.f32 %v14896_v6, %v1978_v41  ;;  %v17618_v23 = vpop.f32.mrf.mxu1 }
 0x184   : > { %v17606_v12 = vpop.f32.mrf.mxu0  ;;  %20781 = vst [vmem:[#allocation28_spill] sm:$0xff] %v17618_v23 }
 0x185   : > { %20778 = vst [vmem:[#allocation25_spill] sm:$0xff] %v17606_v12  ;;  %v14849_v41 = vpop.f32.mrf.mxu1 }
 0x186   : > { %v14899_v46 = vpop.f32.mrf.mxu0  ;;  %v1984_v24 = vadd.f32 %v14849_v41, %v17262_v22 }
 0x187   : > { %v17615_v17 = vadd.f32 %v14899_v46, %v1980_v11  ;;  %v17625_v49 = vpop.f32.mrf.mxu1 }
 0x188   : > { %v17613_v32 = vpop.f32.mrf.mxu0  ;;  %20783 = vst [vmem:[#allocation30_spill] sm:$0xff] %v17625_v49 }
 0x189   : > { %20780 = vst [vmem:[#allocation27_spill] sm:$0xff] %v17613_v32  ;;  %v14852_v11 = vpop.f32.mrf.mxu1 }
 0x18a   : > { %v14902_v8 = vpop.f32.mrf.mxu0  ;;  %v1986_v58 = vadd.f32 %v14852_v11, %v17276_v30 }
 0x18b   : > { %v17622_v6 = vadd.f32 %v14902_v8, %v1982_v5  ;;  %v17632_v14 = vpop.f32.mrf.mxu1 }
 0x18c   : > { %v17620_v56 = vpop.f32.mrf.mxu0  ;;  %20785 = vst [vmem:[#allocation32_spill] sm:$0xff] %v17632_v14 }
 0x18d   : > { %20782 = vst [vmem:[#allocation29_spill] sm:$0xff] %v17620_v56  ;;  %v14855_v5 = vpop.f32.mrf.mxu1 }
 0x18e   : > { %v14905_v12 = vpop.f32.mrf.mxu0  ;;  %v1988_v22 = vadd.f32 %v14855_v5, %v17290_v37 }
 0x18f   : > { %v17629_v46 = vadd.f32 %v14905_v12, %v1984_v24  ;;  %v17639_v41 = vpop.f32.mrf.mxu1 }
 0x190   : > { %v17627_v36 = vpop.f32.mrf.mxu0  ;;  %20787 = vst [vmem:[#allocation34_spill] sm:$0xff] %v17639_v41 }
 0x191   : > { %20784 = vst [vmem:[#allocation31_spill] sm:$0xff] %v17627_v36  ;;  %v14858_v24 = vpop.f32.mrf.mxu1 }
 0x192   : > { %v14908_v32 = vpop.f32.mrf.mxu0  ;;  %v1990_v30 = vadd.f32 %v14858_v24, %v17308_v43 }
 0x193   : > { %v17636_v8 = vadd.f32 %v14908_v32, %v1986_v58  ;;  %v17646_v11 = vpop.f32.mrf.mxu1 }
 0x194   : > { %v17634_v23 = vpop.f32.mrf.mxu0  ;;  %20789 = vst [vmem:[#allocation36_spill] sm:$0xff] %v17646_v11 }
 0x195   : > { %20786 = vst [vmem:[#allocation33_spill] sm:$0xff] %v17634_v23  ;;  %v14919_v58 = vpop.f32.mrf.mxu1 }
 0x196   : > { %v14911_v56 = vpop.f32.mrf.mxu0  ;;  %v2816_v37 = vadd.f32 %v14919_v58, %v17326_v55  ;;  %v13008_v55 = vld [vmem:[%s20681_s3 + $0x20] sm:$0xff] }
 0x197   : > { %v17643_v12 = vadd.f32 %v14911_v56, %v1988_v22  ;;  %v17653_v5 = vpop.f32.mrf.mxu1  ;;  %15257 = vmatprep.subr.mxu1 %v13008_v55 }
 0x198   : > { %v17641_v49 = vpop.f32.mrf.mxu0  ;;  %15258 = vmatpush3.msra.mxu1 %v13008_v55 }
 0x199   : > { %20788 = vst [vmem:[#allocation35_spill] sm:$0xff] %v17641_v49  ;;  %v14922_v22 = vpop.f32.mrf.mxu1 }
 0x19a   : > { %v14914_v36 = vpop.f32.mrf.mxu0  ;;  %v2818_v43 = vadd.f32 %v14922_v22, %v17341_v19 }
 0x19b   : > { %v17650_v32 = vadd.f32 %v14914_v36, %v1990_v30  ;;  %v17660_v24 = vpop.f32.mrf.mxu1 }
 0x19c   : > { %v17648_v14 = vpop.f32.mrf.mxu0 }
 0x19d   : > { %20790 = vst [vmem:[#allocation37_spill] sm:$0xff] %v17648_v14  ;;  %v14925_v30 = vpop.f32.mrf.mxu1 }
 0x19e   : > { %v14975_v23 = vpop.f32.mrf.mxu0 }
 0x19f   : > { %v17657_v56 = vadd.f32 %v14975_v23, %v2816_v37  ;;  %v2820_v23 = vadd.f32 %v14925_v30, %v17356_v27  ;;  %v17670_v37 = vpop.f32.mrf.mxu1 }
 0x1a0   : > { %v17655_v41 = vpop.f32.mrf.mxu0 }
 0x1a1   : > { %v14928_v22 = vpop.f32.mrf.mxu1 }
 0x1a2   : > { %v14978_v49 = vpop.f32.mrf.mxu0 }
 0x1a3   : > { %v17664_v36 = vadd.f32 %v14978_v49, %v2818_v43  ;;  %v2822_v49 = vadd.f32 %v14928_v22, %v17371_v39  ;;  %v17677_v43 = vpop.f32.mrf.mxu1 }
 0x1a4   : > { %v17662_v11 = vpop.f32.mrf.mxu0 }
 0x1a5   : > { %v14931_v47 = vpop.f32.mrf.mxu1 }
 0x1a6   : > { %v14981_v58 = vpop.f32.mrf.mxu0  ;;  %v2824_v27 = vadd.f32 %v14931_v47, %v17384_v40 }
 0x1a7   : > { %v17674_v19 = vadd.f32 %v14981_v58, %v2820_v23  ;;  %v17684_v55 = vpop.f32.mrf.mxu1 }
 0x1a8   : > { %v17672_v14 = vpop.f32.mrf.mxu0 }
 0x1a9   : > { %v14934_v23 = vpop.f32.mrf.mxu1 }
 0x1aa   : > { %v14984_v54 = vpop.f32.mrf.mxu0  ;;  %v2826_v39 = vadd.f32 %v14934_v23, %v17393_v63 }
 0x1ab   : > { %v17681_v18 = vadd.f32 %v14984_v54, %v2822_v49  ;;  %v17691_v22 = vpop.f32.mrf.mxu1 }
 0x1ac   : > { %v17679_v60 = vpop.f32.mrf.mxu0 }
 0x1ad   : > { %v14937_v49 = vpop.f32.mrf.mxu1 }
 0x1ae   : > { %v14987_v25 = vpop.f32.mrf.mxu0  ;;  %v2828_v40 = vadd.f32 %v14937_v49, %v17560_v57  ;;  %v13047_v57 = vld [vmem:[%s20681_s3 + $0x38] sm:$0xff] }
 0x1af   : > { %v17688_v58 = vadd.f32 %v14987_v25, %v2824_v27  ;;  %v17698_v47 = vpop.f32.mrf.mxu1  ;;  %15313 = vmatprep.subr.mxu0 %v13047_v57 }
 0x1b0   : > { %v17686_v30 = vpop.f32.mrf.mxu0  ;;  %15314 = vmatpush3.msra.mxu0 %v13047_v57 }
 0x1b1   : > { %20791 = vst [vmem:[#allocation38_spill] sm:$0xff] %v17686_v30  ;;  %v14940_v27 = vpop.f32.mrf.mxu1 }
 0x1b2   : > { %v14990_v7 = vpop.f32.mrf.mxu0  ;;  %v2830_v63 = vadd.f32 %v14940_v27, %v17573_v28  ;;  %v13046_v28 = vld [vmem:[%s20681_s3 + $0x30] sm:$0xff] }
 0x1b3   : > { %v17695_v54 = vadd.f32 %v14990_v7, %v2826_v39  ;;  %v17705_v23 = vpop.f32.mrf.mxu1  ;;  %15315 = vmatprep.subr.mxu0 %v13046_v28 }
 0x1b4   : > { %v17693_v0 = vpop.f32.mrf.mxu0  ;;  %20794 = vst [vmem:[#allocation41_spill] sm:$0xff] %v17705_v23  ;;  %15316 = vmatpush3.msra.mxu0 %v13046_v28 }
 0x1b5   : > { %v14943_v39 = vpop.f32.mrf.mxu1 }
 0x1b6   : > { %v14993_v26 = vpop.f32.mrf.mxu0 }
 0x1b7   : > { %v17702_v25 = vadd.f32 %v14993_v26, %v2828_v40  ;;  %v2832_v26 = vadd.f32 %v14943_v39, %v17584_v3  ;;  %v13085_v40 = vld [vmem:[%s20681_s3 + $0x48] sm:$0xff] }
 0x1b8   : > { %v17700_v1 = vpop.f32.mrf.mxu0  ;;  %15371 = vmatprep.subr.mxu1 %v13085_v40 }
 0x1b9   : > { %20792 = vst [vmem:[#allocation39_spill] sm:$0xff] %v17700_v1  ;;  %20793 = vst [vmem:[#allocation40_spill] sm:$0xff] %v17702_v25 }
 0x1ba   : > { %v14996_v30 = vpop.f32.mrf.mxu0 }
 0x1bb   : > { %v17709_v7 = vadd.f32 %v14996_v30, %v2830_v63  ;;  %v17721_v30 = vpop.f32.mrf.mxu1 }
 0x1bc   : > { %v17707_v45 = vpop.f32.mrf.mxu0  ;;  %20797 = vst [vmem:[#allocation44_spill] sm:$0xff] %v17721_v30 }
 0x1bd   : > { %20795 = vst [vmem:[#allocation42_spill] sm:$0xff] %v17707_v45  ;;  %20796 = vst [vmem:[#allocation43_spill] sm:$0xff] %v17709_v7  ;;  %v14946_v7 = vpop.f32.mrf.mxu1 }
 0x1be   : > { %v14999_v49 = vpop.f32.mrf.mxu0  ;;  %v2834_v57 = vadd.f32 %v14946_v7, %v17591_v42 }
 0x1bf   : > { %v17725_v63 = vadd.f32 %v14999_v49, %v2832_v26  ;;  %v17728_v39 = vpop.f32.mrf.mxu1 }
 0x1c0   : > { %v17723_v27 = vpop.f32.mrf.mxu0  ;;  %20799 = vst [vmem:[#allocation46_spill] sm:$0xff] %v17728_v39 }
 0x1c1   : > { %20798 = vst [vmem:[#allocation45_spill] sm:$0xff] %v17723_v27  ;;  %v14949_v23 = vpop.f32.mrf.mxu1 }
 0x1c2   : > { %v15002_v3 = vpop.f32.mrf.mxu0  ;;  %v2836_v30 = vadd.f32 %v14949_v23, %v17598_v52 }
 0x1c3   : > { %v17732_v25 = vadd.f32 %v15002_v3, %v2834_v57  ;;  %v17735_v27 = vpop.f32.mrf.mxu1  ;;  %v17746_v3 = vpop.permute.xlu0 %4265 }
 0x1c4   : > { %v17730_v45 = vpop.f32.mrf.mxu0  ;;  %20802 = vst [vmem:[#allocation49_spill] sm:$0xff] %v17735_v27  ;;  %v17748_v57 = vpop.permute.xlu1 %4275 }
 0x1c5   : > { %20800 = vst [vmem:[#allocation47_spill] sm:$0xff] %v17730_v45  ;;  %20801 = vst [vmem:[#allocation48_spill] sm:$0xff] %v17732_v25  ;;  %v14952_v26 = vpop.f32.mrf.mxu1 }
 0x1c6   : > { %v15005_v1 = vpop.f32.mrf.mxu0  ;;  %v2838_v42 = vadd.f32 %v14952_v26, %v17608_v51  ;;  %20807 = vst [vmem:[#allocation54_spill] sm:$0xff] %v17748_v57 }
 0x1c7   : > { %v17739_v49 = vadd.f32 %v15005_v1, %v2836_v30  ;;  %v17742_v7 = vpop.f32.mrf.mxu1 }
 0x1c8   : > { %v17737_v40 = vpop.f32.mrf.mxu0  ;;  %20805 = vst [vmem:[#allocation52_spill] sm:$0xff] %v17742_v7  ;;  %v17759_v7 = vpop.permute.xlu0 %4270 }
 0x1c9   : > { %20803 = vst [vmem:[#allocation50_spill] sm:$0xff] %v17737_v40  ;;  %20804 = vst [vmem:[#allocation51_spill] sm:$0xff] %v17739_v49  ;;  %v14955_v52 = vpop.f32.mrf.mxu1 }
 0x1ca   : > { %v15008_v28 = vpop.f32.mrf.mxu0  ;;  %v2840_v40 = vadd.f32 %v14955_v52, %v17615_v17 }
 0x1cb   : > { %v17750_v45 = vadd.f32 %v15008_v28, %v2838_v42  ;;  %v17753_v1 = vpop.f32.mrf.mxu1 }
 0x1cc   : > { %v17744_v39 = vpop.f32.mrf.mxu0  ;;  %20809 = vst [vmem:[#allocation56_spill] sm:$0xff] %v17753_v1 }
 0x1cd   : > { %20806 = vst [vmem:[#allocation53_spill] sm:$0xff] %v17744_v39  ;;  %20808 = vst [vmem:[#allocation55_spill] sm:$0xff] %v17750_v45  ;;  %v14958_v51 = vpop.f32.mrf.mxu1  ;;  %v17761_v39 = vpop.permute.xlu1 %4280 }
 0x1ce   : > { %v15011_v23 = vpop.f32.mrf.mxu0  ;;  %20812 = vst [vmem:[#allocation59_spill] sm:$0xff] %v17761_v39  ;;  %v2842_v25 = vadd.f32 %v14958_v51, %v17622_v6 }
 0x1cf   : > { %v17757_v49 = vadd.f32 %v15011_v23, %v2840_v40  ;;  %v17764_v28 = vpop.f32.mrf.mxu1 }
 0x1d0   : > { %v17755_v30 = vpop.f32.mrf.mxu0  ;;  %20813 = vst [vmem:[#allocation60_spill] sm:$0xff] %v17764_v28 }
 0x1d1   : > { %20810 = vst [vmem:[#allocation57_spill] sm:$0xff] %v17755_v30  ;;  %20811 = vst [vmem:[#allocation58_spill] sm:$0xff] %v17757_v49  ;;  %v14961_v17 = vpop.f32.mrf.mxu1  ;;  %v17775_v49 = vpop.permute.xlu0 %4285 }
 0x1d2   : > { %v15014_v26 = vpop.f32.mrf.mxu0  ;;  %v2844_v30 = vadd.f32 %v14961_v17, %v17629_v46  ;;  %20818 = vst [vmem:[#allocation65_spill] sm:$0xff] %v17775_v49  ;;  %v17777_v1 = vpop.permute.xlu1 %4290  ;;  %v1955_v46 = vadd.f32 %v17320_v59, %v17074_v4 }
 0x1d3   : > { %v17768_v45 = vadd.f32 %v15014_v26, %v2842_v25  ;;  %v17771_v40 = vpop.f32.mrf.mxu1  ;;  %20819 = vst [vmem:[#allocation66_spill] sm:$0xff] %v17777_v1 }
 0x1d4   : > { %v17766_v42 = vpop.f32.mrf.mxu0  ;;  %20816 = vst [vmem:[#allocation63_spill] sm:$0xff] %v17771_v40 }
 0x1d5   : > { %20814 = vst [vmem:[#allocation61_spill] sm:$0xff] %v17766_v42  ;;  %20815 = vst [vmem:[#allocation62_spill] sm:$0xff] %v17768_v45  ;;  %v14964_v6 = vpop.f32.mrf.mxu1  ;;  %v17790_v45 = vpop.permute.xlu0 %4295 }
 0x1d6   : > { %v15017_v52 = vpop.f32.mrf.mxu0  ;;  %v2846_v42 = vadd.f32 %v14964_v6, %v17636_v8  ;;  %20822 = vst [vmem:[#allocation69_spill] sm:$0xff] %v17790_v45  ;;  %v17792_v28 = vpop.permute.xlu1 %4300  ;;  %v2385_v6 = vadd.f32 %v17322_v10, %v1955_v46 }
 0x1d7   : > { %v17779_v27 = vadd.f32 %v15017_v52, %v2844_v30  ;;  %v17782_v25 = vpop.f32.mrf.mxu1  ;;  %20823 = vst [vmem:[#allocation70_spill] sm:$0xff] %v17792_v28 }
 0x1d8   : > { %v17773_v23 = vpop.f32.mrf.mxu0 }
 0x1d9   : > { %20817 = vst [vmem:[#allocation64_spill] sm:$0xff] %v17773_v23  ;;  %v14967_v23 = vpop.f32.mrf.mxu1  ;;  %v17813_v46 = vpop.permute.xlu0 %4305 }
 0x1da   : > { %v15020_v51 = vpop.f32.mrf.mxu0  ;;  %v2848_v30 = vadd.f32 %v14967_v23, %v17643_v12  ;;  %v1959_v12 = vadd.f32 %v17350_v9, %v17098_v21  ;;  %20825 = vst [vmem:[#allocation72_spill] sm:$0xff] %v17813_v46 }
 0x1db   : > { %v17788_v17 = vadd.f32 %v15020_v51, %v2846_v42  ;;  %v17795_v52 = vpop.f32.mrf.mxu1  ;;  %v2815_v51 = vadd.f32 %v17653_v5, %v2385_v6  ;;  %v1961_v6 = vadd.f32 %v17365_v38, %v17110_v29 }
 0x1dc   : > { %v17784_v26 = vpop.f32.mrf.mxu0  ;;  %20824 = vst [vmem:[#allocation71_spill] sm:$0xff] %v17795_v52  ;;  %v2389_v9 = vadd.f32 %v17352_v16, %v1959_v12 }
 0x1dd   : > { %20820 = vst [vmem:[#allocation67_spill] sm:$0xff] %v17784_v26  ;;  %20821 = vst [vmem:[#allocation68_spill] sm:$0xff] %v17788_v17  ;;  %v1957_v26 = vadd.f32 %v17335_v61, %v17086_v13  ;;  %v14970_v59 = vpop.f32.mrf.mxu1  ;;  %v17815_v13 = vpop.permute.xlu1 %4310  ;;  %v3245_v5 = vadd.f32 %v17655_v41, %v2815_v51 }
 0x1de   : > { %v15023_v40 = vpop.f32.mrf.mxu0  ;;  %v2850_v17 = vadd.f32 %v14970_v59, %v17650_v32  ;;  %20826 = vst [vmem:[#allocation73_spill] sm:$0xff] %v17815_v13  ;;  %v2819_v41 = vadd.f32 %v17670_v37, %v2389_v9 }
 0x1df   : > { %v17802_v4 = vadd.f32 %v15023_v40, %v2848_v30  ;;  %v17808_v23 = vpop.f32.mrf.mxu1  ;;  %v2387_v10 = vadd.f32 %v17337_v48, %v1957_v26  ;;  %v17828_v48 = vld [vmem:[%s20680_s2] ss:$0 sm:$0xff] }
 0x1e0   : > { %v17797_v8 = vpop.f32.mrf.mxu0 }
 0x1e1   : > { %v15031_v40 = vpop.f32.mrf.mxu1  ;;  %v2817_v32 = vadd.f32 %v17660_v24, %v2387_v10  ;;  %v17832_v10 = vpop.permute.xlu0 %4315 }
 0x1e2   : > { %v15026_v42 = vpop.f32.mrf.mxu0  ;;  %v3676_v21 = vadd.f32 %v15031_v40, %v17657_v56  ;;  %20828 = vst [vmem:[#allocation75_spill] sm:$0xff] %v17832_v10  ;;  %v17834_v16 = vpop.permute.xlu1 %4320  ;;  %v2391_v40 = vadd.f32 %v17367_v15, %v1961_v6 }
 0x1e3   : > { %v17817_v61 = vadd.f32 %v15026_v42, %v2850_v17  ;;  %v3496_v26 = vpop.f32.mrf.mxu1  ;;  %v3247_v56 = vadd.f32 %v17662_v11, %v2817_v32  ;;  %20829 = vst [vmem:[#allocation76_spill] sm:$0xff] %v17834_v16  ;;  %v1963_v11 = vadd.f32 %v17380_v31, %v17124_v35  ;;  %v3249_v32 = vadd.f32 %v17672_v14, %v2819_v41 }
 0x1e4   : > { %v17810_v52 = vpop.f32.mrf.mxu0  ;;  %v3675_v42 = vadd.f32 %v3496_v26, %v3245_v5  ;;  %v2821_v26 = vadd.f32 %v17677_v43, %v2391_v40 }
 0x1e5   : > { %20827 = vst [vmem:[#allocation74_spill] sm:$0xff] %v17817_v61  ;;  %v15034_v51 = vpop.f32.mrf.mxu1  ;;  %v17849_v35 = vpop.permute.xlu0 %4325 }
 0x1e6   : > { %v15087_v30 = vpop.f32.mrf.mxu0  ;;  %v3678_v12 = vadd.f32 %v15034_v51, %v17664_v36  ;;  %v1965_v51 = vadd.f32 %v17389_v53, %v17138_v62  ;;  %20830 = vst [vmem:[#allocation77_spill] sm:$0xff] %v17849_v35  ;;  %v17851_v31 = vpop.permute.xlu1 %4330  ;;  %v3251_v62 = vadd.f32 %v17679_v60, %v2821_v26 }
 0x1e7   : > { %v4106_v59 = vadd.f32 %v15087_v30, %v3676_v21  ;;  %v3506_v61 = vpop.f32.mrf.mxu1  ;;  %20831 = vst [vmem:[#allocation78_spill] sm:$0xff] %v17851_v31 }
 0x1e8   : > { %v3926_v17 = vpop.f32.mrf.mxu0  ;;  %v3677_v9 = vadd.f32 %v3506_v61, %v3247_v56 }
 0x1e9   : > { %v4149_v29 = vadd.f32 %v17828_v48, %v4106_v59  ;;  %v4105_v38 = vadd.f32 %v3926_v17, %v3675_v42  ;;  %v15037_v59 = vpop.f32.mrf.mxu1 }
 0x1ea   : > { %v15090_v24 = vpop.f32.mrf.mxu0  ;;  %v3680_v61 = vadd.f32 %v15037_v59, %v17674_v19 }
 0x1eb   : > { %v4185_v5 = vmax.f32 %v4149_v29, 0.0  ;;  %v4148_v37 = vadd.f32 %v17828_v48, %v4105_v38  ;;  %v4108_v21 = vadd.f32 %v15090_v24, %v3678_v12  ;;  %v3516_v24 = vpop.f32.mrf.mxu1  ;;  %v2393_v38 = vadd.f32 %v17382_v2, %v1963_v11 }
 0x1ec   : > { %v3936_v30 = vpop.f32.mrf.mxu0  ;;  %v3679_v29 = vadd.f32 %v3516_v24, %v3249_v32 }
 0x1ed   : > { %v4444_v36 = vmul.f32 %v17759_v7, %v4185_v5  ;;  %v4184_v42 = vmax.f32 %v4148_v37, 0.0  ;;  %v4151_v15 = vadd.f32 %v17828_v48, %v4108_v21  ;;  %v4107_v6 = vadd.f32 %v3936_v30, %v3677_v9  ;;  %v15040_v19 = vpop.f32.mrf.mxu1 }
 0x1ee   : > { %v15093_v17 = vpop.f32.mrf.mxu0  ;;  %v3682_v37 = vadd.f32 %v15040_v19, %v17681_v18  ;;  %v2395_v21 = vadd.f32 %v17391_v33, %v1965_v51  ;;  %v1967_v9 = vadd.f32 %v17556_v50, %v17152_v20  ;;  %v2823_v2 = vadd.f32 %v17684_v55, %v2393_v38  ;;  %v17870_v20 = vpop.permute.xlu0 %4335 }
 0x1ef   : > { %4480 = vst.msk [vmem:[#allocation2 + $0x1b] sm:$0xff] %vm4220_vm2, %v4444_v36  ;;  %v4443_v14 = vmul.f32 %v17746_v3, %v4184_v42  ;;  %v4187_v43 = vmax.f32 %v4151_v15, 0.0  ;;  %v4150_v41 = vadd.f32 %v17828_v48, %v4107_v6  ;;  %v4110_v53 = vadd.f32 %v15093_v17, %v3680_v61  ;;  %v3526_v11 = vpop.f32.mrf.mxu1  ;;  %20832 = vst [vmem:[#allocation79_spill] sm:$0xff] %v17870_v20  ;;  %v17872_v50 = vpop.permute.xlu1 %4340 }
 0x1f0   : > { %v3946_v56 = vpop.f32.mrf.mxu0  ;;  %v3681_v36 = vadd.f32 %v3526_v11, %v3251_v62  ;;  %v2825_v18 = vadd.f32 %v17691_v22, %v2395_v21  ;;  %20833 = vst [vmem:[#allocation80_spill] sm:$0xff] %v17872_v50  ;;  %v2397_v24 = vadd.f32 %v17558_v34, %v1967_v9 }
 0x1f1   : > { %4479 = vst.msk [vmem:[#allocation2 + $0x13] sm:$0xff] %vm4220_vm2, %v4443_v14  ;;  %v4446_v40 = vmul.f32 %v17761_v39, %v4187_v43  ;;  %v4186_v30 = vmax.f32 %v4150_v41, 0.0  ;;  %v4109_v5 = vadd.f32 %v3946_v56, %v3679_v29  ;;  %v4153_v60 = vadd.f32 %v17828_v48, %v4110_v53  ;;  %v15043_v42 = vpop.f32.mrf.mxu1  ;;  %v20834_v56 = vld [vmem:[#allocation16_spill] sm:$0xff]  ;;  %v20835_v14 = vld [vmem:[#allocation38_spill] sm:$0xff] }
 0x1f2   : > { %v15096_v12 = vpop.f32.mrf.mxu0  ;;  %v3684_v61 = vadd.f32 %v15043_v42, %v17688_v58  ;;  %v1969_v22 = vadd.f32 %v20834_v56, %v17166_v44  ;;  %v3253_v43 = vadd.f32 %v20835_v14, %v2823_v2  ;;  %v2827_v58 = vadd.f32 %v17698_v47, %v2397_v24  ;;  %v20836_v47 = vld [vmem:[#allocation17_spill] sm:$0xff]  ;;  %v17898_v42 = vpop.permute.xlu0 %4345 }
 0x1f3   : > { %4482 = vst.msk [vmem:[#allocation2 + $0x2b] sm:$0xff] %vm4220_vm2, %v4446_v40  ;;  %v4445_v26 = vmul.f32 %v17748_v57, %v4186_v30  ;;  %v4152_v59 = vadd.f32 %v17828_v48, %v4109_v5  ;;  %v4112_v17 = vadd.f32 %v15096_v12, %v3682_v37  ;;  %v4189_v33 = vmax.f32 %v4153_v60, 0.0  ;;  %v3536_v29 = vpop.f32.mrf.mxu1  ;;  %20839 = vst [vmem:[#allocation16_spill] sm:$0xff] %v17898_v42  ;;  %v20842_v56 = vld [vmem:[#allocation41_spill] sm:$0xff] }
 0x1f4   : > { %v3956_v32 = vpop.f32.mrf.mxu0  ;;  %v3255_v40 = vadd.f32 %v17693_v0, %v2825_v18  ;;  %v3683_v34 = vadd.f32 %v3536_v29, %v3253_v43 }
 0x1f5   : > { %4481 = vst.msk [vmem:[#allocation2 + $0x23] sm:$0xff] %vm4220_vm2, %v4445_v26  ;;  %v4188_v55 = vmax.f32 %v4152_v59, 0.0  ;;  %v4155_v6 = vadd.f32 %v17828_v48, %v4112_v17  ;;  %v4111_v51 = vadd.f32 %v3956_v32, %v3681_v36  ;;  %v4448_v41 = vmul.f32 %v17777_v1, %v4189_v33  ;;  %v15046_v44 = vpop.f32.mrf.mxu1  ;;  %v20837_v26 = vld [vmem:[#allocation5_spill] sm:$0xff]  ;;  %v20838_v59 = vld [vmem:[#allocation18_spill] sm:$0xff] }
 0x1f6   : > { %v15099_v15 = vpop.f32.mrf.mxu0  ;;  %v3686_v11 = vadd.f32 %v15046_v44, %v17695_v54  ;;  %v2399_v32 = vadd.f32 %v20836_v47, %v1969_v22  ;;  %v1971_v17 = vadd.f32 %v20838_v59, %v20837_v26  ;;  %v17900_v54 = vpop.permute.xlu1 %4350  ;;  %v20844_v44 = vld [vmem:[#allocation19_spill] sm:$0xff]  ;;  %v20846_v47 = vld [vmem:[#allocation20_spill] sm:$0xff]  ;;  %v20847_v26 = vld [vmem:[#allocation42_spill] sm:$0xff] }
 0x1f7   : > { %v4447_v62 = vmul.f32 %v17775_v49, %v4188_v55  ;;  %v4191_v53 = vmax.f32 %v4155_v6, 0.0  ;;  %v4154_v19 = vadd.f32 %v17828_v48, %v4111_v51  ;;  %v4114_v12 = vadd.f32 %v15099_v15, %v3684_v61  ;;  %4484 = vst.msk [vmem:[#allocation2 + $0x3b] sm:$0xff] %vm4220_vm2, %v4448_v41  ;;  %v3546_v18 = vpop.f32.mrf.mxu1  ;;  %20840 = vst [vmem:[#allocation38_spill] sm:$0xff] %v17900_v54  ;;  %v20841_v61 = vld [vmem:[#allocation39_spill] sm:$0xff] }
 0x1f8   : > { %v3966_v38 = vpop.f32.mrf.mxu0  ;;  %v4556_v5 = vld [vmem:[#allocation2 + $0x11] sm:$0xff]  ;;  %v4557_v21 = vld [vmem:[#allocation2 + $0x19] sm:$0xff]  ;;  %v3685_v51 = vadd.f32 %v3546_v18, %v3255_v40  ;;  %v3257_v24 = vadd.f32 %v20841_v61, %v2827_v58  ;;  %v2829_v22 = vadd.f32 %v20842_v56, %v2399_v32  ;;  %v17923_v61 = vpop.permute.xlu0 %4355 }
 0x1f9   : > { %v4518_v37 = vld [vmem:[#allocation2 + $0x10] sm:$0xff]  ;;  %4483 = vst.msk [vmem:[#allocation2 + $0x33] sm:$0xff] %vm4220_vm2, %v4447_v62  ;;  %v4450_v9 = vmul.f32 %v17792_v28, %v4191_v53  ;;  %v4190_v2 = vmax.f32 %v4154_v19, 0.0  ;;  %v4157_v60 = vadd.f32 %v17828_v48, %v4114_v12  ;;  %15146 = vmatprep.mubr.msk.f32.mxu1 %vm4220_vm2, %v4556_v5  ;;  %v4519_v0 = vld [vmem:[#allocation2 + $0x18] sm:$0xff]  ;;  %v4113_v36 = vadd.f32 %v3966_v38, %v3683_v34  ;;  %v15049_v43 = vpop.f32.mrf.mxu1 }
 0x1fa   : > { %v15102_v30 = vpop.f32.mrf.mxu0  ;;  %15204 = vmatprep.mubr.msk.f32.mxu0 %vm4220_vm2, %v4518_v37  ;;  %15147 = vmatmul.mubr.msk.f32.gmra.mxu1 %vm4220_vm2, %v4557_v21  ;;  %v20843_v34 = vld [vmem:[#allocation40_spill] sm:$0xff]  ;;  %v3259_v59 = vadd.f32 %v20847_v26, %v2829_v22  ;;  %20849 = vst [vmem:[#allocation17_spill] sm:$0xff] %v17923_v61  ;;  %v17925_v56 = vpop.permute.xlu1 %4360 }
 0x1fb   : > { %15205 = vmatmul.mubr.msk.f32.gmra.mxu0 %vm4220_vm2, %v4519_v0  ;;  %4486 = vst.msk [vmem:[#allocation2 + $0x4b] sm:$0xff] %vm4220_vm2, %v4450_v9  ;;  %v4449_v15 = vmul.f32 %v17790_v45, %v4190_v2  ;;  %v4193_v55 = vmax.f32 %v4157_v60, 0.0  ;;  %v4116_v6 = vadd.f32 %v15102_v30, %v3686_v11  ;;  %v4156_v14 = vadd.f32 %v17828_v48, %v4113_v36  ;;  %v3556_v37 = vpop.f32.mrf.mxu1  ;;  %v20845_v0 = vld [vmem:[#allocation6_spill] sm:$0xff] }
 0x1fc   : > { %v3976_v33 = vpop.f32.mrf.mxu0  ;;  %v4558_v29 = vld [vmem:[#allocation2 + $0x21] sm:$0xff]  ;;  %v4559_v62 = vld [vmem:[#allocation2 + $0x29] sm:$0xff]  ;;  %v3688_v40 = vadd.f32 %v15049_v43, %v20843_v34  ;;  %v2401_v30 = vadd.f32 %v20844_v44, %v1971_v17  ;;  %v3687_v11 = vadd.f32 %v3556_v37, %v3257_v24  ;;  %v1973_v32 = vadd.f32 %v20846_v47, %v20845_v0  ;;  %20850 = vst [vmem:[#allocation5_spill] sm:$0xff] %v17925_v56  ;;  %v20854_v37 = vld [vmem:[#allocation21_spill] sm:$0xff] }
 0x1fd   : > { %v4520_v38 = vld [vmem:[#allocation2 + $0x20] sm:$0xff]  ;;  %4485 = vst.msk [vmem:[#allocation2 + $0x43] sm:$0xff] %vm4220_vm2, %v4449_v15  ;;  %v4452_v53 = vmul.f32 %v17815_v13, %v4193_v55  ;;  %v4159_v19 = vadd.f32 %v17828_v48, %v4116_v6  ;;  %v4115_v12 = vadd.f32 %v3976_v33, %v3685_v51  ;;  %15149 = vmatprep.mubr.msk.f32.mxu1 %vm4220_vm2, %v4558_v29  ;;  %v4521_v58 = vld [vmem:[#allocation2 + $0x28] sm:$0xff]  ;;  %v4192_v5 = vmax.f32 %v4156_v14, 0.0  ;;  %v20848_v17 = vld [vmem:[#allocation44_spill] sm:$0xff]  ;;  %v15052_v33 = vpop.f32.mrf.mxu1 }
 0x1fe   : > { %v15105_v41 = vpop.f32.mrf.mxu0  ;;  %15207 = vmatprep.mubr.msk.f32.mxu0 %vm4220_vm2, %v4520_v38  ;;  %15150 = vmatmul.mubr.msk.f32.gmra.mxu1 %vm4220_vm2, %v4559_v62  ;;  %v2831_v36 = vadd.f32 %v20848_v17, %v2401_v30  ;;  %v20851_v29 = vld [vmem:[#allocation7_spill] sm:$0xff]  ;;  %v20852_v38 = vld [vmem:[#allocation22_spill] sm:$0xff] }
 0x1ff   : > { %4488 = vst.msk [vmem:[#allocation2 + $0x5b] sm:$0xff] %vm4220_vm2, %v4452_v53  ;;  %v4195_v9 = vmax.f32 %v4159_v19, 0.0  ;;  %v4158_v2 = vadd.f32 %v17828_v48, %v4115_v12  ;;  %v4118_v60 = vadd.f32 %v15105_v41, %v3688_v40  ;;  %15208 = vmatmul.mubr.msk.f32.gmra.mxu0 %vm4220_vm2, %v4521_v58  ;;  %v4451_v18 = vmul.f32 %v17813_v46, %v4192_v5  ;;  %v20853_v53 = vld [vmem:[#allocation43_spill] sm:$0xff]  ;;  %v3566_v12 = vpop.f32.mrf.mxu1  ;;  %v17943_v5 = vld [vmem:[%s20681_s3 + $0x58] sm:$0xff] }
 0x200   : > { %v3986_v21 = vpop.f32.mrf.mxu0  ;;  %v4560_v55 = vld [vmem:[#allocation2 + $0x31] sm:$0xff]  ;;  %v4561_v51 = vld [vmem:[#allocation2 + $0x39] sm:$0xff]  ;;  %v1975_v62 = vadd.f32 %v20852_v38, %v20851_v29  ;;  %v3690_v19 = vadd.f32 %v15052_v33, %v20853_v53  ;;  %v3689_v30 = vadd.f32 %v3566_v12, %v3259_v59  ;;  %15429 = vmatprep.subr.mxu0 %v17943_v5  ;;  %v17959_v38 = vpop.permute.xlu0 %4365 }
 0x201   : > { %v4522_v6 = vld [vmem:[#allocation2 + $0x30] sm:$0xff]  ;;  %v4454_v24 = vmul.f32 %v17834_v16, %v4195_v9  ;;  %v4194_v14 = vmax.f32 %v4158_v2, 0.0  ;;  %v4161_v43 = vadd.f32 %v17828_v48, %v4118_v60  ;;  %v4117_v41 = vadd.f32 %v3986_v21, %v3687_v11  ;;  %15152 = vmatprep.mubr.msk.f32.mxu1 %vm4220_vm2, %v4560_v55  ;;  %v4523_v22 = vld [vmem:[#allocation2 + $0x38] sm:$0xff]  ;;  %4487 = vst.msk [vmem:[#allocation2 + $0x53] sm:$0xff] %vm4220_vm2, %v4451_v18  ;;  %v15055_v26 = vpop.f32.mrf.mxu1  ;;  %v17961_v53 = vpop.permute.xlu1 %4370 }
 0x202   : > { %v15108_v15 = vpop.f32.mrf.mxu0  ;;  %15210 = vmatprep.mubr.msk.f32.mxu0 %vm4220_vm2, %v4522_v6  ;;  %15153 = vmatmul.mubr.msk.f32.gmra.mxu1 %vm4220_vm2, %v4561_v51  ;;  %v2403_v21 = vadd.f32 %v20854_v37, %v1973_v32  ;;  %v20855_v9 = vld [vmem:[#allocation8_spill] sm:$0xff]  ;;  %v20857_v11 = vld [vmem:[#allocation45_spill] sm:$0xff]  ;;  %v3692_v32 = vadd.f32 %v15055_v26, %v17725_v63  ;;  %20860 = vst [vmem:[#allocation18_spill] sm:$0xff] %v17959_v38  ;;  %20861 = vst [vmem:[#allocation39_spill] sm:$0xff] %v17961_v53 }
 0x203   : > { %4490 = vst.msk [vmem:[#allocation2 + $0x6b] sm:$0xff] %vm4220_vm2, %v4454_v24  ;;  %v4453_v40 = vmul.f32 %v17832_v10, %v4194_v14  ;;  %v4197_v58 = vmax.f32 %v4161_v43, 0.0  ;;  %v4160_v44 = vadd.f32 %v17828_v48, %v4117_v41  ;;  %15211 = vmatmul.mubr.msk.f32.gmra.mxu0 %vm4220_vm2, %v4523_v22  ;;  %v20856_v2 = vld [vmem:[#allocation24_spill] sm:$0xff]  ;;  %v3261_v0 = vadd.f32 %v20857_v11, %v2831_v36  ;;  %v20859_v14 = vld [vmem:[#allocation46_spill] sm:$0xff]  ;;  %v3576_v22 = vpop.f32.mrf.mxu1 }
 0x204   : > { %v3996_v34 = vpop.f32.mrf.mxu0  ;;  %v1977_v60 = vadd.f32 %v20856_v2, %v20855_v9  ;;  %v4120_v47 = vadd.f32 %v15108_v15, %v3690_v19  ;;  %v4562_v18 = vld [vmem:[#allocation2 + $0x41] sm:$0xff]  ;;  %v4563_v59 = vld [vmem:[#allocation2 + $0x49] sm:$0xff]  ;;  %v2833_v43 = vadd.f32 %v20859_v14, %v2403_v21 }
 0x205   : > { %v4524_v33 = vld [vmem:[#allocation2 + $0x40] sm:$0xff]  ;;  %4489 = vst.msk [vmem:[#allocation2 + $0x63] sm:$0xff] %vm4220_vm2, %v4453_v40  ;;  %v4456_v55 = vmul.f32 %v17851_v31, %v4197_v58  ;;  %v4196_v6 = vmax.f32 %v4160_v44, 0.0  ;;  %v4119_v51 = vadd.f32 %v3996_v34, %v3689_v30  ;;  %15155 = vmatprep.mubr.msk.f32.mxu1 %vm4220_vm2, %v4562_v18  ;;  %v4525_v36 = vld [vmem:[#allocation2 + $0x48] sm:$0xff]  ;;  %v20862_v34 = vld [vmem:[#allocation25_spill] sm:$0xff]  ;;  %v15058_v37 = vpop.f32.mrf.mxu1 }
 0x206   : > { %v15111_v17 = vpop.f32.mrf.mxu0  ;;  %15213 = vmatprep.mubr.msk.f32.mxu0 %vm4220_vm2, %v4524_v33  ;;  %v20858_v15 = vld [vmem:[#allocation23_spill] sm:$0xff]  ;;  %v4163_v41 = vadd.f32 %v17828_v48, %v4120_v47  ;;  %15156 = vmatmul.mubr.msk.f32.gmra.mxu1 %vm4220_vm2, %v4563_v59  ;;  %v2407_v40 = vadd.f32 %v20862_v34, %v1977_v60  ;;  %v20863_v58 = vld [vmem:[#allocation49_spill] sm:$0xff]  ;;  %v20864_v47 = vld [vmem:[#allocation48_spill] sm:$0xff] }
 0x207   : > { %v2405_v24 = vadd.f32 %v20858_v15, %v1975_v62  ;;  %4492 = vst.msk [vmem:[#allocation2 + $0x7b] sm:$0xff] %vm4220_vm2, %v4456_v55  ;;  %v4455_v63 = vmul.f32 %v17849_v35, %v4196_v6  ;;  %v4162_v19 = vadd.f32 %v17828_v48, %v4119_v51  ;;  %v4122_v12 = vadd.f32 %v15111_v17, %v3692_v32  ;;  %v20865_v33 = vld [vmem:[#allocation9_spill] sm:$0xff]  ;;  %v20866_v59 = vld [vmem:[#allocation26_spill] sm:$0xff]  ;;  %v20867_v60 = vld [vmem:[#allocation47_spill] sm:$0xff]  ;;  %v3586_v32 = vpop.f32.mrf.mxu1 }
 0x208   : > { %v4006_v29 = vpop.f32.mrf.mxu0  ;;  %v3691_v62 = vadd.f32 %v3576_v22, %v3261_v0  ;;  %15214 = vmatmul.mubr.msk.f32.gmra.mxu0 %vm4220_vm2, %v4525_v36  ;;  %v4199_v30 = vmax.f32 %v4163_v41, 0.0  ;;  %v3694_v26 = vadd.f32 %v15058_v37, %v20864_v47  ;;  %v4564_v18 = vld [vmem:[#allocation2 + $0x51] sm:$0xff]  ;;  %v4565_v0 = vld [vmem:[#allocation2 + $0x59] sm:$0xff]  ;;  %v1979_v55 = vadd.f32 %v20866_v59, %v20865_v33 }
 0x209   : > { %v2835_v44 = vadd.f32 %v20863_v58, %v2405_v24  ;;  %4491 = vst.msk [vmem:[#allocation2 + $0x73] sm:$0xff] %vm4220_vm2, %v4455_v63  ;;  %v4198_v9 = vmax.f32 %v4162_v19, 0.0  ;;  %v4165_v2 = vadd.f32 %v17828_v48, %v4122_v12  ;;  %v4526_v17 = vld [vmem:[#allocation2 + $0x50] sm:$0xff]  ;;  %v3263_v6 = vadd.f32 %v20867_v60, %v2833_v43  ;;  %15158 = vmatprep.mubr.msk.f32.mxu1 %vm4220_vm2, %v4564_v18  ;;  %v4527_v15 = vld [vmem:[#allocation2 + $0x58] sm:$0xff]  ;;  %v20868_v43 = vld [vmem:[#allocation50_spill] sm:$0xff] }
 0x20a   : > { %v15114_v21 = vpop.f32.mrf.mxu0  ;;  %v4121_v11 = vadd.f32 %v4006_v29, %v3691_v62  ;;  %v4458_v51 = vmul.f32 %v17872_v50, %v4199_v30  ;;  %15216 = vmatprep.mubr.msk.f32.mxu0 %vm4220_vm2, %v4526_v17  ;;  %15159 = vmatmul.mubr.msk.f32.gmra.mxu1 %vm4220_vm2, %v4565_v0  ;;  %v20869_v63 = vld [vmem:[#allocation52_spill] sm:$0xff]  ;;  %v15061_v62 = vpop.f32.mrf.mxu1  ;;  %v20873_v18 = vld [vmem:[#allocation27_spill] sm:$0xff]  ;;  %v20874_v0 = vld [vmem:[#allocation10_spill] sm:$0xff] }
 0x20b   : > { %v4457_v24 = vmul.f32 %v17870_v20, %v4198_v9  ;;  %v4201_v14 = vmax.f32 %v4165_v2, 0.0  ;;  %v4124_v22 = vadd.f32 %v15114_v21, %v3694_v26  ;;  %v3265_v29 = vadd.f32 %v20868_v43, %v2835_v44  ;;  %v17985_v9 = vpop.permute.xlu0 %4375  ;;  %v17987_v2 = vpop.permute.xlu1 %4380  ;;  %v20875_v33 = vld [vmem:[#allocation28_spill] sm:$0xff] }
 0x20c   : > { %v4016_v36 = vpop.f32.mrf.mxu0  ;;  %v4164_v41 = vadd.f32 %v17828_v48, %v4121_v11  ;;  %15217 = vmatmul.mubr.msk.f32.gmra.mxu0 %vm4220_vm2, %v4527_v15  ;;  %v2837_v19 = vadd.f32 %v20869_v63, %v2407_v40  ;;  %4494 = vst.msk [vmem:[#allocation2 + $0x8b] sm:$0xff] %vm4220_vm2, %v4458_v51  ;;  %v3693_v12 = vadd.f32 %v3586_v32, %v3263_v6  ;;  %v4566_v58 = vld [vmem:[#allocation2 + $0x61] sm:$0xff]  ;;  %v4567_v37 = vld [vmem:[#allocation2 + $0x69] sm:$0xff]  ;;  %20870 = vst [vmem:[#allocation41_spill] sm:$0xff] %v17985_v9  ;;  %v3596_v6 = vpop.f32.mrf.mxu1 }
 0x20d   : > { %v4528_v30 = vld [vmem:[#allocation2 + $0x60] sm:$0xff]  ;;  %20871 = vst [vmem:[#allocation40_spill] sm:$0xff] %v17987_v2  ;;  %4493 = vst.msk [vmem:[#allocation2 + $0x83] sm:$0xff] %vm4220_vm2, %v4457_v24  ;;  %v4460_v21 = vmul.f32 %v17900_v54, %v4201_v14  ;;  %v4167_v44 = vadd.f32 %v17828_v48, %v4124_v22  ;;  %v20872_v40 = vld [vmem:[#allocation51_spill] sm:$0xff]  ;;  %15161 = vmatprep.mubr.msk.f32.mxu1 %vm4220_vm2, %v4566_v58  ;;  %v2409_v17 = vadd.f32 %v20873_v18, %v1979_v55 }
 0x20e   : > { %v15117_v34 = vpop.f32.mrf.mxu0  ;;  %v4200_v11 = vmax.f32 %v4164_v41, 0.0  ;;  %v3696_v47 = vadd.f32 %v15061_v62, %v20872_v40  ;;  %15219 = vmatprep.mubr.msk.f32.mxu0 %vm4220_vm2, %v4528_v30  ;;  %v4529_v26 = vld [vmem:[#allocation2 + $0x68] sm:$0xff]  ;;  %v1981_v59 = vadd.f32 %v20875_v33, %v20874_v0  ;;  %v4123_v60 = vadd.f32 %v4016_v36, %v3693_v12  ;;  %15162 = vmatmul.mubr.msk.f32.gmra.mxu1 %vm4220_vm2, %v4567_v37  ;;  %v20876_v41 = vld [vmem:[#allocation53_spill] sm:$0xff]  ;;  %v20877_v55 = vld [vmem:[#allocation56_spill] sm:$0xff]  ;;  %v15064_v36 = vpop.f32.mrf.mxu1 }
 0x20f   : > { %4496 = vst.msk [vmem:[#allocation2 + $0x9b] sm:$0xff] %vm4220_vm2, %v4460_v21  ;;  %v4203_v15 = vmax.f32 %v4167_v44, 0.0  ;;  %v3695_v14 = vadd.f32 %v3596_v6, %v3265_v29  ;;  %v3267_v22 = vadd.f32 %v20876_v41, %v2837_v19  ;;  %v2839_v43 = vadd.f32 %v20877_v55, %v2409_v17  ;;  %v20878_v21 = vld [vmem:[#allocation55_spill] sm:$0xff]  ;;  %v20879_v44 = vld [vmem:[#allocation29_spill] sm:$0xff]  ;;  %v18012_v17 = vpop.permute.xlu0 %4385  ;;  %v18014_v0 = vpop.permute.xlu1 %4390  ;;  %v20885_v41 = vld [vmem:[#allocation60_spill] sm:$0xff] }
 0x210   : > { %v4026_v51 = vpop.f32.mrf.mxu0  ;;  %v4459_v32 = vmul.f32 %v17898_v42, %v4200_v11  ;;  %v4126_v24 = vadd.f32 %v15117_v34, %v3696_v47  ;;  %15220 = vmatmul.mubr.msk.f32.gmra.mxu0 %vm4220_vm2, %v4529_v26  ;;  %v4166_v63 = vadd.f32 %v17828_v48, %v4123_v60  ;;  %v4568_v62 = vld [vmem:[#allocation2 + $0x71] sm:$0xff]  ;;  %v4569_v30 = vld [vmem:[#allocation2 + $0x79] sm:$0xff]  ;;  %v3698_v11 = vadd.f32 %v15064_v36, %v20878_v21  ;;  %v3606_v26 = vpop.f32.mrf.mxu1 }
 0x211   : > { %v4530_v58 = vld [vmem:[#allocation2 + $0x70] sm:$0xff]  ;;  %v4462_v34 = vmul.f32 %v17925_v56, %v4203_v15  ;;  %v4125_v37 = vadd.f32 %v4026_v51, %v3695_v14  ;;  %15164 = vmatprep.mubr.msk.f32.mxu1 %vm4220_vm2, %v4568_v62  ;;  %v4531_v19 = vld [vmem:[#allocation2 + $0x78] sm:$0xff]  ;;  %v2411_v40 = vadd.f32 %v20879_v44, %v1981_v59  ;;  %20880 = vst [vmem:[#allocation19_spill] sm:$0xff] %v18012_v17  ;;  %20881 = vst [vmem:[#allocation6_spill] sm:$0xff] %v18014_v0 }
 0x212   : > { %v15120_v12 = vpop.f32.mrf.mxu0  ;;  %4495 = vst.msk [vmem:[#allocation2 + $0x93] sm:$0xff] %vm4220_vm2, %v4459_v32  ;;  %v4169_v29 = vadd.f32 %v17828_v48, %v4126_v24  ;;  %v4202_v47 = vmax.f32 %v4166_v63, 0.0  ;;  %15222 = vmatprep.mubr.msk.f32.mxu0 %vm4220_vm2, %v4530_v58  ;;  %v3697_v51 = vadd.f32 %v3606_v26, %v3267_v22  ;;  %15165 = vmatmul.mubr.msk.f32.gmra.mxu1 %vm4220_vm2, %v4569_v30  ;;  %v20882_v59 = vld [vmem:[#allocation11_spill] sm:$0xff]  ;;  %v20883_v32 = vld [vmem:[#allocation30_spill] sm:$0xff]  ;;  %v20884_v24 = vld [vmem:[#allocation57_spill] sm:$0xff]  ;;  %v15067_v36 = vpop.f32.mrf.mxu1 }
 0x213   : > { %4498 = vst.msk [vmem:[#allocation2 + $0xab] sm:$0xff] %vm4220_vm2, %v4462_v34  ;;  %v4168_v60 = vadd.f32 %v17828_v48, %v4125_v37  ;;  %v4128_v6 = vadd.f32 %v15120_v12, %v3698_v11  ;;  %v1983_v15 = vadd.f32 %v20883_v32, %v20882_v59  ;;  %v3269_v14 = vadd.f32 %v20884_v24, %v2839_v43  ;;  %v20886_v21 = vld [vmem:[#allocation4_spill] sm:$0xff]  ;;  %v20887_v11 = vld [vmem:[#allocation14_spill] sm:$0xff]  ;;  %v20891_v24 = vld [vmem:[#allocation31_spill] sm:$0xff] }
 0x214   : > { %v4036_v18 = vpop.f32.mrf.mxu0  ;;  %v4205_v33 = vmax.f32 %v4169_v29, 0.0  ;;  %15223 = vmatmul.mubr.msk.f32.gmra.mxu0 %vm4220_vm2, %v4531_v19  ;;  %v2841_v55 = vadd.f32 %v20885_v41, %v2411_v40  ;;  %v4461_v63 = vmul.f32 %v17923_v61, %v4202_v47  ;;  %v4570_v58 = vld [vmem:[#allocation2 + $0x81] sm:$0xff]  ;;  %v4571_v29 = vld [vmem:[#allocation2 + $0x89] sm:$0xff]  ;;  %v1123_v19 = vadd.f32 %v20887_v11, %v20886_v21 }
 0x215   : > { %v4532_v34 = vld [vmem:[#allocation2 + $0x80] sm:$0xff]  ;;  %v4204_v12 = vmax.f32 %v4168_v60, 0.0  ;;  %v4171_v30 = vadd.f32 %v17828_v48, %v4128_v6  ;;  %v4127_v37 = vadd.f32 %v4036_v18, %v3697_v51  ;;  %15167 = vmatprep.mubr.msk.f32.mxu1 %vm4220_vm2, %v4570_v58  ;;  %v4533_v43 = vld [vmem:[#allocation2 + $0x88] sm:$0xff]  ;;  %v20888_v44 = vld [vmem:[#allocation12_spill] sm:$0xff]  ;;  %v2413_v41 = vadd.f32 %v20891_v24, %v1983_v15 }
 0x216   : > { %v15123_v62 = vpop.f32.mrf.mxu0  ;;  %v4464_v22 = vmul.f32 %v17961_v53, %v4205_v33  ;;  %15225 = vmatprep.mubr.msk.f32.mxu0 %vm4220_vm2, %v4532_v34  ;;  %v20889_v40 = vld [vmem:[#allocation32_spill] sm:$0xff]  ;;  %4497 = vst.msk [vmem:[#allocation2 + $0xa3] sm:$0xff] %vm4220_vm2, %v4461_v63  ;;  %v20890_v26 = vld [vmem:[#allocation58_spill] sm:$0xff]  ;;  %v3616_v33 = vpop.f32.mrf.mxu1  ;;  %15168 = vmatmul.mubr.msk.f32.gmra.mxu1 %vm4220_vm2, %v4571_v29  ;;  %v20892_v58 = vld [vmem:[#allocation13_spill] sm:$0xff] }
 0x217   : > { %v1985_v47 = vadd.f32 %v20889_v40, %v20888_v44  ;;  %v3700_v59 = vadd.f32 %v15067_v36, %v20890_v26  ;;  %v4463_v18 = vmul.f32 %v17959_v38, %v4204_v12  ;;  %v4207_v6 = vmax.f32 %v4171_v30, 0.0  ;;  %v20893_v63 = vld [vmem:[#allocation34_spill] sm:$0xff]  ;;  %v20894_v36 = vld [vmem:[#allocation61_spill] sm:$0xff]  ;;  %v18044_v26 = vpop.permute.xlu0 %4395  ;;  %v20899_v24 = vld [vmem:[#allocation63_spill] sm:$0xff] }
 0x218   : > { %v4046_v60 = vpop.f32.mrf.mxu0  ;;  %4500 = vst.msk [vmem:[#allocation2 + $0xbb] sm:$0xff] %vm4220_vm2, %v4464_v22  ;;  %v4170_v51 = vadd.f32 %v17828_v48, %v4127_v37  ;;  %v3699_v32 = vadd.f32 %v3616_v33, %v3269_v14  ;;  %15226 = vmatmul.mubr.msk.f32.gmra.mxu0 %vm4220_vm2, %v4533_v43  ;;  %v1987_v34 = vadd.f32 %v20893_v63, %v20892_v58  ;;  %v15070_v44 = vpop.f32.mrf.mxu1  ;;  %20895 = vst [vmem:[#allocation20_spill] sm:$0xff] %v18044_v26  ;;  %v20897_v43 = vld [vmem:[#allocation62_spill] sm:$0xff] }
 0x219   : > { %v3271_v21 = vadd.f32 %v20894_v36, %v2841_v55  ;;  %v4130_v11 = vadd.f32 %v15123_v62, %v3700_v59  ;;  %v4572_v40 = vld [vmem:[#allocation2 + $0x91] sm:$0xff]  ;;  %v4573_v30 = vld [vmem:[#allocation2 + $0x99] sm:$0xff]  ;;  %v18046_v14 = vpop.permute.xlu1 %4400  ;;  %4499 = vst.msk [vmem:[#allocation2 + $0xb3] sm:$0xff] %vm4220_vm2, %v4463_v18  ;;  %v4466_v29 = vmul.f32 %v17987_v2, %v4207_v6  ;;  %v3702_v33 = vadd.f32 %v15070_v44, %v20897_v43 }
 0x21a   : > { %v15126_v22 = vpop.f32.mrf.mxu0  ;;  %v4534_v12 = vld [vmem:[#allocation2 + $0x90] sm:$0xff]  ;;  %20896 = vst [vmem:[#allocation42_spill] sm:$0xff] %v18046_v14  ;;  %v4206_v15 = vmax.f32 %v4170_v51, 0.0  ;;  %v4129_v37 = vadd.f32 %v4046_v60, %v3699_v32  ;;  %15170 = vmatprep.mubr.msk.f32.mxu1 %vm4220_vm2, %v4572_v40  ;;  %v4535_v55 = vld [vmem:[#allocation2 + $0x98] sm:$0xff]  ;;  %v2843_v58 = vadd.f32 %v20899_v24, %v2413_v41  ;;  %v3626_v36 = vpop.f32.mrf.mxu1  ;;  %v20900_v32 = vld [vmem:[#allocation15_spill] sm:$0xff] }
 0x21b   : > { %15228 = vmatprep.mubr.msk.f32.mxu0 %vm4220_vm2, %v4534_v12  ;;  %v20898_v62 = vld [vmem:[#allocation33_spill] sm:$0xff]  ;;  %v4173_v63 = vadd.f32 %v17828_v48, %v4130_v11  ;;  %4502 = vst.msk [vmem:[#allocation2 + $0xcb] sm:$0xff] %vm4220_vm2, %v4466_v29  ;;  %v4132_v6 = vadd.f32 %v15126_v22, %v3702_v33  ;;  %v3701_v51 = vadd.f32 %v3626_v36, %v3271_v21  ;;  %v20901_v40 = vld [vmem:[#allocation35_spill] sm:$0xff]  ;;  %v20902_v33 = vld [vmem:[#allocation36_spill] sm:$0xff]  ;;  %v18072_v36 = vpop.permute.xlu0 %4405 }
 0x21c   : > { %v2415_v59 = vadd.f32 %v20898_v62, %v1985_v47  ;;  %v4056_v38 = vpop.f32.mrf.mxu0  ;;  %v4465_v18 = vmul.f32 %v17985_v9, %v4206_v15  ;;  %v4172_v60 = vadd.f32 %v17828_v48, %v4129_v37  ;;  %15171 = vmatmul.mubr.msk.f32.gmra.mxu1 %vm4220_vm2, %v4573_v30  ;;  %v1559_v44 = vadd.f32 %v20900_v32, %v1123_v19  ;;  %v15073_v11 = vpop.f32.mrf.mxu1  ;;  %v20903_v62 = vld [vmem:[#allocation64_spill] sm:$0xff]  ;;  %v20907_v32 = vld [vmem:[#allocation71_spill] sm:$0xff] }
 0x21d   : > { %v2417_v47 = vadd.f32 %v20901_v40, %v1987_v34  ;;  %v4209_v12 = vmax.f32 %v4173_v63, 0.0  ;;  %15229 = vmatmul.mubr.msk.f32.gmra.mxu0 %vm4220_vm2, %v4535_v55  ;;  %v4175_v15 = vadd.f32 %v17828_v48, %v4132_v6  ;;  %v4131_v22 = vadd.f32 %v4056_v38, %v3701_v51  ;;  %v4574_v30 = vld [vmem:[#allocation2 + $0xa1] sm:$0xff]  ;;  %v4575_v19 = vld [vmem:[#allocation2 + $0xa9] sm:$0xff]  ;;  %20904 = vst [vmem:[#allocation44_spill] sm:$0xff] %v18072_v36  ;;  %v18074_v38 = vpop.permute.xlu1 %4410 }
 0x21e   : > { %v2845_v41 = vadd.f32 %v17782_v25, %v2415_v59  ;;  %v15129_v43 = vpop.f32.mrf.mxu0  ;;  %4501 = vst.msk [vmem:[#allocation2 + $0xc3] sm:$0xff] %vm4220_vm2, %v4465_v18  ;;  %v4208_v29 = vmax.f32 %v4172_v60, 0.0  ;;  %v3704_v21 = vadd.f32 %v15073_v11, %v17779_v27  ;;  %v4536_v37 = vld [vmem:[#allocation2 + $0xa0] sm:$0xff]  ;;  %v1989_v34 = vadd.f32 %v20902_v33, %v1559_v44  ;;  %15173 = vmatprep.mubr.msk.f32.mxu1 %vm4220_vm2, %v4574_v30  ;;  %v3636_v55 = vpop.f32.mrf.mxu1  ;;  %v4537_v63 = vld [vmem:[#allocation2 + $0xa8] sm:$0xff] }
 0x21f   : > { %v3273_v25 = vadd.f32 %v20903_v62, %v2843_v58  ;;  %v4468_v59 = vmul.f32 %v18014_v0, %v4209_v12  ;;  %15231 = vmatprep.mubr.msk.f32.mxu0 %vm4220_vm2, %v4536_v37  ;;  %20905 = vst [vmem:[#allocation7_spill] sm:$0xff] %v18074_v38  ;;  %v4211_v18 = vmax.f32 %v4175_v15, 0.0  ;;  %v4174_v60 = vadd.f32 %v17828_v48, %v4131_v22  ;;  %v20906_v58 = vld [vmem:[#allocation67_spill] sm:$0xff] }
 0x220   : > { %v4066_v24 = vpop.f32.mrf.mxu0  ;;  %v4467_v27 = vmul.f32 %v18012_v17, %v4208_v29  ;;  %v4134_v6 = vadd.f32 %v15129_v43, %v3704_v21  ;;  %15174 = vmatmul.mubr.msk.f32.gmra.mxu1 %vm4220_vm2, %v4575_v19  ;;  %v3275_v51 = vadd.f32 %v20906_v58, %v2845_v41  ;;  %v2847_v44 = vadd.f32 %v20907_v32, %v2417_v47  ;;  %v15076_v12 = vpop.f32.mrf.mxu1  ;;  %v4576_v30 = vld [vmem:[#allocation2 + $0xb1] sm:$0xff]  ;;  %v4577_v29 = vld [vmem:[#allocation2 + $0xb9] sm:$0xff] }
 0x221   : > { %4504 = vst.msk [vmem:[#allocation2 + $0xdb] sm:$0xff] %vm4220_vm2, %v4468_v59  ;;  %v3703_v40 = vadd.f32 %v3636_v55, %v3273_v25  ;;  %15232 = vmatmul.mubr.msk.f32.gmra.mxu0 %vm4220_vm2, %v4537_v63  ;;  %v4538_v37 = vld [vmem:[#allocation2 + $0xb0] sm:$0xff]  ;;  %v4470_v43 = vmul.f32 %v18046_v14, %v4211_v18  ;;  %v4210_v15 = vmax.f32 %v4174_v60, 0.0  ;;  %15176 = vmatprep.mubr.msk.f32.mxu1 %vm4220_vm2, %v4576_v30  ;;  %v4539_v47 = vld [vmem:[#allocation2 + $0xb8] sm:$0xff]  ;;  %v18097_v30 = vpop.permute.xlu0 %4415 }
 0x222   : > { %v15132_v11 = vpop.f32.mrf.mxu0  ;;  %4503 = vst.msk [vmem:[#allocation2 + $0xd3] sm:$0xff] %vm4220_vm2, %v4467_v27  ;;  %v4177_v22 = vadd.f32 %v17828_v48, %v4134_v6  ;;  %v20908_v41 = vld [vmem:[#allocation68_spill] sm:$0xff]  ;;  %15234 = vmatprep.mubr.msk.f32.mxu0 %vm4220_vm2, %v4538_v37  ;;  %v20909_v19 = vld [vmem:[#allocation37_spill] sm:$0xff]  ;;  %v3646_v25 = vpop.f32.mrf.mxu1  ;;  %v3277_v60 = vadd.f32 %v17797_v8, %v2847_v44  ;;  %20910 = vst [vmem:[#allocation22_spill] sm:$0xff] %v18097_v30 }
 0x223   : > { %v3706_v21 = vadd.f32 %v15076_v12, %v20908_v41  ;;  %v2419_v33 = vadd.f32 %v20909_v19, %v1989_v34  ;;  %v4133_v62 = vadd.f32 %v4066_v24, %v3703_v40  ;;  %4506 = vst.msk [vmem:[#allocation2 + $0xeb] sm:$0xff] %vm4220_vm2, %v4470_v43  ;;  %v4469_v55 = vmul.f32 %v18044_v26, %v4210_v15  ;;  %v18099_v37 = vpop.permute.xlu1 %4420 }
 0x224   : > { %v4076_v59 = vpop.f32.mrf.mxu0  ;;  %v4213_v63 = vmax.f32 %v4177_v22, 0.0  ;;  %v3705_v18 = vadd.f32 %v3646_v25, %v3275_v51  ;;  %15177 = vmatmul.mubr.msk.f32.gmra.mxu1 %vm4220_vm2, %v4577_v29  ;;  %v15079_v34 = vpop.f32.mrf.mxu1  ;;  %20911 = vst [vmem:[#allocation43_spill] sm:$0xff] %v18099_v37 }
 0x225   : > { %v4136_v27 = vadd.f32 %v15132_v11, %v3706_v21  ;;  %v2849_v6 = vadd.f32 %v17808_v23, %v2419_v33  ;;  %v4176_v58 = vadd.f32 %v17828_v48, %v4133_v62  ;;  %15235 = vmatmul.mubr.msk.f32.gmra.mxu0 %vm4220_vm2, %v4539_v47  ;;  %v4578_v32 = vld [vmem:[#allocation2 + $0xc1] sm:$0xff]  ;;  %v4579_v12 = vld [vmem:[#allocation2 + $0xc9] sm:$0xff]  ;;  %4505 = vst.msk [vmem:[#allocation2 + $0xe3] sm:$0xff] %vm4220_vm2, %v4469_v55 }
 0x226   : > { %v15135_v24 = vpop.f32.mrf.mxu0  ;;  %v4540_v40 = vld [vmem:[#allocation2 + $0xc0] sm:$0xff]  ;;  %v4472_v51 = vmul.f32 %v18074_v38, %v4213_v63  ;;  %v4135_v23 = vadd.f32 %v4076_v59, %v3705_v18  ;;  %v3708_v44 = vadd.f32 %v15079_v34, %v17802_v4  ;;  %15179 = vmatprep.mubr.msk.f32.mxu1 %vm4220_vm2, %v4578_v32  ;;  %v4541_v11 = vld [vmem:[#allocation2 + $0xc8] sm:$0xff]  ;;  %v3656_v43 = vpop.f32.mrf.mxu1 }
 0x227   : > { %v4179_v8 = vadd.f32 %v17828_v48, %v4136_v27  ;;  %v4212_v29 = vmax.f32 %v4176_v58, 0.0  ;;  %15237 = vmatprep.mubr.msk.f32.mxu0 %vm4220_vm2, %v4540_v40  ;;  %v3707_v47 = vadd.f32 %v3656_v43, %v3277_v60  ;;  %v3279_v19 = vadd.f32 %v17810_v52, %v2849_v6  ;;  %v20912_v60 = vld [vmem:[#allocation74_spill] sm:$0xff]  ;;  %v18119_v32 = vpop.permute.xlu1 %4430 }
 0x228   : > { %v4086_v15 = vpop.f32.mrf.mxu0  ;;  %4508 = vst.msk [vmem:[#allocation2 + $0xfb] sm:$0xff] %vm4220_vm2, %v4472_v51  ;;  %v4178_v41 = vadd.f32 %v17828_v48, %v4135_v23  ;;  %v4138_v21 = vadd.f32 %v15135_v24, %v3708_v44  ;;  %15180 = vmatmul.mubr.msk.f32.gmra.mxu1 %vm4220_vm2, %v4579_v12  ;;  %v15082_v33 = vpop.f32.mrf.mxu1  ;;  %20913 = vst [vmem:[#allocation21_spill] sm:$0xff] %v18119_v32 }
 0x229   : > { %v4215_v22 = vmax.f32 %v4179_v8, 0.0  ;;  %v4471_v4 = vmul.f32 %v18072_v36, %v4212_v29  ;;  %15238 = vmatmul.mubr.msk.f32.gmra.mxu0 %vm4220_vm2, %v4541_v11  ;;  %v4580_v62 = vld [vmem:[#allocation2 + $0xd1] sm:$0xff]  ;;  %v4581_v55 = vld [vmem:[#allocation2 + $0xd9] sm:$0xff]  ;;  %v4137_v58 = vadd.f32 %v4086_v15, %v3707_v47  ;;  %v3710_v6 = vadd.f32 %v15082_v33, %v20912_v60  ;;  %v18125_v23 = vpop.permute.xlu0 %4425 }
 0x22a   : > { %v4542_v25 = vld [vmem:[#allocation2 + $0xd0] sm:$0xff]  ;;  %v15138_v59 = vpop.f32.mrf.mxu0  ;;  %v4214_v27 = vmax.f32 %v4178_v41, 0.0  ;;  %v4181_v18 = vadd.f32 %v17828_v48, %v4138_v21  ;;  %15182 = vmatprep.mubr.msk.f32.mxu1 %vm4220_vm2, %v4580_v62  ;;  %v4543_v52 = vld [vmem:[#allocation2 + $0xd8] sm:$0xff]  ;;  %v3666_v34 = vpop.f32.mrf.mxu1  ;;  %20914 = vst [vmem:[#allocation8_spill] sm:$0xff] %v18125_v23 }
 0x22b   : > { %v4474_v63 = vmul.f32 %v18099_v37, %v4215_v22  ;;  %15240 = vmatprep.mubr.msk.f32.mxu0 %vm4220_vm2, %v4542_v25  ;;  %4507 = vst.msk [vmem:[#allocation2 + $0xf3] sm:$0xff] %vm4220_vm2, %v4471_v4  ;;  %v4180_v51 = vadd.f32 %v17828_v48, %v4137_v58  ;;  %v3709_v8 = vadd.f32 %v3666_v34, %v3279_v19  ;;  %v18138_v62 = vpop.permute.xlu1 %4440 }
 0x22c   : > { %v4096_v24 = vpop.f32.mrf.mxu0  ;;  %v4473_v40 = vmul.f32 %v18097_v30, %v4214_v27  ;;  %v4217_v12 = vmax.f32 %v4181_v18, 0.0  ;;  %15183 = vmatmul.mubr.msk.f32.gmra.mxu1 %vm4220_vm2, %v4581_v55  ;;  %v4140_v44 = vadd.f32 %v15138_v59, %v3710_v6  ;;  %v4582_v11 = vld [vmem:[#allocation2 + $0xe1] sm:$0xff]  ;;  %v4583_v43 = vld [vmem:[#allocation2 + $0xe9] sm:$0xff]  ;;  %20915 = vst [vmem:[#allocation24_spill] sm:$0xff] %v18138_v62 }
 0x22d   : > { %4510 = vst.msk [vmem:[#allocation2 + $0x10b] sm:$0xff] %vm4220_vm2, %v4474_v63  ;;  %15241 = vmatmul.mubr.msk.f32.gmra.mxu0 %vm4220_vm2, %v4543_v52  ;;  %v4544_v29 = vld [vmem:[#allocation2 + $0xe0] sm:$0xff]  ;;  %v4216_v22 = vmax.f32 %v4180_v51, 0.0  ;;  %v4139_v41 = vadd.f32 %v4096_v24, %v3709_v8  ;;  %15185 = vmatprep.mubr.msk.f32.mxu1 %vm4220_vm2, %v4582_v11  ;;  %v4545_v21 = vld [vmem:[#allocation2 + $0xe8] sm:$0xff]  ;;  %v18141_v27 = vpop.permute.xlu0 %4435  ;;  %v15145_v24 = vpop.f32.mrf.mxu1 }
 0x22e   : > { %4509 = vst.msk [vmem:[#allocation2 + $0x103] sm:$0xff] %vm4220_vm2, %v4473_v40  ;;  %v4476_v15 = vmul.f32 %v18119_v32, %v4217_v12  ;;  %15243 = vmatprep.mubr.msk.f32.mxu0 %vm4220_vm2, %v4544_v29  ;;  %v4183_v47 = vadd.f32 %v17828_v48, %v4140_v44  ;;  %20916 = vst [vmem:[#allocation45_spill] sm:$0xff] %v18141_v27  ;;  %v15203_v40 = vpop.f32.mrf.mxu0  ;;  %v5299_v29 = vld [vmem:[#allocation2 + $0x2] sm:$0xff] }
 0x22f   : > { %v4475_v19 = vmul.f32 %v18125_v23, %v4216_v22  ;;  %v4182_v4 = vadd.f32 %v17828_v48, %v4139_v41  ;;  %v18154_v12 = vadd.f32 %v15203_v40, %v15145_v24  ;;  %v5728_v22 = vld [vmem:[#allocation2 + $0x1a] sm:$0xff]  ;;  %v5742_v24 = vld [vmem:[#allocation2 + $0x8a] sm:$0xff]  ;;  %v5743_v40 = vld [vmem:[#allocation2 + $0x92] sm:$0xff] }
 0x230   : > { %4512 = vst.msk [vmem:[#allocation2 + $0x11b] sm:$0xff] %vm4220_vm2, %v4476_v15  ;;  %15186 = vmatmul.mubr.msk.f32.gmra.mxu1 %vm4220_vm2, %v4583_v43  ;;  %v4219_v33 = vmax.f32 %v4183_v47, 0.0  ;;  %v5727_v43 = vld [vmem:[#allocation2 + $0x12] sm:$0xff]  ;;  %v5300_v15 = vld [vmem:[#allocation2 + $0xa] sm:$0xff]  ;;  %v13084_v41 = vld [vmem:[%s20681_s3 + $0x40] sm:$0xff] }
 0x231   : > { %15244 = vmatmul.mubr.msk.f32.gmra.mxu0 %vm4220_vm2, %v4545_v21  ;;  %4511 = vst.msk [vmem:[#allocation2 + $0x113] sm:$0xff] %vm4220_vm2, %v4475_v19  ;;  %v4218_v25 = vmax.f32 %v4182_v4, 0.0  ;;  %v16198_v21 = vld [vmem:[%s20681_s3 + $0x48] sm:$0xff]  ;;  %v13122_v19 = vld [vmem:[%s20681_s3 + $0x50] sm:$0xff] }
 0x232   : > { %v4584_v59 = vld [vmem:[#allocation2 + $0xf1] sm:$0xff]  ;;  %v4585_v63 = vld [vmem:[#allocation2 + $0xf9] sm:$0xff]  ;;  %v4478_v18 = vmul.f32 %v18138_v62, %v4219_v33  ;;  %v5729_v47 = vld [vmem:[#allocation2 + $0x22] sm:$0xff]  ;;  %v18524_v62 = vpop.f32.mrf.mxu0 }
 0x233   : > { %v4546_v55 = vld [vmem:[#allocation2 + $0xf0] sm:$0xff]  ;;  %15188 = vmatprep.mubr.msk.f32.mxu1 %vm4220_vm2, %v4584_v59  ;;  %v4547_v48 = vld [vmem:[#allocation2 + $0xf8] sm:$0xff]  ;;  %v4477_v58 = vmul.f32 %v18141_v27, %v4218_v25  ;;  %v18181_v33 = vld [vmem:[%s20681_s3 + $0x68] sm:$0xff] }
 0x234   : > { %15246 = vmatprep.mubr.msk.f32.mxu0 %vm4220_vm2, %v4546_v55  ;;  %15189 = vmatmul.mubr.msk.f32.gmra.mxu1 %vm4220_vm2, %v4585_v63  ;;  %4515 = vst.msk [vmem:[#allocation2 + $0x12b] sm:$0x3f] %vm4514_vm3, %v4478_v18  ;;  %v5730_v4 = vld [vmem:[#allocation2 + $0x2a] sm:$0xff]  ;;  %v5731_v25 = vld [vmem:[#allocation2 + $0x32] sm:$0xff]  ;;  %v5733_v59 = vld [vmem:[#allocation2 + $0x42] sm:$0xff] }
 0x235   : > { %15247 = vmatmul.mubr.msk.f32.gmra.mxu0 %vm4220_vm2, %v4547_v48  ;;  %v4586_v52 = vld [vmem:[#allocation2 + $0x101] sm:$0xff]  ;;  %v4587_v6 = vld [vmem:[#allocation2 + $0x109] sm:$0xff]  ;;  %4513 = vst.msk [vmem:[#allocation2 + $0x123] sm:$0xff] %vm4220_vm2, %v4477_v58  ;;  %v5735_v63 = vld [vmem:[#allocation2 + $0x52] sm:$0xff] }
 0x236   : > { %v4548_v60 = vld [vmem:[#allocation2 + $0x100] sm:$0xff]  ;;  %15191 = vmatprep.mubr.msk.f32.mxu1 %vm4220_vm2, %v4586_v52  ;;  %v4549_v34 = vld [vmem:[#allocation2 + $0x108] sm:$0xff]  ;;  %v18197_v18 = vld [vmem:[%s20681_s3 + $0x78] sm:$0xff] }
 0x237   : > { %15249 = vmatprep.mubr.msk.f32.mxu0 %vm4220_vm2, %v4548_v60  ;;  %v5734_v55 = vld [vmem:[#allocation2 + $0x4a] sm:$0xff]  ;;  %v5736_v48 = vld [vmem:[#allocation2 + $0x5a] sm:$0xff]  ;;  %v5737_v58 = vld [vmem:[#allocation2 + $0x62] sm:$0xff] }
 0x238   : > { %15192 = vmatmul.mubr.msk.f32.gmra.mxu1 %vm4220_vm2, %v4587_v6  ;;  %v4588_v51 = vld [vmem:[#allocation2 + $0x111] sm:$0xff]  ;;  %v4589_v44 = vld [vmem:[#allocation2 + $0x119] sm:$0x3f]  ;;  %v6181_v27 = vld [vmem:[#allocation2 + $0xe3] sm:$0xff] }
 0x239   : > { %15250 = vmatmul.mubr.msk.f32.gmra.mxu0 %vm4220_vm2, %v4549_v34  ;;  %v4550_v8 = vld [vmem:[#allocation2 + $0x110] sm:$0xff]  ;;  %15194 = vmatprep.mubr.msk.f32.mxu1 %vm4220_vm2, %v4588_v51  ;;  %v4551_v11 = vld [vmem:[#allocation2 + $0x118] sm:$0x3f]  ;;  %v5741_v34 = vld [vmem:[#allocation2 + $0x82] sm:$0xff] }
 0x23a   : > { %15252 = vmatprep.mubr.msk.f32.mxu0 %vm4220_vm2, %v4550_v8  ;;  %v5738_v52 = vld [vmem:[#allocation2 + $0x6a] sm:$0xff]  ;;  %v5739_v60 = vld [vmem:[#allocation2 + $0x72] sm:$0xff]  ;;  %v5740_v6 = vld [vmem:[#allocation2 + $0x7a] sm:$0xff] }
 0x23b   : > { %v5744_v51 = vld [vmem:[#allocation2 + $0x9a] sm:$0xff]  ;;  %v5745_v8 = vld [vmem:[#allocation2 + $0xa2] sm:$0xff]  ;;  %v18536_v37 = vld [vmem:[#allocation2 + $0xec] sm:$0xff] }
 0x23c   : > { %15195 = vmatmul.mubr.msk.f32.gmra.mxu1 %vm4220_vm2, %v4589_v44  ;;  %v5746_v44 = vld [vmem:[#allocation2 + $0xaa] sm:$0xff]  ;;  %v6183_v36 = vld [vmem:[#allocation2 + $0xf3] sm:$0xff]  ;;  %v18548_v17 = vld [vmem:[#allocation2 + $0xfc] sm:$0xff] }
 0x23d   : > { %15253 = vmatmul.mubr.msk.f32.gmra.mxu0 %vm4220_vm2, %v4551_v11  ;;  %15259 = vmatprep.mubr.msk.f32.mxu1 %vm4220_vm2, %v5299_v29  ;;  %v5747_v11 = vld [vmem:[#allocation2 + $0xb2] sm:$0xff]  ;;  %v5748_v29 = vld [vmem:[#allocation2 + $0xba] sm:$0xff]  ;;  %v6185_v0 = vld [vmem:[#allocation2 + $0x103] sm:$0xff] }
 0x23e   : > { %15317 = vmatprep.mubr.msk.f32.mxu0 %vm4220_vm2, %v5727_v43  ;;  %v6186_v53 = vld [vmem:[#allocation2 + $0x10b] sm:$0xff]  ;;  %v6188_v54 = vld [vmem:[#allocation2 + $0x11b] sm:$0xff] }
 0x240   : > { %15260 = vmatmul.mubr.msk.f32.vlgmr.msra.gmra.mxu1 %vm4220_vm2, %v5300_v15  ;;  %v5750_v15 = vld [vmem:[#allocation2 + $0xca] sm:$0xff] }
 0x241   : > { %15318 = vmatmul.mubr.msk.f32.vlgmr.msra.gmra.mxu0 %vm4220_vm2, %v5728_v22  ;;  %15372 = vmatpush3.msra.mxu1 %v16198_v21  ;;  %v5753_v21 = vld [vmem:[#allocation2 + $0xe2] sm:$0xff] }
 0x242   : > { %15262 = vmatprep.mubr.msk.f32.mxu1 %vm4220_vm2, %v5727_v43  ;;  %15320 = vmatprep.mubr.msk.f32.mxu0 %vm4220_vm2, %v5729_v47  ;;  %v5749_v43 = vld [vmem:[#allocation2 + $0xc2] sm:$0xff] }
 0x243   : > { %15373 = vmatprep.subr.mxu1 %v13084_v41  ;;  %15430 = vmatpush3.msra.mxu0 %v17943_v5  ;;  %v5732_v5 = vld [vmem:[#allocation2 + $0x3a] sm:$0xff] }
 0x244   : > { %15263 = vmatmul.mubr.msk.f32.gmra.mxu1 %vm4220_vm2, %v5728_v22  ;;  %15431 = vmatprep.subr.mxu0 %v13122_v19  ;;  %v5751_v22 = vld [vmem:[#allocation2 + $0xd2] sm:$0xff] }
 0x245   : > { %15321 = vmatmul.mubr.msk.f32.gmra.mxu0 %vm4220_vm2, %v5730_v4  ;;  %15265 = vmatprep.mubr.msk.f32.mxu1 %vm4220_vm2, %v5729_v47  ;;  %v5754_v47 = vld [vmem:[#allocation2 + $0xea] sm:$0xff] }
 0x246   : > { %15323 = vmatprep.mubr.msk.f32.mxu0 %vm4220_vm2, %v5731_v25  ;;  %15374 = vmatpush3.msra.mxu1 %v13084_v41  ;;  %v5752_v41 = vld [vmem:[#allocation2 + $0xda] sm:$0xff] }
 0x247   : > { %15432 = vmatpush3.msra.mxu0 %v13122_v19  ;;  %15487 = vmatprep.subr.mxu1 %v18181_v33  ;;  %v5755_v19 = vld [vmem:[#allocation2 + $0xf2] sm:$0xff] }
 0x248   : > { %15266 = vmatmul.mubr.msk.f32.gmra.mxu1 %vm4220_vm2, %v5730_v4  ;;  %15545 = vmatprep.subr.mxu0 %v18197_v18  ;;  %v5756_v4 = vld [vmem:[#allocation2 + $0xfa] sm:$0xff] }
 0x249   : > { %15324 = vmatmul.mubr.msk.f32.gmra.mxu0 %vm4220_vm2, %v5732_v5  ;;  %15268 = vmatprep.mubr.msk.f32.mxu1 %vm4220_vm2, %v5731_v25  ;;  %v5757_v25 = vld [vmem:[#allocation2 + $0x102] sm:$0xff] }
 0x24a   : > { %15326 = vmatprep.mubr.msk.f32.mxu0 %vm4220_vm2, %v5733_v59 }
 0x24c   : > { %15269 = vmatmul.mubr.msk.f32.gmra.mxu1 %vm4220_vm2, %v5732_v5  ;;  %v5758_v5 = vld [vmem:[#allocation2 + $0x10a] sm:$0xff] }
 0x24d   : > { %15327 = vmatmul.mubr.msk.f32.gmra.mxu0 %vm4220_vm2, %v5734_v55  ;;  %15271 = vmatprep.mubr.msk.f32.mxu1 %vm4220_vm2, %v5733_v59  ;;  %v5759_v59 = vld [vmem:[#allocation2 + $0x112] sm:$0xff] }
 0x24e   : > { %15329 = vmatprep.mubr.msk.f32.mxu0 %vm4220_vm2, %v5735_v63 }
 0x250   : > { %15272 = vmatmul.mubr.msk.f32.gmra.mxu1 %vm4220_vm2, %v5734_v55  ;;  %v5760_v55 = vld [vmem:[#allocation2 + $0x11a] sm:$0xff] }
 0x251   : > { %15330 = vmatmul.mubr.msk.f32.gmra.mxu0 %vm4220_vm2, %v5736_v48  ;;  %15274 = vmatprep.mubr.msk.f32.mxu1 %vm4220_vm2, %v5735_v63  ;;  %v5761_v63 = vld [vmem:[#allocation2 + $0x122] sm:$0xff] }
 0x252   : > { %15332 = vmatprep.mubr.msk.f32.mxu0 %vm4220_vm2, %v5737_v58 }
 0x254   : > { %15275 = vmatmul.mubr.msk.f32.gmra.mxu1 %vm4220_vm2, %v5736_v48  ;;  %v5334_v48 = vld [vmem:[#allocation2 + $0x11a] sm:$0x3f] }
 0x255   : > { %15333 = vmatmul.mubr.msk.f32.gmra.mxu0 %vm4220_vm2, %v5738_v52  ;;  %15277 = vmatprep.mubr.msk.f32.mxu1 %vm4220_vm2, %v5737_v58  ;;  %v5762_v58 = vld [vmem:[#allocation2 + $0x12a] sm:$0x3f] }
 0x256   : > { %15335 = vmatprep.mubr.msk.f32.mxu0 %vm4220_vm2, %v5739_v60 }
 0x258   : > { %15278 = vmatmul.mubr.msk.f32.gmra.mxu1 %vm4220_vm2, %v5738_v52  ;;  %v6155_v52 = vld [vmem:[#allocation2 + $0x13] sm:$0xff] }
 0x259   : > { %15336 = vmatmul.mubr.msk.f32.gmra.mxu0 %vm4220_vm2, %v5740_v6  ;;  %15280 = vmatprep.mubr.msk.f32.mxu1 %vm4220_vm2, %v5739_v60  ;;  %v6583_v60 = vld [vmem:[#allocation2 + $0x14] sm:$0xff] }
 0x25a   : > { %15338 = vmatprep.mubr.msk.f32.mxu0 %vm4220_vm2, %v5741_v34 }
 0x25c   : > { %15281 = vmatmul.mubr.msk.f32.gmra.mxu1 %vm4220_vm2, %v5740_v6  ;;  %v6156_v6 = vld [vmem:[#allocation2 + $0x1b] sm:$0xff] }
 0x25d   : > { %15339 = vmatmul.mubr.msk.f32.gmra.mxu0 %vm4220_vm2, %v5742_v24  ;;  %15283 = vmatprep.mubr.msk.f32.mxu1 %vm4220_vm2, %v5741_v34  ;;  %v6584_v34 = vld [vmem:[#allocation2 + $0x1c] sm:$0xff] }
 0x25e   : > { %15341 = vmatprep.mubr.msk.f32.mxu0 %vm4220_vm2, %v5743_v40 }
 0x260   : > { %15284 = vmatmul.mubr.msk.f32.gmra.mxu1 %vm4220_vm2, %v5742_v24  ;;  %v13160_v24 = vld [vmem:[%s20681_s3 + $0x60] sm:$0xff] }
 0x261   : > { %15342 = vmatmul.mubr.msk.f32.gmra.mxu0 %vm4220_vm2, %v5744_v51  ;;  %15286 = vmatprep.mubr.msk.f32.mxu1 %vm4220_vm2, %v5743_v40  ;;  %v6157_v40 = vld [vmem:[#allocation2 + $0x23] sm:$0xff] }
 0x262   : > { %15344 = vmatprep.mubr.msk.f32.mxu0 %vm4220_vm2, %v5745_v8 }
 0x264   : > { %15287 = vmatmul.mubr.msk.f32.gmra.mxu1 %vm4220_vm2, %v5744_v51  ;;  %v18263_v51 = vld [vmem:[#allocation2 + $0x24] sm:$0xff] }
 0x265   : > { %15345 = vmatmul.mubr.msk.f32.gmra.mxu0 %vm4220_vm2, %v5746_v44  ;;  %15289 = vmatprep.mubr.msk.f32.mxu1 %vm4220_vm2, %v5745_v8  ;;  %v13198_v8 = vld [vmem:[%s20681_s3 + $0x70] sm:$0xff] }
 0x266   : > { %15347 = vmatprep.mubr.msk.f32.mxu0 %vm4220_vm2, %v5747_v11 }
 0x268   : > { %15290 = vmatmul.mubr.msk.f32.gmra.mxu1 %vm4220_vm2, %v5746_v44  ;;  %v6158_v44 = vld [vmem:[#allocation2 + $0x2b] sm:$0xff] }
 0x269   : > { %15348 = vmatmul.mubr.msk.f32.gmra.mxu0 %vm4220_vm2, %v5748_v29  ;;  %15292 = vmatprep.mubr.msk.f32.mxu1 %vm4220_vm2, %v5747_v11  ;;  %v18273_v11 = vld [vmem:[#allocation2 + $0x2c] sm:$0xff] }
 0x26a   : > { %15350 = vmatprep.mubr.msk.f32.mxu0 %vm4220_vm2, %v5749_v43 }
 0x26c   : > { %15293 = vmatmul.mubr.msk.f32.gmra.mxu1 %vm4220_vm2, %v5748_v29  ;;  %v18278_v29 = vld [vmem:[%s20681_s3 + $0x88] sm:$0xff] }
 0x26d   : > { %15351 = vmatmul.mubr.msk.f32.gmra.mxu0 %vm4220_vm2, %v5750_v15  ;;  %15295 = vmatprep.mubr.msk.f32.mxu1 %vm4220_vm2, %v5749_v43  ;;  %v18283_v43 = vld [vmem:[#allocation2 + $0x34] sm:$0xff] }
 0x26e   : > { %15353 = vmatprep.mubr.msk.f32.mxu0 %vm4220_vm2, %v5751_v22 }
 0x270   : > { %15296 = vmatmul.mubr.msk.f32.gmra.mxu1 %vm4220_vm2, %v5750_v15  ;;  %v18289_v15 = vld [vmem:[#allocation2 + $0x3c] sm:$0xff] }
 0x271   : > { %15354 = vmatmul.mubr.msk.f32.gmra.mxu0 %vm4220_vm2, %v5752_v41  ;;  %15298 = vmatprep.mubr.msk.f32.mxu1 %vm4220_vm2, %v5751_v22  ;;  %v6161_v22 = vld [vmem:[#allocation2 + $0x43] sm:$0xff] }
 0x272   : > { %15356 = vmatprep.mubr.msk.f32.mxu0 %vm4220_vm2, %v5753_v21 }
 0x274   : > { %15299 = vmatmul.mubr.msk.f32.gmra.mxu1 %vm4220_vm2, %v5752_v41  ;;  %v18294_v41 = vld [vmem:[#allocation2 + $0x44] sm:$0xff] }
 0x275   : > { %15357 = vmatmul.mubr.msk.f32.gmra.mxu0 %vm4220_vm2, %v5754_v47  ;;  %15301 = vmatprep.mubr.msk.f32.mxu1 %vm4220_vm2, %v5753_v21  ;;  %v6162_v21 = vld [vmem:[#allocation2 + $0x4b] sm:$0xff] }
 0x276   : > { %15359 = vmatprep.mubr.msk.f32.mxu0 %vm4220_vm2, %v5755_v19 }
 0x278   : > { %15302 = vmatmul.mubr.msk.f32.gmra.mxu1 %vm4220_vm2, %v5754_v47  ;;  %v18299_v47 = vld [vmem:[#allocation2 + $0x4c] sm:$0xff] }
 0x279   : > { %15360 = vmatmul.mubr.msk.f32.gmra.mxu0 %vm4220_vm2, %v5756_v4  ;;  %15304 = vmatprep.mubr.msk.f32.mxu1 %vm4220_vm2, %v5755_v19  ;;  %v6163_v19 = vld [vmem:[#allocation2 + $0x53] sm:$0xff] }
 0x27a   : > { %15362 = vmatprep.mubr.msk.f32.mxu0 %vm4220_vm2, %v5757_v25 }
 0x27c   : > { %15305 = vmatmul.mubr.msk.f32.gmra.mxu1 %vm4220_vm2, %v5756_v4  ;;  %v18304_v4 = vld [vmem:[#allocation2 + $0x54] sm:$0xff] }
 0x27d   : > { %15363 = vmatmul.mubr.msk.f32.gmra.mxu0 %vm4220_vm2, %v5758_v5  ;;  %15307 = vmatprep.mubr.msk.f32.mxu1 %vm4220_vm2, %v5757_v25  ;;  %v6164_v25 = vld [vmem:[#allocation2 + $0x5b] sm:$0xff] }
 0x27e   : > { %15365 = vmatprep.mubr.msk.f32.mxu0 %vm4220_vm2, %v5759_v59 }
 0x280   : > { %15308 = vmatmul.mubr.msk.f32.gmra.mxu1 %vm4220_vm2, %v5758_v5  ;;  %v18316_v5 = vld [vmem:[#allocation2 + $0x5c] sm:$0xff] }
 0x281   : > { %15366 = vmatmul.mubr.msk.f32.gmra.mxu0 %vm4220_vm2, %v5760_v55  ;;  %15310 = vmatprep.mubr.msk.f32.mxu1 %vm4220_vm2, %v5759_v59  ;;  %v6165_v59 = vld [vmem:[#allocation2 + $0x63] sm:$0xff]  ;;  %v20917_v55 = vmov 0.0  }
 0x282   : > { %15368 = vmatprep.mubr.msk.f32.mxu0 %vm4220_vm2, %v5761_v63  ;;  %4262 = vst.msk [vmem:[#allocation2 + $0x140] sm:$0xf] %vm4261_vm4, %v20917_v55  ;;  %12457 = vst.msk [vmem:[%s18313_s11 + $0x140] sm:$0xf] %vm4261_vm4, %v20917_v55  ;;  %v18445_v63 = vld [vmem:[#allocation2 + $0x64] sm:$0xff] }
 0x283   : > { %8414 = vst.msk [vmem:[#allocation3 + $0x140] sm:$0xf] %vm4261_vm4, %v20917_v55 }
 0x284   : > { %15311 = vmatmul.mubr.msk.f32.gmra.mxu1 %vm4220_vm2, %v5334_v48  ;;  %12417 = vst.msk [vmem:[%s18313_s11] sm:$0xff] %vm4220_vm2, %v20917_v55  ;;  %12418 = vst.msk [vmem:[%s18313_s11 + $0x8] sm:$0xff] %vm4220_vm2, %v20917_v55  ;;  %v6166_v48 = vld [vmem:[#allocation2 + $0x6b] sm:$0xff] }
 0x285   : > { %15369 = vmatmul.mubr.msk.f32.gmra.mxu0 %vm4220_vm2, %v5762_v58  ;;  %15375 = vmatprep.mubr.msk.f32.mxu1 %vm4220_vm2, %v6155_v52  ;;  %12419 = vst.msk [vmem:[%s18313_s11 + $0x10] sm:$0xff] %vm4220_vm2, %v20917_v55  ;;  %12420 = vst.msk [vmem:[%s18313_s11 + $0x18] sm:$0xff] %vm4220_vm2, %v20917_v55  ;;  %v18450_v58 = vld [vmem:[#allocation2 + $0x6c] sm:$0xff] }
 0x286   : > { %15433 = vmatprep.mubr.msk.f32.mxu0 %vm4220_vm2, %v6583_v60  ;;  %12421 = vst.msk [vmem:[%s18313_s11 + $0x20] sm:$0xff] %vm4220_vm2, %v20917_v55  ;;  %12422 = vst.msk [vmem:[%s18313_s11 + $0x28] sm:$0xff] %vm4220_vm2, %v20917_v55  ;;  %v6167_v52 = vld [vmem:[#allocation2 + $0x73] sm:$0xff] }
 0x287   : > { %12423 = vst.msk [vmem:[%s18313_s11 + $0x30] sm:$0xff] %vm4220_vm2, %v20917_v55  ;;  %12424 = vst.msk [vmem:[%s18313_s11 + $0x38] sm:$0xff] %vm4220_vm2, %v20917_v55  ;;  %v18455_v60 = vld [vmem:[#allocation2 + $0x74] sm:$0xff] }
 0x288   : > { %15376 = vmatmul.mubr.msk.f32.vlgmr.msra.gmra.mxu1 %vm4220_vm2, %v6156_v6  ;;  %12425 = vst.msk [vmem:[%s18313_s11 + $0x40] sm:$0xff] %vm4220_vm2, %v20917_v55  ;;  %12426 = vst.msk [vmem:[%s18313_s11 + $0x48] sm:$0xff] %vm4220_vm2, %v20917_v55  ;;  %v6168_v6 = vld [vmem:[#allocation2 + $0x7b] sm:$0xff] }
 0x289   : > { %15434 = vmatmul.mubr.msk.f32.vlgmr.msra.gmra.mxu0 %vm4220_vm2, %v6584_v34  ;;  %15488 = vmatpush3.msra.mxu1 %v18181_v33  ;;  %v6159_v33 = vld [vmem:[#allocation2 + $0x33] sm:$0xff]  ;;  %12427 = vst.msk [vmem:[%s18313_s11 + $0x50] sm:$0xff] %vm4220_vm2, %v20917_v55  ;;  %12428 = vst.msk [vmem:[%s18313_s11 + $0x58] sm:$0xff] %vm4220_vm2, %v20917_v55  ;;  %v18460_v34 = vld [vmem:[#allocation2 + $0x7c] sm:$0xff] }
 0x28a   : > { %15378 = vmatprep.mubr.msk.f32.mxu1 %vm4220_vm2, %v6157_v40  ;;  %15436 = vmatprep.mubr.msk.f32.mxu0 %vm4220_vm2, %v18263_v51  ;;  %12429 = vst.msk [vmem:[%s18313_s11 + $0x60] sm:$0xff] %vm4220_vm2, %v20917_v55  ;;  %12430 = vst.msk [vmem:[%s18313_s11 + $0x68] sm:$0xff] %vm4220_vm2, %v20917_v55  ;;  %v18465_v40 = vld [vmem:[#allocation2 + $0x84] sm:$0xff] }
 0x28b   : > { %15489 = vmatprep.subr.mxu1 %v13160_v24  ;;  %15546 = vmatpush3.msra.mxu0 %v18197_v18  ;;  %v6160_v18 = vld [vmem:[#allocation2 + $0x3b] sm:$0xff]  ;;  %12431 = vst.msk [vmem:[%s18313_s11 + $0x70] sm:$0xff] %vm4220_vm2, %v20917_v55  ;;  %12432 = vst.msk [vmem:[%s18313_s11 + $0x78] sm:$0xff] %vm4220_vm2, %v20917_v55 }
 0x28c   : > { %15379 = vmatmul.mubr.msk.f32.gmra.mxu1 %vm4220_vm2, %v6158_v44  ;;  %15547 = vmatprep.subr.mxu0 %v13198_v8  ;;  %12433 = vst.msk [vmem:[%s18313_s11 + $0x80] sm:$0xff] %vm4220_vm2, %v20917_v55  ;;  %12434 = vst.msk [vmem:[%s18313_s11 + $0x88] sm:$0xff] %vm4220_vm2, %v20917_v55  ;;  %v18470_v44 = vld [vmem:[#allocation2 + $0x8c] sm:$0xff] }
 0x28d   : > { %15437 = vmatmul.mubr.msk.f32.gmra.mxu0 %vm4220_vm2, %v18273_v11  ;;  %15381 = vmatprep.mubr.msk.f32.mxu1 %vm4220_vm2, %v6159_v33  ;;  %12435 = vst.msk [vmem:[%s18313_s11 + $0x90] sm:$0xff] %vm4220_vm2, %v20917_v55  ;;  %12436 = vst.msk [vmem:[%s18313_s11 + $0x98] sm:$0xff] %vm4220_vm2, %v20917_v55  ;;  %v6171_v33 = vld [vmem:[#allocation2 + $0x93] sm:$0xff] }
 0x28e   : > { %15439 = vmatprep.mubr.msk.f32.mxu0 %vm4220_vm2, %v18283_v43  ;;  %15490 = vmatpush3.msra.mxu1 %v13160_v24  ;;  %12437 = vst.msk [vmem:[%s18313_s11 + $0xa0] sm:$0xff] %vm4220_vm2, %v20917_v55  ;;  %12438 = vst.msk [vmem:[%s18313_s11 + $0xa8] sm:$0xff] %vm4220_vm2, %v20917_v55  ;;  %v6169_v24 = vld [vmem:[#allocation2 + $0x83] sm:$0xff] }
 0x28f   : > { %15548 = vmatpush3.msra.mxu0 %v13198_v8  ;;  %15603 = vmatprep.subr.mxu1 %v18278_v29  ;;  %12439 = vst.msk [vmem:[%s18313_s11 + $0xb0] sm:$0xff] %vm4220_vm2, %v20917_v55  ;;  %12440 = vst.msk [vmem:[%s18313_s11 + $0xb8] sm:$0xff] %vm4220_vm2, %v20917_v55  ;;  %v6170_v8 = vld [vmem:[#allocation2 + $0x8b] sm:$0xff] }
 0x290   : > { %15382 = vmatmul.mubr.msk.f32.gmra.mxu1 %vm4220_vm2, %v6160_v18  ;;  %12441 = vst.msk [vmem:[%s18313_s11 + $0xc0] sm:$0xff] %vm4220_vm2, %v20917_v55  ;;  %12442 = vst.msk [vmem:[%s18313_s11 + $0xc8] sm:$0xff] %vm4220_vm2, %v20917_v55  ;;  %v18475_v18 = vld [vmem:[#allocation2 + $0x94] sm:$0xff] }
 0x291   : > { %15440 = vmatmul.mubr.msk.f32.gmra.mxu0 %vm4220_vm2, %v18289_v15  ;;  %15384 = vmatprep.mubr.msk.f32.mxu1 %vm4220_vm2, %v6161_v22  ;;  %12443 = vst.msk [vmem:[%s18313_s11 + $0xd0] sm:$0xff] %vm4220_vm2, %v20917_v55  ;;  %12444 = vst.msk [vmem:[%s18313_s11 + $0xd8] sm:$0xff] %vm4220_vm2, %v20917_v55  ;;  %v6172_v22 = vld [vmem:[#allocation2 + $0x9b] sm:$0xff] }
 0x292   : > { %15442 = vmatprep.mubr.msk.f32.mxu0 %vm4220_vm2, %v18294_v41  ;;  %12445 = vst.msk [vmem:[%s18313_s11 + $0xe0] sm:$0xff] %vm4220_vm2, %v20917_v55  ;;  %12446 = vst.msk [vmem:[%s18313_s11 + $0xe8] sm:$0xff] %vm4220_vm2, %v20917_v55 }
 0x293   : > { %12447 = vst.msk [vmem:[%s18313_s11 + $0xf0] sm:$0xff] %vm4220_vm2, %v20917_v55  ;;  %12448 = vst.msk [vmem:[%s18313_s11 + $0xf8] sm:$0xff] %vm4220_vm2, %v20917_v55 }
 0x294   : > { %15385 = vmatmul.mubr.msk.f32.gmra.mxu1 %vm4220_vm2, %v6162_v21  ;;  %12449 = vst.msk [vmem:[%s18313_s11 + $0x100] sm:$0xff] %vm4220_vm2, %v20917_v55  ;;  %12450 = vst.msk [vmem:[%s18313_s11 + $0x108] sm:$0xff] %vm4220_vm2, %v20917_v55  ;;  %v18480_v21 = vld [vmem:[#allocation2 + $0x9c] sm:$0xff] }
 0x295   : > { %15443 = vmatmul.mubr.msk.f32.gmra.mxu0 %vm4220_vm2, %v18299_v47  ;;  %15387 = vmatprep.mubr.msk.f32.mxu1 %vm4220_vm2, %v6163_v19  ;;  %12451 = vst.msk [vmem:[%s18313_s11 + $0x110] sm:$0xff] %vm4220_vm2, %v20917_v55  ;;  %12452 = vst.msk [vmem:[%s18313_s11 + $0x118] sm:$0xff] %vm4220_vm2, %v20917_v55  ;;  %v6173_v19 = vld [vmem:[#allocation2 + $0xa3] sm:$0xff] }
 0x296   : > { %15445 = vmatprep.mubr.msk.f32.mxu0 %vm4220_vm2, %v18304_v4  ;;  %12453 = vst.msk [vmem:[%s18313_s11 + $0x120] sm:$0xff] %vm4220_vm2, %v20917_v55  ;;  %12454 = vst.msk [vmem:[%s18313_s11 + $0x128] sm:$0xff] %vm4220_vm2, %v20917_v55 }
 0x297   : > { %12455 = vst.msk [vmem:[%s18313_s11 + $0x130] sm:$0xff] %vm4220_vm2, %v20917_v55  ;;  %12456 = vst.msk [vmem:[%s18313_s11 + $0x138] sm:$0xff] %vm4220_vm2, %v20917_v55  ;;  %v18490_v55 = vld [vmem:[#allocation2 + $0xac] sm:$0xff] }
 0x298   : > { %15388 = vmatmul.mubr.msk.f32.gmra.mxu1 %vm4220_vm2, %v6164_v25  ;;  %v18485_v25 = vld [vmem:[#allocation2 + $0xa4] sm:$0xff] }
 0x299   : > { %15446 = vmatmul.mubr.msk.f32.gmra.mxu0 %vm4220_vm2, %v18316_v5  ;;  %15390 = vmatprep.mubr.msk.f32.mxu1 %vm4220_vm2, %v6165_v59  ;;  %v6174_v59 = vld [vmem:[#allocation2 + $0xab] sm:$0xff] }
 0x29a   : > { %15448 = vmatprep.mubr.msk.f32.mxu0 %vm4220_vm2, %v18445_v63 }
 0x29c   : > { %15391 = vmatmul.mubr.msk.f32.gmra.mxu1 %vm4220_vm2, %v6166_v48  ;;  %v6175_v48 = vld [vmem:[#allocation2 + $0xb3] sm:$0xff] }
 0x29d   : > { %15449 = vmatmul.mubr.msk.f32.gmra.mxu0 %vm4220_vm2, %v18450_v58  ;;  %15393 = vmatprep.mubr.msk.f32.mxu1 %vm4220_vm2, %v6167_v52  ;;  %v18495_v52 = vld [vmem:[#allocation2 + $0xb4] sm:$0xff] }
 0x29e   : > { %15451 = vmatprep.mubr.msk.f32.mxu0 %vm4220_vm2, %v18455_v60 }
 0x2a0   : > { %15394 = vmatmul.mubr.msk.f32.gmra.mxu1 %vm4220_vm2, %v6168_v6  ;;  %v6176_v6 = vld [vmem:[#allocation2 + $0xbb] sm:$0xff] }
 0x2a1   : > { %15452 = vmatmul.mubr.msk.f32.gmra.mxu0 %vm4220_vm2, %v18460_v34  ;;  %15396 = vmatprep.mubr.msk.f32.mxu1 %vm4220_vm2, %v6169_v24  ;;  %v18500_v24 = vld [vmem:[#allocation2 + $0xbc] sm:$0xff] }
 0x2a2   : > { %15454 = vmatprep.mubr.msk.f32.mxu0 %vm4220_vm2, %v18465_v40 }
 0x2a4   : > { %15397 = vmatmul.mubr.msk.f32.gmra.mxu1 %vm4220_vm2, %v6170_v8  ;;  %v6177_v8 = vld [vmem:[#allocation2 + $0xc3] sm:$0xff] }
 0x2a5   : > { %15455 = vmatmul.mubr.msk.f32.gmra.mxu0 %vm4220_vm2, %v18470_v44  ;;  %15399 = vmatprep.mubr.msk.f32.mxu1 %vm4220_vm2, %v6171_v33  ;;  %v18505_v33 = vld [vmem:[#allocation2 + $0xc4] sm:$0xff] }
 0x2a6   : > { %15457 = vmatprep.mubr.msk.f32.mxu0 %vm4220_vm2, %v18475_v18 }
 0x2a8   : > { %15400 = vmatmul.mubr.msk.f32.gmra.mxu1 %vm4220_vm2, %v6172_v22  ;;  %v6178_v22 = vld [vmem:[#allocation2 + $0xcb] sm:$0xff] }
 0x2a9   : > { %15458 = vmatmul.mubr.msk.f32.gmra.mxu0 %vm4220_vm2, %v18480_v21  ;;  %15402 = vmatprep.mubr.msk.f32.mxu1 %vm4220_vm2, %v6173_v19  ;;  %v18510_v19 = vld [vmem:[#allocation2 + $0xcc] sm:$0xff] }
 0x2aa   : > { %15460 = vmatprep.mubr.msk.f32.mxu0 %vm4220_vm2, %v18485_v25 }
 0x2ac   : > { %15403 = vmatmul.mubr.msk.f32.gmra.mxu1 %vm4220_vm2, %v6174_v59  ;;  %v6179_v59 = vld [vmem:[#allocation2 + $0xd3] sm:$0xff] }
 0x2ad   : > { %15461 = vmatmul.mubr.msk.f32.gmra.mxu0 %vm4220_vm2, %v18490_v55  ;;  %15405 = vmatprep.mubr.msk.f32.mxu1 %vm4220_vm2, %v6175_v48  ;;  %v18515_v48 = vld [vmem:[#allocation2 + $0xd4] sm:$0xff] }
 0x2ae   : > { %15463 = vmatprep.mubr.msk.f32.mxu0 %vm4220_vm2, %v18495_v52 }
 0x2b0   : > { %15406 = vmatmul.mubr.msk.f32.gmra.mxu1 %vm4220_vm2, %v6176_v6  ;;  %v6180_v6 = vld [vmem:[#allocation2 + $0xdb] sm:$0xff] }
 0x2b1   : > { %15464 = vmatmul.mubr.msk.f32.gmra.mxu0 %vm4220_vm2, %v18500_v24  ;;  %15408 = vmatprep.mubr.msk.f32.mxu1 %vm4220_vm2, %v6177_v8  ;;  %v18520_v8 = vld [vmem:[#allocation2 + $0xdc] sm:$0xff] }
 0x2b2   : > { %15466 = vmatprep.mubr.msk.f32.mxu0 %vm4220_vm2, %v18505_v33 }
 0x2b4   : > { %15409 = vmatmul.mubr.msk.f32.gmra.mxu1 %vm4220_vm2, %v6178_v22  ;;  %v18522_v22 = vpop.f32.mrf.mxu1 }
 0x2b5   : > { %15467 = vmatmul.mubr.msk.f32.gmra.mxu0 %vm4220_vm2, %v18510_v19  ;;  %15411 = vmatprep.mubr.msk.f32.mxu1 %vm4220_vm2, %v6179_v59  ;;  %v18529_v59 = vld [vmem:[#allocation2 + $0xe4] sm:$0xff] }
 0x2b6   : > { %15469 = vmatprep.mubr.msk.f32.mxu0 %vm4220_vm2, %v18515_v48 }
 0x2b8   : > { %15412 = vmatmul.mubr.msk.f32.gmra.mxu1 %vm4220_vm2, %v6180_v6  ;;  %v6182_v6 = vld [vmem:[#allocation2 + $0xeb] sm:$0xff] }
 0x2b9   : > { %15470 = vmatmul.mubr.msk.f32.gmra.mxu0 %vm4220_vm2, %v18520_v8  ;;  %15414 = vmatprep.mubr.msk.f32.mxu1 %vm4220_vm2, %v6181_v27  ;;  %v18541_v27 = vld [vmem:[#allocation2 + $0xf4] sm:$0xff] }
 0x2ba   : > { %15472 = vmatprep.mubr.msk.f32.mxu0 %vm4220_vm2, %v18529_v59  ;;  %v15148_v23 = vpop.f32.mrf.mxu1 }
 0x2bb   : > { %v15206_v32 = vpop.f32.mrf.mxu0 }
 0x2bc   : > { %v18533_v30 = vadd.f32 %v15206_v32, %v15148_v23  ;;  %15415 = vmatmul.mubr.msk.f32.gmra.mxu1 %vm4220_vm2, %v6182_v6  ;;  %v4777_v38 = vpop.f32.mrf.mxu1  ;;  %v6184_v23 = vld [vmem:[#allocation2 + $0xfb] sm:$0xff] }
 0x2bd   : > { %15473 = vmatmul.mubr.msk.f32.gmra.mxu0 %vm4220_vm2, %v18536_v37  ;;  %15417 = vmatprep.mubr.msk.f32.mxu1 %vm4220_vm2, %v6183_v36  ;;  %v5130_v26 = vpop.f32.mrf.mxu0  ;;  %v18555_v36 = vld [vmem:[#allocation2 + $0x104] sm:$0xff] }
 0x2be   : > { %15475 = vmatprep.mubr.msk.f32.mxu0 %vm4220_vm2, %v18541_v27  ;;  %v18545_v14 = vadd.f32 %v5130_v26, %v4777_v38  ;;  %v15151_v32 = vpop.f32.mrf.mxu1 }
 0x2bf   : > { %v15209_v6 = vpop.f32.mrf.mxu0 }
 0x2c0   : > { %15418 = vmatmul.mubr.msk.f32.gmra.mxu1 %vm4220_vm2, %v6184_v23  ;;  %v18550_v9 = vadd.f32 %v15209_v6, %v15151_v32  ;;  %v4787_v2 = vpop.f32.mrf.mxu1  ;;  %v18562_v32 = vld [vmem:[#allocation2 + $0x10c] sm:$0xff] }
 0x2c1   : > { %15476 = vmatmul.mubr.msk.f32.gmra.mxu0 %vm4220_vm2, %v18548_v17  ;;  %15420 = vmatprep.mubr.msk.f32.mxu1 %vm4220_vm2, %v6185_v0  ;;  %v5140_v26 = vpop.f32.mrf.mxu0  ;;  %v6187_v6 = vld [vmem:[#allocation2 + $0x113] sm:$0xff] }
 0x2c2   : > { %15478 = vmatprep.mubr.msk.f32.mxu0 %vm4220_vm2, %v18555_v36  ;;  %v18559_v38 = vadd.f32 %v5140_v26, %v4787_v2  ;;  %v15154_v23 = vpop.f32.mrf.mxu1  ;;  %v18569_v0 = vld [vmem:[#allocation2 + $0x114] sm:$0xff] }
 0x2c3   : > { %v15212_v61 = vpop.f32.mrf.mxu0 }
 0x2c4   : > { %15421 = vmatmul.mubr.msk.f32.gmra.mxu1 %vm4220_vm2, %v6186_v53  ;;  %v18564_v56 = vadd.f32 %v15212_v61, %v15154_v23  ;;  %v4797_v42 = vpop.f32.mrf.mxu1  ;;  %v18576_v61 = vld [vmem:[#allocation2 + $0x11c] sm:$0xff] }
 0x2c5   : > { %15479 = vmatmul.mubr.msk.f32.gmra.mxu0 %vm4220_vm2, %v18562_v32  ;;  %15423 = vmatprep.mubr.msk.f32.mxu1 %vm4220_vm2, %v6187_v6  ;;  %v5150_v2 = vpop.f32.mrf.mxu0  ;;  %v6189_v23 = vld [vmem:[#allocation2 + $0x123] sm:$0xff] }
 0x2c6   : > { %15481 = vmatprep.mubr.msk.f32.mxu0 %vm4220_vm2, %v18569_v0  ;;  %v18573_v26 = vadd.f32 %v5150_v2, %v4797_v42  ;;  %v15157_v53 = vpop.f32.mrf.mxu1  ;;  %v18583_v6 = vld [vmem:[#allocation2 + $0x124] sm:$0xff] }
 0x2c8   : > { %v15215_v20 = vpop.f32.mrf.mxu0  ;;  %15424 = vmatmul.mubr.msk.f32.gmra.mxu1 %vm4220_vm2, %v6188_v54  ;;  %v4807_v35 = vpop.f32.mrf.mxu1  ;;  %v6190_v54 = vld [vmem:[#allocation2 + $0x12b] sm:$0x3f] }
 0x2c9   : > { %v18578_v50 = vadd.f32 %v15215_v20, %v15157_v53  ;;  %15482 = vmatmul.mubr.msk.f32.gmra.mxu0 %vm4220_vm2, %v18576_v61  ;;  %15426 = vmatprep.mubr.msk.f32.mxu1 %vm4220_vm2, %v6189_v23  ;;  %v6618_v20 = vld [vmem:[#allocation2 + $0x12c] sm:$0x3f] }
 0x2ca   : > { %15484 = vmatprep.mubr.msk.f32.mxu0 %vm4220_vm2, %v18583_v6  ;;  %v5160_v42 = vpop.f32.mrf.mxu0  ;;  %v15160_v31 = vpop.f32.mrf.mxu1  ;;  %v7439_v23 = vld [vmem:[#allocation2 + $0x25] sm:$0xff] }
 0x2cb   : > { %v18587_v2 = vadd.f32 %v5160_v42, %v4807_v35 }
 0x2cc   : > { %v15218_v10 = vpop.f32.mrf.mxu0  ;;  %15427 = vmatmul.mubr.msk.f32.gmra.mxu1 %vm4220_vm2, %v6190_v54  ;;  %v4817_v16 = vpop.f32.mrf.mxu1  ;;  %v7440_v54 = vld [vmem:[#allocation2 + $0x2d] sm:$0xff] }
 0x2cd   : > { %v18590_v53 = vadd.f32 %v15218_v10, %v15160_v31  ;;  %15485 = vmatmul.mubr.msk.f32.gmra.mxu0 %vm4220_vm2, %v6618_v20  ;;  %15491 = vmatprep.mubr.msk.f32.mxu1 %vm4220_vm2, %v18263_v51  ;;  %v13236_v10 = vld [vmem:[%s20681_s3 + $0x80] sm:$0xff]  ;;  %v7441_v51 = vld [vmem:[#allocation2 + $0x35] sm:$0xff] }
 0x2ce   : > { %15549 = vmatprep.mubr.msk.f32.mxu0 %vm4220_vm2, %v7439_v23  ;;  %v5170_v46 = vpop.f32.mrf.mxu0  ;;  %v15163_v42 = vpop.f32.mrf.mxu1 }
 0x2cf   : > { %v18596_v35 = vadd.f32 %v5170_v46, %v4817_v16 }
 0x2d0   : > { %v15221_v13 = vpop.f32.mrf.mxu0  ;;  %15492 = vmatmul.mubr.msk.f32.vlgmr.msra.gmra.mxu1 %vm4220_vm2, %v18273_v11  ;;  %v4827_v46 = vpop.f32.mrf.mxu1 }
 0x2d1   : > { %v18603_v31 = vadd.f32 %v15221_v13, %v15163_v42  ;;  %15550 = vmatmul.mubr.msk.f32.vlgmr.msra.gmra.mxu0 %vm4220_vm2, %v7440_v54  ;;  %15604 = vmatpush3.msra.mxu1 %v18278_v29  ;;  %v7442_v13 = vld [vmem:[#allocation2 + $0x3d] sm:$0xff]  ;;  %v7443_v29 = vld [vmem:[#allocation2 + $0x45] sm:$0xff] }
 0x2d2   : > { %15494 = vmatprep.mubr.msk.f32.mxu1 %vm4220_vm2, %v18283_v43  ;;  %15552 = vmatprep.mubr.msk.f32.mxu0 %vm4220_vm2, %v7441_v51  ;;  %v5180_v16 = vpop.f32.mrf.mxu0  ;;  %v15166_v20 = vpop.f32.mrf.mxu1 }
 0x2d3   : > { %v18610_v11 = vadd.f32 %v5180_v16, %v4827_v46  ;;  %15605 = vmatprep.subr.mxu1 %v13236_v10 }
 0x2d4   : > { %v15224_v23 = vpop.f32.mrf.mxu0  ;;  %15495 = vmatmul.mubr.msk.f32.gmra.mxu1 %vm4220_vm2, %v18289_v15  ;;  %v4837_v43 = vpop.f32.mrf.mxu1  ;;  %v7444_v15 = vld [vmem:[#allocation2 + $0x4d] sm:$0xff] }
 0x2d5   : > { %v18614_v42 = vadd.f32 %v15224_v23, %v15166_v20  ;;  %15553 = vmatmul.mubr.msk.f32.gmra.mxu0 %vm4220_vm2, %v7442_v13  ;;  %15497 = vmatprep.mubr.msk.f32.mxu1 %vm4220_vm2, %v18294_v41  ;;  %v7445_v41 = vld [vmem:[#allocation2 + $0x55] sm:$0xff] }
 0x2d6   : > { %15555 = vmatprep.mubr.msk.f32.mxu0 %vm4220_vm2, %v7443_v29  ;;  %v5190_v54 = vpop.f32.mrf.mxu0  ;;  %15606 = vmatpush3.msra.mxu1 %v13236_v10  ;;  %v15169_v46 = vpop.f32.mrf.mxu1 }
 0x2d7   : > { %v18620_v51 = vadd.f32 %v5190_v54, %v4837_v43  ;;  %v7447_v54 = vld [vmem:[#allocation2 + $0x65] sm:$0xff] }
 0x2d8   : > { %v15227_v16 = vpop.f32.mrf.mxu0  ;;  %15498 = vmatmul.mubr.msk.f32.gmra.mxu1 %vm4220_vm2, %v18299_v47  ;;  %v4847_v23 = vpop.f32.mrf.mxu1  ;;  %v7446_v47 = vld [vmem:[#allocation2 + $0x5d] sm:$0xff] }
 0x2d9   : > { %v18624_v20 = vadd.f32 %v15227_v16, %v15169_v46  ;;  %15556 = vmatmul.mubr.msk.f32.gmra.mxu0 %vm4220_vm2, %v7444_v15  ;;  %15500 = vmatprep.mubr.msk.f32.mxu1 %vm4220_vm2, %v18304_v4 }
 0x2da   : > { %15558 = vmatprep.mubr.msk.f32.mxu0 %vm4220_vm2, %v7445_v41  ;;  %v5200_v10 = vpop.f32.mrf.mxu0 }
 0x2db   : > { %v18630_v13 = vadd.f32 %v5200_v10, %v4847_v23 }
 0x2dc   : > { %v15172_v29 = vpop.f32.mrf.mxu1  ;;  %15501 = vmatmul.mubr.msk.f32.gmra.mxu1 %vm4220_vm2, %v18316_v5  ;;  %v7448_v5 = vld [vmem:[#allocation2 + $0x6d] sm:$0xff] }
 0x2dd   : > { %v15230_v43 = vpop.f32.mrf.mxu0  ;;  %15559 = vmatmul.mubr.msk.f32.gmra.mxu0 %vm4220_vm2, %v7446_v47  ;;  %15503 = vmatprep.mubr.msk.f32.mxu1 %vm4220_vm2, %v18445_v63  ;;  %v7449_v63 = vld [vmem:[#allocation2 + $0x75] sm:$0xff] }
 0x2de   : > { %v18637_v4 = vadd.f32 %v15230_v43, %v15172_v29  ;;  %15561 = vmatprep.mubr.msk.f32.mxu0 %vm4220_vm2, %v7447_v54  ;;  %v4857_v46 = vpop.f32.mrf.mxu1 }
 0x2df   : > { %v5210_v16 = vpop.f32.mrf.mxu0 }
 0x2e0   : > { %v18640_v15 = vadd.f32 %v5210_v16, %v4857_v46  ;;  %v15175_v41 = vpop.f32.mrf.mxu1  ;;  %15504 = vmatmul.mubr.msk.f32.gmra.mxu1 %vm4220_vm2, %v18450_v58  ;;  %v7450_v58 = vld [vmem:[#allocation2 + $0x7d] sm:$0xff] }
 0x2e1   : > { %v15233_v23 = vpop.f32.mrf.mxu0  ;;  %15562 = vmatmul.mubr.msk.f32.gmra.mxu0 %vm4220_vm2, %v7448_v5  ;;  %15506 = vmatprep.mubr.msk.f32.mxu1 %vm4220_vm2, %v18455_v60  ;;  %v7451_v60 = vld [vmem:[#allocation2 + $0x85] sm:$0xff] }
 0x2e2   : > { %v18647_v10 = vadd.f32 %v15233_v23, %v15175_v41  ;;  %15564 = vmatprep.mubr.msk.f32.mxu0 %vm4220_vm2, %v7449_v63  ;;  %v4867_v29 = vpop.f32.mrf.mxu1 }
 0x2e3   : > { %v5220_v47 = vpop.f32.mrf.mxu0 }
 0x2e4   : > { %v18650_v43 = vadd.f32 %v5220_v47, %v4867_v29  ;;  %v15178_v54 = vpop.f32.mrf.mxu1  ;;  %15507 = vmatmul.mubr.msk.f32.gmra.mxu1 %vm4220_vm2, %v18460_v34  ;;  %v7452_v34 = vld [vmem:[#allocation2 + $0x8d] sm:$0xff] }
 0x2e5   : > { %v15236_v46 = vpop.f32.mrf.mxu0  ;;  %15565 = vmatmul.mubr.msk.f32.gmra.mxu0 %vm4220_vm2, %v7450_v58  ;;  %15509 = vmatprep.mubr.msk.f32.mxu1 %vm4220_vm2, %v18465_v40  ;;  %v7453_v40 = vld [vmem:[#allocation2 + $0x95] sm:$0xff] }
 0x2e6   : > { %v18657_v16 = vadd.f32 %v15236_v46, %v15178_v54  ;;  %15567 = vmatprep.mubr.msk.f32.mxu0 %vm4220_vm2, %v7451_v60  ;;  %v4877_v41 = vpop.f32.mrf.mxu1 }
 0x2e7   : > { %v5230_v5 = vpop.f32.mrf.mxu0 }
 0x2e8   : > { %v18660_v23 = vadd.f32 %v5230_v5, %v4877_v41  ;;  %v15181_v63 = vpop.f32.mrf.mxu1  ;;  %15510 = vmatmul.mubr.msk.f32.gmra.mxu1 %vm4220_vm2, %v18470_v44  ;;  %v7454_v44 = vld [vmem:[#allocation2 + $0x9d] sm:$0xff] }
 0x2e9   : > { %v15239_v29 = vpop.f32.mrf.mxu0  ;;  %15568 = vmatmul.mubr.msk.f32.gmra.mxu0 %vm4220_vm2, %v7452_v34  ;;  %15512 = vmatprep.mubr.msk.f32.mxu1 %vm4220_vm2, %v18475_v18  ;;  %v7455_v18 = vld [vmem:[#allocation2 + $0xa5] sm:$0xff] }
 0x2ea   : > { %v18667_v47 = vadd.f32 %v15239_v29, %v15181_v63  ;;  %15570 = vmatprep.mubr.msk.f32.mxu0 %vm4220_vm2, %v7453_v40  ;;  %v4887_v54 = vpop.f32.mrf.mxu1 }
 0x2eb   : > { %v5240_v58 = vpop.f32.mrf.mxu0 }
 0x2ec   : > { %v18670_v46 = vadd.f32 %v5240_v58, %v4887_v54  ;;  %v15184_v60 = vpop.f32.mrf.mxu1  ;;  %15513 = vmatmul.mubr.msk.f32.gmra.mxu1 %vm4220_vm2, %v18480_v21  ;;  %v7456_v21 = vld [vmem:[#allocation2 + $0xad] sm:$0xff] }
 0x2ed   : > { %v15242_v41 = vpop.f32.mrf.mxu0  ;;  %15571 = vmatmul.mubr.msk.f32.gmra.mxu0 %vm4220_vm2, %v7454_v44  ;;  %15515 = vmatprep.mubr.msk.f32.mxu1 %vm4220_vm2, %v18485_v25  ;;  %v7457_v25 = vld [vmem:[#allocation2 + $0xb5] sm:$0xff] }
 0x2ee   : > { %v18677_v5 = vadd.f32 %v15242_v41, %v15184_v60  ;;  %15573 = vmatprep.mubr.msk.f32.mxu0 %vm4220_vm2, %v7455_v18  ;;  %v4897_v63 = vpop.f32.mrf.mxu1 }
 0x2ef   : > { %v5250_v34 = vpop.f32.mrf.mxu0 }
 0x2f0   : > { %v18680_v29 = vadd.f32 %v5250_v34, %v4897_v63  ;;  %v15187_v40 = vpop.f32.mrf.mxu1  ;;  %15516 = vmatmul.mubr.msk.f32.gmra.mxu1 %vm4220_vm2, %v18490_v55  ;;  %v7458_v55 = vld [vmem:[#allocation2 + $0xbd] sm:$0xff] }
 0x2f1   : > { %v15245_v54 = vpop.f32.mrf.mxu0  ;;  %15574 = vmatmul.mubr.msk.f32.gmra.mxu0 %vm4220_vm2, %v7456_v21  ;;  %15518 = vmatprep.mubr.msk.f32.mxu1 %vm4220_vm2, %v18495_v52  ;;  %v7459_v52 = vld [vmem:[#allocation2 + $0xc5] sm:$0xff] }
 0x2f2   : > { %v18687_v58 = vadd.f32 %v15245_v54, %v15187_v40  ;;  %15576 = vmatprep.mubr.msk.f32.mxu0 %vm4220_vm2, %v7457_v25  ;;  %v4907_v60 = vpop.f32.mrf.mxu1 }
 0x2f3   : > { %v5260_v44 = vpop.f32.mrf.mxu0 }
 0x2f4   : > { %v18690_v41 = vadd.f32 %v5260_v44, %v4907_v60  ;;  %v15190_v18 = vpop.f32.mrf.mxu1  ;;  %15519 = vmatmul.mubr.msk.f32.gmra.mxu1 %vm4220_vm2, %v18500_v24  ;;  %v7460_v24 = vld [vmem:[#allocation2 + $0xcd] sm:$0xff] }
 0x2f5   : > { %v15248_v63 = vpop.f32.mrf.mxu0  ;;  %15577 = vmatmul.mubr.msk.f32.gmra.mxu0 %vm4220_vm2, %v7458_v55  ;;  %15521 = vmatprep.mubr.msk.f32.mxu1 %vm4220_vm2, %v18505_v33  ;;  %v7461_v33 = vld [vmem:[#allocation2 + $0xd5] sm:$0xff] }
 0x2f6   : > { %v18697_v34 = vadd.f32 %v15248_v63, %v15190_v18  ;;  %15579 = vmatprep.mubr.msk.f32.mxu0 %vm4220_vm2, %v7459_v52  ;;  %v4917_v40 = vpop.f32.mrf.mxu1 }
 0x2f7   : > { %v5270_v21 = vpop.f32.mrf.mxu0 }
 0x2f8   : > { %v18700_v54 = vadd.f32 %v5270_v21, %v4917_v40  ;;  %v15193_v25 = vpop.f32.mrf.mxu1  ;;  %15522 = vmatmul.mubr.msk.f32.gmra.mxu1 %vm4220_vm2, %v18510_v19  ;;  %v7462_v19 = vld [vmem:[#allocation2 + $0xdd] sm:$0xff] }
 0x2f9   : > { %v15251_v60 = vpop.f32.mrf.mxu0  ;;  %15580 = vmatmul.mubr.msk.f32.gmra.mxu0 %vm4220_vm2, %v7460_v24  ;;  %15524 = vmatprep.mubr.msk.f32.mxu1 %vm4220_vm2, %v18515_v48  ;;  %v7463_v48 = vld [vmem:[#allocation2 + $0xe5] sm:$0xff] }
 0x2fa   : > { %v18707_v44 = vadd.f32 %v15251_v60, %v15193_v25  ;;  %15582 = vmatprep.mubr.msk.f32.mxu0 %vm4220_vm2, %v7461_v33  ;;  %v18710_v18 = vpop.f32.mrf.mxu1 }
 0x2fb   : > { %v18712_v55 = vpop.f32.mrf.mxu0 }
 0x2fc   : > { %v15196_v63 = vpop.f32.mrf.mxu1  ;;  %15525 = vmatmul.mubr.msk.f32.gmra.mxu1 %vm4220_vm2, %v18520_v8  ;;  %v7464_v8 = vld [vmem:[#allocation2 + $0xed] sm:$0xff] }
 0x2fd   : > { %v15254_v52 = vpop.f32.mrf.mxu0  ;;  %15583 = vmatmul.mubr.msk.f32.gmra.mxu0 %vm4220_vm2, %v7462_v19  ;;  %15527 = vmatprep.mubr.msk.f32.mxu1 %vm4220_vm2, %v18529_v59  ;;  %v7465_v59 = vld [vmem:[#allocation2 + $0xf5] sm:$0xff] }
 0x2fe   : > { %v18719_v40 = vadd.f32 %v15254_v52, %v15196_v63  ;;  %15585 = vmatprep.mubr.msk.f32.mxu0 %vm4220_vm2, %v7463_v48  ;;  %v18722_v21 = vpop.f32.mrf.mxu1 }
 0x2ff   : > { %20918 = vst [vmem:[#allocation23_spill] sm:$0xff] %v18722_v21  ;;  %v18724_v25 = vpop.f32.mrf.mxu0  ;;  %v7871_v21 = vld [vmem:[#allocation2 + $0x46] sm:$0xff] }
 0x300   : > { %20919 = vst [vmem:[#allocation46_spill] sm:$0xff] %v18724_v25  ;;  %v15261_v24 = vpop.f32.mrf.mxu1  ;;  %15528 = vmatmul.mubr.msk.f32.gmra.mxu1 %vm4220_vm2, %v18536_v37  ;;  %v7466_v37 = vld [vmem:[#allocation2 + $0xfd] sm:$0xff] }
 0x301   : > { %v5692_v60 = vadd.f32 %v15261_v24, %v18154_v12  ;;  %v15319_v33 = vpop.f32.mrf.mxu0  ;;  %15586 = vmatmul.mubr.msk.f32.gmra.mxu0 %vm4220_vm2, %v7464_v8  ;;  %15530 = vmatprep.mubr.msk.f32.mxu1 %vm4220_vm2, %v18541_v27  ;;  %v7467_v27 = vld [vmem:[#allocation2 + $0x105] sm:$0xff] }
 0x302   : > { %15588 = vmatprep.mubr.msk.f32.mxu0 %vm4220_vm2, %v7465_v59  ;;  %v18733_v63 = vpop.f32.mrf.mxu1 }
 0x303   : > { %v18735_v19 = vadd.f32 %v15319_v33, %v5692_v60  ;;  %v18737_v52 = vpop.f32.mrf.mxu0 }
 0x304   : > { %v15264_v48 = vpop.f32.mrf.mxu1  ;;  %15531 = vmatmul.mubr.msk.f32.gmra.mxu1 %vm4220_vm2, %v18548_v17 }
 0x305   : > { %v5694_v12 = vadd.f32 %v15264_v48, %v18533_v30  ;;  %v15322_v24 = vpop.f32.mrf.mxu0  ;;  %15589 = vmatmul.mubr.msk.f32.gmra.mxu0 %vm4220_vm2, %v7466_v37  ;;  %15533 = vmatprep.mubr.msk.f32.mxu1 %vm4220_vm2, %v18555_v36  ;;  %v7468_v30 = vld [vmem:[#allocation2 + $0x10d] sm:$0xff]  ;;  %v7469_v36 = vld [vmem:[#allocation2 + $0x115] sm:$0xff] }
 0x306   : > { %15591 = vmatprep.mubr.msk.f32.mxu0 %vm4220_vm2, %v7467_v27  ;;  %v5522_v8 = vpop.f32.mrf.mxu1 }
 0x307   : > { %v18746_v60 = vadd.f32 %v15322_v24, %v5694_v12  ;;  %v18749_v33 = vadd.f32 %v5522_v8, %v18545_v14  ;;  %v18751_v59 = vpop.f32.mrf.mxu0 }
 0x308   : > { %v15267_v17 = vpop.f32.mrf.mxu1  ;;  %15534 = vmatmul.mubr.msk.f32.gmra.mxu1 %vm4220_vm2, %v18562_v32 }
 0x309   : > { %v5696_v48 = vadd.f32 %v15267_v17, %v18550_v9  ;;  %v15325_v37 = vpop.f32.mrf.mxu0  ;;  %15592 = vmatmul.mubr.msk.f32.gmra.mxu0 %vm4220_vm2, %v7468_v30  ;;  %15536 = vmatprep.mubr.msk.f32.mxu1 %vm4220_vm2, %v18569_v0  ;;  %v7470_v9 = vld [vmem:[#allocation2 + $0x11d] sm:$0xff]  ;;  %v7471_v0 = vld [vmem:[#allocation2 + $0x125] sm:$0xff]  ;;  %v7045_v30 = vld [vmem:[#allocation2 + $0x134] sm:$0xff] }
 0x30a   : > { %15594 = vmatprep.mubr.msk.f32.mxu0 %vm4220_vm2, %v7469_v36  ;;  %v5532_v14 = vpop.f32.mrf.mxu1  ;;  %v7044_v36 = vld [vmem:[#allocation2 + $0x12c] sm:$0xff] }
 0x30b   : > { %v18760_v12 = vadd.f32 %v15325_v37, %v5696_v48  ;;  %v18763_v24 = vadd.f32 %v5532_v14, %v18559_v38  ;;  %v18765_v27 = vpop.f32.mrf.mxu0 }
 0x30c   : > { %v15270_v32 = vpop.f32.mrf.mxu1  ;;  %15537 = vmatmul.mubr.msk.f32.gmra.mxu1 %vm4220_vm2, %v18576_v61 }
 0x30d   : > { %v5698_v8 = vadd.f32 %v15270_v32, %v18564_v56  ;;  %v15328_v17 = vpop.f32.mrf.mxu0  ;;  %15595 = vmatmul.mubr.msk.f32.gmra.mxu0 %vm4220_vm2, %v7470_v9  ;;  %15539 = vmatprep.mubr.msk.f32.mxu1 %vm4220_vm2, %v18583_v6  ;;  %v7473_v56 = vld [vmem:[#allocation2 + $0x135] sm:$0xff]  ;;  %v7472_v32 = vld [vmem:[#allocation2 + $0x12d] sm:$0xff] }
 0x30e   : > { %15597 = vmatprep.mubr.msk.f32.mxu0 %vm4220_vm2, %v7471_v0  ;;  %v5542_v38 = vpop.f32.mrf.mxu1 }
 0x30f   : > { %v18774_v48 = vadd.f32 %v15328_v17, %v5698_v8  ;;  %v18777_v37 = vadd.f32 %v5542_v38, %v18573_v26  ;;  %v18779_v61 = vpop.f32.mrf.mxu0  ;;  %v7046_v8 = vld [vmem:[#allocation2 + $0x13c] sm:$0x3f] }
 0x310   : > { %v15273_v14 = vpop.f32.mrf.mxu1  ;;  %15540 = vmatmul.mubr.msk.f32.gmra.mxu1 %vm4220_vm2, %v7044_v36  ;;  %v7474_v26 = vld [vmem:[#allocation2 + $0x13d] sm:$0x3f] }
 0x311   : > { %v5700_v6 = vadd.f32 %v15273_v14, %v18578_v50  ;;  %v15331_v9 = vpop.f32.mrf.mxu0  ;;  %15598 = vmatmul.mubr.msk.f32.gmra.mxu0 %vm4220_vm2, %v7472_v32  ;;  %15542 = vmatprep.mubr.msk.f32.mxu1 %vm4220_vm2, %v7045_v30  ;;  %v7867_v50 = vld [vmem:[#allocation2 + $0x26] sm:$0xff] }
 0x312   : > { %v5552_v17 = vpop.f32.mrf.mxu1  ;;  %15600 = vmatprep.mubr.msk.f32.mxu0 %vm4220_vm2, %v7473_v56 }
 0x313   : > { %v18786_v0 = vadd.f32 %v15331_v9, %v5700_v6  ;;  %v18789_v38 = vadd.f32 %v5552_v17, %v18587_v2  ;;  %v18791_v25 = vpop.f32.mrf.mxu0  ;;  %v7868_v9 = vld [vmem:[#allocation2 + $0x2e] sm:$0xff] }
 0x314   : > { %v15276_v36 = vpop.f32.mrf.mxu1  ;;  %15543 = vmatmul.mubr.msk.f32.gmra.mxu1 %vm4220_vm2, %v7046_v8  ;;  %v7869_v8 = vld [vmem:[#allocation2 + $0x36] sm:$0xff] }
 0x315   : > { %v5702_v14 = vadd.f32 %v15276_v36, %v18590_v53  ;;  %v15334_v32 = vpop.f32.mrf.mxu0  ;;  %15607 = vmatprep.mubr.msk.f32.mxu1 %vm4220_vm2, %v7867_v50  ;;  %15601 = vmatmul.mubr.msk.f32.gmra.mxu0 %vm4220_vm2, %v7474_v26 }
 0x316   : > { %v5562_v30 = vpop.f32.mrf.mxu1 }
 0x317   : > { %v18797_v56 = vadd.f32 %v15334_v32, %v5702_v14  ;;  %v18800_v6 = vadd.f32 %v5562_v30, %v18596_v35  ;;  %v18802_v2 = vpop.f32.mrf.mxu0  ;;  %v7870_v32 = vld [vmem:[#allocation2 + $0x3e] sm:$0xff] }
 0x318   : > { %v15279_v17 = vpop.f32.mrf.mxu1  ;;  %15608 = vmatmul.mubr.msk.f32.vlgmr.msra.gmra.mxu1 %vm4220_vm2, %v7868_v9 }
 0x319   : > { %v5704_v53 = vadd.f32 %v15279_v17, %v18603_v31  ;;  %v15337_v36 = vpop.f32.mrf.mxu0  ;;  %15610 = vmatprep.mubr.msk.f32.mxu1 %vm4220_vm2, %v7869_v8 }
 0x31a   : > { %v5572_v50 = vpop.f32.mrf.mxu1 }
 0x31b   : > { %v18807_v26 = vadd.f32 %v15337_v36, %v5704_v53  ;;  %v18810_v14 = vadd.f32 %v5572_v50, %v18610_v11  ;;  %v18812_v35 = vpop.f32.mrf.mxu0  ;;  %v7872_v53 = vld [vmem:[#allocation2 + $0x4e] sm:$0xff]  ;;  %v7873_v50 = vld [vmem:[#allocation2 + $0x56] sm:$0xff] }
 0x31c   : > { %20921 = vst [vmem:[#allocation49_spill] sm:$0xff] %v18812_v35  ;;  %v15282_v30 = vpop.f32.mrf.mxu1  ;;  %15611 = vmatmul.mubr.msk.f32.gmra.mxu1 %vm4220_vm2, %v7870_v32 }
 0x31d   : > { %20920 = vst [vmem:[#allocation25_spill] sm:$0xff] %v18810_v14  ;;  %v5706_v9 = vadd.f32 %v15282_v30, %v18614_v42  ;;  %v15340_v45 = vpop.f32.mrf.mxu0  ;;  %15613 = vmatprep.mubr.msk.f32.mxu1 %vm4220_vm2, %v7871_v21 }
 0x31e   : > { %v5582_v31 = vpop.f32.mrf.mxu1 }
 0x31f   : > { %v18817_v17 = vadd.f32 %v15340_v45, %v5706_v9  ;;  %v18820_v8 = vadd.f32 %v5582_v31, %v18620_v51  ;;  %v18822_v11 = vpop.f32.mrf.mxu0  ;;  %v13276_v45 = vld [vmem:[%s20683_s5 + $0x18] sm:$0xff] }
 0x320   : > { %20923 = vst [vmem:[#allocation9_spill] sm:$0xff] %v18822_v11  ;;  %v15285_v36 = vpop.f32.mrf.mxu1  ;;  %15614 = vmatmul.mubr.msk.f32.gmra.mxu1 %vm4220_vm2, %v7872_v53  ;;  %15661 = vmatprep.subr.mxu0 %v13276_v45  ;;  %v7874_v9 = vld [vmem:[#allocation2 + $0x5e] sm:$0xff] }
 0x321   : > { %20922 = vst [vmem:[#allocation48_spill] sm:$0xff] %v18820_v8  ;;  %v5708_v32 = vadd.f32 %v15285_v36, %v18624_v20  ;;  %v15343_v28 = vpop.f32.mrf.mxu0  ;;  %15616 = vmatprep.mubr.msk.f32.mxu1 %vm4220_vm2, %v7873_v50  ;;  %15662 = vmatpush3.msra.mxu0 %v13276_v45  ;;  %v7875_v20 = vld [vmem:[#allocation2 + $0x66] sm:$0xff]  ;;  %v7877_v45 = vld [vmem:[#allocation2 + $0x76] sm:$0xff] }
 0x322   : > { %v5592_v42 = vpop.f32.mrf.mxu1 }
 0x323   : > { %v18830_v51 = vadd.f32 %v15343_v28, %v5708_v32  ;;  %v18833_v21 = vadd.f32 %v5592_v42, %v18630_v13  ;;  %v18835_v30 = vpop.f32.mrf.mxu0  ;;  %v7876_v32 = vld [vmem:[#allocation2 + $0x6e] sm:$0xff] }
 0x324   : > { %20925 = vst [vmem:[#allocation47_spill] sm:$0xff] %v18835_v30  ;;  %v15288_v31 = vpop.f32.mrf.mxu1  ;;  %15617 = vmatmul.mubr.msk.f32.gmra.mxu1 %vm4220_vm2, %v7874_v9 }
 0x325   : > { %20924 = vst [vmem:[#allocation26_spill] sm:$0xff] %v18833_v21  ;;  %v5710_v53 = vadd.f32 %v15288_v31, %v18637_v4  ;;  %v15346_v36 = vpop.f32.mrf.mxu0  ;;  %15619 = vmatprep.mubr.msk.f32.mxu1 %vm4220_vm2, %v7875_v20 }
 0x326   : > { %v5602_v50 = vpop.f32.mrf.mxu1 }
 0x327   : > { %v18840_v49 = vadd.f32 %v15346_v36, %v5710_v53  ;;  %v18843_v28 = vadd.f32 %v5602_v50, %v18640_v15  ;;  %v18845_v13 = vpop.f32.mrf.mxu0  ;;  %v7878_v53 = vld [vmem:[#allocation2 + $0x7e] sm:$0xff]  ;;  %v7879_v50 = vld [vmem:[#allocation2 + $0x86] sm:$0xff] }
 0x328   : > { %20927 = vst [vmem:[#allocation52_spill] sm:$0xff] %v18845_v13  ;;  %v15291_v42 = vpop.f32.mrf.mxu1  ;;  %15620 = vmatmul.mubr.msk.f32.gmra.mxu1 %vm4220_vm2, %v7876_v32 }
 0x329   : > { %20926 = vst [vmem:[#allocation50_spill] sm:$0xff] %v18843_v28  ;;  %v5712_v9 = vadd.f32 %v15291_v42, %v18647_v10  ;;  %v15349_v30 = vpop.f32.mrf.mxu0  ;;  %15622 = vmatprep.mubr.msk.f32.mxu1 %vm4220_vm2, %v7877_v45  ;;  %v7880_v45 = vld [vmem:[#allocation2 + $0x8e] sm:$0xff] }
 0x32a   : > { %v5612_v4 = vpop.f32.mrf.mxu1 }
 0x32b   : > { %v18850_v31 = vadd.f32 %v15349_v30, %v5712_v9  ;;  %v18853_v20 = vadd.f32 %v5612_v4, %v18650_v43  ;;  %v18855_v15 = vpop.f32.mrf.mxu0  ;;  %v7881_v4 = vld [vmem:[#allocation2 + $0x96] sm:$0xff] }
 0x32c   : > { %20929 = vst [vmem:[#allocation27_spill] sm:$0xff] %v18855_v15  ;;  %v15294_v36 = vpop.f32.mrf.mxu1  ;;  %15623 = vmatmul.mubr.msk.f32.gmra.mxu1 %vm4220_vm2, %v7878_v53 }
 0x32d   : > { %20928 = vst [vmem:[#allocation51_spill] sm:$0xff] %v18853_v20  ;;  %v5714_v32 = vadd.f32 %v15294_v36, %v18657_v16  ;;  %v15352_v13 = vpop.f32.mrf.mxu0  ;;  %15625 = vmatprep.mubr.msk.f32.mxu1 %vm4220_vm2, %v7879_v50  ;;  %v7882_v50 = vld [vmem:[#allocation2 + $0x9e] sm:$0xff] }
 0x32e   : > { %v5622_v10 = vpop.f32.mrf.mxu1 }
 0x32f   : > { %v18860_v42 = vadd.f32 %v15352_v13, %v5714_v32  ;;  %v18863_v30 = vadd.f32 %v5622_v10, %v18660_v23  ;;  %v18865_v43 = vpop.f32.mrf.mxu0  ;;  %v7883_v10 = vld [vmem:[#allocation2 + $0xa6] sm:$0xff] }
 0x330   : > { %20931 = vst [vmem:[#allocation28_spill] sm:$0xff] %v18865_v43  ;;  %v15297_v9 = vpop.f32.mrf.mxu1  ;;  %15626 = vmatmul.mubr.msk.f32.gmra.mxu1 %vm4220_vm2, %v7880_v45 }
 0x331   : > { %20930 = vst [vmem:[#allocation10_spill] sm:$0xff] %v18863_v30  ;;  %v5716_v53 = vadd.f32 %v15297_v9, %v18667_v47  ;;  %v15355_v15 = vpop.f32.mrf.mxu0  ;;  %15628 = vmatprep.mubr.msk.f32.mxu1 %vm4220_vm2, %v7881_v4  ;;  %v7884_v4 = vld [vmem:[#allocation2 + $0xae] sm:$0xff] }
 0x332   : > { %v5632_v16 = vpop.f32.mrf.mxu1 }
 0x333   : > { %v18870_v36 = vadd.f32 %v15355_v15, %v5716_v53  ;;  %v18873_v13 = vadd.f32 %v5632_v16, %v18670_v46  ;;  %v18875_v23 = vpop.f32.mrf.mxu0  ;;  %v7885_v16 = vld [vmem:[#allocation2 + $0xb6] sm:$0xff] }
 0x334   : > { %20933 = vst [vmem:[#allocation56_spill] sm:$0xff] %v18875_v23  ;;  %v15300_v32 = vpop.f32.mrf.mxu1  ;;  %15629 = vmatmul.mubr.msk.f32.gmra.mxu1 %vm4220_vm2, %v7882_v50 }
 0x335   : > { %20932 = vst [vmem:[#allocation53_spill] sm:$0xff] %v18873_v13  ;;  %v5718_v45 = vadd.f32 %v15300_v32, %v18677_v5  ;;  %v15358_v43 = vpop.f32.mrf.mxu0  ;;  %15631 = vmatprep.mubr.msk.f32.mxu1 %vm4220_vm2, %v7883_v10  ;;  %v7886_v10 = vld [vmem:[#allocation2 + $0xbe] sm:$0xff] }
 0x336   : > { %v5642_v47 = vpop.f32.mrf.mxu1 }
 0x337   : > { %v18880_v9 = vadd.f32 %v15358_v43, %v5718_v45  ;;  %v18883_v15 = vadd.f32 %v5642_v47, %v18680_v29  ;;  %v18885_v46 = vpop.f32.mrf.mxu0  ;;  %v7887_v47 = vld [vmem:[#allocation2 + $0xc6] sm:$0xff] }
 0x338   : > { %20935 = vst [vmem:[#allocation29_spill] sm:$0xff] %v18885_v46  ;;  %v15303_v53 = vpop.f32.mrf.mxu1  ;;  %15632 = vmatmul.mubr.msk.f32.gmra.mxu1 %vm4220_vm2, %v7884_v4 }
 0x339   : > { %20934 = vst [vmem:[#allocation55_spill] sm:$0xff] %v18883_v15  ;;  %v5720_v50 = vadd.f32 %v15303_v53, %v18687_v58  ;;  %v15361_v23 = vpop.f32.mrf.mxu0  ;;  %15634 = vmatprep.mubr.msk.f32.mxu1 %vm4220_vm2, %v7885_v16  ;;  %v7888_v16 = vld [vmem:[#allocation2 + $0xce] sm:$0xff] }
 0x33a   : > { %v5652_v5 = vpop.f32.mrf.mxu1 }
 0x33b   : > { %v18890_v32 = vadd.f32 %v15361_v23, %v5720_v50  ;;  %v18893_v43 = vadd.f32 %v5652_v5, %v18690_v41  ;;  %v18895_v29 = vpop.f32.mrf.mxu0  ;;  %v7889_v5 = vld [vmem:[#allocation2 + $0xd6] sm:$0xff] }
 0x33c   : > { %20937 = vst [vmem:[#allocation30_spill] sm:$0xff] %v18895_v29  ;;  %v15306_v45 = vpop.f32.mrf.mxu1  ;;  %15635 = vmatmul.mubr.msk.f32.gmra.mxu1 %vm4220_vm2, %v7886_v10  ;;  %v5281_v10 = vadd.f32 %v18712_v55, %v18710_v18 }
 0x33d   : > { %20936 = vst [vmem:[#allocation11_spill] sm:$0xff] %v18893_v43  ;;  %v5722_v4 = vadd.f32 %v15306_v45, %v18697_v34  ;;  %v15364_v46 = vpop.f32.mrf.mxu0  ;;  %15637 = vmatprep.mubr.msk.f32.mxu1 %vm4220_vm2, %v7887_v47 }
 0x33e   : > { %v5662_v58 = vpop.f32.mrf.mxu1 }
 0x33f   : > { %v18900_v53 = vadd.f32 %v15364_v46, %v5722_v4  ;;  %v18903_v23 = vadd.f32 %v5662_v58, %v18700_v54  ;;  %v18905_v41 = vpop.f32.mrf.mxu0  ;;  %v7890_v58 = vld [vmem:[#allocation2 + $0xde] sm:$0xff] }
 0x340   : > { %20939 = vst [vmem:[#allocation60_spill] sm:$0xff] %v18905_v41  ;;  %v15309_v50 = vpop.f32.mrf.mxu1  ;;  %15638 = vmatmul.mubr.msk.f32.gmra.mxu1 %vm4220_vm2, %v7888_v16  ;;  %v7891_v16 = vld [vmem:[#allocation2 + $0xe6] sm:$0xff] }
 0x341   : > { %20938 = vst [vmem:[#allocation57_spill] sm:$0xff] %v18903_v23  ;;  %v5724_v34 = vadd.f32 %v15309_v50, %v18707_v44  ;;  %v15367_v45 = vpop.f32.mrf.mxu0  ;;  %15640 = vmatprep.mubr.msk.f32.mxu1 %vm4220_vm2, %v7889_v5  ;;  %v13275_v44 = vld [vmem:[%s20683_s5 + $0x10] sm:$0xff] }
 0x342   : > { %v5672_v46 = vpop.f32.mrf.mxu1  ;;  %15663 = vmatprep.subr.mxu0 %v13275_v44 }
 0x343   : > { %v18912_v47 = vadd.f32 %v15367_v45, %v5724_v34  ;;  %v18914_v54 = vadd.f32 %v5672_v46, %v5281_v10  ;;  %v18916_v4 = vpop.f32.mrf.mxu0  ;;  %v7892_v10 = vld [vmem:[#allocation2 + $0xee] sm:$0xff]  ;;  %15664 = vmatpush3.msra.mxu0 %v13275_v44  ;;  %v7895_v44 = vld [vmem:[#allocation2 + $0x106] sm:$0xff] }
 0x344   : > { %20941 = vst [vmem:[#allocation14_spill] sm:$0xff] %v18916_v4  ;;  %v15312_v41 = vpop.f32.mrf.mxu1  ;;  %15641 = vmatmul.mubr.msk.f32.gmra.mxu1 %vm4220_vm2, %v7890_v58 }
 0x345   : > { %20940 = vst [vmem:[#allocation4_spill] sm:$0xff] %v18914_v54  ;;  %v5726_v23 = vadd.f32 %v15312_v41, %v18719_v40  ;;  %v15370_v18 = vpop.f32.mrf.mxu0  ;;  %15643 = vmatprep.mubr.msk.f32.mxu1 %vm4220_vm2, %v7891_v16  ;;  %v7893_v40 = vld [vmem:[#allocation2 + $0xf6] sm:$0xff]  ;;  %v7899_v54 = vld [vmem:[#allocation2 + $0x126] sm:$0xff] }
 0x346   : > { %v18924_v55 = vpop.f32.mrf.mxu1 }
 0x347   : > { %20942 = vst [vmem:[#allocation12_spill] sm:$0xff] %v18924_v55  ;;  %v18926_v50 = vadd.f32 %v15370_v18, %v5726_v23  ;;  %v18928_v5 = vpop.f32.mrf.mxu0  ;;  %v7894_v23 = vld [vmem:[#allocation2 + $0xfe] sm:$0xff]  ;;  %v7897_v55 = vld [vmem:[#allocation2 + $0x116] sm:$0xff] }
 0x348   : > { %20943 = vst [vmem:[#allocation32_spill] sm:$0xff] %v18928_v5  ;;  %v15377_v34 = vpop.f32.mrf.mxu1  ;;  %15644 = vmatmul.mubr.msk.f32.gmra.mxu1 %vm4220_vm2, %v7892_v10 }
 0x349   : > { %v6548_v41 = vadd.f32 %v15377_v34, %v18735_v19  ;;  %v15435_v45 = vpop.f32.mrf.mxu0  ;;  %15646 = vmatprep.mubr.msk.f32.mxu1 %vm4220_vm2, %v7893_v40 }
 0x34a   : > { %v18933_v46 = vpop.f32.mrf.mxu1 }
 0x34b   : > { %v18935_v58 = vadd.f32 %v15435_v45, %v6548_v41  ;;  %v18937_v16 = vpop.f32.mrf.mxu0  ;;  %v7896_v41 = vld [vmem:[#allocation2 + $0x10e] sm:$0xff] }
 0x34c   : > { %v15380_v18 = vpop.f32.mrf.mxu1  ;;  %15647 = vmatmul.mubr.msk.f32.gmra.mxu1 %vm4220_vm2, %v7894_v23 }
 0x34d   : > { %v6550_v5 = vadd.f32 %v15380_v18, %v18746_v60  ;;  %v15438_v10 = vpop.f32.mrf.mxu0  ;;  %15649 = vmatprep.mubr.msk.f32.mxu1 %vm4220_vm2, %v7895_v44 }
 0x34e   : > { %v18942_v19 = vpop.f32.mrf.mxu1 }
 0x34f   : > { %v18944_v34 = vadd.f32 %v15438_v10, %v6550_v5  ;;  %v18946_v40 = vpop.f32.mrf.mxu0  ;;  %v7898_v5 = vld [vmem:[#allocation2 + $0x11e] sm:$0xff] }
 0x350   : > { %v15383_v45 = vpop.f32.mrf.mxu1  ;;  %15650 = vmatmul.mubr.msk.f32.gmra.mxu1 %vm4220_vm2, %v7896_v41 }
 0x351   : > { %v6552_v4 = vadd.f32 %v15383_v45, %v18760_v12  ;;  %v15441_v23 = vpop.f32.mrf.mxu0  ;;  %15652 = vmatprep.mubr.msk.f32.mxu1 %vm4220_vm2, %v7897_v55  ;;  %v7901_v45 = vld [vmem:[#allocation2 + $0x136] sm:$0xff] }
 0x352   : > { %v18951_v60 = vpop.f32.mrf.mxu1 }
 0x353   : > { %v18953_v18 = vadd.f32 %v15441_v23, %v6552_v4  ;;  %v18955_v44 = vpop.f32.mrf.mxu0  ;;  %v7900_v4 = vld [vmem:[#allocation2 + $0x12e] sm:$0xff] }
 0x354   : > { %v15386_v10 = vpop.f32.mrf.mxu1  ;;  %15653 = vmatmul.mubr.msk.f32.gmra.mxu1 %vm4220_vm2, %v7898_v5 }
 0x355   : > { %v6554_v29 = vadd.f32 %v15386_v10, %v18774_v48  ;;  %v15444_v41 = vpop.f32.mrf.mxu0  ;;  %15655 = vmatprep.mubr.msk.f32.mxu1 %vm4220_vm2, %v7899_v54  ;;  %v7902_v48 = vld [vmem:[#allocation2 + $0x13e] sm:$0x3f] }
 0x356   : > { %v18960_v12 = vpop.f32.mrf.mxu1 }
 0x357   : > { %v18962_v55 = vadd.f32 %v15444_v41, %v6554_v29  ;;  %v18964_v43 = vpop.f32.mrf.mxu0 }
 0x358   : > { %v15389_v23 = vpop.f32.mrf.mxu1  ;;  %15656 = vmatmul.mubr.msk.f32.gmra.mxu1 %vm4220_vm2, %v7900_v4 }
 0x359   : > { %v6556_v15 = vadd.f32 %v15389_v23, %v18786_v0  ;;  %v15447_v5 = vpop.f32.mrf.mxu0  ;;  %15658 = vmatprep.mubr.msk.f32.mxu1 %vm4220_vm2, %v7901_v45 }
 0x35a   : > { %v18969_v10 = vpop.f32.mrf.mxu1 }
 0x35b   : > { %v18971_v54 = vadd.f32 %v15447_v5, %v6556_v15  ;;  %v18973_v13 = vpop.f32.mrf.mxu0 }
 0x35c   : > { %v15392_v29 = vpop.f32.mrf.mxu1  ;;  %15659 = vmatmul.mubr.msk.f32.gmra.mxu1 %vm4220_vm2, %v7902_v48 }
 0x35d   : > { %v6558_v41 = vadd.f32 %v15392_v29, %v18797_v56  ;;  %v15450_v30 = vpop.f32.mrf.mxu0 }
 0x35e   : > { %v18977_v20 = vpop.f32.mrf.mxu1 }
 0x35f   : > { %v18979_v4 = vadd.f32 %v15450_v30, %v6558_v41  ;;  %v18981_v0 = vpop.f32.mrf.mxu0 }
 0x360   : > { %20944 = vst [vmem:[#allocation58_spill] sm:$0xff] %v18981_v0  ;;  %v15395_v45 = vpop.f32.mrf.mxu1 }
 0x361   : > { %v6560_v23 = vadd.f32 %v15395_v45, %v18807_v26  ;;  %v15453_v28 = vpop.f32.mrf.mxu0 }
 0x362   : > { %v18984_v15 = vpop.f32.mrf.mxu1 }
 0x363   : > { %20945 = vst [vmem:[#allocation31_spill] sm:$0xff] %v18984_v15  ;;  %v18986_v5 = vadd.f32 %v15453_v28, %v6560_v23  ;;  %v18988_v21 = vpop.f32.mrf.mxu0 }
 0x364   : > { %20946 = vst [vmem:[#allocation13_spill] sm:$0xff] %v18988_v21  ;;  %v15398_v48 = vpop.f32.mrf.mxu1 }
 0x365   : > { %v6562_v56 = vadd.f32 %v15398_v48, %v18817_v17  ;;  %v15456_v29 = vpop.f32.mrf.mxu0  ;;  %v8524_v17 = vld [vmem:[%s20683_s5 + $0x8] sm:$0xff] }
 0x366   : > { %v18991_v11 = vpop.f32.mrf.mxu1  ;;  %15719 = vmatprep.subr.mxu1 %v8524_v17 }
 0x367   : > { %20947 = vst [vmem:[#allocation34_spill] sm:$0xff] %v18991_v11  ;;  %v18993_v30 = vadd.f32 %v15456_v29, %v6562_v56  ;;  %v18995_v41 = vpop.f32.mrf.mxu0  ;;  %15720 = vmatpush3.msra.mxu1 %v8524_v17  ;;  %v8488_v17 = vld [vmem:[#allocation3 + $0x8] sm:$0xff] }
 0x368   : > { %20948 = vst [vmem:[#allocation61_spill] sm:$0xff] %v18995_v41  ;;  %v15401_v8 = vpop.f32.mrf.mxu1 }
 0x369   : > { %v6564_v26 = vadd.f32 %v15401_v8, %v18830_v51  ;;  %v15459_v45 = vpop.f32.mrf.mxu0  ;;  %v8523_v8 = vld [vmem:[%s20683_s5] sm:$0xff]  ;;  %v8525_v51 = vld [vmem:[#allocation3 + $0x1] sm:$0xff] }
 0x36a   : > { %v18998_v1 = vpop.f32.mrf.mxu1  ;;  %15721 = vmatprep.subr.mxu1 %v8523_v8  ;;  %15665 = vmatprep.mubr.msk.f32.mxu0 %vm4220_vm2, %v8525_v51 }
 0x36b   : > { %20949 = vst [vmem:[#allocation62_spill] sm:$0xff] %v18998_v1  ;;  %v19000_v28 = vadd.f32 %v15459_v45, %v6564_v26  ;;  %v19002_v23 = vpop.f32.mrf.mxu0  ;;  %v8487_v1 = vld [vmem:[#allocation3] sm:$0xff]  ;;  %15722 = vmatpush3.msra.mxu1 %v8523_v8 }
 0x36c   : > { %20950 = vst [vmem:[#allocation33_spill] sm:$0xff] %v19002_v23  ;;  %v15404_v48 = vpop.f32.mrf.mxu1  ;;  %15723 = vmatprep.mubr.msk.f32.mxu1 %vm4220_vm2, %v8487_v1 }
 0x36d   : > { %v6566_v56 = vadd.f32 %v15404_v48, %v18840_v49  ;;  %v15462_v29 = vpop.f32.mrf.mxu0  ;;  %v8526_v49 = vld [vmem:[#allocation3 + $0x9] sm:$0xff]  ;;  %v13350_v48 = vld [vmem:[%s20683_s5 + $0x28] sm:$0xff]  ;;  %15724 = vmatmul.mubr.msk.f32.vlgmr.msra.gmra.mxu1 %vm4220_vm2, %v8488_v17 }
 0x36e   : > { %v19011_v26 = vpop.f32.mrf.mxu1  ;;  %15666 = vmatmul.mubr.msk.f32.vlgmr.msra.gmra.mxu0 %vm4220_vm2, %v8526_v49  ;;  %15777 = vmatprep.subr.mxu0 %v13350_v48 }
 0x36f   : > { %20951 = vst [vmem:[#allocation63_spill] sm:$0xff] %v19011_v26  ;;  %v19014_v45 = vadd.f32 %v15462_v29, %v6566_v56  ;;  %v19016_v23 = vpop.f32.mrf.mxu0  ;;  %15778 = vmatpush3.msra.mxu0 %v13350_v48 }
 0x370   : > { %20952 = vst [vmem:[#allocation15_spill] sm:$0xff] %v19016_v23  ;;  %v15407_v41 = vpop.f32.mrf.mxu1 }
 0x371   : > { %v6568_v51 = vadd.f32 %v15407_v41, %v18850_v31  ;;  %v15465_v56 = vpop.f32.mrf.mxu0 }
 0x372   : > { %v19025_v29 = vpop.f32.mrf.mxu1 }
 0x373   : > { %20953 = vst [vmem:[#allocation35_spill] sm:$0xff] %v19025_v29  ;;  %v19027_v8 = vadd.f32 %v15465_v56, %v6568_v51  ;;  %v19029_v1 = vpop.f32.mrf.mxu0 }
 0x374   : > { %20954 = vst [vmem:[#allocation36_spill] sm:$0xff] %v19029_v1  ;;  %v15410_v23 = vpop.f32.mrf.mxu1 }
 0x375   : > { %v6570_v26 = vadd.f32 %v15410_v23, %v18860_v42  ;;  %v15468_v11 = vpop.f32.mrf.mxu0 }
 0x376   : > { %v19032_v21 = vpop.f32.mrf.mxu1 }
 0x377   : > { %20955 = vst [vmem:[#allocation64_spill] sm:$0xff] %v19032_v21  ;;  %v19034_v49 = vadd.f32 %v15468_v11, %v6570_v26  ;;  %v19036_v17 = vpop.f32.mrf.mxu0 }
 0x378   : > { %20956 = vst [vmem:[#allocation67_spill] sm:$0xff] %v19036_v17  ;;  %v15413_v31 = vpop.f32.mrf.mxu1 }
 0x379   : > { %v6572_v41 = vadd.f32 %v15413_v31, %v18870_v36  ;;  %v15471_v15 = vpop.f32.mrf.mxu0 }
 0x37a   : > { %v19039_v29 = vpop.f32.mrf.mxu1 }
 0x37b   : > { %20957 = vst [vmem:[#allocation71_spill] sm:$0xff] %v19039_v29  ;;  %v19041_v48 = vadd.f32 %v15471_v15, %v6572_v41  ;;  %v19043_v51 = vpop.f32.mrf.mxu0 }
 0x37c   : > { %20958 = vst [vmem:[#allocation68_spill] sm:$0xff] %v19043_v51  ;;  %v15416_v56 = vpop.f32.mrf.mxu1 }
 0x37d   : > { %v6574_v42 = vadd.f32 %v15416_v56, %v18880_v9  ;;  %v15474_v23 = vpop.f32.mrf.mxu0 }
 0x37e   : > { %v19046_v1 = vpop.f32.mrf.mxu1 }
 0x37f   : > { %20959 = vst [vmem:[#allocation37_spill] sm:$0xff] %v19046_v1  ;;  %v19048_v11 = vadd.f32 %v15474_v23, %v6574_v42  ;;  %v19050_v26 = vpop.f32.mrf.mxu0 }
 0x380   : > { %20960 = vst [vmem:[#allocation74_spill] sm:$0xff] %v19050_v26  ;;  %v15419_v17 = vpop.f32.mrf.mxu1 }
 0x381   : > { %v6576_v36 = vadd.f32 %v15419_v17, %v18890_v32  ;;  %v15477_v31 = vpop.f32.mrf.mxu0 }
 0x382   : > { %v19053_v21 = vpop.f32.mrf.mxu1 }
 0x383   : > { %20961 = vst [vmem:[#allocation81_spill] sm:$0xff] %v19053_v21  ;;  %v19055_v15 = vadd.f32 %v15477_v31, %v6576_v36  ;;  %v19057_v41 = vpop.f32.mrf.mxu0 }
 0x384   : > { %20962 = vst [vmem:[#allocation82_spill] sm:$0xff] %v19057_v41  ;;  %v15422_v51 = vpop.f32.mrf.mxu1 }
 0x385   : > { %v6578_v9 = vadd.f32 %v15422_v51, %v18900_v53  ;;  %v15480_v56 = vpop.f32.mrf.mxu0 }
 0x386   : > { %v19060_v29 = vpop.f32.mrf.mxu1 }
 0x387   : > { %20963 = vst [vmem:[#allocation83_spill] sm:$0xff] %v19060_v29  ;;  %v19062_v42 = vadd.f32 %v15480_v56, %v6578_v9  ;;  %v19064_v23 = vpop.f32.mrf.mxu0 }
 0x388   : > { %20964 = vst [vmem:[#allocation84_spill] sm:$0xff] %v19064_v23  ;;  %v15425_v26 = vpop.f32.mrf.mxu1 }
 0x389   : > { %v6580_v32 = vadd.f32 %v15425_v26, %v18912_v47  ;;  %v15483_v17 = vpop.f32.mrf.mxu0 }
 0x38a   : > { %v19067_v1 = vpop.f32.mrf.mxu1 }
 0x38b   : > { %20965 = vst [vmem:[#allocation85_spill] sm:$0xff] %v19067_v1  ;;  %v19069_v36 = vadd.f32 %v15483_v17, %v6580_v32  ;;  %v19071_v31 = vpop.f32.mrf.mxu0 }
 0x38c   : > { %20966 = vst [vmem:[#allocation86_spill] sm:$0xff] %v19071_v31  ;;  %v15428_v41 = vpop.f32.mrf.mxu1 }
 0x38d   : > { %v6582_v53 = vadd.f32 %v15428_v41, %v18926_v50  ;;  %v15486_v51 = vpop.f32.mrf.mxu0  ;;  %v13349_v50 = vld [vmem:[%s20683_s5 + $0x20] sm:$0xff] }
 0x38e   : > { %v19074_v21 = vpop.f32.mrf.mxu1  ;;  %15779 = vmatprep.subr.mxu0 %v13349_v50 }
 0x38f   : > { %20967 = vst [vmem:[#allocation87_spill] sm:$0xff] %v19074_v21  ;;  %v19076_v9 = vadd.f32 %v15486_v51, %v6582_v53  ;;  %v19078_v56 = vpop.f32.mrf.mxu0  ;;  %15780 = vmatpush3.msra.mxu0 %v13349_v50 }
 0x390   : > { %20968 = vst [vmem:[#allocation88_spill] sm:$0xff] %v19078_v56  ;;  %v15493_v23 = vpop.f32.mrf.mxu1 }
 0x391   : > { %v19081_v47 = vadd.f32 %v15493_v23, %v18935_v58  ;;  %v19083_v26 = vpop.f32.mrf.mxu0 }
 0x392   : > { %v19085_v32 = vpop.f32.mrf.mxu1 }
 0x393   : > { %v19087_v17 = vpop.f32.mrf.mxu0 }
 0x394   : > { %v15496_v41 = vpop.f32.mrf.mxu1 }
 0x395   : > { %v19093_v53 = vadd.f32 %v15496_v41, %v18944_v34  ;;  %v19097_v58 = vpop.f32.mrf.mxu0 }
 0x396   : > { %v19095_v51 = vpop.f32.mrf.mxu1 }
 0x397   : > { %v19104_v31 = vpop.f32.mrf.mxu0 }
 0x398   : > { %v15499_v23 = vpop.f32.mrf.mxu1 }
 0x399   : > { %v19100_v56 = vadd.f32 %v15499_v23, %v18953_v18  ;;  %v19111_v34 = vpop.f32.mrf.mxu0 }
 0x39a   : > { %v19102_v21 = vpop.f32.mrf.mxu1 }
 0x39b   : > { %v19118_v18 = vpop.f32.mrf.mxu0 }
 0x39c   : > { %v15502_v1 = vpop.f32.mrf.mxu1 }
 0x39d   : > { %v19107_v29 = vadd.f32 %v15502_v1, %v18962_v55  ;;  %v19125_v55 = vpop.f32.mrf.mxu0 }
 0x39e   : > { %v19109_v0 = vpop.f32.mrf.mxu1 }
 0x39f   : > { %20969 = vst [vmem:[#allocation89_spill] sm:$0xff] %v19107_v29 }
 0x3a0   : > { %v15505_v50 = vpop.f32.mrf.mxu1 }
 0x3a1   : > { %v19114_v41 = vadd.f32 %v15505_v50, %v18971_v54  ;;  %v19132_v54 = vpop.f32.mrf.mxu0 }
 0x3a2   : > { %v19116_v57 = vpop.f32.mrf.mxu1 }
 0x3a3   : > { %20970 = vst [vmem:[#allocation90_spill] sm:$0xff] %v19114_v41  ;;  %20971 = vst [vmem:[#allocation91_spill] sm:$0xff] %v19116_v57  ;;  %v13388_v41 = vld [vmem:[%s20683_s5 + $0x38] sm:$0xff] }
 0x3a4   : > { %v15508_v23 = vpop.f32.mrf.mxu1  ;;  %15835 = vmatprep.subr.mxu1 %v13388_v41 }
 0x3a5   : > { %v19121_v35 = vadd.f32 %v15508_v23, %v18979_v4  ;;  %v13387_v23 = vld [vmem:[%s20683_s5 + $0x30] sm:$0xff]  ;;  %15836 = vmatpush3.msra.mxu1 %v13388_v41 }
 0x3a6   : > { %v19123_v14 = vpop.f32.mrf.mxu1  ;;  %15837 = vmatprep.subr.mxu1 %v13387_v23 }
 0x3a7   : > { %20972 = vst [vmem:[#allocation92_spill] sm:$0xff] %v19121_v35  ;;  %20973 = vst [vmem:[#allocation93_spill] sm:$0xff] %v19123_v14  ;;  %15838 = vmatpush3.msra.mxu1 %v13387_v23 }
 0x3a8   : > { %v15511_v1 = vpop.f32.mrf.mxu1 }
 0x3a9   : > { %v19128_v39 = vadd.f32 %v15511_v1, %v18986_v5  ;;  %v13426_v5 = vld [vmem:[%s20683_s5 + $0x48] sm:$0xff] }
 0x3aa   : > { %v19130_v29 = vpop.f32.mrf.mxu1  ;;  %15893 = vmatprep.subr.mxu0 %v13426_v5 }
 0x3ab   : > { %20974 = vst [vmem:[#allocation94_spill] sm:$0xff] %v19128_v39  ;;  %20975 = vst [vmem:[#allocation95_spill] sm:$0xff] %v19130_v29  ;;  %v19148_v39 = vpop.f32.mrf.mxu0 }
 0x3ac   : > { %v15514_v50 = vpop.f32.mrf.mxu1 }
 0x3ad   : > { %v19138_v4 = vadd.f32 %v15514_v50, %v18993_v30 }
 0x3ae   : > { %v19146_v1 = vpop.f32.mrf.mxu1 }
 0x3af   : > { %20976 = vst [vmem:[#allocation96_spill] sm:$0xff] %v19138_v4  ;;  %20977 = vst [vmem:[#allocation97_spill] sm:$0xff] %v19146_v1  ;;  %v19155_v4 = vpop.f32.mrf.mxu0 }
 0x3b0   : > { %v15517_v29 = vpop.f32.mrf.mxu1 }
 0x3b1   : > { %v19151_v30 = vadd.f32 %v15517_v29, %v19000_v28  ;;  %v19162_v41 = vpop.f32.mrf.mxu0 }
 0x3b2   : > { %v19153_v50 = vpop.f32.mrf.mxu1 }
 0x3b3   : > { %20978 = vst [vmem:[#allocation98_spill] sm:$0xff] %v19151_v30  ;;  %20979 = vst [vmem:[#allocation99_spill] sm:$0xff] %v19153_v50  ;;  %v19169_v28 = vpop.f32.mrf.mxu0 }
 0x3b4   : > { %v15520_v35 = vpop.f32.mrf.mxu1 }
 0x3b5   : > { %v19158_v14 = vadd.f32 %v15520_v35, %v19014_v45  ;;  %v19176_v35 = vpop.f32.mrf.mxu0 }
 0x3b6   : > { %v19160_v57 = vpop.f32.mrf.mxu1 }
 0x3b7   : > { %20980 = vst [vmem:[#allocation100_spill] sm:$0xff] %v19158_v14  ;;  %20981 = vst [vmem:[#allocation101_spill] sm:$0xff] %v19160_v57 }
 0x3b8   : > { %v15523_v5 = vpop.f32.mrf.mxu1 }
 0x3b9   : > { %v19165_v1 = vadd.f32 %v15523_v5, %v19027_v8  ;;  %v19183_v8 = vpop.f32.mrf.mxu0 }
 0x3ba   : > { %v19167_v23 = vpop.f32.mrf.mxu1 }
 0x3bb   : > { %20982 = vst [vmem:[#allocation102_spill] sm:$0xff] %v19165_v1  ;;  %20983 = vst [vmem:[#allocation103_spill] sm:$0xff] %v19167_v23 }
 0x3bc   : > { %v15526_v29 = vpop.f32.mrf.mxu1 }
 0x3bd   : > { %v19172_v30 = vadd.f32 %v15526_v29, %v19034_v49  ;;  %v5121_v49 = vadd.f32 %v18524_v62, %v18522_v22  ;;  %v19192_v29 = vpop.f32.mrf.mxu0 }
 0x3be   : > { %v19174_v50 = vpop.f32.mrf.mxu1 }
 0x3bf   : > { %20984 = vst [vmem:[#allocation104_spill] sm:$0xff] %v19172_v30  ;;  %20985 = vst [vmem:[#allocation105_spill] sm:$0xff] %v19174_v50  ;;  %v5691_v50 = vadd.f32 %v18733_v63, %v5121_v49 }
 0x3c0   : > { %v15529_v45 = vpop.f32.mrf.mxu1 }
 0x3c1   : > { %v19179_v14 = vadd.f32 %v15529_v45, %v19041_v48 }
 0x3c2   : > { %v19181_v57 = vpop.f32.mrf.mxu1 }
 0x3c3   : > { %20986 = vst [vmem:[#allocation106_spill] sm:$0xff] %v19179_v14  ;;  %20987 = vst [vmem:[#allocation107_spill] sm:$0xff] %v19181_v57  ;;  %v19200_v14 = vpop.f32.mrf.mxu0 }
 0x3c4   : > { %v15532_v5 = vpop.f32.mrf.mxu1 }
 0x3c5   : > { %v19186_v1 = vadd.f32 %v15532_v5, %v19048_v11  ;;  %v6119_v11 = vadd.f32 %v18737_v52, %v5691_v50  ;;  %v19209_v22 = vpop.f32.mrf.mxu0 }
 0x3c6   : > { %v19188_v23 = vpop.f32.mrf.mxu1 }
 0x3c7   : > { %20988 = vst [vmem:[#allocation108_spill] sm:$0xff] %v19186_v1  ;;  %v6547_v62 = vadd.f32 %v18933_v46, %v6119_v11  ;;  %v6123_v46 = vadd.f32 %v18765_v27, %v18763_v24  ;;  %v6125_v24 = vadd.f32 %v18779_v61, %v18777_v37 }
 0x3c8   : > { %v15535_v30 = vpop.f32.mrf.mxu1 }
 0x3c9   : > { %v19196_v48 = vadd.f32 %v15535_v30, %v19055_v15  ;;  %v6121_v15 = vadd.f32 %v18751_v59, %v18749_v33  ;;  %v6975_v52 = vadd.f32 %v18937_v16, %v6547_v62  ;;  %v6551_v33 = vadd.f32 %v18951_v60, %v6123_v46 }
 0x3ca   : > { %v19198_v45 = vpop.f32.mrf.mxu1  ;;  %v7832_v16 = vadd.f32 %v19083_v26, %v19081_v47  ;;  %v6553_v47 = vadd.f32 %v18960_v12, %v6125_v24 }
 0x3cb   : > { %v7403_v11 = vadd.f32 %v19085_v32, %v6975_v52  ;;  %v6127_v52 = vadd.f32 %v18791_v25, %v18789_v38 }
 0x3cc   : > { %v15538_v57 = vpop.f32.mrf.mxu1 }
 0x3cd   : > { %v19204_v5 = vadd.f32 %v15538_v57, %v19062_v42  ;;  %v6549_v57 = vadd.f32 %v18942_v19, %v6121_v15  ;;  %v19220_v42 = vpop.f32.mrf.mxu0  ;;  %v7831_v60 = vadd.f32 %v19087_v17, %v7403_v11 }
 0x3ce   : > { %v19206_v1 = vpop.f32.mrf.mxu1 }
 0x3cf   : > { %20989 = vst [vmem:[#allocation109_spill] sm:$0xff] %v19204_v5  ;;  %v19234_v19 = vpop.f32.mrf.mxu0 }
 0x3d0   : > { %v15541_v63 = vpop.f32.mrf.mxu1 }
 0x3d1   : > { %v19214_v30 = vadd.f32 %v15541_v63, %v19069_v36  ;;  %v6977_v36 = vadd.f32 %v18946_v40, %v6549_v57  ;;  %v6979_v40 = vadd.f32 %v18955_v44, %v6551_v33  ;;  %v7834_v63 = vadd.f32 %v19097_v58, %v19093_v53  ;;  %v19249_v37 = vpop.f32.mrf.mxu0 }
 0x3d2   : > { %v19216_v49 = vpop.f32.mrf.mxu1  ;;  %v6555_v53 = vadd.f32 %v18969_v10, %v6127_v52  ;;  %v7836_v58 = vadd.f32 %v19111_v34, %v19100_v56 }
 0x3d3   : > { %v7405_v32 = vadd.f32 %v19095_v51, %v6977_v36  ;;  %v7407_v17 = vadd.f32 %v19102_v21, %v6979_v40  ;;  %v19261_v33 = vpop.f32.mrf.mxu0  ;;  %v6129_v36 = vadd.f32 %v18802_v2, %v18800_v6 }
 0x3d4   : > { %v15544_v50 = vpop.f32.mrf.mxu1 }
 0x3d5   : > { %v19226_v5 = vadd.f32 %v15544_v50, %v19076_v9  ;;  %v19241_v9 = vld [vmem:[%s20682_s4] ss:$0 sm:$0xff]  ;;  %v7833_v57 = vadd.f32 %v19104_v31, %v7405_v32  ;;  %v6981_v50 = vadd.f32 %v18964_v43, %v6553_v47  ;;  %v6557_v32 = vadd.f32 %v18977_v20, %v6129_v36  ;;  %v20994_v20 = vld [vmem:[#allocation91_spill] sm:$0xff] }
 0x3d6   : > { %v19229_v59 = vpop.f32.mrf.mxu1 }
 0x3d7   : > { %v7409_v43 = vadd.f32 %v19109_v0, %v6981_v50  ;;  %v20991_v0 = vld [vmem:[#allocation59_spill] sm:$0xff]  ;;  %v20996_v50 = vld [vmem:[#allocation58_spill] sm:$0xff] }
 0x3d8   : > { %v15609_v27 = vpop.f32.mrf.mxu1 }
 0x3d9   : > { %v8260_v62 = vadd.f32 %v15609_v27, %v7832_v16  ;;  %v7835_v16 = vadd.f32 %v19118_v18, %v7407_v17  ;;  %v19276_v18 = vpop.f32.mrf.mxu0 }
 0x3da   : > { %v8080_v26 = vpop.f32.mrf.mxu1 }
 0x3db   : > { %v8303_v61 = vadd.f32 %v19241_v9, %v8260_v62  ;;  %v8259_v15 = vadd.f32 %v8080_v26, %v7831_v60  ;;  %v6983_v60 = vadd.f32 %v18973_v13, %v6555_v53  ;;  %v20990_v62 = vld [vmem:[#allocation89_spill] sm:$0xff]  ;;  %v7837_v13 = vadd.f32 %v19132_v54, %v7409_v43  ;;  %v19292_v54 = vpop.f32.mrf.mxu0 }
 0x3dc   : > { %v15612_v51 = vpop.f32.mrf.mxu1  ;;  %v7838_v6 = vadd.f32 %v19125_v55, %v20990_v62  ;;  %v20995_v55 = vld [vmem:[#allocation54_spill] sm:$0xff]  ;;  %v6985_v53 = vadd.f32 %v20996_v50, %v6557_v32 }
 0x3dd   : > { %v8339_v44 = vmax.f32 %v8303_v61, 0.0  ;;  %v8302_v12 = vadd.f32 %v19241_v9, %v8259_v15  ;;  %v8262_v46 = vadd.f32 %v15612_v51, %v7834_v63  ;;  %v20992_v61 = vld [vmem:[#allocation25_spill] sm:$0xff]  ;;  %v7411_v17 = vadd.f32 %v20994_v20, %v6983_v60 }
 0x3de   : > { %v8090_v11 = vpop.f32.mrf.mxu1  ;;  %v20993_v15 = vld [vmem:[#allocation49_spill] sm:$0xff] }
 0x3df   : > { %v8416_v25 = vmul.f32 %v8339_v44, %v17759_v7  ;;  %v8338_v38 = vmax.f32 %v8302_v12, 0.0  ;;  %v8305_v21 = vadd.f32 %v19241_v9, %v8262_v46  ;;  %v8261_v31 = vadd.f32 %v8090_v11, %v7833_v57  ;;  %v21002_v60 = vld [vmem:[#allocation93_spill] sm:$0xff] }
 0x3e0   : > { %v15615_v10 = vpop.f32.mrf.mxu1  ;;  %v6131_v52 = vadd.f32 %v20993_v15, %v20992_v61  ;;  %v7413_v32 = vadd.f32 %v21002_v60, %v6985_v53  ;;  %v21005_v61 = vld [vmem:[#allocation34_spill] sm:$0xff] }
 0x3e1   : > { %8452 = vst.msk [vmem:[#allocation3 + $0x1b] sm:$0xff] %vm4220_vm2, %v8416_v25  ;;  %v8415_v56 = vmul.f32 %v8338_v38, %v17746_v3  ;;  %v8341_v34 = vmax.f32 %v8305_v21, 0.0  ;;  %v8304_v24 = vadd.f32 %v19241_v9, %v8261_v31  ;;  %v8264_v27 = vadd.f32 %v15615_v10, %v7836_v58  ;;  %v20997_v58 = vld [vmem:[#allocation31_spill] sm:$0xff]  ;;  %v20998_v25 = vld [vmem:[#allocation90_spill] sm:$0xff] }
 0x3e2   : > { %v8100_v2 = vpop.f32.mrf.mxu1  ;;  %v6559_v11 = vadd.f32 %v20997_v58, %v6131_v52  ;;  %v7840_v38 = vadd.f32 %v19148_v39, %v20998_v25  ;;  %v20999_v31 = vld [vmem:[#allocation66_spill] sm:$0xff]  ;;  %v21003_v39 = vld [vmem:[#allocation65_spill] sm:$0xff]  ;;  %v21006_v52 = vld [vmem:[#allocation92_spill] sm:$0xff] }
 0x3e3   : > { %8451 = vst.msk [vmem:[#allocation3 + $0x13] sm:$0xff] %vm4220_vm2, %v8415_v56  ;;  %v8418_v40 = vmul.f32 %v8341_v34, %v20991_v0  ;;  %v8340_v47 = vmax.f32 %v8304_v24, 0.0  ;;  %v8307_v26 = vadd.f32 %v19241_v9, %v8264_v27  ;;  %v8263_v63 = vadd.f32 %v8100_v2, %v7835_v16  ;;  %v21000_v56 = vld [vmem:[#allocation48_spill] sm:$0xff]  ;;  %v21001_v34 = vld [vmem:[#allocation9_spill] sm:$0xff] }
 0x3e4   : > { %v15618_v51 = vpop.f32.mrf.mxu1  ;;  %v6133_v24 = vadd.f32 %v21001_v34, %v21000_v56  ;;  %v7839_v27 = vadd.f32 %v19155_v4, %v7411_v17 }
 0x3e5   : > { %8454 = vst.msk [vmem:[#allocation3 + $0x2b] sm:$0xff] %vm4220_vm2, %v8418_v40  ;;  %v8417_v57 = vmul.f32 %v8340_v47, %v20995_v55  ;;  %v8343_v44 = vmax.f32 %v8307_v26, 0.0  ;;  %v8306_v12 = vadd.f32 %v19241_v9, %v8263_v63  ;;  %v8266_v46 = vadd.f32 %v15618_v51, %v7838_v6  ;;  %v21004_v26 = vld [vmem:[#allocation13_spill] sm:$0xff] }
 0x3e6   : > { %v8110_v21 = vpop.f32.mrf.mxu1  ;;  %v6987_v63 = vadd.f32 %v21004_v26, %v6559_v11  ;;  %v6561_v15 = vadd.f32 %v21005_v61, %v6133_v24  ;;  %v21009_v11 = vld [vmem:[#allocation47_spill] sm:$0xff]  ;;  %v21015_v61 = vld [vmem:[#allocation73_spill] sm:$0xff] }
 0x3e7   : > { %8453 = vst.msk [vmem:[#allocation3 + $0x23] sm:$0xff] %vm4220_vm2, %v8417_v57  ;;  %v8420_v36 = vmul.f32 %v8343_v44, %v20999_v31  ;;  %v8342_v16 = vmax.f32 %v8306_v12, 0.0  ;;  %v8309_v43 = vadd.f32 %v19241_v9, %v8266_v46  ;;  %v8265_v10 = vadd.f32 %v8110_v21, %v7837_v13  ;;  %v19308_v57 = vpop.f32.mrf.mxu0  ;;  %v21007_v44 = vld [vmem:[#allocation70_spill] sm:$0xff]  ;;  %v21010_v21 = vld [vmem:[#allocation95_spill] sm:$0xff] }
 0x3e8   : > { %v15621_v62 = vpop.f32.mrf.mxu1  ;;  %v7842_v13 = vadd.f32 %v19162_v41, %v21006_v52  ;;  %v21008_v41 = vld [vmem:[#allocation26_spill] sm:$0xff] }
 0x3e9   : > { %8456 = vst.msk [vmem:[#allocation3 + $0x3b] sm:$0xff] %vm4220_vm2, %v8420_v36  ;;  %v8419_v6 = vmul.f32 %v8342_v16, %v21003_v39  ;;  %v8345_v2 = vmax.f32 %v8309_v43, 0.0  ;;  %v8308_v40 = vadd.f32 %v19241_v9, %v8265_v10  ;;  %v8268_v47 = vadd.f32 %v15621_v62, %v7840_v38  ;;  %v21011_v43 = vld [vmem:[#allocation69_spill] sm:$0xff]  ;;  %v21013_v62 = vld [vmem:[#allocation62_spill] sm:$0xff] }
 0x3ea   : > { %v8120_v20 = vpop.f32.mrf.mxu1  ;;  %v8527_v4 = vld [vmem:[#allocation3 + $0x11] sm:$0xff]  ;;  %v8528_v51 = vld [vmem:[#allocation3 + $0x19] sm:$0xff]  ;;  %v6135_v25 = vadd.f32 %v21009_v11, %v21008_v41  ;;  %v7841_v38 = vadd.f32 %v19169_v28, %v7413_v32  ;;  %v7415_v36 = vadd.f32 %v21010_v21, %v6987_v63  ;;  %v19328_v63 = vpop.f32.mrf.mxu0 }
 0x3eb   : > { %v8489_v17 = vld [vmem:[#allocation3 + $0x10] sm:$0xff]  ;;  %8455 = vst.msk [vmem:[#allocation3 + $0x33] sm:$0xff] %vm4220_vm2, %v8419_v6  ;;  %v8422_v12 = vmul.f32 %v8345_v2, %v21007_v44  ;;  %v8344_v46 = vmax.f32 %v8308_v40, 0.0  ;;  %v8311_v50 = vadd.f32 %v19241_v9, %v8268_v47  ;;  %v8267_v53 = vadd.f32 %v8120_v20, %v7839_v27  ;;  %15668 = vmatprep.mubr.msk.f32.mxu0 %vm4220_vm2, %v8527_v4  ;;  %v8490_v58 = vld [vmem:[#allocation3 + $0x18] sm:$0xff] }
 0x3ec   : > { %15726 = vmatprep.mubr.msk.f32.mxu1 %vm4220_vm2, %v8489_v17  ;;  %v15624_v16 = vpop.f32.mrf.mxu1  ;;  %15669 = vmatmul.mubr.msk.f32.gmra.mxu0 %vm4220_vm2, %v8528_v51  ;;  %v21012_v27 = vld [vmem:[#allocation61_spill] sm:$0xff]  ;;  %v6563_v6 = vadd.f32 %v21013_v62, %v6135_v25  ;;  %v21014_v28 = vld [vmem:[#allocation94_spill] sm:$0xff]  ;;  %v21017_v17 = vld [vmem:[#allocation52_spill] sm:$0xff]  ;;  %v19348_v62 = vpop.f32.mrf.mxu0 }
 0x3ed   : > { %15727 = vmatmul.mubr.msk.f32.gmra.mxu1 %vm4220_vm2, %v8490_v58  ;;  %8458 = vst.msk [vmem:[#allocation3 + $0x4b] sm:$0xff] %vm4220_vm2, %v8422_v12  ;;  %v8421_v10 = vmul.f32 %v8344_v46, %v21011_v43  ;;  %v8347_v56 = vmax.f32 %v8311_v50, 0.0  ;;  %v8310_v34 = vadd.f32 %v19241_v9, %v8267_v53  ;;  %v8270_v24 = vadd.f32 %v15624_v16, %v7842_v13  ;;  %v21018_v46 = vld [vmem:[#allocation97_spill] sm:$0xff]  ;;  %v21019_v58 = vld [vmem:[#allocation72_spill] sm:$0xff] }
 0x3ee   : > { %v6989_v60 = vadd.f32 %v21012_v27, %v6561_v15  ;;  %v7844_v32 = vadd.f32 %v19176_v35, %v21014_v28  ;;  %v8130_v2 = vpop.f32.mrf.mxu1  ;;  %v8529_v40 = vld [vmem:[#allocation3 + $0x21] sm:$0xff]  ;;  %v8530_v26 = vld [vmem:[#allocation3 + $0x29] sm:$0xff]  ;;  %v21016_v35 = vld [vmem:[#allocation50_spill] sm:$0xff]  ;;  %v7843_v12 = vadd.f32 %v19183_v8, %v7415_v36 }
 0x3ef   : > { %v8491_v47 = vld [vmem:[#allocation3 + $0x20] sm:$0xff]  ;;  %8457 = vst.msk [vmem:[#allocation3 + $0x43] sm:$0xff] %vm4220_vm2, %v8421_v10  ;;  %v8424_v52 = vmul.f32 %v8347_v56, %v21015_v61  ;;  %v8346_v20 = vmax.f32 %v8310_v34, 0.0  ;;  %v8313_v13 = vadd.f32 %v19241_v9, %v8270_v24  ;;  %v8269_v4 = vadd.f32 %v8130_v2, %v7841_v38  ;;  %15671 = vmatprep.mubr.msk.f32.mxu0 %vm4220_vm2, %v8529_v40  ;;  %v8492_v15 = vld [vmem:[#allocation3 + $0x28] sm:$0xff]  ;;  %v21020_v21 = vld [vmem:[#allocation33_spill] sm:$0xff] }
 0x3f0   : > { %15729 = vmatprep.mubr.msk.f32.mxu1 %vm4220_vm2, %v8491_v47  ;;  %v6137_v51 = vadd.f32 %v21017_v17, %v21016_v35  ;;  %v7417_v50 = vadd.f32 %v21018_v46, %v6989_v60  ;;  %v15627_v53 = vpop.f32.mrf.mxu1  ;;  %15672 = vmatmul.mubr.msk.f32.gmra.mxu0 %vm4220_vm2, %v8530_v26  ;;  %v6991_v16 = vadd.f32 %v21020_v21, %v6563_v6  ;;  %v21021_v10 = vld [vmem:[#allocation63_spill] sm:$0xff]  ;;  %v21022_v8 = vld [vmem:[#allocation96_spill] sm:$0xff]  ;;  %v19364_v35 = vld [vmem:[%s20683_s5 + $0x58] sm:$0xff] }
 0x3f1   : > { %15730 = vmatmul.mubr.msk.f32.gmra.mxu1 %vm4220_vm2, %v8492_v15  ;;  %8460 = vst.msk [vmem:[#allocation3 + $0x5b] sm:$0xff] %vm4220_vm2, %v8424_v52  ;;  %v8423_v41 = vmul.f32 %v8346_v20, %v21019_v58  ;;  %v8349_v11 = vmax.f32 %v8313_v13, 0.0  ;;  %v8312_v25 = vadd.f32 %v19241_v9, %v8269_v4  ;;  %v8272_v38 = vadd.f32 %v15627_v53, %v7844_v32  ;;  %v21023_v28 = vld [vmem:[#allocation76_spill] sm:$0xff]  ;;  %v21025_v26 = vld [vmem:[#allocation27_spill] sm:$0xff]  ;;  %v13577_v61 = vld [vmem:[%s20683_s5 + $0x80] sm:$0xff] }
 0x3f2   : > { %v6565_v56 = vadd.f32 %v21021_v10, %v6137_v51  ;;  %v7846_v36 = vadd.f32 %v19192_v29, %v21022_v8  ;;  %v8140_v34 = vpop.f32.mrf.mxu1  ;;  %v8531_v24 = vld [vmem:[#allocation3 + $0x31] sm:$0xff]  ;;  %v8532_v60 = vld [vmem:[#allocation3 + $0x39] sm:$0xff]  ;;  %v7845_v20 = vadd.f32 %v19200_v14, %v7417_v50  ;;  %15951 = vmatprep.subr.mxu1 %v19364_v35  ;;  %v11410_v58 = vld [vmem:[#allocation3 + $0x25] sm:$0xff] }
 0x3f3   : > { %v8493_v27 = vld [vmem:[#allocation3 + $0x30] sm:$0xff]  ;;  %8459 = vst.msk [vmem:[#allocation3 + $0x53] sm:$0xff] %vm4220_vm2, %v8423_v41  ;;  %v8426_v2 = vmul.f32 %v8349_v11, %v21023_v28  ;;  %v8348_v40 = vmax.f32 %v8312_v25, 0.0  ;;  %v8315_v32 = vadd.f32 %v19241_v9, %v8272_v38  ;;  %v8271_v47 = vadd.f32 %v8140_v34, %v7843_v12  ;;  %15674 = vmatprep.mubr.msk.f32.mxu0 %vm4220_vm2, %v8531_v24  ;;  %v8494_v6 = vld [vmem:[#allocation3 + $0x38] sm:$0xff]  ;;  %v21024_v29 = vld [vmem:[#allocation51_spill] sm:$0xff]  ;;  %v19374_v34 = vpop.f32.mrf.mxu0 }
 0x3f4   : > { %15732 = vmatprep.mubr.msk.f32.mxu1 %vm4220_vm2, %v8493_v27  ;;  %v6139_v52 = vadd.f32 %v21025_v26, %v21024_v29  ;;  %v21026_v13 = vld [vmem:[#allocation99_spill] sm:$0xff]  ;;  %v15630_v15 = vpop.f32.mrf.mxu1  ;;  %15675 = vmatmul.mubr.msk.f32.gmra.mxu0 %vm4220_vm2, %v8532_v60  ;;  %v21030_v25 = vld [vmem:[#allocation98_spill] sm:$0xff] }
 0x3f5   : > { %v7419_v4 = vadd.f32 %v21026_v13, %v6991_v16  ;;  %15733 = vmatmul.mubr.msk.f32.gmra.mxu1 %vm4220_vm2, %v8494_v6  ;;  %8462 = vst.msk [vmem:[#allocation3 + $0x6b] sm:$0xff] %vm4220_vm2, %v8426_v2  ;;  %v21027_v17 = vld [vmem:[#allocation75_spill] sm:$0xff]  ;;  %v8351_v12 = vmax.f32 %v8315_v32, 0.0  ;;  %v8314_v46 = vadd.f32 %v19241_v9, %v8271_v47  ;;  %v8274_v14 = vadd.f32 %v15630_v15, %v7846_v36  ;;  %v21031_v24 = vld [vmem:[#allocation78_spill] sm:$0xff]  ;;  %v21034_v6 = vld [vmem:[#allocation101_spill] sm:$0xff] }
 0x3f6   : > { %v8425_v51 = vmul.f32 %v8348_v40, %v21027_v17  ;;  %v21028_v50 = vld [vmem:[#allocation15_spill] sm:$0xff]  ;;  %v7848_v38 = vadd.f32 %v19209_v22, %v21030_v25  ;;  %v8150_v21 = vpop.f32.mrf.mxu1  ;;  %v8534_v8 = vld [vmem:[#allocation3 + $0x49] sm:$0xff]  ;;  %v21032_v22 = vld [vmem:[#allocation10_spill] sm:$0xff] }
 0x3f7   : > { %v6993_v53 = vadd.f32 %v21028_v50, %v6565_v56  ;;  %v21029_v41 = vld [vmem:[#allocation35_spill] sm:$0xff]  ;;  %v8428_v27 = vmul.f32 %v8351_v12, %v21031_v24  ;;  %v8350_v36 = vmax.f32 %v8314_v46, 0.0  ;;  %v8317_v60 = vadd.f32 %v19241_v9, %v8274_v14  ;;  %v8496_v56 = vld [vmem:[#allocation3 + $0x48] sm:$0xff] }
 0x3f8   : > { %v6567_v11 = vadd.f32 %v21029_v41, %v6139_v52  ;;  %v8533_v16 = vld [vmem:[#allocation3 + $0x41] sm:$0xff]  ;;  %8461 = vst.msk [vmem:[#allocation3 + $0x63] sm:$0xff] %vm4220_vm2, %v8425_v51  ;;  %v8273_v2 = vadd.f32 %v8150_v21, %v7845_v20  ;;  %v7847_v47 = vadd.f32 %v19220_v42, %v7419_v4  ;;  %v15633_v26 = vpop.f32.mrf.mxu1  ;;  %v21035_v52 = vld [vmem:[#allocation77_spill] sm:$0xff] }
 0x3f9   : > { %v8495_v10 = vld [vmem:[#allocation3 + $0x40] sm:$0xff]  ;;  %15677 = vmatprep.mubr.msk.f32.mxu0 %vm4220_vm2, %v8533_v16  ;;  %v21033_v40 = vld [vmem:[#allocation28_spill] sm:$0xff]  ;;  %v7421_v29 = vadd.f32 %v21034_v6, %v6993_v53  ;;  %8464 = vst.msk [vmem:[#allocation3 + $0x7b] sm:$0xff] %vm4220_vm2, %v8428_v27  ;;  %v8427_v20 = vmul.f32 %v8350_v36, %v21035_v52  ;;  %v8353_v13 = vmax.f32 %v8317_v60, 0.0  ;;  %v8276_v51 = vadd.f32 %v15633_v26, %v7848_v38  ;;  %v19394_v16 = vpop.f32.mrf.mxu0 }
 0x3fa   : > { %15735 = vmatprep.mubr.msk.f32.mxu1 %vm4220_vm2, %v8495_v10  ;;  %v6141_v32 = vadd.f32 %v21033_v40, %v21032_v22  ;;  %15678 = vmatmul.mubr.msk.f32.gmra.mxu0 %vm4220_vm2, %v8534_v8  ;;  %v8316_v15 = vadd.f32 %v19241_v9, %v8273_v2  ;;  %v21036_v12 = vld [vmem:[#allocation36_spill] sm:$0xff]  ;;  %v8160_v53 = vpop.f32.mrf.mxu1  ;;  %v8535_v41 = vld [vmem:[#allocation3 + $0x51] sm:$0xff]  ;;  %v8536_v21 = vld [vmem:[#allocation3 + $0x59] sm:$0xff] }
 0x3fb   : > { %15736 = vmatmul.mubr.msk.f32.gmra.mxu1 %vm4220_vm2, %v8496_v56  ;;  %v6995_v46 = vadd.f32 %v21036_v12, %v6567_v11  ;;  %v21037_v14 = vld [vmem:[#allocation64_spill] sm:$0xff]  ;;  %v8497_v25 = vld [vmem:[#allocation3 + $0x50] sm:$0xff]  ;;  %8463 = vst.msk [vmem:[#allocation3 + $0x73] sm:$0xff] %vm4220_vm2, %v8427_v20  ;;  %v8319_v38 = vadd.f32 %v19241_v9, %v8276_v51  ;;  %v8275_v36 = vadd.f32 %v8160_v53, %v7847_v47  ;;  %v8498_v11 = vld [vmem:[#allocation3 + $0x58] sm:$0xff] }
 0x3fc   : > { %v6569_v50 = vadd.f32 %v21037_v14, %v6141_v32  ;;  %v21038_v42 = vld [vmem:[#allocation100_spill] sm:$0xff]  ;;  %v8352_v27 = vmax.f32 %v8316_v15, 0.0  ;;  %15680 = vmatprep.mubr.msk.f32.mxu0 %vm4220_vm2, %v8535_v41  ;;  %15738 = vmatprep.mubr.msk.f32.mxu1 %vm4220_vm2, %v8497_v25  ;;  %v7849_v56 = vadd.f32 %v19249_v37, %v7421_v29  ;;  %v21042_v22 = vld [vmem:[#allocation103_spill] sm:$0xff]  ;;  %v15636_v32 = vpop.f32.mrf.mxu1  ;;  %v21046_v37 = vld [vmem:[#allocation102_spill] sm:$0xff]  ;;  %v19414_v25 = vpop.f32.mrf.mxu0 }
 0x3fd   : > { %v7850_v4 = vadd.f32 %v19234_v19, %v21038_v42  ;;  %v21039_v10 = vld [vmem:[#allocation80_spill] sm:$0xff]  ;;  %v21040_v19 = vld [vmem:[#allocation53_spill] sm:$0xff]  ;;  %v7423_v40 = vadd.f32 %v21042_v22, %v6995_v46  ;;  %v21043_v47 = vld [vmem:[#allocation79_spill] sm:$0xff]  ;;  %v8355_v26 = vmax.f32 %v8319_v38, 0.0  ;;  %v8318_v20 = vadd.f32 %v19241_v9, %v8275_v36 }
 0x3fe   : > { %v8430_v8 = vmul.f32 %v8353_v13, %v21039_v10  ;;  %v21041_v60 = vld [vmem:[#allocation56_spill] sm:$0xff]  ;;  %15681 = vmatmul.mubr.msk.f32.gmra.mxu0 %vm4220_vm2, %v8536_v21  ;;  %v8429_v6 = vmul.f32 %v8352_v27, %v21043_v47  ;;  %v21044_v15 = vld [vmem:[#allocation67_spill] sm:$0xff]  ;;  %v7852_v29 = vadd.f32 %v19261_v33, %v21046_v37  ;;  %v8170_v46 = vpop.f32.mrf.mxu1  ;;  %v21047_v21 = vld [vmem:[#allocation38_spill] sm:$0xff] }
 0x3ff   : > { %v6143_v2 = vadd.f32 %v21041_v60, %v21040_v19  ;;  %15739 = vmatmul.mubr.msk.f32.gmra.mxu1 %vm4220_vm2, %v8498_v11  ;;  %v8278_v13 = vadd.f32 %v15636_v32, %v7850_v4  ;;  %v6997_v51 = vadd.f32 %v21044_v15, %v6569_v50  ;;  %v21045_v12 = vld [vmem:[#allocation71_spill] sm:$0xff]  ;;  %v8538_v41 = vld [vmem:[#allocation3 + $0x69] sm:$0xff]  ;;  %v8354_v27 = vmax.f32 %v8318_v20, 0.0 }
 0x400   : > { %8466 = vst.msk [vmem:[#allocation3 + $0x8b] sm:$0xff] %vm4220_vm2, %v8430_v8  ;;  %v8537_v42 = vld [vmem:[#allocation3 + $0x61] sm:$0xff]  ;;  %8465 = vst.msk [vmem:[#allocation3 + $0x83] sm:$0xff] %vm4220_vm2, %v8429_v6  ;;  %v8432_v8 = vmul.f32 %v8355_v26, %v21047_v21  ;;  %v8277_v38 = vadd.f32 %v8170_v46, %v7849_v56  ;;  %v21049_v36 = vld [vmem:[#allocation29_spill] sm:$0xff]  ;;  %v7851_v19 = vadd.f32 %v19276_v18, %v7423_v40  ;;  %v15639_v22 = vpop.f32.mrf.mxu1 }
 0x401   : > { %v6571_v14 = vadd.f32 %v21045_v12, %v6143_v2  ;;  %v8499_v53 = vld [vmem:[#allocation3 + $0x60] sm:$0xff]  ;;  %v8321_v4 = vadd.f32 %v19241_v9, %v8278_v13  ;;  %15683 = vmatprep.mubr.msk.f32.mxu0 %vm4220_vm2, %v8537_v42  ;;  %v8500_v50 = vld [vmem:[#allocation3 + $0x68] sm:$0xff]  ;;  %v21050_v60 = vld [vmem:[#allocation105_spill] sm:$0xff]  ;;  %v8280_v20 = vadd.f32 %v15639_v22, %v7852_v29 }
 0x402   : > { %15741 = vmatprep.mubr.msk.f32.mxu1 %vm4220_vm2, %v8499_v53  ;;  %v21048_v33 = vld [vmem:[#allocation55_spill] sm:$0xff]  ;;  %v7425_v2 = vadd.f32 %v21050_v60, %v6997_v51  ;;  %15684 = vmatmul.mubr.msk.f32.gmra.mxu0 %vm4220_vm2, %v8538_v41  ;;  %8468 = vst.msk [vmem:[#allocation3 + $0x9b] sm:$0xff] %vm4220_vm2, %v8432_v8  ;;  %v21051_v56 = vld [vmem:[#allocation16_spill] sm:$0xff]  ;;  %v8320_v26 = vadd.f32 %v19241_v9, %v8277_v38  ;;  %v21053_v12 = vld [vmem:[#allocation37_spill] sm:$0xff]  ;;  %v8180_v51 = vpop.f32.mrf.mxu1  ;;  %v19434_v41 = vpop.f32.mrf.mxu0 }
 0x403   : > { %v6145_v11 = vadd.f32 %v21049_v36, %v21048_v33  ;;  %15742 = vmatmul.mubr.msk.f32.gmra.mxu1 %vm4220_vm2, %v8500_v50  ;;  %v8431_v32 = vmul.f32 %v8354_v27, %v21051_v56  ;;  %v8357_v6 = vmax.f32 %v8321_v4, 0.0  ;;  %v21052_v13 = vld [vmem:[#allocation68_spill] sm:$0xff]  ;;  %v8539_v46 = vld [vmem:[#allocation3 + $0x71] sm:$0xff]  ;;  %v8540_v53 = vld [vmem:[#allocation3 + $0x79] sm:$0xff]  ;;  %v8323_v29 = vadd.f32 %v19241_v9, %v8280_v20 }
 0x404   : > { %v6999_v15 = vadd.f32 %v21052_v13, %v6571_v14  ;;  %v21054_v18 = vld [vmem:[#allocation104_spill] sm:$0xff]  ;;  %v8501_v42 = vld [vmem:[#allocation3 + $0x70] sm:$0xff]  ;;  %v8356_v4 = vmax.f32 %v8320_v26, 0.0  ;;  %v8279_v38 = vadd.f32 %v8180_v51, %v7851_v19  ;;  %15686 = vmatprep.mubr.msk.f32.mxu0 %vm4220_vm2, %v8539_v46  ;;  %v8502_v14 = vld [vmem:[#allocation3 + $0x78] sm:$0xff]  ;;  %v7853_v36 = vadd.f32 %v19308_v57, %v7425_v2  ;;  %v15642_v22 = vpop.f32.mrf.mxu1 }
 0x405   : > { %v6573_v37 = vadd.f32 %v21053_v12, %v6145_v11  ;;  %v7854_v40 = vadd.f32 %v19292_v54, %v21054_v18  ;;  %8467 = vst.msk [vmem:[#allocation3 + $0x93] sm:$0xff] %vm4220_vm2, %v8431_v32  ;;  %v21055_v8 = vld [vmem:[#allocation5_spill] sm:$0xff]  ;;  %15744 = vmatprep.mubr.msk.f32.mxu1 %vm4220_vm2, %v8501_v42  ;;  %v21056_v54 = vld [vmem:[#allocation11_spill] sm:$0xff]  ;;  %v21057_v50 = vld [vmem:[#allocation30_spill] sm:$0xff] }
 0x406   : > { %v8434_v27 = vmul.f32 %v8357_v6, %v21055_v8  ;;  %v6147_v33 = vadd.f32 %v21057_v50, %v21056_v54  ;;  %v21058_v11 = vld [vmem:[#allocation107_spill] sm:$0xff]  ;;  %15687 = vmatmul.mubr.msk.f32.gmra.mxu0 %vm4220_vm2, %v8540_v53  ;;  %v21059_v19 = vld [vmem:[#allocation17_spill] sm:$0xff]  ;;  %v8359_v6 = vmax.f32 %v8323_v29, 0.0  ;;  %v8322_v26 = vadd.f32 %v19241_v9, %v8279_v38  ;;  %v21061_v12 = vld [vmem:[#allocation46_spill] sm:$0xff]  ;;  %v8190_v53 = vpop.f32.mrf.mxu1  ;;  %v19456_v50 = vpop.f32.mrf.mxu0 }
 0x407   : > { %v7427_v60 = vadd.f32 %v21058_v11, %v6999_v15  ;;  %15745 = vmatmul.mubr.msk.f32.gmra.mxu1 %vm4220_vm2, %v8502_v14  ;;  %v8433_v32 = vmul.f32 %v8356_v4, %v21059_v19  ;;  %v8282_v20 = vadd.f32 %v15642_v22, %v7854_v40  ;;  %v21060_v13 = vld [vmem:[#allocation23_spill] sm:$0xff]  ;;  %v21062_v51 = vld [vmem:[#allocation74_spill] sm:$0xff]  ;;  %v21063_v2 = vld [vmem:[#allocation81_spill] sm:$0xff]  ;;  %v8281_v11 = vadd.f32 %v8190_v53, %v7853_v36 }
 0x408   : > { %8470 = vst.msk [vmem:[#allocation3 + $0xab] sm:$0xff] %vm4220_vm2, %v8434_v27  ;;  %v5291_v18 = vadd.f32 %v21061_v12, %v21060_v13  ;;  %v7001_v57 = vadd.f32 %v21062_v51, %v6573_v37  ;;  %v6575_v15 = vadd.f32 %v21063_v2, %v6147_v33  ;;  %v21064_v46 = vld [vmem:[#allocation106_spill] sm:$0xff]  ;;  %v8541_v14 = vld [vmem:[#allocation3 + $0x81] sm:$0xff]  ;;  %v8542_v27 = vld [vmem:[#allocation3 + $0x89] sm:$0xff]  ;;  %v8358_v29 = vmax.f32 %v8322_v26, 0.0  ;;  %v15645_v51 = vpop.f32.mrf.mxu1 }
 0x409   : > { %v7856_v42 = vadd.f32 %v19328_v63, %v21064_v46  ;;  %v8503_v54 = vld [vmem:[#allocation3 + $0x80] sm:$0xff]  ;;  %8469 = vst.msk [vmem:[#allocation3 + $0xa3] sm:$0xff] %vm4220_vm2, %v8433_v32  ;;  %v8325_v38 = vadd.f32 %v19241_v9, %v8282_v20  ;;  %15689 = vmatprep.mubr.msk.f32.mxu0 %vm4220_vm2, %v8541_v14  ;;  %v8504_v37 = vld [vmem:[#allocation3 + $0x88] sm:$0xff]  ;;  %v21066_v63 = vld [vmem:[#allocation57_spill] sm:$0xff]  ;;  %v7855_v13 = vadd.f32 %v19348_v62, %v7427_v60 }
 0x40a   : > { %v21065_v4 = vld [vmem:[#allocation39_spill] sm:$0xff]  ;;  %15747 = vmatprep.mubr.msk.f32.mxu1 %vm4220_vm2, %v8503_v54  ;;  %v21067_v33 = vld [vmem:[#allocation60_spill] sm:$0xff]  ;;  %v7429_v12 = vadd.f32 %v19188_v23, %v7001_v57  ;;  %15690 = vmatmul.mubr.msk.f32.gmra.mxu0 %vm4220_vm2, %v8542_v27  ;;  %v21068_v36 = vld [vmem:[#allocation18_spill] sm:$0xff]  ;;  %v8324_v26 = vadd.f32 %v19241_v9, %v8281_v11  ;;  %v8200_v27 = vpop.f32.mrf.mxu1 }
 0x40b   : > { %v8436_v40 = vmul.f32 %v8359_v6, %v21065_v4  ;;  %v6149_v22 = vadd.f32 %v21067_v33, %v21066_v63  ;;  %15748 = vmatmul.mubr.msk.f32.gmra.mxu1 %vm4220_vm2, %v8504_v37  ;;  %v8435_v32 = vmul.f32 %v8358_v29, %v21068_v36  ;;  %v8361_v6 = vmax.f32 %v8325_v38, 0.0  ;;  %v21069_v2 = vld [vmem:[#allocation4_spill] sm:$0xff]  ;;  %v21070_v46 = vld [vmem:[#allocation14_spill] sm:$0xff]  ;;  %v21072_v60 = vld [vmem:[#allocation83_spill] sm:$0xff]  ;;  %v19478_v33 = vpop.f32.mrf.mxu0 }
 0x40c   : > { %v8284_v20 = vadd.f32 %v15645_v51, %v7856_v42  ;;  %v6151_v53 = vadd.f32 %v21070_v46, %v21069_v2  ;;  %v21071_v14 = vld [vmem:[#allocation82_spill] sm:$0xff]  ;;  %v21073_v57 = vld [vmem:[#allocation108_spill] sm:$0xff]  ;;  %v8505_v63 = vld [vmem:[#allocation3 + $0x90] sm:$0xff]  ;;  %v8360_v38 = vmax.f32 %v8324_v26, 0.0  ;;  %v8283_v51 = vadd.f32 %v8200_v27, %v7855_v13 }
 0x40d   : > { %8472 = vst.msk [vmem:[#allocation3 + $0xbb] sm:$0xff] %vm4220_vm2, %v8436_v40  ;;  %v7003_v62 = vadd.f32 %v21071_v14, %v6575_v15  ;;  %v6577_v23 = vadd.f32 %v21072_v60, %v6149_v22  ;;  %v7858_v54 = vadd.f32 %v19374_v34, %v21073_v57  ;;  %v8543_v37 = vld [vmem:[#allocation3 + $0x91] sm:$0xff]  ;;  %v8544_v40 = vld [vmem:[#allocation3 + $0x99] sm:$0xff]  ;;  %8471 = vst.msk [vmem:[#allocation3 + $0xb3] sm:$0xff] %vm4220_vm2, %v8435_v32  ;;  %15750 = vmatprep.mubr.msk.f32.mxu1 %vm4220_vm2, %v8505_v63  ;;  %v15648_v14 = vpop.f32.mrf.mxu1  ;;  %v15599_v63 = vpop.f32.mrf.mxu0 }
 0x40e   : > { %v21074_v29 = vld [vmem:[#allocation40_spill] sm:$0xff]  ;;  %v8327_v11 = vadd.f32 %v19241_v9, %v8284_v20  ;;  %15692 = vmatprep.mubr.msk.f32.mxu0 %vm4220_vm2, %v8543_v37  ;;  %v8506_v15 = vld [vmem:[#allocation3 + $0x98] sm:$0xff]  ;;  %v7857_v2 = vadd.f32 %v19394_v16, %v7429_v12  ;;  %v21076_v32 = vld [vmem:[#allocation41_spill] sm:$0xff]  ;;  %v8326_v26 = vadd.f32 %v19241_v9, %v8283_v51 }
 0x40f   : > { %v8438_v42 = vmul.f32 %v8361_v6, %v21074_v29  ;;  %v21075_v34 = vld [vmem:[#allocation12_spill] sm:$0xff]  ;;  %v7431_v46 = vadd.f32 %v19198_v45, %v7003_v62  ;;  %15693 = vmatmul.mubr.msk.f32.gmra.mxu0 %vm4220_vm2, %v8544_v40  ;;  %15751 = vmatmul.mubr.msk.f32.gmra.mxu1 %vm4220_vm2, %v8506_v15  ;;  %v8437_v13 = vmul.f32 %v8360_v38, %v21076_v32  ;;  %v8210_v16 = vpop.f32.mrf.mxu1  ;;  %v21079_v40 = vld [vmem:[#allocation6_spill] sm:$0xff] }
 0x410   : > { %v5725_v22 = vadd.f32 %v21075_v34, %v5291_v18  ;;  %v8363_v6 = vmax.f32 %v8327_v11, 0.0  ;;  %v8286_v20 = vadd.f32 %v15648_v14, %v7858_v54  ;;  %v21077_v60 = vld [vmem:[#allocation84_spill] sm:$0xff]  ;;  %v21078_v18 = vld [vmem:[#allocation85_spill] sm:$0xff]  ;;  %v7860_v45 = vadd.f32 %v19414_v25, %v19196_v48  ;;  %v8507_v62 = vld [vmem:[#allocation3 + $0xa0] sm:$0xff] }
 0x411   : > { %8474 = vst.msk [vmem:[#allocation3 + $0xcb] sm:$0xff] %vm4220_vm2, %v8438_v42  ;;  %v7005_v57 = vadd.f32 %v21077_v60, %v6577_v23  ;;  %v6579_v27 = vadd.f32 %v21078_v18, %v6151_v53  ;;  %v8545_v12 = vld [vmem:[#allocation3 + $0xa1] sm:$0xff]  ;;  %v8546_v37 = vld [vmem:[#allocation3 + $0xa9] sm:$0xff]  ;;  %8473 = vst.msk [vmem:[#allocation3 + $0xc3] sm:$0xff] %vm4220_vm2, %v8437_v13  ;;  %v8362_v38 = vmax.f32 %v8326_v26, 0.0  ;;  %v8285_v54 = vadd.f32 %v8210_v16, %v7857_v2  ;;  %v15651_v15 = vpop.f32.mrf.mxu1 }
 0x412   : > { %v8440_v42 = vmul.f32 %v8363_v6, %v21079_v40  ;;  %v8329_v11 = vadd.f32 %v19241_v9, %v8286_v20  ;;  %15695 = vmatprep.mubr.msk.f32.mxu0 %vm4220_vm2, %v8545_v12  ;;  %15753 = vmatprep.mubr.msk.f32.mxu1 %vm4220_vm2, %v8507_v62  ;;  %v8508_v53 = vld [vmem:[#allocation3 + $0xa8] sm:$0xff]  ;;  %v7859_v25 = vadd.f32 %v19434_v41, %v7431_v46  ;;  %v21081_v34 = vld [vmem:[#allocation19_spill] sm:$0xff]  ;;  %v21082_v26 = vld [vmem:[#allocation86_spill] sm:$0xff]  ;;  %v7812_v12 = vpop.f32.mrf.mxu0 }
 0x413   : > { %v21080_v23 = vld [vmem:[#allocation32_spill] sm:$0xff]  ;;  %v7433_v51 = vadd.f32 %v19206_v1, %v7005_v57  ;;  %15696 = vmatmul.mubr.msk.f32.gmra.mxu0 %vm4220_vm2, %v8546_v37  ;;  %15754 = vmatmul.mubr.msk.f32.gmra.mxu1 %vm4220_vm2, %v8508_v53  ;;  %v8439_v2 = vmul.f32 %v8362_v38, %v21081_v34  ;;  %v8328_v13 = vadd.f32 %v19241_v9, %v8285_v54  ;;  %v21084_v41 = vld [vmem:[#allocation109_spill] sm:$0xff]  ;;  %v8220_v46 = vpop.f32.mrf.mxu1  ;;  %v21085_v62 = vld [vmem:[#allocation42_spill] sm:$0xff] }
 0x414   : > { %v6153_v48 = vadd.f32 %v21080_v23, %v5725_v22  ;;  %8476 = vst.msk [vmem:[#allocation3 + $0xdb] sm:$0xff] %vm4220_vm2, %v8440_v42  ;;  %v8365_v14 = vmax.f32 %v8329_v11, 0.0  ;;  %v8288_v6 = vadd.f32 %v15651_v15, %v7860_v45  ;;  %v7007_v20 = vadd.f32 %v21082_v26, %v6579_v27  ;;  %v21083_v22 = vld [vmem:[#allocation87_spill] sm:$0xff]  ;;  %v8547_v57 = vld [vmem:[#allocation3 + $0xb1] sm:$0xff]  ;;  %v15602_v53 = vpop.f32.mrf.mxu0  ;;  %v21086_v23 = vld [vmem:[#allocation20_spill] sm:$0xff] }
 0x415   : > { %v7862_v1 = vadd.f32 %v19456_v50, %v21084_v41  ;;  %v8509_v18 = vld [vmem:[#allocation3 + $0xb0] sm:$0xff]  ;;  %v8548_v16 = vld [vmem:[#allocation3 + $0xb9] sm:$0xff]  ;;  %8475 = vst.msk [vmem:[#allocation3 + $0xd3] sm:$0xff] %vm4220_vm2, %v8439_v2  ;;  %v8364_v42 = vmax.f32 %v8328_v13, 0.0  ;;  %v8287_v45 = vadd.f32 %v8220_v46, %v7859_v25  ;;  %15698 = vmatprep.mubr.msk.f32.mxu0 %vm4220_vm2, %v8547_v57  ;;  %v7861_v50 = vadd.f32 %v19478_v33, %v7433_v51  ;;  %v15654_v54 = vpop.f32.mrf.mxu1 }
 0x416   : > { %v6581_v60 = vadd.f32 %v21083_v22, %v6153_v48  ;;  %v8442_v37 = vmul.f32 %v8365_v14, %v21085_v62  ;;  %v8331_v38 = vadd.f32 %v19241_v9, %v8288_v6  ;;  %15756 = vmatprep.mubr.msk.f32.mxu1 %vm4220_vm2, %v8509_v18  ;;  %v8510_v27 = vld [vmem:[#allocation3 + $0xb8] sm:$0xff]  ;;  %v7435_v11 = vadd.f32 %v19216_v49, %v7007_v20  ;;  %v21087_v14 = vld [vmem:[#allocation88_spill] sm:$0xff]  ;;  %v21088_v20 = vld [vmem:[#allocation7_spill] sm:$0xff]  ;;  %v7822_v18 = vpop.f32.mrf.mxu0 }
 0x417   : > { %15699 = vmatmul.mubr.msk.f32.gmra.mxu0 %vm4220_vm2, %v8548_v16  ;;  %15757 = vmatmul.mubr.msk.f32.gmra.mxu1 %vm4220_vm2, %v8510_v27  ;;  %v8441_v48 = vmul.f32 %v8364_v42, %v21086_v23  ;;  %v8330_v15 = vadd.f32 %v19241_v9, %v8287_v45  ;;  %v8290_v2 = vadd.f32 %v15654_v54, %v7862_v1  ;;  %v8230_v51 = vpop.f32.mrf.mxu1  ;;  %v21089_v16 = vld [vmem:[#allocation44_spill] sm:$0xff]  ;;  %v21090_v54 = vld [vmem:[#allocation43_spill] sm:$0xff] }
 0x418   : > { %8478 = vst.msk [vmem:[#allocation3 + $0xeb] sm:$0xff] %vm4220_vm2, %v8442_v37  ;;  %v8367_v25 = vmax.f32 %v8331_v38, 0.0  ;;  %v7009_v13 = vadd.f32 %v21087_v14, %v6581_v60  ;;  %v7864_v33 = vadd.f32 %v15599_v63, %v19214_v30  ;;  %v8549_v49 = vld [vmem:[#allocation3 + $0xc1] sm:$0xff]  ;;  %v8550_v26 = vld [vmem:[#allocation3 + $0xc9] sm:$0xff]  ;;  %v8289_v57 = vadd.f32 %v8230_v51, %v7861_v50 }
 0x419   : > { %v8511_v6 = vld [vmem:[#allocation3 + $0xc0] sm:$0xff]  ;;  %8477 = vst.msk [vmem:[#allocation3 + $0xe3] sm:$0xff] %vm4220_vm2, %v8441_v48  ;;  %v8366_v41 = vmax.f32 %v8330_v15, 0.0  ;;  %v8333_v46 = vadd.f32 %v19241_v9, %v8290_v2  ;;  %15701 = vmatprep.mubr.msk.f32.mxu0 %vm4220_vm2, %v8549_v49  ;;  %v8512_v1 = vld [vmem:[#allocation3 + $0xc8] sm:$0xff]  ;;  %v7863_v60 = vadd.f32 %v7812_v12, %v7435_v11  ;;  %v15657_v63 = vpop.f32.mrf.mxu1  ;;  %v7866_v27 = vadd.f32 %v15602_v53, %v19226_v5  ;;  %v21091_v5 = vld [vmem:[#allocation22_spill] sm:$0xff] }
 0x41a   : > { %v8444_v22 = vmul.f32 %v8367_v25, %v21088_v20  ;;  %15759 = vmatprep.mubr.msk.f32.mxu1 %vm4220_vm2, %v8511_v6  ;;  %v7437_v30 = vadd.f32 %v19229_v59, %v7009_v13  ;;  %v8332_v38 = vadd.f32 %v19241_v9, %v8289_v57  ;;  %v8292_v45 = vadd.f32 %v15657_v63, %v7864_v33  ;;  %v21092_v57 = vld [vmem:[#allocation21_spill] sm:$0xff] }
 0x41b   : > { %15702 = vmatmul.mubr.msk.f32.gmra.mxu0 %vm4220_vm2, %v8550_v26  ;;  %15760 = vmatmul.mubr.msk.f32.gmra.mxu1 %vm4220_vm2, %v8512_v1  ;;  %v8443_v37 = vmul.f32 %v8366_v41, %v21089_v16  ;;  %v8369_v42 = vmax.f32 %v8333_v46, 0.0  ;;  %v8240_v50 = vpop.f32.mrf.mxu1 }
 0x41c   : > { %8480 = vst.msk [vmem:[#allocation3 + $0xfb] sm:$0xff] %vm4220_vm2, %v8444_v22  ;;  %v8551_v12 = vld [vmem:[#allocation3 + $0xd1] sm:$0xff]  ;;  %v8552_v59 = vld [vmem:[#allocation3 + $0xd9] sm:$0xff]  ;;  %v8368_v25 = vmax.f32 %v8332_v38, 0.0  ;;  %v8335_v15 = vadd.f32 %v19241_v9, %v8292_v45  ;;  %v8291_v2 = vadd.f32 %v8240_v50, %v7863_v60  ;;  %v7865_v13 = vadd.f32 %v7822_v18, %v7437_v30 }
 0x41d   : > { %v8513_v11 = vld [vmem:[#allocation3 + $0xd0] sm:$0xff]  ;;  %8479 = vst.msk [vmem:[#allocation3 + $0xf3] sm:$0xff] %vm4220_vm2, %v8443_v37  ;;  %v8446_v48 = vmul.f32 %v8369_v42, %v21090_v54  ;;  %15704 = vmatprep.mubr.msk.f32.mxu0 %vm4220_vm2, %v8551_v12  ;;  %v8514_v14 = vld [vmem:[#allocation3 + $0xd8] sm:$0xff]  ;;  %v15660_v33 = vpop.f32.mrf.mxu1  ;;  %v21093_v37 = vld [vmem:[#allocation8_spill] sm:$0xff] }
 0x41e   : > { %15762 = vmatprep.mubr.msk.f32.mxu1 %vm4220_vm2, %v8513_v11  ;;  %v8445_v53 = vmul.f32 %v8368_v25, %v21091_v5  ;;  %v8371_v51 = vmax.f32 %v8335_v15, 0.0  ;;  %v8334_v49 = vadd.f32 %v19241_v9, %v8291_v2  ;;  %v8294_v6 = vadd.f32 %v15660_v33, %v7866_v27  ;;  %v21094_v11 = vld [vmem:[#allocation24_spill] sm:$0xff] }
 0x41f   : > { %15705 = vmatmul.mubr.msk.f32.gmra.mxu0 %vm4220_vm2, %v8552_v59  ;;  %15763 = vmatmul.mubr.msk.f32.gmra.mxu1 %vm4220_vm2, %v8514_v14  ;;  %8482 = vst.msk [vmem:[#allocation3 + $0x10b] sm:$0xff] %vm4220_vm2, %v8446_v48  ;;  %v8250_v26 = vpop.f32.mrf.mxu1 }
 0x420   : > { %v8553_v22 = vld [vmem:[#allocation3 + $0xe1] sm:$0xff]  ;;  %v8554_v46 = vld [vmem:[#allocation3 + $0xe9] sm:$0xff]  ;;  %8481 = vst.msk [vmem:[#allocation3 + $0x103] sm:$0xff] %vm4220_vm2, %v8445_v53  ;;  %v8448_v1 = vmul.f32 %v8371_v51, %v21092_v57  ;;  %v8370_v60 = vmax.f32 %v8334_v49, 0.0  ;;  %v8337_v30 = vadd.f32 %v19241_v9, %v8294_v6  ;;  %v8293_v63 = vadd.f32 %v8250_v26, %v7865_v13 }
 0x421   : > { %v8515_v41 = vld [vmem:[#allocation3 + $0xe0] sm:$0xff]  ;;  %15707 = vmatprep.mubr.msk.f32.mxu0 %vm4220_vm2, %v8553_v22  ;;  %v8516_v18 = vld [vmem:[#allocation3 + $0xe8] sm:$0xff]  ;;  %v9698_v22 = vld [vmem:[#allocation3 + $0x12] sm:$0xff] }
 0x422   : > { %15765 = vmatprep.mubr.msk.f32.mxu1 %vm4220_vm2, %v8515_v41  ;;  %8484 = vst.msk [vmem:[#allocation3 + $0x11b] sm:$0xff] %vm4220_vm2, %v8448_v1  ;;  %v8447_v42 = vmul.f32 %v8370_v60, %v21093_v37  ;;  %v8373_v38 = vmax.f32 %v8337_v30, 0.0  ;;  %v8336_v45 = vadd.f32 %v19241_v9, %v8293_v63  ;;  %v21095_v9 = vld [vmem:[#allocation45_spill] sm:$0xff]  ;;  %v9270_v53 = vld [vmem:[#allocation3 + $0x2] sm:$0xff]  ;;  %v13425_v1 = vld [vmem:[%s20683_s5 + $0x40] sm:$0xff] }
 0x423   : > { %15708 = vmatmul.mubr.msk.f32.gmra.mxu0 %vm4220_vm2, %v8554_v46  ;;  %15766 = vmatmul.mubr.msk.f32.gmra.mxu1 %vm4220_vm2, %v8516_v18  ;;  %v9271_v41 = vld [vmem:[#allocation3 + $0xa] sm:$0xff]  ;;  %v9699_v46 = vld [vmem:[#allocation3 + $0x1a] sm:$0xff]  ;;  %v9700_v18 = vld [vmem:[#allocation3 + $0x22] sm:$0xff] }
 0x424   : > { %v8555_v27 = vld [vmem:[#allocation3 + $0xf1] sm:$0xff]  ;;  %v8556_v12 = vld [vmem:[#allocation3 + $0xf9] sm:$0xff]  ;;  %8483 = vst.msk [vmem:[#allocation3 + $0x113] sm:$0xff] %vm4220_vm2, %v8447_v42  ;;  %v8450_v59 = vmul.f32 %v8373_v38, %v21094_v11  ;;  %v8372_v48 = vmax.f32 %v8336_v45, 0.0  ;;  %v13463_v45 = vld [vmem:[%s20683_s5 + $0x50] sm:$0xff] }
 0x425   : > { %v8517_v50 = vld [vmem:[#allocation3 + $0xf0] sm:$0xff]  ;;  %15710 = vmatprep.mubr.msk.f32.mxu0 %vm4220_vm2, %v8555_v27  ;;  %v8518_v25 = vld [vmem:[#allocation3 + $0xf8] sm:$0xff]  ;;  %v16199_v63 = vld [vmem:[%s20683_s5 + $0x48] sm:$0xff] }
 0x426   : > { %15768 = vmatprep.mubr.msk.f32.mxu1 %vm4220_vm2, %v8517_v50  ;;  %8486 = vst.msk [vmem:[#allocation3 + $0x12b] sm:$0x3f] %vm4514_vm3, %v8450_v59  ;;  %v8449_v15 = vmul.f32 %v8372_v48, %v21095_v9  ;;  %v9701_v38 = vld [vmem:[#allocation3 + $0x2a] sm:$0xff]  ;;  %v19598_v27 = vld [vmem:[%s20683_s5 + $0x68] sm:$0xff]  ;;  %v9702_v50 = vld [vmem:[#allocation3 + $0x32] sm:$0xff] }
 0x427   : > { %15711 = vmatmul.mubr.msk.f32.gmra.mxu0 %vm4220_vm2, %v8556_v12  ;;  %15769 = vmatmul.mubr.msk.f32.gmra.mxu1 %vm4220_vm2, %v8518_v25  ;;  %v8557_v2 = vld [vmem:[#allocation3 + $0x101] sm:$0xff]  ;;  %v8558_v13 = vld [vmem:[#allocation3 + $0x109] sm:$0xff]  ;;  %v9706_v48 = vld [vmem:[#allocation3 + $0x52] sm:$0xff] }
 0x428   : > { %v8519_v14 = vld [vmem:[#allocation3 + $0x100] sm:$0xff]  ;;  %8485 = vst.msk [vmem:[#allocation3 + $0x123] sm:$0xff] %vm4220_vm2, %v8449_v15  ;;  %15713 = vmatprep.mubr.msk.f32.mxu0 %vm4220_vm2, %v8557_v2  ;;  %v8520_v33 = vld [vmem:[#allocation3 + $0x108] sm:$0xff]  ;;  %v19616_v25 = vld [vmem:[%s20683_s5 + $0x78] sm:$0xff] }
 0x429   : > { %15771 = vmatprep.mubr.msk.f32.mxu1 %vm4220_vm2, %v8519_v14  ;;  %v9704_v12 = vld [vmem:[#allocation3 + $0x42] sm:$0xff]  ;;  %v9705_v59 = vld [vmem:[#allocation3 + $0x4a] sm:$0xff]  ;;  %v9707_v15 = vld [vmem:[#allocation3 + $0x5a] sm:$0xff] }
 0x42a   : > { %v9708_v2 = vld [vmem:[#allocation3 + $0x62] sm:$0xff]  ;;  %v9709_v14 = vld [vmem:[#allocation3 + $0x6a] sm:$0xff]  ;;  %v10154_v16 = vld [vmem:[#allocation3 + $0xf3] sm:$0xff] }
 0x42b   : > { %15714 = vmatmul.mubr.msk.f32.gmra.mxu0 %vm4220_vm2, %v8558_v13  ;;  %15772 = vmatmul.mubr.msk.f32.gmra.mxu1 %vm4220_vm2, %v8520_v33  ;;  %v8559_v51 = vld [vmem:[#allocation3 + $0x111] sm:$0xff]  ;;  %v8560_v6 = vld [vmem:[#allocation3 + $0x119] sm:$0x3f]  ;;  %v19811_v11 = vld [vmem:[#allocation3 + $0xe4] sm:$0xff] }
 0x42c   : > { %v8521_v49 = vld [vmem:[#allocation3 + $0x110] sm:$0xff]  ;;  %15716 = vmatprep.mubr.msk.f32.mxu0 %vm4220_vm2, %v8559_v51  ;;  %v8522_v26 = vld [vmem:[#allocation3 + $0x118] sm:$0x3f] }
 0x42d   : > { %15774 = vmatprep.mubr.msk.f32.mxu1 %vm4220_vm2, %v8521_v49  ;;  %v15725_v30 = vpop.f32.mrf.mxu1  ;;  %v9710_v13 = vld [vmem:[#allocation3 + $0x72] sm:$0xff]  ;;  %v9711_v33 = vld [vmem:[#allocation3 + $0x7a] sm:$0xff]  ;;  %v9713_v51 = vld [vmem:[#allocation3 + $0x8a] sm:$0xff] }
 0x42e   : > { %v15667_v60 = vpop.f32.mrf.mxu0  ;;  %v9714_v49 = vld [vmem:[#allocation3 + $0x92] sm:$0xff]  ;;  %v19806_v9 = vld [vmem:[#allocation3 + $0xdc] sm:$0xff]  ;;  %v10161_v24 = vld [vmem:[#allocation3 + $0x12b] sm:$0x3f] }
 0x42f   : > { %15717 = vmatmul.mubr.msk.f32.gmra.mxu0 %vm4220_vm2, %v8560_v6  ;;  %15775 = vmatmul.mubr.msk.f32.gmra.mxu1 %vm4220_vm2, %v8522_v26  ;;  %v19588_v42 = vadd.f32 %v15725_v30, %v15667_v60  ;;  %v9715_v6 = vld [vmem:[#allocation3 + $0x9a] sm:$0xff]  ;;  %v9716_v26 = vld [vmem:[#allocation3 + $0xa2] sm:$0xff]  ;;  %v9721_v60 = vld [vmem:[#allocation3 + $0xca] sm:$0xff]  ;;  %v19818_v37 = vpop.f32.mrf.mxu1 }
 0x430   : > { %15839 = vmatprep.mubr.msk.f32.mxu1 %vm4220_vm2, %v9698_v22  ;;  %15781 = vmatprep.mubr.msk.f32.mxu0 %vm4220_vm2, %v9270_v53  ;;  %v9712_v53 = vld [vmem:[#allocation3 + $0x82] sm:$0xff]  ;;  %v9722_v30 = vld [vmem:[#allocation3 + $0xd2] sm:$0xff]  ;;  %v10589_v17 = vld [vmem:[#allocation3 + $0x12c] sm:$0x3f] }
 0x431   : > { %v10153_v57 = vld [vmem:[#allocation3 + $0xeb] sm:$0xff]  ;;  %v19825_v20 = vld [vmem:[#allocation3 + $0xf4] sm:$0xff]  ;;  %v19834_v32 = vld [vmem:[#allocation3 + $0xfc] sm:$0xff] }
 0x432   : > { %v19820_v5 = vld [vmem:[#allocation3 + $0xec] sm:$0xff]  ;;  %v10155_v40 = vld [vmem:[#allocation3 + $0xfb] sm:$0xff] }
 0x433   : > { %15782 = vmatmul.mubr.msk.f32.vlgmr.msra.gmra.mxu0 %vm4220_vm2, %v9271_v41  ;;  %15840 = vmatmul.mubr.msk.f32.vlgmr.msra.gmra.mxu1 %vm4220_vm2, %v9699_v46  ;;  %v9718_v41 = vld [vmem:[#allocation3 + $0xb2] sm:$0xff]  ;;  %v10159_v21 = vld [vmem:[#allocation3 + $0x11b] sm:$0xff] }
 0x434   : > { %15894 = vmatpush3.msra.mxu0 %v16199_v63  ;;  %15784 = vmatprep.mubr.msk.f32.mxu0 %vm4220_vm2, %v9698_v22  ;;  %v9717_v22 = vld [vmem:[#allocation3 + $0xaa] sm:$0xff]  ;;  %v9723_v63 = vld [vmem:[#allocation3 + $0xda] sm:$0xff] }
 0x435   : > { %15842 = vmatprep.mubr.msk.f32.mxu1 %vm4220_vm2, %v9700_v18  ;;  %15895 = vmatprep.subr.mxu0 %v13425_v1  ;;  %v10157_v4 = vld [vmem:[#allocation3 + $0x10b] sm:$0xff]  ;;  %v19862_v47 = vld [vmem:[#allocation3 + $0x11c] sm:$0xff] }
 0x436   : > { %15896 = vmatpush3.msra.mxu0 %v13425_v1  ;;  %15952 = vmatpush3.msra.mxu1 %v19364_v35  ;;  %v9703_v35 = vld [vmem:[#allocation3 + $0x3a] sm:$0xff]  ;;  %v9720_v1 = vld [vmem:[#allocation3 + $0xc2] sm:$0xff]  ;;  %v19848_v19 = vld [vmem:[#allocation3 + $0x10c] sm:$0xff] }
 0x437   : > { %15785 = vmatmul.mubr.msk.f32.gmra.mxu0 %vm4220_vm2, %v9699_v46  ;;  %15843 = vmatmul.mubr.msk.f32.gmra.mxu1 %vm4220_vm2, %v9701_v38  ;;  %v9719_v46 = vld [vmem:[#allocation3 + $0xba] sm:$0xff] }
 0x438   : > { %15787 = vmatprep.mubr.msk.f32.mxu0 %vm4220_vm2, %v9700_v18  ;;  %15845 = vmatprep.mubr.msk.f32.mxu1 %vm4220_vm2, %v9702_v50  ;;  %v9724_v18 = vld [vmem:[#allocation3 + $0xe2] sm:$0xff] }
 0x439   : > { %15953 = vmatprep.subr.mxu1 %v13463_v45  ;;  %16009 = vmatprep.subr.mxu0 %v19598_v27 }
 0x43a   : > { %15954 = vmatpush3.msra.mxu1 %v13463_v45  ;;  %v9726_v45 = vld [vmem:[#allocation3 + $0xf2] sm:$0xff] }
 0x43b   : > { %15788 = vmatmul.mubr.msk.f32.gmra.mxu0 %vm4220_vm2, %v9701_v38  ;;  %15846 = vmatmul.mubr.msk.f32.gmra.mxu1 %vm4220_vm2, %v9703_v35  ;;  %v9725_v38 = vld [vmem:[#allocation3 + $0xea] sm:$0xff] }
 0x43c   : > { %15790 = vmatprep.mubr.msk.f32.mxu0 %vm4220_vm2, %v9702_v50  ;;  %15848 = vmatprep.mubr.msk.f32.mxu1 %vm4220_vm2, %v9704_v12  ;;  %v9727_v50 = vld [vmem:[#allocation3 + $0xfa] sm:$0xff] }
 0x43d   : > { %16067 = vmatprep.subr.mxu1 %v19616_v25 }
 0x43f   : > { %15791 = vmatmul.mubr.msk.f32.gmra.mxu0 %vm4220_vm2, %v9703_v35  ;;  %15849 = vmatmul.mubr.msk.f32.gmra.mxu1 %vm4220_vm2, %v9705_v59  ;;  %v9728_v35 = vld [vmem:[#allocation3 + $0x102] sm:$0xff] }
 0x440   : > { %15793 = vmatprep.mubr.msk.f32.mxu0 %vm4220_vm2, %v9704_v12  ;;  %15851 = vmatprep.mubr.msk.f32.mxu1 %vm4220_vm2, %v9706_v48  ;;  %v9729_v12 = vld [vmem:[#allocation3 + $0x10a] sm:$0xff] }
 0x443   : > { %15794 = vmatmul.mubr.msk.f32.gmra.mxu0 %vm4220_vm2, %v9705_v59  ;;  %15852 = vmatmul.mubr.msk.f32.gmra.mxu1 %vm4220_vm2, %v9707_v15  ;;  %v9730_v59 = vld [vmem:[#allocation3 + $0x112] sm:$0xff] }
 0x444   : > { %15796 = vmatprep.mubr.msk.f32.mxu0 %vm4220_vm2, %v9706_v48  ;;  %15854 = vmatprep.mubr.msk.f32.mxu1 %vm4220_vm2, %v9708_v2  ;;  %v9731_v48 = vld [vmem:[#allocation3 + $0x11a] sm:$0xff] }
 0x447   : > { %15797 = vmatmul.mubr.msk.f32.gmra.mxu0 %vm4220_vm2, %v9707_v15  ;;  %15855 = vmatmul.mubr.msk.f32.gmra.mxu1 %vm4220_vm2, %v9709_v14  ;;  %v9732_v15 = vld [vmem:[#allocation3 + $0x122] sm:$0xff] }
 0x448   : > { %15799 = vmatprep.mubr.msk.f32.mxu0 %vm4220_vm2, %v9708_v2  ;;  %15857 = vmatprep.mubr.msk.f32.mxu1 %vm4220_vm2, %v9710_v13  ;;  %v9305_v2 = vld [vmem:[#allocation3 + $0x11a] sm:$0x3f] }
 0x44b   : > { %15800 = vmatmul.mubr.msk.f32.gmra.mxu0 %vm4220_vm2, %v9709_v14  ;;  %15858 = vmatmul.mubr.msk.f32.gmra.mxu1 %vm4220_vm2, %v9711_v33  ;;  %v9733_v14 = vld [vmem:[#allocation3 + $0x12a] sm:$0x3f] }
 0x44c   : > { %15802 = vmatprep.mubr.msk.f32.mxu0 %vm4220_vm2, %v9710_v13  ;;  %15860 = vmatprep.mubr.msk.f32.mxu1 %vm4220_vm2, %v9712_v53  ;;  %v10126_v13 = vld [vmem:[#allocation3 + $0x13] sm:$0xff] }
 0x44f   : > { %15803 = vmatmul.mubr.msk.f32.gmra.mxu0 %vm4220_vm2, %v9711_v33  ;;  %15861 = vmatmul.mubr.msk.f32.gmra.mxu1 %vm4220_vm2, %v9713_v51  ;;  %v10554_v33 = vld [vmem:[#allocation3 + $0x14] sm:$0xff] }
 0x450   : > { %15805 = vmatprep.mubr.msk.f32.mxu0 %vm4220_vm2, %v9712_v53  ;;  %15863 = vmatprep.mubr.msk.f32.mxu1 %vm4220_vm2, %v9714_v49  ;;  %v10127_v53 = vld [vmem:[#allocation3 + $0x1b] sm:$0xff] }
 0x453   : > { %15806 = vmatmul.mubr.msk.f32.gmra.mxu0 %vm4220_vm2, %v9713_v51  ;;  %15864 = vmatmul.mubr.msk.f32.gmra.mxu1 %vm4220_vm2, %v9715_v6  ;;  %v10555_v51 = vld [vmem:[#allocation3 + $0x1c] sm:$0xff] }
 0x454   : > { %15808 = vmatprep.mubr.msk.f32.mxu0 %vm4220_vm2, %v9714_v49  ;;  %15866 = vmatprep.mubr.msk.f32.mxu1 %vm4220_vm2, %v9716_v26  ;;  %v13501_v49 = vld [vmem:[%s20683_s5 + $0x60] sm:$0xff] }
 0x457   : > { %15809 = vmatmul.mubr.msk.f32.gmra.mxu0 %vm4220_vm2, %v9715_v6  ;;  %15867 = vmatmul.mubr.msk.f32.gmra.mxu1 %vm4220_vm2, %v9717_v22  ;;  %v10128_v6 = vld [vmem:[#allocation3 + $0x23] sm:$0xff] }
 0x458   : > { %15811 = vmatprep.mubr.msk.f32.mxu0 %vm4220_vm2, %v9716_v26  ;;  %15869 = vmatprep.mubr.msk.f32.mxu1 %vm4220_vm2, %v9718_v41  ;;  %v19682_v26 = vld [vmem:[#allocation3 + $0x24] sm:$0xff] }
 0x45b   : > { %15812 = vmatmul.mubr.msk.f32.gmra.mxu0 %vm4220_vm2, %v9717_v22  ;;  %15870 = vmatmul.mubr.msk.f32.gmra.mxu1 %vm4220_vm2, %v9719_v46  ;;  %v10129_v22 = vld [vmem:[#allocation3 + $0x2b] sm:$0xff] }
 0x45c   : > { %15814 = vmatprep.mubr.msk.f32.mxu0 %vm4220_vm2, %v9718_v41  ;;  %15872 = vmatprep.mubr.msk.f32.mxu1 %vm4220_vm2, %v9720_v1  ;;  %v19686_v41 = vld [vmem:[#allocation3 + $0x2c] sm:$0xff] }
 0x45f   : > { %15815 = vmatmul.mubr.msk.f32.gmra.mxu0 %vm4220_vm2, %v9719_v46  ;;  %15873 = vmatmul.mubr.msk.f32.gmra.mxu1 %vm4220_vm2, %v9721_v60  ;;  %v13539_v46 = vld [vmem:[%s20683_s5 + $0x70] sm:$0xff] }
 0x460   : > { %15817 = vmatprep.mubr.msk.f32.mxu0 %vm4220_vm2, %v9720_v1  ;;  %15875 = vmatprep.mubr.msk.f32.mxu1 %vm4220_vm2, %v9722_v30  ;;  %v10130_v1 = vld [vmem:[#allocation3 + $0x33] sm:$0xff] }
 0x463   : > { %15818 = vmatmul.mubr.msk.f32.gmra.mxu0 %vm4220_vm2, %v9721_v60  ;;  %15876 = vmatmul.mubr.msk.f32.gmra.mxu1 %vm4220_vm2, %v9723_v63  ;;  %v19700_v60 = vld [vmem:[#allocation3 + $0x34] sm:$0xff] }
 0x464   : > { %15820 = vmatprep.mubr.msk.f32.mxu0 %vm4220_vm2, %v9722_v30  ;;  %15878 = vmatprep.mubr.msk.f32.mxu1 %vm4220_vm2, %v9724_v18  ;;  %v19706_v30 = vld [vmem:[#allocation3 + $0x3c] sm:$0xff] }
 0x467   : > { %15821 = vmatmul.mubr.msk.f32.gmra.mxu0 %vm4220_vm2, %v9723_v63  ;;  %15879 = vmatmul.mubr.msk.f32.gmra.mxu1 %vm4220_vm2, %v9725_v38  ;;  %v10132_v63 = vld [vmem:[#allocation3 + $0x43] sm:$0xff] }
 0x468   : > { %15823 = vmatprep.mubr.msk.f32.mxu0 %vm4220_vm2, %v9724_v18  ;;  %15881 = vmatprep.mubr.msk.f32.mxu1 %vm4220_vm2, %v9726_v45  ;;  %v19711_v18 = vld [vmem:[#allocation3 + $0x44] sm:$0xff] }
 0x46b   : > { %15824 = vmatmul.mubr.msk.f32.gmra.mxu0 %vm4220_vm2, %v9725_v38  ;;  %15882 = vmatmul.mubr.msk.f32.gmra.mxu1 %vm4220_vm2, %v9727_v50  ;;  %v10133_v38 = vld [vmem:[#allocation3 + $0x4b] sm:$0xff] }
 0x46c   : > { %15826 = vmatprep.mubr.msk.f32.mxu0 %vm4220_vm2, %v9726_v45  ;;  %15884 = vmatprep.mubr.msk.f32.mxu1 %vm4220_vm2, %v9728_v35  ;;  %v19716_v45 = vld [vmem:[#allocation3 + $0x4c] sm:$0xff] }
 0x46f   : > { %15827 = vmatmul.mubr.msk.f32.gmra.mxu0 %vm4220_vm2, %v9727_v50  ;;  %15885 = vmatmul.mubr.msk.f32.gmra.mxu1 %vm4220_vm2, %v9729_v12  ;;  %v10134_v50 = vld [vmem:[#allocation3 + $0x53] sm:$0xff] }
 0x470   : > { %15829 = vmatprep.mubr.msk.f32.mxu0 %vm4220_vm2, %v9728_v35  ;;  %15887 = vmatprep.mubr.msk.f32.mxu1 %vm4220_vm2, %v9730_v59  ;;  %v19721_v35 = vld [vmem:[#allocation3 + $0x54] sm:$0xff] }
 0x473   : > { %15830 = vmatmul.mubr.msk.f32.gmra.mxu0 %vm4220_vm2, %v9729_v12  ;;  %15888 = vmatmul.mubr.msk.f32.gmra.mxu1 %vm4220_vm2, %v9731_v48  ;;  %v10135_v12 = vld [vmem:[#allocation3 + $0x5b] sm:$0xff]  ;;  %v10136_v48 = vld [vmem:[#allocation3 + $0x63] sm:$0xff] }
 0x474   : > { %15832 = vmatprep.mubr.msk.f32.mxu0 %vm4220_vm2, %v9730_v59  ;;  %15890 = vmatprep.mubr.msk.f32.mxu1 %vm4220_vm2, %v9732_v15  ;;  %v19726_v59 = vld [vmem:[#allocation3 + $0x5c] sm:$0xff]  ;;  %v19731_v15 = vld [vmem:[#allocation3 + $0x64] sm:$0xff] }
 0x477   : > { %15833 = vmatmul.mubr.msk.f32.gmra.mxu0 %vm4220_vm2, %v9305_v2  ;;  %15891 = vmatmul.mubr.msk.f32.gmra.mxu1 %vm4220_vm2, %v9733_v14  ;;  %v10137_v2 = vld [vmem:[#allocation3 + $0x6b] sm:$0xff] }
 0x478   : > { %15897 = vmatprep.mubr.msk.f32.mxu0 %vm4220_vm2, %v10126_v13  ;;  %15955 = vmatprep.mubr.msk.f32.mxu1 %vm4220_vm2, %v10554_v33  ;;  %v19736_v14 = vld [vmem:[#allocation3 + $0x6c] sm:$0xff]  ;;  %v19741_v33 = vld [vmem:[#allocation3 + $0x74] sm:$0xff] }
 0x479   : > { %v10138_v13 = vld [vmem:[#allocation3 + $0x73] sm:$0xff] }
 0x47b   : > { %15898 = vmatmul.mubr.msk.f32.vlgmr.msra.gmra.mxu0 %vm4220_vm2, %v10127_v53  ;;  %15956 = vmatmul.mubr.msk.f32.vlgmr.msra.gmra.mxu1 %vm4220_vm2, %v10555_v51  ;;  %v10139_v53 = vld [vmem:[#allocation3 + $0x7b] sm:$0xff] }
 0x47c   : > { %16010 = vmatpush3.msra.mxu0 %v19598_v27  ;;  %15900 = vmatprep.mubr.msk.f32.mxu0 %vm4220_vm2, %v10128_v6  ;;  %v19695_v27 = vld [vmem:[%s20683_s5 + $0x88] sm:$0xff] }
 0x47d   : > { %15958 = vmatprep.mubr.msk.f32.mxu1 %vm4220_vm2, %v19682_v26  ;;  %16011 = vmatprep.subr.mxu0 %v13501_v49  ;;  %v19746_v51 = vld [vmem:[#allocation3 + $0x7c] sm:$0xff]  ;;  %v19751_v6 = vld [vmem:[#allocation3 + $0x84] sm:$0xff] }
 0x47e   : > { %16012 = vmatpush3.msra.mxu0 %v13501_v49  ;;  %16068 = vmatpush3.msra.mxu1 %v19616_v25  ;;  %v10131_v25 = vld [vmem:[#allocation3 + $0x3b] sm:$0xff]  ;;  %v10140_v49 = vld [vmem:[#allocation3 + $0x83] sm:$0xff] }
 0x47f   : > { %15901 = vmatmul.mubr.msk.f32.gmra.mxu0 %vm4220_vm2, %v10129_v22  ;;  %15959 = vmatmul.mubr.msk.f32.gmra.mxu1 %vm4220_vm2, %v19686_v41  ;;  %v10141_v22 = vld [vmem:[#allocation3 + $0x8b] sm:$0xff] }
 0x480   : > { %15903 = vmatprep.mubr.msk.f32.mxu0 %vm4220_vm2, %v10130_v1  ;;  %15961 = vmatprep.mubr.msk.f32.mxu1 %vm4220_vm2, %v19700_v60  ;;  %v10142_v1 = vld [vmem:[#allocation3 + $0x93] sm:$0xff] }
 0x481   : > { %16069 = vmatprep.subr.mxu1 %v13539_v46  ;;  %16125 = vmatprep.subr.mxu0 %v19695_v27 }
 0x482   : > { %16070 = vmatpush3.msra.mxu1 %v13539_v46  ;;  %v19756_v46 = vld [vmem:[#allocation3 + $0x8c] sm:$0xff] }
 0x483   : > { %15904 = vmatmul.mubr.msk.f32.gmra.mxu0 %vm4220_vm2, %v10131_v25  ;;  %15962 = vmatmul.mubr.msk.f32.gmra.mxu1 %vm4220_vm2, %v19706_v30  ;;  %v19761_v25 = vld [vmem:[#allocation3 + $0x94] sm:$0xff] }
 0x484   : > { %15906 = vmatprep.mubr.msk.f32.mxu0 %vm4220_vm2, %v10132_v63  ;;  %15964 = vmatprep.mubr.msk.f32.mxu1 %vm4220_vm2, %v19711_v18  ;;  %v10143_v63 = vld [vmem:[#allocation3 + $0x9b] sm:$0xff] }
 0x487   : > { %15907 = vmatmul.mubr.msk.f32.gmra.mxu0 %vm4220_vm2, %v10133_v38  ;;  %15965 = vmatmul.mubr.msk.f32.gmra.mxu1 %vm4220_vm2, %v19716_v45  ;;  %v19766_v38 = vld [vmem:[#allocation3 + $0x9c] sm:$0xff] }
 0x488   : > { %15909 = vmatprep.mubr.msk.f32.mxu0 %vm4220_vm2, %v10134_v50  ;;  %15967 = vmatprep.mubr.msk.f32.mxu1 %vm4220_vm2, %v19721_v35  ;;  %v10144_v50 = vld [vmem:[#allocation3 + $0xa3] sm:$0xff] }
 0x48b   : > { %15910 = vmatmul.mubr.msk.f32.gmra.mxu0 %vm4220_vm2, %v10135_v12  ;;  %15968 = vmatmul.mubr.msk.f32.gmra.mxu1 %vm4220_vm2, %v19726_v59  ;;  %v19771_v12 = vld [vmem:[#allocation3 + $0xa4] sm:$0xff] }
 0x48c   : > { %15912 = vmatprep.mubr.msk.f32.mxu0 %vm4220_vm2, %v10136_v48  ;;  %15970 = vmatprep.mubr.msk.f32.mxu1 %vm4220_vm2, %v19731_v15  ;;  %v10145_v48 = vld [vmem:[#allocation3 + $0xab] sm:$0xff] }
 0x48f   : > { %15913 = vmatmul.mubr.msk.f32.gmra.mxu0 %vm4220_vm2, %v10137_v2  ;;  %15971 = vmatmul.mubr.msk.f32.gmra.mxu1 %vm4220_vm2, %v19736_v14  ;;  %v19776_v2 = vld [vmem:[#allocation3 + $0xac] sm:$0xff] }
 0x490   : > { %15915 = vmatprep.mubr.msk.f32.mxu0 %vm4220_vm2, %v10138_v13  ;;  %15973 = vmatprep.mubr.msk.f32.mxu1 %vm4220_vm2, %v19741_v33  ;;  %v10146_v13 = vld [vmem:[#allocation3 + $0xb3] sm:$0xff] }
 0x493   : > { %15916 = vmatmul.mubr.msk.f32.gmra.mxu0 %vm4220_vm2, %v10139_v53  ;;  %15974 = vmatmul.mubr.msk.f32.gmra.mxu1 %vm4220_vm2, %v19746_v51  ;;  %v19781_v53 = vld [vmem:[#allocation3 + $0xb4] sm:$0xff] }
 0x494   : > { %15918 = vmatprep.mubr.msk.f32.mxu0 %vm4220_vm2, %v10140_v49  ;;  %15976 = vmatprep.mubr.msk.f32.mxu1 %vm4220_vm2, %v19751_v6  ;;  %v10147_v49 = vld [vmem:[#allocation3 + $0xbb] sm:$0xff] }
 0x497   : > { %15919 = vmatmul.mubr.msk.f32.gmra.mxu0 %vm4220_vm2, %v10141_v22  ;;  %15977 = vmatmul.mubr.msk.f32.gmra.mxu1 %vm4220_vm2, %v19756_v46  ;;  %v19786_v22 = vld [vmem:[#allocation3 + $0xbc] sm:$0xff] }
 0x498   : > { %15921 = vmatprep.mubr.msk.f32.mxu0 %vm4220_vm2, %v10142_v1  ;;  %15979 = vmatprep.mubr.msk.f32.mxu1 %vm4220_vm2, %v19761_v25  ;;  %v10148_v1 = vld [vmem:[#allocation3 + $0xc3] sm:$0xff] }
 0x49b   : > { %15922 = vmatmul.mubr.msk.f32.gmra.mxu0 %vm4220_vm2, %v10143_v63  ;;  %15980 = vmatmul.mubr.msk.f32.gmra.mxu1 %vm4220_vm2, %v19766_v38  ;;  %v19791_v63 = vld [vmem:[#allocation3 + $0xc4] sm:$0xff] }
 0x49c   : > { %15924 = vmatprep.mubr.msk.f32.mxu0 %vm4220_vm2, %v10144_v50  ;;  %15982 = vmatprep.mubr.msk.f32.mxu1 %vm4220_vm2, %v19771_v12  ;;  %v10149_v50 = vld [vmem:[#allocation3 + $0xcb] sm:$0xff] }
 0x49f   : > { %15925 = vmatmul.mubr.msk.f32.gmra.mxu0 %vm4220_vm2, %v10145_v48  ;;  %15983 = vmatmul.mubr.msk.f32.gmra.mxu1 %vm4220_vm2, %v19776_v2  ;;  %v19796_v48 = vld [vmem:[#allocation3 + $0xcc] sm:$0xff] }
 0x4a0   : > { %15927 = vmatprep.mubr.msk.f32.mxu0 %vm4220_vm2, %v10146_v13  ;;  %15985 = vmatprep.mubr.msk.f32.mxu1 %vm4220_vm2, %v19781_v53  ;;  %v10150_v13 = vld [vmem:[#allocation3 + $0xd3] sm:$0xff] }
 0x4a3   : > { %15928 = vmatmul.mubr.msk.f32.gmra.mxu0 %vm4220_vm2, %v10147_v49  ;;  %15986 = vmatmul.mubr.msk.f32.gmra.mxu1 %vm4220_vm2, %v19786_v22  ;;  %v19801_v49 = vld [vmem:[#allocation3 + $0xd4] sm:$0xff] }
 0x4a4   : > { %15930 = vmatprep.mubr.msk.f32.mxu0 %vm4220_vm2, %v10148_v1  ;;  %15988 = vmatprep.mubr.msk.f32.mxu1 %vm4220_vm2, %v19791_v63  ;;  %v10151_v1 = vld [vmem:[#allocation3 + $0xdb] sm:$0xff] }
 0x4a7   : > { %15931 = vmatmul.mubr.msk.f32.gmra.mxu0 %vm4220_vm2, %v10149_v50  ;;  %15989 = vmatmul.mubr.msk.f32.gmra.mxu1 %vm4220_vm2, %v19796_v48  ;;  %v10152_v50 = vld [vmem:[#allocation3 + $0xe3] sm:$0xff] }
 0x4a8   : > { %15933 = vmatprep.mubr.msk.f32.mxu0 %vm4220_vm2, %v10150_v13  ;;  %15991 = vmatprep.mubr.msk.f32.mxu1 %vm4220_vm2, %v19801_v49  ;;  %v19816_v13 = vpop.f32.mrf.mxu0 }
 0x4ab   : > { %15934 = vmatmul.mubr.msk.f32.gmra.mxu0 %vm4220_vm2, %v10151_v1  ;;  %15992 = vmatmul.mubr.msk.f32.gmra.mxu1 %vm4220_vm2, %v19806_v9 }
 0x4ac   : > { %15936 = vmatprep.mubr.msk.f32.mxu0 %vm4220_vm2, %v10152_v50  ;;  %15994 = vmatprep.mubr.msk.f32.mxu1 %vm4220_vm2, %v19811_v11  ;;  %v15670_v54 = vpop.f32.mrf.mxu0 }
 0x4ad   : > { %v15728_v1 = vpop.f32.mrf.mxu1 }
 0x4ae   : > { %v19827_v50 = vadd.f32 %v15728_v1, %v15670_v54  ;;  %v8748_v23 = vpop.f32.mrf.mxu0  ;;  %v10156_v54 = vld [vmem:[#allocation3 + $0x103] sm:$0xff] }
 0x4af   : > { %15937 = vmatmul.mubr.msk.f32.gmra.mxu0 %vm4220_vm2, %v10153_v57  ;;  %15995 = vmatmul.mubr.msk.f32.gmra.mxu1 %vm4220_vm2, %v19820_v5  ;;  %v9101_v62 = vpop.f32.mrf.mxu1  ;;  %v19839_v1 = vld [vmem:[#allocation3 + $0x104] sm:$0xff] }
 0x4b0   : > { %15939 = vmatprep.mubr.msk.f32.mxu0 %vm4220_vm2, %v10154_v16  ;;  %15997 = vmatprep.mubr.msk.f32.mxu1 %vm4220_vm2, %v19825_v20  ;;  %v19832_v34 = vadd.f32 %v9101_v62, %v8748_v23  ;;  %v15673_v57 = vpop.f32.mrf.mxu0 }
 0x4b1   : > { %v15731_v29 = vpop.f32.mrf.mxu1 }
 0x4b2   : > { %v19841_v16 = vadd.f32 %v15731_v29, %v15673_v57  ;;  %v8758_v62 = vpop.f32.mrf.mxu0  ;;  %v10158_v29 = vld [vmem:[#allocation3 + $0x113] sm:$0xff] }
 0x4b3   : > { %15940 = vmatmul.mubr.msk.f32.gmra.mxu0 %vm4220_vm2, %v10155_v40  ;;  %15998 = vmatmul.mubr.msk.f32.gmra.mxu1 %vm4220_vm2, %v19834_v32  ;;  %v9111_v23 = vpop.f32.mrf.mxu1  ;;  %v19853_v57 = vld [vmem:[#allocation3 + $0x114] sm:$0xff] }
 0x4b4   : > { %15942 = vmatprep.mubr.msk.f32.mxu0 %vm4220_vm2, %v10156_v54  ;;  %16000 = vmatprep.mubr.msk.f32.mxu1 %vm4220_vm2, %v19839_v1  ;;  %v19846_v36 = vadd.f32 %v9111_v23, %v8758_v62  ;;  %v15676_v40 = vpop.f32.mrf.mxu0 }
 0x4b5   : > { %v15734_v8 = vpop.f32.mrf.mxu1 }
 0x4b6   : > { %v19855_v54 = vadd.f32 %v15734_v8, %v15676_v40  ;;  %v8768_v62 = vpop.f32.mrf.mxu0  ;;  %v10160_v8 = vld [vmem:[#allocation3 + $0x123] sm:$0xff] }
 0x4b7   : > { %15943 = vmatmul.mubr.msk.f32.gmra.mxu0 %vm4220_vm2, %v10157_v4  ;;  %16001 = vmatmul.mubr.msk.f32.gmra.mxu1 %vm4220_vm2, %v19848_v19  ;;  %v9121_v23 = vpop.f32.mrf.mxu1  ;;  %v19867_v40 = vld [vmem:[#allocation3 + $0x124] sm:$0xff] }
 0x4b8   : > { %15945 = vmatprep.mubr.msk.f32.mxu0 %vm4220_vm2, %v10158_v29  ;;  %16003 = vmatprep.mubr.msk.f32.mxu1 %vm4220_vm2, %v19853_v57  ;;  %v19860_v56 = vadd.f32 %v9121_v23, %v8768_v62 }
 0x4ba   : > { %v15679_v4 = vpop.f32.mrf.mxu0 }
 0x4bb   : > { %v15737_v10 = vpop.f32.mrf.mxu1  ;;  %15946 = vmatmul.mubr.msk.f32.gmra.mxu0 %vm4220_vm2, %v10159_v21  ;;  %16004 = vmatmul.mubr.msk.f32.gmra.mxu1 %vm4220_vm2, %v19862_v47 }
 0x4bc   : > { %v19869_v29 = vadd.f32 %v15737_v10, %v15679_v4  ;;  %15948 = vmatprep.mubr.msk.f32.mxu0 %vm4220_vm2, %v10160_v8  ;;  %16006 = vmatprep.mubr.msk.f32.mxu1 %vm4220_vm2, %v19867_v40  ;;  %v8778_v62 = vpop.f32.mrf.mxu0 }
 0x4bd   : > { %v9131_v23 = vpop.f32.mrf.mxu1 }
 0x4be   : > { %v19874_v52 = vadd.f32 %v9131_v23, %v8778_v62  ;;  %v15682_v21 = vpop.f32.mrf.mxu0  ;;  %v11411_v23 = vld [vmem:[#allocation3 + $0x2d] sm:$0xff] }
 0x4bf   : > { %v15740_v28 = vpop.f32.mrf.mxu1  ;;  %15949 = vmatmul.mubr.msk.f32.gmra.mxu0 %vm4220_vm2, %v10161_v24  ;;  %16007 = vmatmul.mubr.msk.f32.gmra.mxu1 %vm4220_vm2, %v10589_v17 }
 0x4c0   : > { %v19878_v10 = vadd.f32 %v15740_v28, %v15682_v21  ;;  %16013 = vmatprep.mubr.msk.f32.mxu0 %vm4220_vm2, %v19682_v26  ;;  %16071 = vmatprep.mubr.msk.f32.mxu1 %vm4220_vm2, %v11410_v58  ;;  %v8788_v4 = vpop.f32.mrf.mxu0  ;;  %v11412_v58 = vld [vmem:[#allocation3 + $0x35] sm:$0xff] }
 0x4c1   : > { %v9141_v8 = vpop.f32.mrf.mxu1 }
 0x4c2   : > { %v19883_v62 = vadd.f32 %v9141_v8, %v8788_v4  ;;  %v15685_v24 = vpop.f32.mrf.mxu0  ;;  %v11413_v4 = vld [vmem:[#allocation3 + $0x3d] sm:$0xff] }
 0x4c3   : > { %v15743_v43 = vpop.f32.mrf.mxu1  ;;  %16014 = vmatmul.mubr.msk.f32.vlgmr.msra.gmra.mxu0 %vm4220_vm2, %v19686_v41  ;;  %16072 = vmatmul.mubr.msk.f32.vlgmr.msra.gmra.mxu1 %vm4220_vm2, %v11411_v23 }
 0x4c4   : > { %v19891_v28 = vadd.f32 %v15743_v43, %v15685_v24  ;;  %16126 = vmatpush3.msra.mxu0 %v19695_v27  ;;  %16016 = vmatprep.mubr.msk.f32.mxu0 %vm4220_vm2, %v19700_v60  ;;  %v8798_v17 = vpop.f32.mrf.mxu0  ;;  %v11414_v43 = vld [vmem:[#allocation3 + $0x45] sm:$0xff] }
 0x4c5   : > { %16074 = vmatprep.mubr.msk.f32.mxu1 %vm4220_vm2, %v11412_v58  ;;  %v9151_v26 = vpop.f32.mrf.mxu1  ;;  %16127 = vmatprep.subr.mxu0 %v13577_v61 }
 0x4c6   : > { %v19897_v21 = vadd.f32 %v9151_v26, %v8798_v17  ;;  %16128 = vmatpush3.msra.mxu0 %v13577_v61  ;;  %v15688_v41 = vpop.f32.mrf.mxu0  ;;  %v11415_v61 = vld [vmem:[#allocation3 + $0x4d] sm:$0xff] }
 0x4c7   : > { %v15746_v8 = vpop.f32.mrf.mxu1  ;;  %16017 = vmatmul.mubr.msk.f32.gmra.mxu0 %vm4220_vm2, %v19706_v30  ;;  %16075 = vmatmul.mubr.msk.f32.gmra.mxu1 %vm4220_vm2, %v11413_v4  ;;  %v11416_v30 = vld [vmem:[#allocation3 + $0x55] sm:$0xff] }
 0x4c8   : > { %v19902_v27 = vadd.f32 %v15746_v8, %v15688_v41  ;;  %16019 = vmatprep.mubr.msk.f32.mxu0 %vm4220_vm2, %v19711_v18  ;;  %16077 = vmatprep.mubr.msk.f32.mxu1 %vm4220_vm2, %v11414_v43  ;;  %v8808_v60 = vpop.f32.mrf.mxu0  ;;  %v11417_v8 = vld [vmem:[#allocation3 + $0x5d] sm:$0xff] }
 0x4c9   : > { %v9161_v23 = vpop.f32.mrf.mxu1 }
 0x4ca   : > { %v19907_v24 = vadd.f32 %v9161_v23, %v8808_v60  ;;  %v15691_v58 = vpop.f32.mrf.mxu0 }
 0x4cb   : > { %v15749_v17 = vpop.f32.mrf.mxu1  ;;  %16020 = vmatmul.mubr.msk.f32.gmra.mxu0 %vm4220_vm2, %v19716_v45  ;;  %16078 = vmatmul.mubr.msk.f32.gmra.mxu1 %vm4220_vm2, %v11415_v61  ;;  %v11418_v45 = vld [vmem:[#allocation3 + $0x65] sm:$0xff] }
 0x4cc   : > { %v19912_v26 = vadd.f32 %v15749_v17, %v15691_v58  ;;  %16022 = vmatprep.mubr.msk.f32.mxu0 %vm4220_vm2, %v19721_v35  ;;  %16080 = vmatprep.mubr.msk.f32.mxu1 %vm4220_vm2, %v11416_v30  ;;  %v8818_v18 = vpop.f32.mrf.mxu0  ;;  %v11419_v17 = vld [vmem:[#allocation3 + $0x6d] sm:$0xff] }
 0x4cd   : > { %v9171_v4 = vpop.f32.mrf.mxu1 }
 0x4ce   : > { %v19917_v41 = vadd.f32 %v9171_v4, %v8818_v18 }
 0x4cf   : > { %v15694_v43 = vpop.f32.mrf.mxu0  ;;  %v15752_v60 = vpop.f32.mrf.mxu1  ;;  %16023 = vmatmul.mubr.msk.f32.gmra.mxu0 %vm4220_vm2, %v19726_v59  ;;  %16081 = vmatmul.mubr.msk.f32.gmra.mxu1 %vm4220_vm2, %v11417_v8  ;;  %v11420_v59 = vld [vmem:[#allocation3 + $0x75] sm:$0xff] }
 0x4d0   : > { %v19922_v23 = vadd.f32 %v15752_v60, %v15694_v43  ;;  %16025 = vmatprep.mubr.msk.f32.mxu0 %vm4220_vm2, %v19731_v15  ;;  %16083 = vmatprep.mubr.msk.f32.mxu1 %vm4220_vm2, %v11418_v45  ;;  %v11421_v60 = vld [vmem:[#allocation3 + $0x7d] sm:$0xff] }
 0x4d1   : > { %v8828_v35 = vpop.f32.mrf.mxu0  ;;  %v9181_v61 = vpop.f32.mrf.mxu1 }
 0x4d2   : > { %v19927_v58 = vadd.f32 %v9181_v61, %v8828_v35 }
 0x4d3   : > { %v15697_v30 = vpop.f32.mrf.mxu0  ;;  %v15755_v18 = vpop.f32.mrf.mxu1  ;;  %16026 = vmatmul.mubr.msk.f32.gmra.mxu0 %vm4220_vm2, %v19736_v14  ;;  %16084 = vmatmul.mubr.msk.f32.gmra.mxu1 %vm4220_vm2, %v11419_v17  ;;  %v11422_v14 = vld [vmem:[#allocation3 + $0x85] sm:$0xff] }
 0x4d4   : > { %v19932_v4 = vadd.f32 %v15755_v18, %v15697_v30  ;;  %16028 = vmatprep.mubr.msk.f32.mxu0 %vm4220_vm2, %v19741_v33  ;;  %16086 = vmatprep.mubr.msk.f32.mxu1 %vm4220_vm2, %v11420_v59  ;;  %v11423_v18 = vld [vmem:[#allocation3 + $0x8d] sm:$0xff] }
 0x4d5   : > { %v8838_v15 = vpop.f32.mrf.mxu0  ;;  %v9191_v8 = vpop.f32.mrf.mxu1 }
 0x4d6   : > { %v19937_v43 = vadd.f32 %v9191_v8, %v8838_v15 }
 0x4d7   : > { %v15700_v45 = vpop.f32.mrf.mxu0  ;;  %v15758_v35 = vpop.f32.mrf.mxu1  ;;  %16029 = vmatmul.mubr.msk.f32.gmra.mxu0 %vm4220_vm2, %v19746_v51  ;;  %16087 = vmatmul.mubr.msk.f32.gmra.mxu1 %vm4220_vm2, %v11421_v60  ;;  %v11424_v51 = vld [vmem:[#allocation3 + $0x95] sm:$0xff] }
 0x4d8   : > { %v19942_v61 = vadd.f32 %v15758_v35, %v15700_v45  ;;  %16031 = vmatprep.mubr.msk.f32.mxu0 %vm4220_vm2, %v19751_v6  ;;  %16089 = vmatprep.mubr.msk.f32.mxu1 %vm4220_vm2, %v11422_v14  ;;  %v11425_v35 = vld [vmem:[#allocation3 + $0x9d] sm:$0xff] }
 0x4d9   : > { %v8848_v33 = vpop.f32.mrf.mxu0  ;;  %v9201_v17 = vpop.f32.mrf.mxu1 }
 0x4da   : > { %v19947_v30 = vadd.f32 %v9201_v17, %v8848_v33 }
 0x4db   : > { %v15703_v59 = vpop.f32.mrf.mxu0  ;;  %v15761_v15 = vpop.f32.mrf.mxu1  ;;  %16032 = vmatmul.mubr.msk.f32.gmra.mxu0 %vm4220_vm2, %v19756_v46  ;;  %16090 = vmatmul.mubr.msk.f32.gmra.mxu1 %vm4220_vm2, %v11423_v18  ;;  %v11426_v46 = vld [vmem:[#allocation3 + $0xa5] sm:$0xff] }
 0x4dc   : > { %v19952_v8 = vadd.f32 %v15761_v15, %v15703_v59  ;;  %16034 = vmatprep.mubr.msk.f32.mxu0 %vm4220_vm2, %v19761_v25  ;;  %16092 = vmatprep.mubr.msk.f32.mxu1 %vm4220_vm2, %v11424_v51  ;;  %v11427_v15 = vld [vmem:[#allocation3 + $0xad] sm:$0xff] }
 0x4dd   : > { %v8858_v6 = vpop.f32.mrf.mxu0  ;;  %v9211_v60 = vpop.f32.mrf.mxu1 }
 0x4de   : > { %v19957_v45 = vadd.f32 %v9211_v60, %v8858_v6 }
 0x4df   : > { %v15706_v14 = vpop.f32.mrf.mxu0  ;;  %v15764_v33 = vpop.f32.mrf.mxu1  ;;  %16035 = vmatmul.mubr.msk.f32.gmra.mxu0 %vm4220_vm2, %v19766_v38  ;;  %16093 = vmatmul.mubr.msk.f32.gmra.mxu1 %vm4220_vm2, %v11425_v35  ;;  %v11428_v38 = vld [vmem:[#allocation3 + $0xb5] sm:$0xff] }
 0x4e0   : > { %v19962_v17 = vadd.f32 %v15764_v33, %v15706_v14  ;;  %16037 = vmatprep.mubr.msk.f32.mxu0 %vm4220_vm2, %v19771_v12  ;;  %16095 = vmatprep.mubr.msk.f32.mxu1 %vm4220_vm2, %v11426_v46  ;;  %v11429_v33 = vld [vmem:[#allocation3 + $0xbd] sm:$0xff] }
 0x4e1   : > { %v8868_v25 = vpop.f32.mrf.mxu0  ;;  %v9221_v18 = vpop.f32.mrf.mxu1 }
 0x4e2   : > { %v19967_v59 = vadd.f32 %v9221_v18, %v8868_v25 }
 0x4e3   : > { %v15709_v51 = vpop.f32.mrf.mxu0  ;;  %v15767_v6 = vpop.f32.mrf.mxu1  ;;  %16038 = vmatmul.mubr.msk.f32.gmra.mxu0 %vm4220_vm2, %v19776_v2  ;;  %16096 = vmatmul.mubr.msk.f32.gmra.mxu1 %vm4220_vm2, %v11427_v15  ;;  %v11430_v2 = vld [vmem:[#allocation3 + $0xc5] sm:$0xff] }
 0x4e4   : > { %v19972_v60 = vadd.f32 %v15767_v6, %v15709_v51  ;;  %16040 = vmatprep.mubr.msk.f32.mxu0 %vm4220_vm2, %v19781_v53  ;;  %16098 = vmatprep.mubr.msk.f32.mxu1 %vm4220_vm2, %v11428_v38  ;;  %v11431_v6 = vld [vmem:[#allocation3 + $0xcd] sm:$0xff] }
 0x4e5   : > { %v8878_v12 = vpop.f32.mrf.mxu0  ;;  %v9231_v35 = vpop.f32.mrf.mxu1 }
 0x4e6   : > { %v19977_v14 = vadd.f32 %v9231_v35, %v8878_v12 }
 0x4e7   : > { %v15712_v46 = vpop.f32.mrf.mxu0  ;;  %v15770_v25 = vpop.f32.mrf.mxu1  ;;  %16041 = vmatmul.mubr.msk.f32.gmra.mxu0 %vm4220_vm2, %v19786_v22  ;;  %16099 = vmatmul.mubr.msk.f32.gmra.mxu1 %vm4220_vm2, %v11429_v33  ;;  %v11432_v22 = vld [vmem:[#allocation3 + $0xd5] sm:$0xff] }
 0x4e8   : > { %v19982_v18 = vadd.f32 %v15770_v25, %v15712_v46  ;;  %16043 = vmatprep.mubr.msk.f32.mxu0 %vm4220_vm2, %v19791_v63  ;;  %16101 = vmatprep.mubr.msk.f32.mxu1 %vm4220_vm2, %v11430_v2  ;;  %v11433_v25 = vld [vmem:[#allocation3 + $0xdd] sm:$0xff] }
 0x4e9   : > { %v8888_v53 = vpop.f32.mrf.mxu0  ;;  %v9241_v15 = vpop.f32.mrf.mxu1 }
 0x4ea   : > { %v19987_v51 = vadd.f32 %v9241_v15, %v8888_v53 }
 0x4eb   : > { %v15715_v38 = vpop.f32.mrf.mxu0  ;;  %v15773_v12 = vpop.f32.mrf.mxu1  ;;  %16044 = vmatmul.mubr.msk.f32.gmra.mxu0 %vm4220_vm2, %v19796_v48  ;;  %16102 = vmatmul.mubr.msk.f32.gmra.mxu1 %vm4220_vm2, %v11431_v6  ;;  %v11434_v48 = vld [vmem:[#allocation3 + $0xe5] sm:$0xff] }
 0x4ec   : > { %v19992_v35 = vadd.f32 %v15773_v12, %v15715_v38  ;;  %16046 = vmatprep.mubr.msk.f32.mxu0 %vm4220_vm2, %v19801_v49  ;;  %16104 = vmatprep.mubr.msk.f32.mxu1 %vm4220_vm2, %v11432_v22  ;;  %v11435_v12 = vld [vmem:[#allocation3 + $0xed] sm:$0xff] }
 0x4ed   : > { %v8898_v63 = vpop.f32.mrf.mxu0  ;;  %v9251_v33 = vpop.f32.mrf.mxu1 }
 0x4ee   : > { %v19997_v46 = vadd.f32 %v9251_v33, %v8898_v63  ;;  %v9092_v33 = vadd.f32 %v19818_v37, %v19816_v13  ;;  %v11438_v37 = vld [vmem:[#allocation3 + $0x105] sm:$0xff] }
 0x4ef   : > { %v15718_v2 = vpop.f32.mrf.mxu0  ;;  %v15776_v53 = vpop.f32.mrf.mxu1  ;;  %16047 = vmatmul.mubr.msk.f32.gmra.mxu0 %vm4220_vm2, %v19806_v9  ;;  %16105 = vmatmul.mubr.msk.f32.gmra.mxu1 %vm4220_vm2, %v11433_v25  ;;  %v11436_v9 = vld [vmem:[#allocation3 + $0xf5] sm:$0xff] }
 0x4f0   : > { %v20002_v15 = vadd.f32 %v15776_v53, %v15718_v2  ;;  %16049 = vmatprep.mubr.msk.f32.mxu0 %vm4220_vm2, %v19811_v11  ;;  %16107 = vmatprep.mubr.msk.f32.mxu1 %vm4220_vm2, %v11434_v48 }
 0x4f1   : > { %v8908_v49 = vpop.f32.mrf.mxu0  ;;  %v9261_v6 = vpop.f32.mrf.mxu1 }
 0x4f2   : > { %v20007_v38 = vadd.f32 %v9261_v6, %v8908_v49  ;;  %v11437_v49 = vld [vmem:[#allocation3 + $0xfd] sm:$0xff] }
 0x4f3   : > { %v15783_v22 = vpop.f32.mrf.mxu0  ;;  %v15841_v63 = vpop.f32.mrf.mxu1  ;;  %16050 = vmatmul.mubr.msk.f32.gmra.mxu0 %vm4220_vm2, %v19820_v5  ;;  %16108 = vmatmul.mubr.msk.f32.gmra.mxu1 %vm4220_vm2, %v11435_v12 }
 0x4f4   : > { %v9663_v11 = vadd.f32 %v15783_v22, %v19588_v42  ;;  %16052 = vmatprep.mubr.msk.f32.mxu0 %vm4220_vm2, %v19825_v20  ;;  %16110 = vmatprep.mubr.msk.f32.mxu1 %vm4220_vm2, %v11436_v9  ;;  %v11439_v9 = vld [vmem:[#allocation3 + $0x10d] sm:$0xff] }
 0x4f5   : > { %v9483_v25 = vpop.f32.mrf.mxu0  ;;  %v9911_v2 = vpop.f32.mrf.mxu1 }
 0x4f6   : > { %v20018_v53 = vadd.f32 %v15841_v63, %v9663_v11  ;;  %v9662_v48 = vadd.f32 %v9483_v25, %v9092_v33 }
 0x4f7   : > { %v15786_v5 = vpop.f32.mrf.mxu0  ;;  %v15844_v6 = vpop.f32.mrf.mxu1  ;;  %16053 = vmatmul.mubr.msk.f32.gmra.mxu0 %vm4220_vm2, %v19834_v32  ;;  %16111 = vmatmul.mubr.msk.f32.gmra.mxu1 %vm4220_vm2, %v11437_v49  ;;  %v11441_v49 = vld [vmem:[#allocation3 + $0x11d] sm:$0xff] }
 0x4f8   : > { %v20023_v42 = vadd.f32 %v9911_v2, %v9662_v48  ;;  %v9665_v20 = vadd.f32 %v15786_v5, %v19827_v50  ;;  %16055 = vmatprep.mubr.msk.f32.mxu0 %vm4220_vm2, %v19839_v1  ;;  %16113 = vmatprep.mubr.msk.f32.mxu1 %vm4220_vm2, %v11438_v37  ;;  %v11440_v50 = vld [vmem:[#allocation3 + $0x115] sm:$0xff] }
 0x4f9   : > { %v9493_v13 = vpop.f32.mrf.mxu0  ;;  %v9921_v12 = vpop.f32.mrf.mxu1 }
 0x4fa   : > { %v20029_v22 = vadd.f32 %v15844_v6, %v9665_v20  ;;  %v9664_v63 = vadd.f32 %v9493_v13, %v19832_v34  ;;  %v11016_v20 = vld [vmem:[#allocation3 + $0x134] sm:$0xff] }
 0x4fb   : > { %v15789_v32 = vpop.f32.mrf.mxu0  ;;  %v15847_v33 = vpop.f32.mrf.mxu1  ;;  %16056 = vmatmul.mubr.msk.f32.gmra.mxu0 %vm4220_vm2, %v19848_v19  ;;  %16114 = vmatmul.mubr.msk.f32.gmra.mxu1 %vm4220_vm2, %v11439_v9  ;;  %v11444_v13 = vld [vmem:[#allocation3 + $0x135] sm:$0xff]  ;;  %v11443_v9 = vld [vmem:[#allocation3 + $0x12d] sm:$0xff] }
 0x4fc   : > { %v20035_v11 = vadd.f32 %v9921_v12, %v9664_v63  ;;  %v9667_v1 = vadd.f32 %v15789_v32, %v19841_v16  ;;  %16058 = vmatprep.mubr.msk.f32.mxu0 %vm4220_vm2, %v19853_v57  ;;  %16116 = vmatprep.mubr.msk.f32.mxu1 %vm4220_vm2, %v11440_v50  ;;  %v11442_v16 = vld [vmem:[#allocation3 + $0x125] sm:$0xff]  ;;  %v11017_v50 = vld [vmem:[#allocation3 + $0x13c] sm:$0x3f] }
 0x4fd   : > { %v9503_v25 = vpop.f32.mrf.mxu0  ;;  %v9931_v34 = vpop.f32.mrf.mxu1  ;;  %v11015_v63 = vld [vmem:[#allocation3 + $0x12c] sm:$0xff] }
 0x4fe   : > { %v20041_v2 = vadd.f32 %v15847_v33, %v9667_v1  ;;  %v9666_v48 = vadd.f32 %v9503_v25, %v19846_v36  ;;  %v11445_v1 = vld [vmem:[#allocation3 + $0x13d] sm:$0x3f] }
 0x4ff   : > { %v15792_v19 = vpop.f32.mrf.mxu0  ;;  %v15850_v5 = vpop.f32.mrf.mxu1  ;;  %16059 = vmatmul.mubr.msk.f32.gmra.mxu0 %vm4220_vm2, %v19862_v47  ;;  %16117 = vmatmul.mubr.msk.f32.gmra.mxu1 %vm4220_vm2, %v11441_v49 }
 0x500   : > { %v20047_v6 = vadd.f32 %v9931_v34, %v9666_v48  ;;  %v9669_v57 = vadd.f32 %v15792_v19, %v19855_v54  ;;  %16061 = vmatprep.mubr.msk.f32.mxu0 %vm4220_vm2, %v19867_v40  ;;  %16119 = vmatprep.mubr.msk.f32.mxu1 %vm4220_vm2, %v11442_v16 }
 0x501   : > { %v9513_v37 = vpop.f32.mrf.mxu0  ;;  %v9941_v36 = vpop.f32.mrf.mxu1 }
 0x502   : > { %v20053_v12 = vadd.f32 %v15850_v5, %v9669_v57  ;;  %v9668_v47 = vadd.f32 %v9513_v37, %v19860_v56  ;;  %v11838_v5 = vld [vmem:[#allocation3 + $0x26] sm:$0xff] }
 0x503   : > { %v15795_v32 = vpop.f32.mrf.mxu0  ;;  %v15853_v33 = vpop.f32.mrf.mxu1  ;;  %16062 = vmatmul.mubr.msk.f32.gmra.mxu0 %vm4220_vm2, %v11015_v63  ;;  %16120 = vmatmul.mubr.msk.f32.gmra.mxu1 %vm4220_vm2, %v11443_v9  ;;  %v11840_v63 = vld [vmem:[#allocation3 + $0x36] sm:$0xff] }
 0x504   : > { %v20058_v54 = vadd.f32 %v9941_v36, %v9668_v47  ;;  %v9671_v40 = vadd.f32 %v15795_v32, %v19869_v29  ;;  %16064 = vmatprep.mubr.msk.f32.mxu0 %vm4220_vm2, %v11016_v20  ;;  %16122 = vmatprep.mubr.msk.f32.mxu1 %vm4220_vm2, %v11444_v13 }
 0x505   : > { %v9523_v25 = vpop.f32.mrf.mxu0  ;;  %v9951_v56 = vpop.f32.mrf.mxu1 }
 0x506   : > { %v20063_v34 = vadd.f32 %v15853_v33, %v9671_v40  ;;  %v9670_v48 = vadd.f32 %v9523_v25, %v19874_v52  ;;  %v11839_v52 = vld [vmem:[#allocation3 + $0x2e] sm:$0xff] }
 0x507   : > { %v15798_v49 = vpop.f32.mrf.mxu0  ;;  %v15856_v19 = vpop.f32.mrf.mxu1  ;;  %16065 = vmatmul.mubr.msk.f32.gmra.mxu0 %vm4220_vm2, %v11017_v50  ;;  %16123 = vmatmul.mubr.msk.f32.gmra.mxu1 %vm4220_vm2, %v11445_v1  ;;  %v11841_v1 = vld [vmem:[#allocation3 + $0x3e] sm:$0xff] }
 0x508   : > { %v20068_v29 = vadd.f32 %v9951_v56, %v9670_v48  ;;  %v9673_v16 = vadd.f32 %v15798_v49, %v19878_v10  ;;  %16129 = vmatprep.mubr.msk.f32.mxu0 %vm4220_vm2, %v11838_v5  ;;  %v11842_v56 = vld [vmem:[#allocation3 + $0x46] sm:$0xff] }
 0x509   : > { %v9533_v57 = vpop.f32.mrf.mxu0  ;;  %v9961_v37 = vpop.f32.mrf.mxu1 }
 0x50a   : > { %v20072_v36 = vadd.f32 %v15856_v19, %v9673_v16  ;;  %v9672_v20 = vadd.f32 %v9533_v57, %v19883_v62  ;;  %v11843_v57 = vld [vmem:[#allocation3 + $0x4e] sm:$0xff] }
 0x50b   : > { %v15801_v13 = vpop.f32.mrf.mxu0  ;;  %v15859_v47 = vpop.f32.mrf.mxu1  ;;  %16130 = vmatmul.mubr.msk.f32.vlgmr.msra.gmra.mxu0 %vm4220_vm2, %v11839_v52 }
 0x50c   : > { %v20076_v9 = vadd.f32 %v9961_v37, %v9672_v20  ;;  %v9675_v32 = vadd.f32 %v15801_v13, %v19891_v28  ;;  %16132 = vmatprep.mubr.msk.f32.mxu0 %vm4220_vm2, %v11840_v63  ;;  %v11844_v20 = vld [vmem:[#allocation3 + $0x56] sm:$0xff] }
 0x50d   : > { %v9543_v10 = vpop.f32.mrf.mxu0  ;;  %v9971_v33 = vpop.f32.mrf.mxu1 }
 0x50e   : > { %v20080_v40 = vadd.f32 %v15859_v47, %v9675_v32  ;;  %v9674_v50 = vadd.f32 %v9543_v10, %v19897_v21  ;;  %v11845_v10 = vld [vmem:[#allocation3 + $0x5e] sm:$0xff] }
 0x50f   : > { %v15804_v62 = vpop.f32.mrf.mxu0  ;;  %v15862_v25 = vpop.f32.mrf.mxu1  ;;  %16133 = vmatmul.mubr.msk.f32.gmra.mxu0 %vm4220_vm2, %v11841_v1 }
 0x510   : > { %v20084_v48 = vadd.f32 %v9971_v33, %v9674_v50  ;;  %v9677_v49 = vadd.f32 %v15804_v62, %v19902_v27  ;;  %16135 = vmatprep.mubr.msk.f32.mxu0 %vm4220_vm2, %v11842_v56  ;;  %v11846_v50 = vld [vmem:[#allocation3 + $0x66] sm:$0xff] }
 0x511   : > { %v9553_v28 = vpop.f32.mrf.mxu0  ;;  %v9981_v19 = vpop.f32.mrf.mxu1 }
 0x512   : > { %v20088_v5 = vadd.f32 %v15862_v25, %v9677_v49  ;;  %v9676_v16 = vadd.f32 %v9553_v28, %v19907_v24  ;;  %v11847_v28 = vld [vmem:[#allocation3 + $0x6e] sm:$0xff] }
 0x513   : > { %v15807_v21 = vpop.f32.mrf.mxu0  ;;  %v15865_v37 = vpop.f32.mrf.mxu1  ;;  %16136 = vmatmul.mubr.msk.f32.gmra.mxu0 %vm4220_vm2, %v11843_v57 }
 0x514   : > { %v20092_v52 = vadd.f32 %v9981_v19, %v9676_v16  ;;  %v9679_v13 = vadd.f32 %v15807_v21, %v19912_v26  ;;  %16138 = vmatprep.mubr.msk.f32.mxu0 %vm4220_vm2, %v11844_v20  ;;  %v11848_v16 = vld [vmem:[#allocation3 + $0x76] sm:$0xff] }
 0x515   : > { %v9563_v27 = vpop.f32.mrf.mxu0  ;;  %v9991_v47 = vpop.f32.mrf.mxu1 }
 0x516   : > { %v20096_v63 = vadd.f32 %v15865_v37, %v9679_v13  ;;  %v9678_v32 = vadd.f32 %v9563_v27, %v19917_v41  ;;  %v11849_v27 = vld [vmem:[#allocation3 + $0x7e] sm:$0xff] }
 0x517   : > { %v15810_v24 = vpop.f32.mrf.mxu0  ;;  %v15868_v33 = vpop.f32.mrf.mxu1  ;;  %16139 = vmatmul.mubr.msk.f32.gmra.mxu0 %vm4220_vm2, %v11845_v10 }
 0x518   : > { %v20100_v1 = vadd.f32 %v9991_v47, %v9678_v32  ;;  %v9681_v62 = vadd.f32 %v15810_v24, %v19922_v23  ;;  %16141 = vmatprep.mubr.msk.f32.mxu0 %vm4220_vm2, %v11846_v50  ;;  %v11850_v32 = vld [vmem:[#allocation3 + $0x86] sm:$0xff] }
 0x519   : > { %v9573_v26 = vpop.f32.mrf.mxu0  ;;  %v10001_v25 = vpop.f32.mrf.mxu1 }
 0x51a   : > { %v20104_v56 = vadd.f32 %v15868_v33, %v9681_v62  ;;  %v9680_v49 = vadd.f32 %v9573_v26, %v19927_v58  ;;  %v11851_v26 = vld [vmem:[#allocation3 + $0x8e] sm:$0xff] }
 0x51b   : > { %v15813_v41 = vpop.f32.mrf.mxu0  ;;  %v15871_v19 = vpop.f32.mrf.mxu1  ;;  %16142 = vmatmul.mubr.msk.f32.gmra.mxu0 %vm4220_vm2, %v11847_v28 }
 0x51c   : > { %v20108_v57 = vadd.f32 %v10001_v25, %v9680_v49  ;;  %v9683_v21 = vadd.f32 %v15813_v41, %v19932_v4  ;;  %16144 = vmatprep.mubr.msk.f32.mxu0 %vm4220_vm2, %v11848_v16  ;;  %v11852_v49 = vld [vmem:[#allocation3 + $0x96] sm:$0xff] }
 0x51d   : > { %v9583_v23 = vpop.f32.mrf.mxu0  ;;  %v10011_v37 = vpop.f32.mrf.mxu1 }
 0x51e   : > { %v20112_v20 = vadd.f32 %v15871_v19, %v9683_v21  ;;  %v9682_v13 = vadd.f32 %v9583_v23, %v19937_v43  ;;  %v11853_v23 = vld [vmem:[#allocation3 + $0x9e] sm:$0xff] }
 0x51f   : > { %v15816_v58 = vpop.f32.mrf.mxu0  ;;  %v15874_v47 = vpop.f32.mrf.mxu1  ;;  %16145 = vmatmul.mubr.msk.f32.gmra.mxu0 %vm4220_vm2, %v11849_v27 }
 0x520   : > { %v20116_v10 = vadd.f32 %v10011_v37, %v9682_v13  ;;  %v9685_v24 = vadd.f32 %v15816_v58, %v19942_v61  ;;  %16147 = vmatprep.mubr.msk.f32.mxu0 %vm4220_vm2, %v11850_v32  ;;  %v11854_v13 = vld [vmem:[#allocation3 + $0xa6] sm:$0xff] }
 0x521   : > { %v9593_v4 = vpop.f32.mrf.mxu0  ;;  %v10021_v33 = vpop.f32.mrf.mxu1 }
 0x522   : > { %v20120_v50 = vadd.f32 %v15874_v47, %v9685_v24  ;;  %v9684_v62 = vadd.f32 %v9593_v4, %v19947_v30  ;;  %v11855_v4 = vld [vmem:[#allocation3 + $0xae] sm:$0xff] }
 0x523   : > { %v15819_v43 = vpop.f32.mrf.mxu0  ;;  %v15877_v25 = vpop.f32.mrf.mxu1  ;;  %16148 = vmatmul.mubr.msk.f32.gmra.mxu0 %vm4220_vm2, %v11851_v26 }
 0x524   : > { %v20124_v28 = vadd.f32 %v10021_v33, %v9684_v62  ;;  %v9687_v41 = vadd.f32 %v15819_v43, %v19952_v8  ;;  %16150 = vmatprep.mubr.msk.f32.mxu0 %vm4220_vm2, %v11852_v49  ;;  %v11856_v62 = vld [vmem:[#allocation3 + $0xb6] sm:$0xff] }
 0x525   : > { %v9603_v61 = vpop.f32.mrf.mxu0  ;;  %v10031_v19 = vpop.f32.mrf.mxu1 }
 0x526   : > { %v20128_v16 = vadd.f32 %v15877_v25, %v9687_v41  ;;  %v9686_v21 = vadd.f32 %v9603_v61, %v19957_v45  ;;  %v11857_v61 = vld [vmem:[#allocation3 + $0xbe] sm:$0xff] }
 0x527   : > { %v15822_v30 = vpop.f32.mrf.mxu0  ;;  %v15880_v37 = vpop.f32.mrf.mxu1  ;;  %16151 = vmatmul.mubr.msk.f32.gmra.mxu0 %vm4220_vm2, %v11853_v23 }
 0x528   : > { %v20132_v27 = vadd.f32 %v10031_v19, %v9686_v21  ;;  %v9689_v58 = vadd.f32 %v15822_v30, %v19962_v17  ;;  %16153 = vmatprep.mubr.msk.f32.mxu0 %vm4220_vm2, %v11854_v13  ;;  %v11858_v21 = vld [vmem:[#allocation3 + $0xc6] sm:$0xff] }
 0x529   : > { %v9613_v8 = vpop.f32.mrf.mxu0  ;;  %v10041_v47 = vpop.f32.mrf.mxu1 }
 0x52a   : > { %v20136_v32 = vadd.f32 %v15880_v37, %v9689_v58  ;;  %v9688_v24 = vadd.f32 %v9613_v8, %v19967_v59  ;;  %v11859_v8 = vld [vmem:[#allocation3 + $0xce] sm:$0xff] }
 0x52b   : > { %v15825_v45 = vpop.f32.mrf.mxu0  ;;  %v15883_v33 = vpop.f32.mrf.mxu1  ;;  %16154 = vmatmul.mubr.msk.f32.gmra.mxu0 %vm4220_vm2, %v11855_v4 }
 0x52c   : > { %v20140_v26 = vadd.f32 %v10041_v47, %v9688_v24  ;;  %v9691_v43 = vadd.f32 %v15825_v45, %v19972_v60  ;;  %16156 = vmatprep.mubr.msk.f32.mxu0 %vm4220_vm2, %v11856_v62  ;;  %v11860_v24 = vld [vmem:[#allocation3 + $0xd6] sm:$0xff] }
 0x52d   : > { %v9623_v17 = vpop.f32.mrf.mxu0  ;;  %v10051_v25 = vpop.f32.mrf.mxu1 }
 0x52e   : > { %v20144_v49 = vadd.f32 %v15883_v33, %v9691_v43  ;;  %v9690_v41 = vadd.f32 %v9623_v17, %v19977_v14  ;;  %v11861_v17 = vld [vmem:[#allocation3 + $0xde] sm:$0xff] }
 0x52f   : > { %v15828_v59 = vpop.f32.mrf.mxu0  ;;  %v15886_v19 = vpop.f32.mrf.mxu1  ;;  %16157 = vmatmul.mubr.msk.f32.gmra.mxu0 %vm4220_vm2, %v11857_v61 }
 0x530   : > { %v20148_v23 = vadd.f32 %v10051_v25, %v9690_v41  ;;  %v9693_v30 = vadd.f32 %v15828_v59, %v19982_v18  ;;  %16159 = vmatprep.mubr.msk.f32.mxu0 %vm4220_vm2, %v11858_v21  ;;  %v11862_v41 = vld [vmem:[#allocation3 + $0xe6] sm:$0xff] }
 0x531   : > { %v9633_v60 = vpop.f32.mrf.mxu0  ;;  %v10061_v37 = vpop.f32.mrf.mxu1 }
 0x532   : > { %v20152_v13 = vadd.f32 %v15886_v19, %v9693_v30  ;;  %v9692_v58 = vadd.f32 %v9633_v60, %v19987_v51  ;;  %v11863_v60 = vld [vmem:[#allocation3 + $0xee] sm:$0xff] }
 0x533   : > { %v15831_v14 = vpop.f32.mrf.mxu0  ;;  %v15889_v47 = vpop.f32.mrf.mxu1  ;;  %16160 = vmatmul.mubr.msk.f32.gmra.mxu0 %vm4220_vm2, %v11859_v8 }
 0x534   : > { %v20156_v4 = vadd.f32 %v10061_v37, %v9692_v58  ;;  %v9695_v45 = vadd.f32 %v15831_v14, %v19992_v35  ;;  %16162 = vmatprep.mubr.msk.f32.mxu0 %vm4220_vm2, %v11860_v24  ;;  %v11864_v58 = vld [vmem:[#allocation3 + $0xf6] sm:$0xff] }
 0x535   : > { %v9643_v18 = vpop.f32.mrf.mxu0  ;;  %v10071_v33 = vpop.f32.mrf.mxu1 }
 0x536   : > { %v20160_v62 = vadd.f32 %v15889_v47, %v9695_v45  ;;  %v9694_v43 = vadd.f32 %v9643_v18, %v19997_v46  ;;  %v11865_v18 = vld [vmem:[#allocation3 + $0xfe] sm:$0xff] }
 0x537   : > { %v15834_v51 = vpop.f32.mrf.mxu0  ;;  %v15892_v25 = vpop.f32.mrf.mxu1  ;;  %16163 = vmatmul.mubr.msk.f32.gmra.mxu0 %vm4220_vm2, %v11861_v17 }
 0x538   : > { %v20164_v61 = vadd.f32 %v10071_v33, %v9694_v43  ;;  %v9697_v59 = vadd.f32 %v15834_v51, %v20002_v15  ;;  %16165 = vmatprep.mubr.msk.f32.mxu0 %vm4220_vm2, %v11862_v41  ;;  %v11866_v43 = vld [vmem:[#allocation3 + $0x106] sm:$0xff] }
 0x539   : > { %v9653_v35 = vpop.f32.mrf.mxu0  ;;  %v10081_v19 = vpop.f32.mrf.mxu1 }
 0x53a   : > { %v20168_v21 = vadd.f32 %v15892_v25, %v9697_v59  ;;  %v9696_v30 = vadd.f32 %v9653_v35, %v20007_v38  ;;  %v11867_v35 = vld [vmem:[#allocation3 + $0x10e] sm:$0xff] }
 0x53b   : > { %v15899_v46 = vpop.f32.mrf.mxu0  ;;  %v15957_v37 = vpop.f32.mrf.mxu1  ;;  %16166 = vmatmul.mubr.msk.f32.gmra.mxu0 %vm4220_vm2, %v11863_v60 }
 0x53c   : > { %v20172_v8 = vadd.f32 %v10081_v19, %v9696_v30  ;;  %v10519_v14 = vadd.f32 %v15899_v46, %v20018_v53  ;;  %16168 = vmatprep.mubr.msk.f32.mxu0 %vm4220_vm2, %v11864_v58  ;;  %v11868_v30 = vld [vmem:[#allocation3 + $0x116] sm:$0xff] }
 0x53d   : > { %v10339_v15 = vpop.f32.mrf.mxu0  ;;  %v10767_v47 = vpop.f32.mrf.mxu1 }
 0x53e   : > { %v20176_v24 = vadd.f32 %v15957_v37, %v10519_v14  ;;  %v10518_v45 = vadd.f32 %v10339_v15, %v20023_v42  ;;  %v11869_v15 = vld [vmem:[#allocation3 + $0x11e] sm:$0xff] }
 0x53f   : > { %v15902_v38 = vpop.f32.mrf.mxu0  ;;  %v15960_v33 = vpop.f32.mrf.mxu1  ;;  %16169 = vmatmul.mubr.msk.f32.gmra.mxu0 %vm4220_vm2, %v11865_v18 }
 0x540   : > { %v20180_v17 = vadd.f32 %v10767_v47, %v10518_v45  ;;  %v10521_v51 = vadd.f32 %v15902_v38, %v20029_v22  ;;  %16171 = vmatprep.mubr.msk.f32.mxu0 %vm4220_vm2, %v11866_v43  ;;  %v11870_v45 = vld [vmem:[#allocation3 + $0x126] sm:$0xff]  ;;  %v11872_v43 = vld [vmem:[#allocation3 + $0x136] sm:$0xff] }
 0x541   : > { %v10349_v53 = vpop.f32.mrf.mxu0  ;;  %v10777_v25 = vpop.f32.mrf.mxu1 }
 0x542   : > { %v20184_v41 = vadd.f32 %v15960_v33, %v10521_v51  ;;  %v10520_v59 = vadd.f32 %v10349_v53, %v20035_v11 }
 0x543   : > { %v15905_v42 = vpop.f32.mrf.mxu0  ;;  %v15963_v19 = vpop.f32.mrf.mxu1  ;;  %16172 = vmatmul.mubr.msk.f32.gmra.mxu0 %vm4220_vm2, %v11867_v35 }
 0x544   : > { %v20188_v60 = vadd.f32 %v10777_v25, %v10520_v59  ;;  %v10523_v46 = vadd.f32 %v15905_v42, %v20041_v2  ;;  %16174 = vmatprep.mubr.msk.f32.mxu0 %vm4220_vm2, %v11868_v30 }
 0x545   : > { %v10359_v22 = vpop.f32.mrf.mxu0  ;;  %v10787_v37 = vpop.f32.mrf.mxu1 }
 0x546   : > { %v20192_v58 = vadd.f32 %v15963_v19, %v10523_v46  ;;  %v10522_v14 = vadd.f32 %v10359_v22, %v20047_v6  ;;  %v11871_v6 = vld [vmem:[#allocation3 + $0x12e] sm:$0xff] }
 0x547   : > { %v15908_v11 = vpop.f32.mrf.mxu0  ;;  %v15966_v47 = vpop.f32.mrf.mxu1  ;;  %16175 = vmatmul.mubr.msk.f32.gmra.mxu0 %vm4220_vm2, %v11869_v15 }
 0x548   : > { %v20196_v18 = vadd.f32 %v10787_v37, %v10522_v14  ;;  %v10525_v38 = vadd.f32 %v15908_v11, %v20053_v12  ;;  %16177 = vmatprep.mubr.msk.f32.mxu0 %vm4220_vm2, %v11870_v45  ;;  %v11873_v12 = vld [vmem:[#allocation3 + $0x13e] sm:$0x3f] }
 0x549   : > { %v10369_v2 = vpop.f32.mrf.mxu0  ;;  %v10797_v33 = vpop.f32.mrf.mxu1 }
 0x54a   : > { %v20200_v51 = vadd.f32 %v15966_v47, %v10525_v38  ;;  %v10524_v53 = vadd.f32 %v10369_v2, %v20058_v54 }
 0x54b   : > { %v15911_v25 = vpop.f32.mrf.mxu0  ;;  %v15969_v59 = vpop.f32.mrf.mxu1  ;;  %16178 = vmatmul.mubr.msk.f32.gmra.mxu0 %vm4220_vm2, %v11871_v6 }
 0x54c   : > { %v20204_v35 = vadd.f32 %v10797_v33, %v10524_v53  ;;  %v10527_v42 = vadd.f32 %v15911_v25, %v20063_v34  ;;  %16180 = vmatprep.mubr.msk.f32.mxu0 %vm4220_vm2, %v11872_v43 }
 0x54d   : > { %v10379_v19 = vpop.f32.mrf.mxu0  ;;  %v10807_v30 = vpop.f32.mrf.mxu1 }
 0x54e   : > { %v20208_v46 = vadd.f32 %v15969_v59, %v10527_v42  ;;  %v10526_v22 = vadd.f32 %v10379_v19, %v20068_v29 }
 0x54f   : > { %v15914_v37 = vpop.f32.mrf.mxu0  ;;  %v15972_v54 = vpop.f32.mrf.mxu1  ;;  %16181 = vmatmul.mubr.msk.f32.gmra.mxu0 %vm4220_vm2, %v11873_v12 }
 0x550   : > { %v20212_v14 = vadd.f32 %v10807_v30, %v10526_v22  ;;  %v10529_v15 = vadd.f32 %v15914_v37, %v20072_v36 }
 0x551   : > { %v10389_v11 = vpop.f32.mrf.mxu0  ;;  %v10817_v47 = vpop.f32.mrf.mxu1 }
 0x552   : > { %v20215_v34 = vadd.f32 %v15972_v54, %v10529_v15  ;;  %v10528_v45 = vadd.f32 %v10389_v11, %v20076_v9 }
 0x553   : > { %v15917_v38 = vpop.f32.mrf.mxu0  ;;  %v15975_v2 = vpop.f32.mrf.mxu1 }
 0x554   : > { %v20218_v33 = vadd.f32 %v10817_v47, %v10528_v45  ;;  %v10531_v29 = vadd.f32 %v15917_v38, %v20080_v40 }
 0x555   : > { %v10399_v43 = vpop.f32.mrf.mxu0  ;;  %v10827_v53 = vpop.f32.mrf.mxu1 }
 0x556   : > { %v20221_v6 = vadd.f32 %v15975_v2, %v10531_v29  ;;  %v10530_v25 = vadd.f32 %v10399_v43, %v20084_v48 }
 0x557   : > { %v15920_v59 = vpop.f32.mrf.mxu0  ;;  %v15978_v36 = vpop.f32.mrf.mxu1 }
 0x558   : > { %v20224_v42 = vadd.f32 %v10827_v53, %v10530_v25  ;;  %v10533_v12 = vadd.f32 %v15920_v59, %v20088_v5 }
 0x559   : > { %v10409_v19 = vpop.f32.mrf.mxu0  ;;  %v10837_v9 = vpop.f32.mrf.mxu1 }
 0x55a   : > { %v20227_v30 = vadd.f32 %v15978_v36, %v10533_v12  ;;  %v10532_v22 = vadd.f32 %v10409_v19, %v20092_v52 }
 0x55b   : > { %v15923_v37 = vpop.f32.mrf.mxu0  ;;  %v15981_v40 = vpop.f32.mrf.mxu1 }
 0x55c   : > { %v20230_v54 = vadd.f32 %v10837_v9, %v10532_v22  ;;  %v10535_v15 = vadd.f32 %v15923_v37, %v20096_v63 }
 0x55d   : > { %v10419_v11 = vpop.f32.mrf.mxu0  ;;  %v10847_v48 = vpop.f32.mrf.mxu1 }
 0x55e   : > { %v20233_v47 = vadd.f32 %v15981_v40, %v10535_v15  ;;  %v10534_v45 = vadd.f32 %v10419_v11, %v20100_v1 }
 0x55f   : > { %v15926_v38 = vpop.f32.mrf.mxu0  ;;  %v15984_v5 = vpop.f32.mrf.mxu1 }
 0x560   : > { %v20236_v2 = vadd.f32 %v10847_v48, %v10534_v45  ;;  %v10537_v29 = vadd.f32 %v15926_v38, %v20104_v56 }
 0x561   : > { %v10429_v43 = vpop.f32.mrf.mxu0  ;;  %v10857_v52 = vpop.f32.mrf.mxu1 }
 0x562   : > { %v20239_v53 = vadd.f32 %v15984_v5, %v10537_v29  ;;  %v10536_v25 = vadd.f32 %v10429_v43, %v20108_v57 }
 0x563   : > { %v15929_v59 = vpop.f32.mrf.mxu0  ;;  %v15987_v63 = vpop.f32.mrf.mxu1 }
 0x564   : > { %v20242_v36 = vadd.f32 %v10857_v52, %v10536_v25  ;;  %v10539_v12 = vadd.f32 %v15929_v59, %v20112_v20 }
 0x565   : > { %v10439_v19 = vpop.f32.mrf.mxu0  ;;  %v10867_v1 = vpop.f32.mrf.mxu1 }
 0x566   : > { %v20245_v9 = vadd.f32 %v15987_v63, %v10539_v12  ;;  %v10538_v22 = vadd.f32 %v10439_v19, %v20116_v10 }
 0x567   : > { %v15932_v37 = vpop.f32.mrf.mxu0  ;;  %v15990_v56 = vpop.f32.mrf.mxu1 }
 0x568   : > { %v20248_v40 = vadd.f32 %v10867_v1, %v10538_v22  ;;  %v10541_v15 = vadd.f32 %v15932_v37, %v20120_v50 }
 0x569   : > { %v10449_v11 = vpop.f32.mrf.mxu0  ;;  %v10877_v57 = vpop.f32.mrf.mxu1 }
 0x56a   : > { %v20251_v48 = vadd.f32 %v15990_v56, %v10541_v15  ;;  %v10540_v45 = vadd.f32 %v10449_v11, %v20124_v28 }
 0x56b   : > { %v15935_v38 = vpop.f32.mrf.mxu0  ;;  %v15993_v20 = vpop.f32.mrf.mxu1 }
 0x56c   : > { %v20254_v5 = vadd.f32 %v10877_v57, %v10540_v45  ;;  %v10543_v29 = vadd.f32 %v15935_v38, %v20128_v16 }
 0x56d   : > { %v10459_v43 = vpop.f32.mrf.mxu0  ;;  %v10887_v10 = vpop.f32.mrf.mxu1 }
 0x56e   : > { %v20257_v52 = vadd.f32 %v15993_v20, %v10543_v29  ;;  %v10542_v25 = vadd.f32 %v10459_v43, %v20132_v27 }
 0x56f   : > { %v15938_v59 = vpop.f32.mrf.mxu0  ;;  %v15996_v50 = vpop.f32.mrf.mxu1 }
 0x570   : > { %v20260_v63 = vadd.f32 %v10887_v10, %v10542_v25  ;;  %v10545_v12 = vadd.f32 %v15938_v59, %v20136_v32 }
 0x571   : > { %v10469_v19 = vpop.f32.mrf.mxu0  ;;  %v10897_v28 = vpop.f32.mrf.mxu1 }
 0x572   : > { %v20263_v1 = vadd.f32 %v15996_v50, %v10545_v12  ;;  %v10544_v22 = vadd.f32 %v10469_v19, %v20140_v26 }
 0x573   : > { %v15941_v37 = vpop.f32.mrf.mxu0  ;;  %v15999_v16 = vpop.f32.mrf.mxu1 }
 0x574   : > { %v20266_v56 = vadd.f32 %v10897_v28, %v10544_v22  ;;  %v10547_v15 = vadd.f32 %v15941_v37, %v20144_v49 }
 0x575   : > { %v10479_v11 = vpop.f32.mrf.mxu0  ;;  %v10907_v27 = vpop.f32.mrf.mxu1 }
 0x576   : > { %v20269_v57 = vadd.f32 %v15999_v16, %v10547_v15  ;;  %v10546_v45 = vadd.f32 %v10479_v11, %v20148_v23 }
 0x577   : > { %v15944_v38 = vpop.f32.mrf.mxu0  ;;  %v16002_v32 = vpop.f32.mrf.mxu1 }
 0x578   : > { %v20272_v20 = vadd.f32 %v10907_v27, %v10546_v45  ;;  %v10549_v29 = vadd.f32 %v15944_v38, %v20152_v13 }
 0x579   : > { %v10489_v43 = vpop.f32.mrf.mxu0  ;;  %v10917_v26 = vpop.f32.mrf.mxu1 }
 0x57a   : > { %v20275_v10 = vadd.f32 %v16002_v32, %v10549_v29  ;;  %v10548_v25 = vadd.f32 %v10489_v43, %v20156_v4 }
 0x57b   : > { %v15947_v59 = vpop.f32.mrf.mxu0  ;;  %v16005_v49 = vpop.f32.mrf.mxu1 }
 0x57c   : > { %v20278_v50 = vadd.f32 %v10917_v26, %v10548_v25  ;;  %v10551_v12 = vadd.f32 %v15947_v59, %v20160_v62 }
 0x57d   : > { %v10499_v19 = vpop.f32.mrf.mxu0  ;;  %v10927_v23 = vpop.f32.mrf.mxu1 }
 0x57e   : > { %v20281_v28 = vadd.f32 %v16005_v49, %v10551_v12  ;;  %v10550_v22 = vadd.f32 %v10499_v19, %v20164_v61 }
 0x57f   : > { %v15950_v37 = vpop.f32.mrf.mxu0  ;;  %v16008_v13 = vpop.f32.mrf.mxu1 }
 0x580   : > { %v20284_v16 = vadd.f32 %v10927_v23, %v10550_v22  ;;  %v10553_v15 = vadd.f32 %v15950_v37, %v20168_v21 }
 0x581   : > { %v10509_v11 = vpop.f32.mrf.mxu0  ;;  %v10937_v4 = vpop.f32.mrf.mxu1 }
 0x582   : > { %v20287_v27 = vadd.f32 %v16008_v13, %v10553_v15  ;;  %v10552_v45 = vadd.f32 %v10509_v11, %v20172_v8 }
 0x583   : > { %v16015_v38 = vpop.f32.mrf.mxu0  ;;  %v20290_v62 = vpop.f32.mrf.mxu1 }
 0x584   : > { %v20292_v32 = vadd.f32 %v10937_v4, %v10552_v45  ;;  %v20295_v29 = vadd.f32 %v16015_v38, %v20176_v24 }
 0x585   : > { %v11195_v61 = vpop.f32.mrf.mxu0  ;;  %v20300_v26 = vpop.f32.mrf.mxu1 }
 0x586   : > { %v20298_v43 = vadd.f32 %v11195_v61, %v20180_v17 }
 0x587   : > { %v16018_v21 = vpop.f32.mrf.mxu0  ;;  %v20305_v8 = vpop.f32.mrf.mxu1 }
 0x588   : > { %v20303_v25 = vadd.f32 %v16018_v21, %v20184_v41 }
 0x589   : > { %v11205_v59 = vpop.f32.mrf.mxu0  ;;  %v20313_v23 = vpop.f32.mrf.mxu1 }
 0x58a   : > { %v20308_v49 = vadd.f32 %v11205_v59, %v20188_v60 }
 0x58b   : > { %v16021_v12 = vpop.f32.mrf.mxu0  ;;  %v20321_v13 = vpop.f32.mrf.mxu1 }
 0x58c   : > { %v20311_v24 = vadd.f32 %v16021_v12, %v20192_v58 }
 0x58d   : > { %v11215_v19 = vpop.f32.mrf.mxu0  ;;  %v20329_v4 = vpop.f32.mrf.mxu1 }
 0x58e   : > { %v20316_v17 = vadd.f32 %v11215_v19, %v20196_v18 }
 0x58f   : > { %v16024_v22 = vpop.f32.mrf.mxu0  ;;  %v20337_v61 = vpop.f32.mrf.mxu1 }
 0x590   : > { %v20319_v41 = vadd.f32 %v16024_v22, %v20200_v51 }
 0x591   : > { %v11225_v37 = vpop.f32.mrf.mxu0  ;;  %v20345_v12 = vpop.f32.mrf.mxu1 }
 0x592   : > { %v20324_v60 = vadd.f32 %v11225_v37, %v20204_v35 }
 0x593   : > { %v16027_v15 = vpop.f32.mrf.mxu0  ;;  %v20353_v37 = vpop.f32.mrf.mxu1 }
 0x594   : > { %v20327_v58 = vadd.f32 %v16027_v15, %v20208_v46 }
 0x595   : > { %v11235_v11 = vpop.f32.mrf.mxu0 }
 0x596   : > { %v20332_v18 = vadd.f32 %v11235_v11, %v20212_v14 }
 0x597   : > { %v16030_v45 = vpop.f32.mrf.mxu0 }
 0x598   : > { %v20335_v51 = vadd.f32 %v16030_v45, %v20215_v34  ;;  %v20361_v45 = vpop.f32.mrf.mxu1 }
 0x599   : > { %v11245_v38 = vpop.f32.mrf.mxu0 }
 0x59a   : > { %v20340_v35 = vadd.f32 %v11245_v38, %v20218_v33 }
 0x59b   : > { %v16033_v21 = vpop.f32.mrf.mxu0 }
 0x59c   : > { %v20343_v46 = vadd.f32 %v16033_v21, %v20221_v6 }
 0x59d   : > { %v11255_v59 = vpop.f32.mrf.mxu0 }
 0x59e   : > { %v20348_v14 = vadd.f32 %v11255_v59, %v20224_v42  ;;  %v20369_v59 = vpop.f32.mrf.mxu1 }
 0x59f   : > { %v16036_v19 = vpop.f32.mrf.mxu0 }
 0x5a0   : > { %v20351_v34 = vadd.f32 %v16036_v19, %v20227_v30 }
 0x5a1   : > { %v11265_v22 = vpop.f32.mrf.mxu0 }
 0x5a2   : > { %v20356_v33 = vadd.f32 %v11265_v22, %v20230_v54 }
 0x5a3   : > { %v16039_v15 = vpop.f32.mrf.mxu0 }
 0x5a4   : > { %v20359_v6 = vadd.f32 %v16039_v15, %v20233_v47  ;;  %v20377_v15 = vpop.f32.mrf.mxu1 }
 0x5a5   : > { %v11275_v11 = vpop.f32.mrf.mxu0 }
 0x5a6   : > { %v20364_v42 = vadd.f32 %v11275_v11, %v20236_v2 }
 0x5a7   : > { %v16042_v38 = vpop.f32.mrf.mxu0 }
 0x5a8   : > { %v20367_v30 = vadd.f32 %v16042_v38, %v20239_v53 }
 0x5a9   : > { %v11285_v21 = vpop.f32.mrf.mxu0 }
 0x5aa   : > { %21096 = vst [vmem:[#allocation89_spill] sm:$0xff] %v20367_v30  ;;  %v20372_v54 = vadd.f32 %v11285_v21, %v20242_v36  ;;  %v20385_v30 = vpop.f32.mrf.mxu1 }
 0x5ab   : > { %v16045_v19 = vpop.f32.mrf.mxu0 }
 0x5ac   : > { %v20375_v47 = vadd.f32 %v16045_v19, %v20245_v9 }
 0x5ad   : > { %v11295_v22 = vpop.f32.mrf.mxu0 }
 0x5ae   : > { %21097 = vst [vmem:[#allocation59_spill] sm:$0xff] %v20375_v47  ;;  %v20380_v2 = vadd.f32 %v11295_v22, %v20248_v40  ;;  %v20393_v47 = vpop.f32.mrf.mxu1 }
 0x5af   : > { %v16048_v11 = vpop.f32.mrf.mxu0 }
 0x5b0   : > { %v20383_v53 = vadd.f32 %v16048_v11, %v20251_v48 }
 0x5b1   : > { %v11305_v38 = vpop.f32.mrf.mxu0 }
 0x5b2   : > { %21098 = vst [vmem:[#allocation25_spill] sm:$0xff] %v20383_v53  ;;  %v20388_v36 = vadd.f32 %v11305_v38, %v20254_v5  ;;  %v20401_v53 = vpop.f32.mrf.mxu1 }
 0x5b3   : > { %v16051_v21 = vpop.f32.mrf.mxu0 }
 0x5b4   : > { %v20391_v9 = vadd.f32 %v16051_v21, %v20257_v52 }
 0x5b5   : > { %v11315_v19 = vpop.f32.mrf.mxu0 }
 0x5b6   : > { %21099 = vst [vmem:[#allocation49_spill] sm:$0xff] %v20391_v9  ;;  %v20396_v40 = vadd.f32 %v11315_v19, %v20260_v63  ;;  %v20409_v9 = vpop.f32.mrf.mxu1 }
 0x5b7   : > { %v16054_v22 = vpop.f32.mrf.mxu0 }
 0x5b8   : > { %v20399_v48 = vadd.f32 %v16054_v22, %v20263_v1 }
 0x5b9   : > { %v11325_v11 = vpop.f32.mrf.mxu0 }
 0x5ba   : > { %21100 = vst [vmem:[#allocation91_spill] sm:$0xff] %v20399_v48  ;;  %v20404_v5 = vadd.f32 %v11325_v11, %v20266_v56  ;;  %v20417_v48 = vpop.f32.mrf.mxu1 }
 0x5bb   : > { %v16057_v38 = vpop.f32.mrf.mxu0 }
 0x5bc   : > { %v20407_v52 = vadd.f32 %v16057_v38, %v20269_v57 }
 0x5bd   : > { %v11335_v21 = vpop.f32.mrf.mxu0 }
 0x5be   : > { %21101 = vst [vmem:[#allocation54_spill] sm:$0xff] %v20407_v52  ;;  %v20412_v63 = vadd.f32 %v11335_v21, %v20272_v20  ;;  %v20425_v52 = vpop.f32.mrf.mxu1 }
 0x5bf   : > { %v16060_v19 = vpop.f32.mrf.mxu0 }
 0x5c0   : > { %v20415_v1 = vadd.f32 %v16060_v19, %v20275_v10 }
 0x5c1   : > { %v11345_v22 = vpop.f32.mrf.mxu0 }
 0x5c2   : > { %21102 = vst [vmem:[#allocation58_spill] sm:$0xff] %v20415_v1  ;;  %v20420_v56 = vadd.f32 %v11345_v22, %v20278_v50  ;;  %v11803_v1 = vadd.f32 %v20290_v62, %v20295_v29  ;;  %v20435_v50 = vpop.f32.mrf.mxu1 }
 0x5c3   : > { %v16063_v11 = vpop.f32.mrf.mxu0 }
 0x5c4   : > { %21103 = vst [vmem:[#allocation31_spill] sm:$0xff] %v20420_v56  ;;  %v20423_v57 = vadd.f32 %v16063_v11, %v20281_v28  ;;  %v20443_v11 = vld [vmem:[%s20684_s6] ss:$0 sm:$0xff]  ;;  %v20449_v62 = vpop.f32.mrf.mxu1 }
 0x5c5   : > { %v11355_v38 = vpop.f32.mrf.mxu0 }
 0x5c6   : > { %21104 = vst [vmem:[#allocation90_spill] sm:$0xff] %v20423_v57  ;;  %v20428_v20 = vadd.f32 %v11355_v38, %v20284_v16  ;;  %v11802_v16 = vadd.f32 %v20300_v26, %v20298_v43  ;;  %v12309_v43 = vld [vmem:[#allocation2 + $0x13] sm:$0xff] }
 0x5c7   : > { %v16066_v21 = vpop.f32.mrf.mxu0 }
 0x5c8   : > { %21105 = vst [vmem:[#allocation66_spill] sm:$0xff] %v20428_v20  ;;  %v20431_v10 = vadd.f32 %v16066_v21, %v20287_v27  ;;  %v11805_v21 = vadd.f32 %v20305_v8, %v20303_v25 }
 0x5c9   : > { %v11365_v19 = vpop.f32.mrf.mxu0 }
 0x5ca   : > { %21106 = vst [vmem:[#allocation48_spill] sm:$0xff] %v20431_v10  ;;  %v20438_v22 = vadd.f32 %v11365_v19, %v20292_v32  ;;  %v12310_v19 = vld [vmem:[#allocation2 + $0x1b] sm:$0xff]  ;;  %v11804_v10 = vadd.f32 %v20313_v23, %v20308_v49  ;;  %v11806_v49 = vadd.f32 %v20329_v4, %v20316_v17  ;;  %v12312_v23 = vld [vmem:[#allocation2 + $0x2b] sm:$0xff]  ;;  %v11808_v4 = vadd.f32 %v20345_v12, %v20324_v60 }
 0x5cb   : > { %v16131_v28 = vpop.f32.mrf.mxu0 }
 0x5cc   : > { %21107 = vst [vmem:[#allocation9_spill] sm:$0xff] %v20438_v22  ;;  %v12231_v27 = vadd.f32 %v16131_v28, %v11803_v1  ;;  %v20455_v1 = vpop.f32.mrf.mxu1 }
 0x5cd   : > { %v12051_v38 = vpop.f32.mrf.mxu0 }
 0x5ce   : > { %v12274_v29 = vadd.f32 %v20443_v11, %v12231_v27  ;;  %v12230_v32 = vadd.f32 %v12051_v38, %v11802_v16  ;;  %v11807_v16 = vadd.f32 %v20321_v13, %v20311_v24 }
 0x5cf   : > { %v16134_v22 = vpop.f32.mrf.mxu0 }
 0x5d0   : > { %v12346_v20 = vadd.f32 %v12310_v19, %v12274_v29  ;;  %v12273_v57 = vadd.f32 %v20443_v11, %v12230_v32  ;;  %v12233_v56 = vadd.f32 %v16134_v22, %v11805_v21  ;;  %v20466_v19 = vpop.f32.mrf.mxu1 }
 0x5d1   : > { %v12061_v26 = vpop.f32.mrf.mxu0 }
 0x5d2   : > { %v12382_v28 = vmax.f32 %v12346_v20, 0.0  ;;  %v12345_v25 = vadd.f32 %v12309_v43, %v12273_v57  ;;  %v12276_v8 = vadd.f32 %v20443_v11, %v12233_v56  ;;  %v12232_v27 = vadd.f32 %v12061_v26, %v11804_v10  ;;  %v12311_v56 = vld [vmem:[#allocation2 + $0x23] sm:$0xff]  ;;  %v20480_v60 = vpop.f32.mrf.mxu1 }
 0x5d3   : > { %v16137_v38 = vpop.f32.mrf.mxu0  ;;  %v11809_v57 = vadd.f32 %v20337_v61, %v20319_v41 }
 0x5d4   : > { %v12459_v22 = vmul.f32 %v12382_v28, %v17759_v7  ;;  %v12381_v21 = vmax.f32 %v12345_v25, 0.0  ;;  %v12348_v29 = vadd.f32 %v12312_v23, %v12276_v8  ;;  %v12275_v20 = vadd.f32 %v20443_v11, %v12232_v27  ;;  %v12314_v28 = vld [vmem:[#allocation2 + $0x3b] sm:$0xff] }
 0x5d5   : > { %v12235_v10 = vadd.f32 %v16137_v38, %v11807_v16  ;;  %v12071_v32 = vpop.f32.mrf.mxu0  ;;  %v11811_v8 = vadd.f32 %v20353_v37, %v20327_v58  ;;  %v12313_v16 = vld [vmem:[#allocation2 + $0x33] sm:$0xff] }
 0x5d6   : > { %12495 = vst.msk [vmem:[%s18313_s11 + $0x1b] sm:$0xff] %vm4220_vm2, %v12459_v22  ;;  %v12458_v24 = vmul.f32 %v12381_v21, %v17746_v3  ;;  %v12384_v17 = vmax.f32 %v12348_v29, 0.0  ;;  %v12347_v13 = vadd.f32 %v12311_v56, %v12275_v20  ;;  %v12234_v7 = vadd.f32 %v12071_v32, %v11806_v49  ;;  %v12316_v21 = vld [vmem:[#allocation2 + $0x4b] sm:$0xff]  ;;  %v12315_v32 = vld [vmem:[#allocation2 + $0x43] sm:$0xff] }
 0x5d7   : > { %v12278_v43 = vadd.f32 %v20443_v11, %v12235_v10  ;;  %v16140_v26 = vpop.f32.mrf.mxu0  ;;  %v11810_v56 = vadd.f32 %v20361_v45, %v20332_v18  ;;  %v12318_v18 = vld [vmem:[#allocation2 + $0x5b] sm:$0xff] }
 0x5d8   : > { %12494 = vst.msk [vmem:[%s18313_s11 + $0x13] sm:$0xff] %vm4220_vm2, %v12458_v24  ;;  %v12461_v41 = vmul.f32 %v12384_v17, %v20991_v0  ;;  %v12383_v61 = vmax.f32 %v12347_v13, 0.0  ;;  %v12277_v25 = vadd.f32 %v20443_v11, %v12234_v7  ;;  %v12237_v3 = vadd.f32 %v16140_v26, %v11809_v57  ;;  %v20494_v17 = vpop.f32.mrf.mxu1 }
 0x5d9   : > { %v12350_v27 = vadd.f32 %v12314_v28, %v12278_v43  ;;  %v12081_v49 = vpop.f32.mrf.mxu0  ;;  %v11812_v26 = vadd.f32 %v20377_v15, %v20340_v35  ;;  %v21108_v15 = vld [vmem:[#allocation69_spill] sm:$0xff] }
 0x5da   : > { %12497 = vst.msk [vmem:[%s18313_s11 + $0x2b] sm:$0xff] %vm4220_vm2, %v12461_v41  ;;  %v12460_v12 = vmul.f32 %v12383_v61, %v20995_v55  ;;  %v12349_v23 = vadd.f32 %v12313_v16, %v12277_v25  ;;  %v12280_v0 = vadd.f32 %v20443_v11, %v12237_v3  ;;  %v12236_v38 = vadd.f32 %v12081_v49, %v11808_v4  ;;  %v20508_v35 = vpop.f32.mrf.mxu1 }
 0x5db   : > { %v12386_v22 = vmax.f32 %v12350_v27, 0.0  ;;  %v16143_v29 = vpop.f32.mrf.mxu0  ;;  %v11813_v55 = vadd.f32 %v20369_v59, %v20335_v51  ;;  %v11815_v61 = vadd.f32 %v20385_v30, %v20343_v46  ;;  %v12317_v27 = vld [vmem:[#allocation2 + $0x53] sm:$0xff]  ;;  %v11814_v49 = vadd.f32 %v20393_v47, %v20348_v14  ;;  %v12320_v46 = vld [vmem:[#allocation2 + $0x6b] sm:$0xff] }
 0x5dc   : > { %12496 = vst.msk [vmem:[%s18313_s11 + $0x23] sm:$0xff] %vm4220_vm2, %v12460_v12  ;;  %v12385_v58 = vmax.f32 %v12349_v23, 0.0  ;;  %v12352_v37 = vadd.f32 %v12316_v21, %v12280_v0  ;;  %v12279_v20 = vadd.f32 %v20443_v11, %v12236_v38  ;;  %v12239_v57 = vadd.f32 %v16143_v29, %v11811_v8  ;;  %v21109_v23 = vld [vmem:[#allocation73_spill] sm:$0xff] }
 0x5dd   : > { %v12463_v10 = vmul.f32 %v12386_v22, %v20999_v31  ;;  %v12091_v24 = vpop.f32.mrf.mxu0 }
 0x5de   : > { %v12462_v13 = vmul.f32 %v12385_v58, %v21003_v39  ;;  %v12388_v7 = vmax.f32 %v12352_v37, 0.0  ;;  %v12351_v4 = vadd.f32 %v12315_v32, %v12279_v20  ;;  %v12282_v43 = vadd.f32 %v20443_v11, %v12239_v57  ;;  %v12319_v58 = vld [vmem:[#allocation2 + $0x63] sm:$0xff]  ;;  %v20520_v20 = vpop.f32.mrf.mxu1  ;;  %v21110_v32 = vld [vmem:[#allocation72_spill] sm:$0xff] }
 0x5df   : > { %12499 = vst.msk [vmem:[%s18313_s11 + $0x3b] sm:$0xff] %vm4220_vm2, %v12463_v10  ;;  %v12238_v51 = vadd.f32 %v12091_v24, %v11810_v56  ;;  %v16146_v45 = vpop.f32.mrf.mxu0  ;;  %v11816_v10 = vadd.f32 %v20409_v9, %v20356_v33  ;;  %v21112_v9 = vld [vmem:[#allocation75_spill] sm:$0xff] }
 0x5e0   : > { %12498 = vst.msk [vmem:[%s18313_s11 + $0x33] sm:$0xff] %vm4220_vm2, %v12462_v13  ;;  %v12465_v31 = vmul.f32 %v12388_v7, %v21007_v44  ;;  %v12387_v59 = vmax.f32 %v12351_v4, 0.0  ;;  %v12354_v41 = vadd.f32 %v12318_v18, %v12282_v43  ;;  %v12241_v39 = vadd.f32 %v16146_v45, %v11813_v55  ;;  %v12322_v13 = vld [vmem:[#allocation2 + $0x7b] sm:$0xff]  ;;  %v21111_v4 = vld [vmem:[#allocation76_spill] sm:$0xff]  ;;  %v20536_v33 = vpop.f32.mrf.mxu1 }
 0x5e1   : > { %v12281_v28 = vadd.f32 %v20443_v11, %v12238_v51  ;;  %v12101_v25 = vpop.f32.mrf.mxu0  ;;  %v11817_v55 = vadd.f32 %v20401_v53, %v20351_v34  ;;  %v11819_v45 = vadd.f32 %v20417_v48, %v20359_v6  ;;  %v12321_v34 = vld [vmem:[#allocation2 + $0x73] sm:$0xff] }
 0x5e2   : > { %12501 = vst.msk [vmem:[%s18313_s11 + $0x4b] sm:$0xff] %vm4220_vm2, %v12465_v31  ;;  %v12464_v3 = vmul.f32 %v12387_v59, %v21108_v15  ;;  %v12390_v8 = vmax.f32 %v12354_v41, 0.0  ;;  %v12284_v44 = vadd.f32 %v20443_v11, %v12241_v39  ;;  %v12240_v16 = vadd.f32 %v12101_v25, %v11812_v26  ;;  %v21113_v25 = vld [vmem:[#allocation78_spill] sm:$0xff] }
 0x5e3   : > { %v12353_v12 = vadd.f32 %v12317_v27, %v12281_v28  ;;  %v16149_v30 = vpop.f32.mrf.mxu0  ;;  %v11818_v28 = vadd.f32 %v20425_v52, %v20364_v42  ;;  %v20550_v42 = vpop.f32.mrf.mxu1  ;;  %v21115_v52 = vld [vmem:[#allocation77_spill] sm:$0xff] }
 0x5e4   : > { %12500 = vst.msk [vmem:[%s18313_s11 + $0x43] sm:$0xff] %vm4220_vm2, %v12464_v3  ;;  %v12467_v0 = vmul.f32 %v12390_v8, %v21109_v23  ;;  %v12356_v38 = vadd.f32 %v12320_v46, %v12284_v44  ;;  %v12283_v22 = vadd.f32 %v20443_v11, %v12240_v16  ;;  %v12243_v21 = vadd.f32 %v16149_v30, %v11815_v61  ;;  %v12324_v8 = vld [vmem:[#allocation2 + $0x8b] sm:$0xff]  ;;  %v21114_v16 = vld [vmem:[#allocation89_spill] sm:$0xff]  ;;  %v12323_v46 = vld [vmem:[#allocation2 + $0x83] sm:$0xff] }
 0x5e5   : > { %v12389_v29 = vmax.f32 %v12353_v12, 0.0  ;;  %v12111_v37 = vpop.f32.mrf.mxu0 }
 0x5e6   : > { %12503 = vst.msk [vmem:[%s18313_s11 + $0x5b] sm:$0xff] %vm4220_vm2, %v12467_v0  ;;  %v12392_v14 = vmax.f32 %v12356_v38, 0.0  ;;  %v12355_v47 = vadd.f32 %v12319_v58, %v12283_v22  ;;  %v12286_v57 = vadd.f32 %v20443_v11, %v12243_v21  ;;  %v12242_v56 = vadd.f32 %v12111_v37, %v11814_v49 }
 0x5e7   : > { %v12466_v24 = vmul.f32 %v12389_v29, %v21110_v32  ;;  %v16152_v7 = vpop.f32.mrf.mxu0  ;;  %v11821_v49 = vadd.f32 %v20435_v50, %v21114_v16  ;;  %v12326_v29 = vld [vmem:[#allocation2 + $0x9b] sm:$0xff] }
 0x5e8   : > { %v12469_v43 = vmul.f32 %v12392_v14, %v21111_v4  ;;  %v12391_v26 = vmax.f32 %v12355_v47, 0.0  ;;  %v12358_v18 = vadd.f32 %v12322_v13, %v12286_v57  ;;  %v12285_v51 = vadd.f32 %v20443_v11, %v12242_v56  ;;  %v21116_v56 = vld [vmem:[#allocation59_spill] sm:$0xff]  ;;  %v21122_v16 = vld [vmem:[#allocation5_spill] sm:$0xff] }
 0x5e9   : > { %12502 = vst.msk [vmem:[%s18313_s11 + $0x53] sm:$0xff] %vm4220_vm2, %v12466_v24  ;;  %v12245_v53 = vadd.f32 %v16152_v7, %v11817_v55  ;;  %v12121_v31 = vpop.f32.mrf.mxu0  ;;  %v11820_v57 = vadd.f32 %v20449_v62, %v20372_v54  ;;  %v11823_v55 = vadd.f32 %v20455_v1, %v21116_v56  ;;  %v12325_v24 = vld [vmem:[#allocation2 + $0x93] sm:$0xff]  ;;  %v20564_v7 = vpop.f32.mrf.mxu1  ;;  %v21118_v4 = vld [vmem:[#allocation79_spill] sm:$0xff] }
 0x5ea   : > { %12505 = vst.msk [vmem:[%s18313_s11 + $0x6b] sm:$0xff] %vm4220_vm2, %v12469_v43  ;;  %v12468_v59 = vmul.f32 %v12391_v26, %v21112_v9  ;;  %v12394_v41 = vmax.f32 %v12358_v18, 0.0  ;;  %v12357_v39 = vadd.f32 %v12321_v34, %v12285_v51  ;;  %v12244_v61 = vadd.f32 %v12121_v31, %v11816_v10  ;;  %v21117_v10 = vld [vmem:[#allocation80_spill] sm:$0xff]  ;;  %v21119_v34 = vld [vmem:[#allocation38_spill] sm:$0xff]  ;;  %v21125_v56 = vld [vmem:[#allocation39_spill] sm:$0xff] }
 0x5eb   : > { %v12288_v6 = vadd.f32 %v20443_v11, %v12245_v53  ;;  %v16155_v48 = vpop.f32.mrf.mxu0  ;;  %v12328_v54 = vld [vmem:[#allocation2 + $0xab] sm:$0xff] }
 0x5ec   : > { %12504 = vst.msk [vmem:[%s18313_s11 + $0x63] sm:$0xff] %vm4220_vm2, %v12468_v59  ;;  %v12471_v15 = vmul.f32 %v12394_v41, %v21113_v25  ;;  %v12393_v3 = vmax.f32 %v12357_v39, 0.0  ;;  %v12287_v27 = vadd.f32 %v20443_v11, %v12244_v61  ;;  %v12247_v44 = vadd.f32 %v16155_v48, %v11819_v45  ;;  %v21120_v41 = vld [vmem:[#allocation25_spill] sm:$0xff]  ;;  %v12327_v25 = vld [vmem:[#allocation2 + $0xa3] sm:$0xff] }
 0x5ed   : > { %v12360_v12 = vadd.f32 %v12324_v8, %v12288_v6  ;;  %v12131_v30 = vpop.f32.mrf.mxu0  ;;  %v11822_v45 = vadd.f32 %v20466_v19, %v20380_v2  ;;  %v11825_v39 = vadd.f32 %v20480_v60, %v21120_v41  ;;  %v20578_v2 = vpop.f32.mrf.mxu1  ;;  %v21121_v19 = vld [vmem:[#allocation16_spill] sm:$0xff]  ;;  %v11824_v8 = vadd.f32 %v20494_v17, %v20388_v36  ;;  %v12330_v60 = vld [vmem:[#allocation2 + $0xbb] sm:$0xff] }
 0x5ee   : > { %12507 = vst.msk [vmem:[%s18313_s11 + $0x7b] sm:$0xff] %vm4220_vm2, %v12471_v15  ;;  %v12470_v23 = vmul.f32 %v12393_v3, %v21115_v52  ;;  %v12359_v0 = vadd.f32 %v12323_v46, %v12287_v27  ;;  %v12290_v38 = vadd.f32 %v20443_v11, %v12247_v44  ;;  %v12246_v22 = vadd.f32 %v12131_v30, %v11818_v28 }
 0x5ef   : > { %v12396_v21 = vmax.f32 %v12360_v12, 0.0  ;;  %v16158_v58 = vpop.f32.mrf.mxu0 }
 0x5f0   : > { %12506 = vst.msk [vmem:[%s18313_s11 + $0x73] sm:$0xff] %vm4220_vm2, %v12470_v23  ;;  %v12395_v50 = vmax.f32 %v12359_v0, 0.0  ;;  %v12362_v37 = vadd.f32 %v12326_v29, %v12290_v38  ;;  %v12289_v14 = vadd.f32 %v20443_v11, %v12246_v22  ;;  %v12249_v47 = vadd.f32 %v16158_v58, %v11821_v49  ;;  %v12329_v23 = vld [vmem:[#allocation2 + $0xb3] sm:$0xff]  ;;  %v16118_v38 = vpop.f32.mrf.mxu1 }
 0x5f1   : > { %v12473_v32 = vmul.f32 %v12396_v21, %v21117_v10  ;;  %v12141_v13 = vpop.f32.mrf.mxu0  ;;  %v21123_v29 = vld [vmem:[#allocation49_spill] sm:$0xff] }
 0x5f2   : > { %v12472_v43 = vmul.f32 %v12395_v50, %v21118_v4  ;;  %v12398_v26 = vmax.f32 %v12362_v37, 0.0  ;;  %v12361_v18 = vadd.f32 %v12325_v24, %v12289_v14  ;;  %v12292_v51 = vadd.f32 %v20443_v11, %v12249_v47  ;;  %v21124_v37 = vld [vmem:[#allocation17_spill] sm:$0xff]  ;;  %v12332_v47 = vld [vmem:[#allocation2 + $0xcb] sm:$0xff] }
 0x5f3   : > { %12509 = vst.msk [vmem:[%s18313_s11 + $0x8b] sm:$0xff] %vm4220_vm2, %v12473_v32  ;;  %v12248_v62 = vadd.f32 %v12141_v13, %v11820_v57  ;;  %v16161_v1 = vpop.f32.mrf.mxu0  ;;  %v11827_v58 = vadd.f32 %v20508_v35, %v21123_v29  ;;  %v11826_v50 = vadd.f32 %v20520_v20, %v20396_v40  ;;  %v21126_v13 = vld [vmem:[#allocation91_spill] sm:$0xff]  ;;  %v11773_v40 = vpop.f32.mrf.mxu1  ;;  %v21127_v20 = vld [vmem:[#allocation18_spill] sm:$0xff] }
 0x5f4   : > { %12508 = vst.msk [vmem:[%s18313_s11 + $0x83] sm:$0xff] %vm4220_vm2, %v12472_v43  ;;  %v12475_v53 = vmul.f32 %v12398_v26, %v21119_v34  ;;  %v12397_v31 = vmax.f32 %v12361_v18, 0.0  ;;  %v12364_v9 = vadd.f32 %v12328_v54, %v12292_v51  ;;  %v12251_v59 = vadd.f32 %v16161_v1, %v11823_v55  ;;  %v12331_v35 = vld [vmem:[#allocation2 + $0xc3] sm:$0xff]  ;;  %v21128_v34 = vld [vmem:[#allocation40_spill] sm:$0xff] }
 0x5f5   : > { %v12291_v61 = vadd.f32 %v20443_v11, %v12248_v62  ;;  %v12151_v28 = vpop.f32.mrf.mxu0  ;;  %v11829_v4 = vadd.f32 %v20536_v33, %v21126_v13  ;;  %v11828_v62 = vadd.f32 %v20550_v42, %v20404_v5  ;;  %v16121_v5 = vpop.f32.mrf.mxu1  ;;  %v21130_v42 = vld [vmem:[#allocation41_spill] sm:$0xff] }
 0x5f6   : > { %12511 = vst.msk [vmem:[%s18313_s11 + $0x9b] sm:$0xff] %vm4220_vm2, %v12475_v53  ;;  %v12474_v6 = vmul.f32 %v12397_v31, %v21121_v19  ;;  %v12400_v48 = vmax.f32 %v12364_v9, 0.0  ;;  %v12294_v15 = vadd.f32 %v20443_v11, %v12251_v59  ;;  %v12250_v3 = vadd.f32 %v12151_v28, %v11822_v45  ;;  %v12334_v9 = vld [vmem:[#allocation2 + $0xdb] sm:$0xff]  ;;  %v12333_v19 = vld [vmem:[#allocation2 + $0xd3] sm:$0xff] }
 0x5f7   : > { %v12363_v27 = vadd.f32 %v12327_v25, %v12291_v61  ;;  %v16164_v44 = vpop.f32.mrf.mxu0 }
 0x5f8   : > { %12510 = vst.msk [vmem:[%s18313_s11 + $0x93] sm:$0xff] %vm4220_vm2, %v12474_v6  ;;  %v12477_v49 = vmul.f32 %v12400_v48, %v21122_v16  ;;  %v12366_v12 = vadd.f32 %v12330_v60, %v12294_v15  ;;  %v12293_v46 = vadd.f32 %v20443_v11, %v12250_v3  ;;  %v12253_v30 = vadd.f32 %v16164_v44, %v11825_v39  ;;  %v21129_v39 = vld [vmem:[#allocation54_spill] sm:$0xff] }
 0x5f9   : > { %v12399_v52 = vmax.f32 %v12363_v27, 0.0  ;;  %v12161_v0 = vpop.f32.mrf.mxu0  ;;  %v11831_v61 = vadd.f32 %v20564_v7, %v21129_v39  ;;  %v12336_v27 = vld [vmem:[#allocation2 + $0xeb] sm:$0xff] }
 0x5fa   : > { %12513 = vst.msk [vmem:[%s18313_s11 + $0xab] sm:$0xff] %vm4220_vm2, %v12477_v49  ;;  %v12402_v22 = vmax.f32 %v12366_v12, 0.0  ;;  %v12365_v36 = vadd.f32 %v12329_v23, %v12293_v46  ;;  %v12296_v17 = vadd.f32 %v20443_v11, %v12253_v30  ;;  %v12252_v21 = vadd.f32 %v12161_v0, %v11824_v8  ;;  %v21131_v46 = vld [vmem:[#allocation58_spill] sm:$0xff] }
 0x5fb   : > { %v12476_v14 = vmul.f32 %v12399_v52, %v21124_v37  ;;  %v16167_v57 = vpop.f32.mrf.mxu0  ;;  %v11830_v12 = vadd.f32 %v20578_v2, %v20412_v63  ;;  %v11833_v30 = vadd.f32 %v16118_v38, %v21131_v46  ;;  %v21132_v52 = vld [vmem:[#allocation6_spill] sm:$0xff]  ;;  %v21134_v37 = vld [vmem:[#allocation31_spill] sm:$0xff] }
 0x5fc   : > { %v12479_v55 = vmul.f32 %v12402_v22, %v21125_v56  ;;  %v12401_v10 = vmax.f32 %v12365_v36, 0.0  ;;  %v12368_v32 = vadd.f32 %v12332_v47, %v12296_v17  ;;  %v12295_v24 = vadd.f32 %v20443_v11, %v12252_v21  ;;  %v12335_v0 = vld [vmem:[#allocation2 + $0xe3] sm:$0xff]  ;;  %v11783_v36 = vpop.f32.mrf.mxu1  ;;  %v12338_v63 = vld [vmem:[#allocation2 + $0xfb] sm:$0xff] }
 0x5fd   : > { %12512 = vst.msk [vmem:[%s18313_s11 + $0xa3] sm:$0xff] %vm4220_vm2, %v12476_v14  ;;  %v12255_v43 = vadd.f32 %v16167_v57, %v11827_v58  ;;  %v12171_v26 = vpop.f32.mrf.mxu0  ;;  %v21133_v17 = vld [vmem:[#allocation19_spill] sm:$0xff]  ;;  %v11832_v14 = vadd.f32 %v11773_v40, %v21134_v37  ;;  %v21135_v57 = vld [vmem:[#allocation42_spill] sm:$0xff] }
 0x5fe   : > { %12515 = vst.msk [vmem:[%s18313_s11 + $0xbb] sm:$0xff] %vm4220_vm2, %v12479_v55  ;;  %v12478_v18 = vmul.f32 %v12401_v10, %v21127_v20  ;;  %v12404_v51 = vmax.f32 %v12368_v32, 0.0  ;;  %v12367_v45 = vadd.f32 %v12331_v35, %v12295_v24  ;;  %v12254_v54 = vadd.f32 %v12171_v26, %v11826_v50  ;;  %v16124_v38 = vpop.f32.mrf.mxu1  ;;  %v21136_v24 = vld [vmem:[#allocation90_spill] sm:$0xff]  ;;  %v12337_v20 = vld [vmem:[#allocation2 + $0xf3] sm:$0xff] }
 0x5ff   : > { %v12298_v1 = vadd.f32 %v20443_v11, %v12255_v43  ;;  %v16170_v33 = vpop.f32.mrf.mxu0  ;;  %v11835_v13 = vadd.f32 %v16121_v5, %v21136_v24  ;;  %v21137_v43 = vld [vmem:[#allocation20_spill] sm:$0xff] }
 0x600   : > { %12514 = vst.msk [vmem:[%s18313_s11 + $0xb3] sm:$0xff] %vm4220_vm2, %v12478_v18  ;;  %v12481_v53 = vmul.f32 %v12404_v51, %v21128_v34  ;;  %v12403_v31 = vmax.f32 %v12367_v45, 0.0  ;;  %v12297_v59 = vadd.f32 %v20443_v11, %v12254_v54  ;;  %v12257_v41 = vadd.f32 %v16170_v33, %v11829_v4  ;;  %v21138_v45 = vld [vmem:[#allocation66_spill] sm:$0xff]  ;;  %v11793_v34 = vpop.f32.mrf.mxu1 }
 0x601   : > { %v12370_v28 = vadd.f32 %v12334_v9, %v12298_v1  ;;  %v12181_v6 = vpop.f32.mrf.mxu0  ;;  %v11834_v54 = vadd.f32 %v11783_v36, %v21138_v45  ;;  %v12340_v1 = vld [vmem:[#allocation2 + $0x10b] sm:$0xff] }
 0x602   : > { %12517 = vst.msk [vmem:[%s18313_s11 + $0xcb] sm:$0xff] %vm4220_vm2, %v12481_v53  ;;  %v12480_v48 = vmul.f32 %v12403_v31, %v21130_v42  ;;  %v12369_v25 = vadd.f32 %v12333_v19, %v12297_v59  ;;  %v12300_v15 = vadd.f32 %v20443_v11, %v12257_v41  ;;  %v12256_v3 = vadd.f32 %v12181_v6, %v11828_v62  ;;  %v21139_v53 = vld [vmem:[#allocation7_spill] sm:$0xff] }
 0x603   : > { %v12406_v8 = vmax.f32 %v12370_v28, 0.0  ;;  %v16173_v60 = vpop.f32.mrf.mxu0 }
 0x604   : > { %12516 = vst.msk [vmem:[%s18313_s11 + $0xc3] sm:$0xff] %vm4220_vm2, %v12480_v48  ;;  %v12405_v44 = vmax.f32 %v12369_v25, 0.0  ;;  %v12372_v7 = vadd.f32 %v12336_v27, %v12300_v15  ;;  %v12299_v16 = vadd.f32 %v20443_v11, %v12256_v3  ;;  %v12259_v49 = vadd.f32 %v16173_v60, %v11831_v61  ;;  %v12339_v61 = vld [vmem:[#allocation2 + $0x103] sm:$0xff]  ;;  %v21140_v48 = vld [vmem:[#allocation48_spill] sm:$0xff]  ;;  %v21141_v15 = vld [vmem:[#allocation9_spill] sm:$0xff] }
 0x605   : > { %v12483_v23 = vmul.f32 %v12406_v8, %v21132_v52  ;;  %v12191_v22 = vpop.f32.mrf.mxu0  ;;  %v11837_v25 = vadd.f32 %v16124_v38, %v21140_v48  ;;  %v11836_v3 = vadd.f32 %v11793_v34, %v21141_v15  ;;  %v21142_v8 = vld [vmem:[#allocation44_spill] sm:$0xff]  ;;  %v12342_v60 = vld [vmem:[#allocation2 + $0x11b] sm:$0xff] }
 0x606   : > { %v12482_v21 = vmul.f32 %v12405_v44, %v21133_v17  ;;  %v12408_v29 = vmax.f32 %v12372_v7, 0.0  ;;  %v12371_v58 = vadd.f32 %v12335_v0, %v12299_v16  ;;  %v12302_v50 = vadd.f32 %v20443_v11, %v12259_v49  ;;  %v21143_v7 = vld [vmem:[#allocation43_spill] sm:$0xff]  ;;  %v21144_v0 = vld [vmem:[#allocation22_spill] sm:$0xff]  ;;  %v21146_v38 = vld [vmem:[#allocation8_spill] sm:$0xff] }
 0x607   : > { %12519 = vst.msk [vmem:[%s18313_s11 + $0xdb] sm:$0xff] %vm4220_vm2, %v12483_v23  ;;  %v12258_v2 = vadd.f32 %v12191_v22, %v11830_v12  ;;  %v16176_v47 = vpop.f32.mrf.mxu0 }
 0x608   : > { %12518 = vst.msk [vmem:[%s18313_s11 + $0xd3] sm:$0xff] %vm4220_vm2, %v12482_v21  ;;  %v12485_v56 = vmul.f32 %v12408_v29, %v21135_v57  ;;  %v12407_v55 = vmax.f32 %v12371_v58, 0.0  ;;  %v12374_v10 = vadd.f32 %v12338_v63, %v12302_v50  ;;  %v12261_v32 = vadd.f32 %v16176_v47, %v11833_v30  ;;  %v12341_v30 = vld [vmem:[#allocation2 + $0x113] sm:$0xff]  ;;  %v12343_v47 = vld [vmem:[#allocation2 + $0x123] sm:$0xff] }
 0x609   : > { %v12301_v4 = vadd.f32 %v20443_v11, %v12258_v2  ;;  %v12201_v35 = vpop.f32.mrf.mxu0  ;;  %v21145_v58 = vld [vmem:[#allocation21_spill] sm:$0xff] }
 0x60a   : > { %12521 = vst.msk [vmem:[%s18313_s11 + $0xeb] sm:$0xff] %vm4220_vm2, %v12485_v56  ;;  %v12484_v26 = vmul.f32 %v12407_v55, %v21137_v43  ;;  %v12410_v40 = vmax.f32 %v12374_v10, 0.0  ;;  %v12304_v18 = vadd.f32 %v20443_v11, %v12261_v32  ;;  %v12260_v51 = vadd.f32 %v12201_v35, %v11832_v14  ;;  %v12344_v14 = vld [vmem:[#allocation2 + $0x12b] sm:$0x3f] }
 0x60b   : > { %v12373_v62 = vadd.f32 %v12337_v20, %v12301_v4  ;;  %v16179_v33 = vpop.f32.mrf.mxu0  ;;  %v21147_v32 = vld [vmem:[#allocation24_spill] sm:$0xff] }
 0x60c   : > { %12520 = vst.msk [vmem:[%s18313_s11 + $0xe3] sm:$0xff] %vm4220_vm2, %v12484_v26  ;;  %v12487_v31 = vmul.f32 %v12410_v40, %v21139_v53  ;;  %v12376_v9 = vadd.f32 %v12340_v1, %v12304_v18  ;;  %v12303_v59 = vadd.f32 %v20443_v11, %v12260_v51  ;;  %v12263_v41 = vadd.f32 %v16179_v33, %v11835_v13  ;;  %v21148_v13 = vld [vmem:[#allocation45_spill] sm:$0xff] }
 0x60d   : > { %v12409_v39 = vmax.f32 %v12373_v62, 0.0  ;;  %v12211_v28 = vpop.f32.mrf.mxu0 }
 0x60e   : > { %12523 = vst.msk [vmem:[%s18313_s11 + $0xfb] sm:$0xff] %vm4220_vm2, %v12487_v31  ;;  %v12412_v19 = vmax.f32 %v12376_v9, 0.0  ;;  %v12375_v6 = vadd.f32 %v12339_v61, %v12303_v59  ;;  %v12306_v5 = vadd.f32 %v20443_v11, %v12263_v41  ;;  %v12262_v42 = vadd.f32 %v12211_v28, %v11834_v54 }
 0x60f   : > { %v12486_v27 = vmul.f32 %v12409_v39, %v21142_v8  ;;  %v16182_v44 = vpop.f32.mrf.mxu0 }
 0x610   : > { %v12489_v16 = vmul.f32 %v12412_v19, %v21143_v7  ;;  %v12411_v49 = vmax.f32 %v12375_v6, 0.0  ;;  %v12378_v12 = vadd.f32 %v12342_v60, %v12306_v5  ;;  %v12305_v46 = vadd.f32 %v20443_v11, %v12262_v42 }
 0x611   : > { %12522 = vst.msk [vmem:[%s18313_s11 + $0xf3] sm:$0xff] %vm4220_vm2, %v12486_v27  ;;  %v12265_v52 = vadd.f32 %v16182_v44, %v11837_v25  ;;  %v12221_v23 = vpop.f32.mrf.mxu0 }
 0x612   : > { %12525 = vst.msk [vmem:[%s18313_s11 + $0x10b] sm:$0xff] %vm4220_vm2, %v12489_v16  ;;  %v12488_v22 = vmul.f32 %v12411_v49, %v21144_v0  ;;  %v12414_v36 = vmax.f32 %v12378_v12, 0.0  ;;  %v12377_v17 = vadd.f32 %v12341_v30, %v12305_v46  ;;  %v12264_v21 = vadd.f32 %v12221_v23, %v11836_v3 }
 0x613   : > { %v12308_v29 = vadd.f32 %v20443_v11, %v12265_v52 }
 0x614   : > { %12524 = vst.msk [vmem:[%s18313_s11 + $0x103] sm:$0xff] %vm4220_vm2, %v12488_v22  ;;  %v12491_v50 = vmul.f32 %v12414_v36, %v21145_v58  ;;  %v12413_v37 = vmax.f32 %v12377_v17, 0.0  ;;  %v12307_v63 = vadd.f32 %v20443_v11, %v12264_v21 }
 0x615   : > { %v12380_v2 = vadd.f32 %v12344_v14, %v12308_v29 }
 0x616   : > { %12527 = vst.msk [vmem:[%s18313_s11 + $0x11b] sm:$0xff] %vm4220_vm2, %v12491_v50  ;;  %v12490_v57 = vmul.f32 %v12413_v37, %v21146_v38  ;;  %v12379_v56 = vadd.f32 %v12343_v47, %v12307_v63 }
 0x617   : > { %v12416_v55 = vmax.f32 %v12380_v2, 0.0 }
 0x618   : > { %12526 = vst.msk [vmem:[%s18313_s11 + $0x113] sm:$0xff] %vm4220_vm2, %v12490_v57  ;;  %v12415_v10 = vmax.f32 %v12379_v56, 0.0 }
 0x619   : > { %v12493_v24 = vmul.f32 %v12416_v55, %v21147_v32 }
 0x61a   : > { %v12492_v4 = vmul.f32 %v12415_v10, %v21148_v13 }
 0x61b   : > { %12529 = vst.msk [vmem:[%s18313_s11 + $0x12b] sm:$0x3f] %vm4514_vm3, %v12493_v24 }
 0x61c   : > { %12528 = vst.msk [vmem:[%s18313_s11 + $0x123] sm:$0xff] %vm4220_vm2, %v12492_v4 }
 0x61d PF: > { %s18_s27 = sadd.s32 1, %s16206_s27  }
 0x61e   : > { %p15_p4 = scmp.ge.s32.totalorder %s18_s27, 4  }
 0x620   :  { %17 = sbr.rel (!%p15_p4) target bundleno = 1 (0x1), region = 106 }

</bundles_post_ra>
